<compile_context>
chip_gen: v7x
topology: tpu7x:2x2x1
jax: 0.10.0
libtpu: 0.0.40
codegen_flags: <defaults>
</compile_context>

<pallas_src>
import functools
import math

import jax
import jax.numpy as jnp
from jax.experimental import pallas as pl
from jax.experimental.pallas import tpu as pltpu

C = 128            # conv channels
L = 31             # sequence length implied by dense_1 = Linear(31*128, 128)
NUM_CLASSES = 10   # TODO(synk): Params.num_classes.value not given in the spec; using 10.
HEAD_PAD = 128     # lane-dense padding of the logits slab


# ----------------------------------------------------------------------------
# Kernel 1: 4-layer causal dilated conv stack, batch-tiled.
# Activations are (BT*L, C): row = b_local*L + t, channels on the 128 lanes.
# ----------------------------------------------------------------------------
def tcn_conv_kernel(x2_ref, tidx_ref, w1_ref, b1_ref,
                    w2a_ref, w2b_ref, b2_ref,
                    w3a_ref, w3b_ref, b3_ref,
                    w4a_ref, w4b_ref, b4_ref,
                    o_ref):
    t_idx = tidx_ref[...]                       # (BT*L, 1) int32: time within sample

    # conv_1: Cin=1, K=2 -> both taps stacked on K by the wrapper: one MXU matmul.
    h = jnp.dot(x2_ref[...], w1_ref[...],
                preferred_element_type=jnp.float32) + b1_ref[...]
    h = jnp.maximum(h, 0.0)
    # TODO(synk): f.dropout(p=0.05) (train-mode stochastic) omitted; inference identity.

    def causal_block(h, d, wa_ref, wb_ref, b_ref):
        # h_shift[b*L + t] = h[b*L + t - d] for t >= d, else 0 (causal left pad).
        # pltpu.roll is an XLU sublane rotation (np.roll semantics); rows that
        # wrapped across sample boundaries (t < d) are zeroed by the mask.
        h_shift = pltpu.roll(h, shift=d, axis=0)
        h_shift = jnp.where(t_idx < d, 0.0, h_shift)
        y = (jnp.dot(h.astype(jnp.bfloat16), wb_ref[...],
                     preferred_element_type=jnp.float32)
             + jnp.dot(h_shift.astype(jnp.bfloat16), wa_ref[...],
                       preferred_element_type=jnp.float32)
             + b_ref[...])
        return jnp.maximum(y, 0.0)

    h = causal_block(h, 2, w2a_ref, w2b_ref, b2_ref)   # conv_2, dilation 2
    h = causal_block(h, 4, w3a_ref, w3b_ref, b3_ref)   # conv_3, dilation 4
    h = causal_block(h, 8, w4a_ref, w4b_ref, b4_ref)   # conv_4, dilation 8
    o_ref[...] = h.astype(o_ref.dtype)


# ----------------------------------------------------------------------------
# Kernel 2: head  relu(x @ Wd1 + b1) @ Wd2 + b2  then log_softmax, batch-tiled.
# Wd2/bd2 are padded to 128 output lanes (padded-class bias = -1e30 so they
# vanish from the softmax); the wrapper slices back to num_classes.
# ----------------------------------------------------------------------------
def head_kernel(x_ref, wd1_ref, bd1_ref, wd2_ref, bd2_ref, o_ref):
    h = jnp.dot(x_ref[...], wd1_ref[...],
                preferred_element_type=jnp.float32) + bd1_ref[...]
    h = jnp.maximum(h, 0.0)
    logits = jnp.dot(h, wd2_ref[...],
                     preferred_element_type=jnp.float32) + bd2_ref[...]
    m = jnp.max(logits, axis=1, keepdims=True)
    z = logits - m
    lse = jnp.log(jnp.sum(jnp.exp(z), axis=1, keepdims=True))
    o_ref[...] = z - lse


def _full_spec(a):
    nd = a.ndim
    return pl.BlockSpec(a.shape, lambda i, _nd=nd: (0,) * _nd)


# ----------------------------------------------------------------------------
# Wrapper
# ----------------------------------------------------------------------------
def tcn_forward(x_ncw, params, *, batch_tile=16):
    """x_ncw: (B, 1, 31) float32 (torch NCW). Returns (B, NUM_CLASSES) log-probs."""
    (w1, b1, w2a, w2b, b2, w3a, w3b, b3, w4a, w4b, b4,
     wd1, bd1, wd2p, bd2p) = params
    assert batch_tile % 8 == 0, "batch_tile must be a multiple of 8"
    B = x_ncw.shape[0]
    BT = batch_tile
    Bp = -(-B // BT) * BT
    nb = Bp // BT

    x = x_ncw.reshape(B, L).astype(jnp.float32)
    if Bp != B:
        x = jnp.pad(x, ((0, Bp - B), (0, 0)))
    # Stack the two conv_1 taps on K: column 0 = x[t-1] (0 at t=0), column 1 = x[t].
    x_prev = jnp.pad(x[:, :-1], ((0, 0), (1, 0)))
    x2 = jnp.stack([x_prev, x], axis=-1).reshape(Bp * L, 2)
    # Per-row "time within sample" index (identical pattern for every batch tile).
    t_idx = jnp.tile(jnp.arange(L, dtype=jnp.int32), BT).reshape(BT * L, 1)

    conv_out = pl.pallas_call(
        tcn_conv_kernel,
        out_shape=jax.ShapeDtypeStruct((Bp * L, C), jnp.bfloat16),
        grid=(nb,),
        in_specs=[
            pl.BlockSpec((BT * L, 2), lambda i: (i, 0)),
            pl.BlockSpec((BT * L, 1), lambda i: (0, 0)),
            _full_spec(w1), _full_spec(b1),
            _full_spec(w2a), _full_spec(w2b), _full_spec(b2),
            _full_spec(w3a), _full_spec(w3b), _full_spec(b3),
            _full_spec(w4a), _full_spec(w4b), _full_spec(b4),
        ],
        out_specs=pl.BlockSpec((BT * L, C), lambda i: (i, 0)),
        compiler_params=pltpu.CompilerParams(dimension_semantics=("parallel",)),
    )(x2, t_idx, w1, b1, w2a, w2b, b2, w3a, w3b, b3, w4a, w4b, b4)

    # (Bp*L, C) -> (Bp, L*C) is a free row-major reshape; feature index g = t*C + c
    # matches the pre-permuted wd1 rows (== torch's channel-major view(-1, 31*128)).
    xflat = conv_out.reshape(Bp, L * C)

    # Head batch tile: largest multiple of BT that divides Bp and is <= 128.
    BH = BT * math.gcd(nb, max(1, 128 // BT))
    out_pad = pl.pallas_call(
        head_kernel,
        out_shape=jax.ShapeDtypeStruct((Bp, HEAD_PAD), jnp.float32),
        grid=(Bp // BH,),
        in_specs=[
            pl.BlockSpec((BH, L * C), lambda i: (i, 0)),
            _full_spec(wd1), _full_spec(bd1),
            _full_spec(wd2p), _full_spec(bd2p),
        ],
        out_specs=pl.BlockSpec((BH, HEAD_PAD), lambda i: (i, 0)),
        compiler_params=pltpu.CompilerParams(dimension_semantics=("parallel",)),
    )(xflat, wd1, bd1, wd2p, bd2p)

    return out_pad[:B, :NUM_CLASSES]


# ----------------------------------------------------------------------------
# Pure-JAX reference (same parameters, f32 math) for validation.
# ----------------------------------------------------------------------------
def tcn_reference(x_ncw, params):
    (w1, b1, w2a, w2b, b2, w3a, w3b, b3, w4a, w4b, b4,
     wd1, bd1, wd2p, bd2p) = params
    f32 = jnp.float32
    B = x_ncw.shape[0]
    x = x_ncw.reshape(B, L).astype(f32)
    x_prev = jnp.pad(x[:, :-1], ((0, 0), (1, 0)))
    h = x_prev[..., None] * w1[0] + x[..., None] * w1[1] + b1          # (B, L, C)
    h = jnp.maximum(h, 0.0)
    for wa, wb, bb, d in ((w2a, w2b, b2, 2), (w3a, w3b, b3, 4), (w4a, w4b, b4, 8)):
        hs = jnp.pad(h[:, :-d, :], ((0, 0), (d, 0), (0, 0)))
        y = h @ wb.astype(f32) + hs @ wa.astype(f32) + bb
        h = jnp.maximum(y, 0.0)
    flat = h.reshape(B, L * C)                                          # g = t*C + c
    d1 = jnp.maximum(flat @ wd1.astype(f32) + bd1, 0.0)
    logits = d1 @ wd2p[:, :NUM_CLASSES] + bd2p[:, :NUM_CLASSES]
    return jax.nn.log_softmax(logits, axis=1)


# ----------------------------------------------------------------------------
# Deterministic synthetic parameters (shapes from the module __init__), already
# laid out / typed for the kernels.
# ----------------------------------------------------------------------------
def init_params(key, num_classes):
    ks = jax.random.split(key, 16)

    def n(k, shape, scale):
        return jax.random.normal(k, shape, jnp.float32) * scale

    # conv_1: torch weight (128, 1, 2) -> stored (K=2, Cout): row 0 taps x[t-1], row 1 taps x[t].
    w1 = n(ks[0], (2, C), 1.0 / jnp.sqrt(2.0))
    b1 = n(ks[1], (1, C), 0.1)

    convs = []
    for li in range(3):  # conv_2..conv_4: torch weight (128, 128, 2)
        wa = n(ks[2 + 3 * li], (C, C), 1.0 / jnp.sqrt(2.0 * C)).astype(jnp.bfloat16)  # W[:,:,0].T
        wb = n(ks[3 + 3 * li], (C, C), 1.0 / jnp.sqrt(2.0 * C)).astype(jnp.bfloat16)  # W[:,:,1].T
        bb = n(ks[4 + 3 * li], (1, C), 0.05)
        convs += [wa, wb, bb]

    # dense_1: torch weight (128, 31*128), torch feature index f = c*31 + t.
    wd1_torch = n(ks[11], (L * C, C), 1.0 / jnp.sqrt(float(L * C)))   # [f, out]
    # Re-order rows to the kernels' t-major flatten: g = t*C + c.
    wd1 = (wd1_torch.reshape(C, L, C).transpose(1, 0, 2)
           .reshape(L * C, C).astype(jnp.bfloat16))
    bd1 = n(ks[12], (1, C), 0.05)

    # dense_2: torch weight (num_classes, 128) -> (128, num_classes), padded to a
    # lane-dense (128, 128) slab; padded classes get bias -1e30 so they drop out
    # of the softmax, and the wrapper slices the real classes back out.
    wd2 = n(ks[13], (C, num_classes), 1.0 / jnp.sqrt(float(C)))
    bd2 = n(ks[14], (1, num_classes), 0.05)
    wd2p = jnp.zeros((C, HEAD_PAD), jnp.float32).at[:, :num_classes].set(wd2)
    bd2p = jnp.full((1, HEAD_PAD), -1e30, jnp.float32).at[:, :num_classes].set(bd2)

    return (w1, b1, *convs, wd1, bd1, wd2p, bd2p)


if __name__ == "__main__":
    B = 20
    key = jax.random.PRNGKey(0)
    kx, kp = jax.random.split(key)

    # Module input (torch NCW): (B, 1, 31)
    x_ncw = jax.random.normal(kx, (B, 1, L), jnp.float32)
    params = init_params(kp, NUM_CLASSES)

    fwd = jax.jit(functools.partial(tcn_forward, batch_tile=16))
    out = fwd(x_ncw, params)
    jax.block_until_ready(out)

    assert out.shape == (B, NUM_CLASSES)
    assert bool(jnp.all(jnp.isfinite(out)))
    # log_softmax rows must exponentiate-sum to ~1
    assert bool(jnp.all(jnp.abs(jnp.sum(jnp.exp(out), axis=1) - 1.0) < 1e-3))
    # Validate against the pure-JAX reference (same bf16 weights, f32 math).
    ref = jax.jit(tcn_reference)(x_ncw, params)
    err = float(jnp.max(jnp.abs(out - ref)))
    assert err < 1e-1, f"kernel/reference mismatch: max abs err = {err}"
    print("KERNEL_OK")
</pallas_src>

<mosaic_0001>
module attributes {stable_mosaic.version = 11 : i64} {
  func.func @tcn_conv_kernel(%arg0: i32, %arg1: memref<496x2xf32, #tpu.memory_space<vmem>>, %arg2: memref<496x1xi32, #tpu.memory_space<vmem>>, %arg3: memref<2x128xf32, #tpu.memory_space<vmem>>, %arg4: memref<1x128xf32, #tpu.memory_space<vmem>>, %arg5: memref<128x128xbf16, #tpu.memory_space<vmem>>, %arg6: memref<128x128xbf16, #tpu.memory_space<vmem>>, %arg7: memref<1x128xf32, #tpu.memory_space<vmem>>, %arg8: memref<128x128xbf16, #tpu.memory_space<vmem>>, %arg9: memref<128x128xbf16, #tpu.memory_space<vmem>>, %arg10: memref<1x128xf32, #tpu.memory_space<vmem>>, %arg11: memref<128x128xbf16, #tpu.memory_space<vmem>>, %arg12: memref<128x128xbf16, #tpu.memory_space<vmem>>, %arg13: memref<1x128xf32, #tpu.memory_space<vmem>>, %arg14: memref<496x128xbf16, #tpu.memory_space<vmem>>) attributes {dimension_semantics = [#tpu.dimension_semantics<parallel>], iteration_bounds = array<i64: 2>, scalar_prefetch = 0 : i64, scratch_operands = 0 : i64, tpu.core_type = #tpu.core_type<tc>, window_params = [{transform_indices = @transform_0, window_bounds = array<i64: 496, 2>}, {pipeline_mode = #tpu.pipeline_mode<synchronous>, transform_indices = @transform_1, window_bounds = array<i64: 496, 1>}, {pipeline_mode = #tpu.pipeline_mode<synchronous>, transform_indices = @transform_2, window_bounds = array<i64: 2, 128>}, {pipeline_mode = #tpu.pipeline_mode<synchronous>, transform_indices = @transform_3, window_bounds = array<i64: 1, 128>}, {pipeline_mode = #tpu.pipeline_mode<synchronous>, transform_indices = @transform_4, window_bounds = array<i64: 128, 128>}, {pipeline_mode = #tpu.pipeline_mode<synchronous>, transform_indices = @transform_5, window_bounds = array<i64: 128, 128>}, {pipeline_mode = #tpu.pipeline_mode<synchronous>, transform_indices = @transform_6, window_bounds = array<i64: 1, 128>}, {pipeline_mode = #tpu.pipeline_mode<synchronous>, transform_indices = @transform_7, window_bounds = array<i64: 128, 128>}, {pipeline_mode = #tpu.pipeline_mode<synchronous>, transform_indices = @transform_8, window_bounds = array<i64: 128, 128>}, {pipeline_mode = #tpu.pipeline_mode<synchronous>, transform_indices = @transform_9, window_bounds = array<i64: 1, 128>}, {pipeline_mode = #tpu.pipeline_mode<synchronous>, transform_indices = @transform_10, window_bounds = array<i64: 128, 128>}, {pipeline_mode = #tpu.pipeline_mode<synchronous>, transform_indices = @transform_11, window_bounds = array<i64: 128, 128>}, {pipeline_mode = #tpu.pipeline_mode<synchronous>, transform_indices = @transform_12, window_bounds = array<i64: 1, 128>}, {transform_indices = @transform_13, window_bounds = array<i64: 496, 128>}]} {
    %c0 = arith.constant 0 : index
    %c0_0 = arith.constant 0 : index
    %0 = vector.load %arg2[%c0, %c0_0] : memref<496x1xi32, #tpu.memory_space<vmem>>, vector<496x1xi32>
    %c0_1 = arith.constant 0 : index
    %c0_2 = arith.constant 0 : index
    %1 = vector.load %arg1[%c0_1, %c0_2] : memref<496x2xf32, #tpu.memory_space<vmem>>, vector<496x2xf32>
    %c0_3 = arith.constant 0 : index
    %c0_4 = arith.constant 0 : index
    %2 = vector.load %arg3[%c0_3, %c0_4] : memref<2x128xf32, #tpu.memory_space<vmem>>, vector<2x128xf32>
    %cst = arith.constant dense<0.000000e+00> : vector<496x128xf32>
    %3 = tpu.matmul %1, %2, %cst {dimension_numbers = #tpu.dot_dimension_numbers<[1], [0], [0], [1], [0, 0, 1, 1], [], []>} : vector<496x2xf32>, vector<2x128xf32>, vector<496x128xf32> -> vector<496x128xf32>
    %c0_5 = arith.constant 0 : index
    %c0_6 = arith.constant 0 : index
    %4 = vector.load %arg4[%c0_5, %c0_6] : memref<1x128xf32, #tpu.memory_space<vmem>>, vector<1x128xf32>
    %5 = vector.broadcast %4 : vector<1x128xf32> to vector<496x128xf32>
    %6 = arith.addf %3, %5 : vector<496x128xf32>
    %cst_7 = arith.constant 0.000000e+00 : f32
    %7 = vector.broadcast %cst_7 : f32 to vector<496x128xf32>
    %8 = arith.maximumf %6, %7 : vector<496x128xf32>
    %c2_i32 = arith.constant 2 : i32
    %9 = tpu.dynamic_rotate %8 by %c2_i32 dim 0 : vector<496x128xf32>, i32 -> vector<496x128xf32>
    %c2_i32_8 = arith.constant 2 : i32
    %10 = vector.broadcast %c2_i32_8 : i32 to vector<496x1xi32>
    %11 = arith.cmpi slt, %0, %10 : vector<496x1xi32>
    %cst_9 = arith.constant 0.000000e+00 : f32
    %12 = vector.shape_cast %11 : vector<496x1xi1> to vector<496x1xi1>
    %13 = vector.broadcast %12 : vector<496x1xi1> to vector<496x128xi1>
    %14 = vector.broadcast %cst_9 : f32 to vector<496x128xf32>
    %15 = arith.select %13, %14, %9 : vector<496x128xi1>, vector<496x128xf32>
    %16 = arith.truncf %8 : vector<496x128xf32> to vector<496x128xbf16>
    %c0_10 = arith.constant 0 : index
    %c0_11 = arith.constant 0 : index
    %17 = vector.load %arg6[%c0_10, %c0_11] : memref<128x128xbf16, #tpu.memory_space<vmem>>, vector<128x128xbf16>
    %cst_12 = arith.constant dense<0.000000e+00> : vector<496x128xf32>
    %18 = tpu.matmul %16, %17, %cst_12 {dimension_numbers = #tpu.dot_dimension_numbers<[1], [0], [0], [1], [0, 0, 1, 1], [], []>} : vector<496x128xbf16>, vector<128x128xbf16>, vector<496x128xf32> -> vector<496x128xf32>
    %19 = arith.truncf %15 : vector<496x128xf32> to vector<496x128xbf16>
    %c0_13 = arith.constant 0 : index
    %c0_14 = arith.constant 0 : index
    %20 = vector.load %arg5[%c0_13, %c0_14] : memref<128x128xbf16, #tpu.memory_space<vmem>>, vector<128x128xbf16>
    %cst_15 = arith.constant dense<0.000000e+00> : vector<496x128xf32>
    %21 = tpu.matmul %19, %20, %cst_15 {dimension_numbers = #tpu.dot_dimension_numbers<[1], [0], [0], [1], [0, 0, 1, 1], [], []>} : vector<496x128xbf16>, vector<128x128xbf16>, vector<496x128xf32> -> vector<496x128xf32>
    %22 = arith.addf %18, %21 : vector<496x128xf32>
    %c0_16 = arith.constant 0 : index
    %c0_17 = arith.constant 0 : index
    %23 = vector.load %arg7[%c0_16, %c0_17] : memref<1x128xf32, #tpu.memory_space<vmem>>, vector<1x128xf32>
    %24 = vector.broadcast %23 : vector<1x128xf32> to vector<496x128xf32>
    %25 = arith.addf %22, %24 : vector<496x128xf32>
    %cst_18 = arith.constant 0.000000e+00 : f32
    %26 = vector.broadcast %cst_18 : f32 to vector<496x128xf32>
    %27 = arith.maximumf %25, %26 : vector<496x128xf32>
    %c4_i32 = arith.constant 4 : i32
    %28 = tpu.dynamic_rotate %27 by %c4_i32 dim 0 : vector<496x128xf32>, i32 -> vector<496x128xf32>
    %c4_i32_19 = arith.constant 4 : i32
    %29 = vector.broadcast %c4_i32_19 : i32 to vector<496x1xi32>
    %30 = arith.cmpi slt, %0, %29 : vector<496x1xi32>
    %cst_20 = arith.constant 0.000000e+00 : f32
    %31 = vector.shape_cast %30 : vector<496x1xi1> to vector<496x1xi1>
    %32 = vector.broadcast %31 : vector<496x1xi1> to vector<496x128xi1>
    %33 = vector.broadcast %cst_20 : f32 to vector<496x128xf32>
    %34 = arith.select %32, %33, %28 : vector<496x128xi1>, vector<496x128xf32>
    %35 = arith.truncf %27 : vector<496x128xf32> to vector<496x128xbf16>
    %c0_21 = arith.constant 0 : index
    %c0_22 = arith.constant 0 : index
    %36 = vector.load %arg9[%c0_21, %c0_22] : memref<128x128xbf16, #tpu.memory_space<vmem>>, vector<128x128xbf16>
    %cst_23 = arith.constant dense<0.000000e+00> : vector<496x128xf32>
    %37 = tpu.matmul %35, %36, %cst_23 {dimension_numbers = #tpu.dot_dimension_numbers<[1], [0], [0], [1], [0, 0, 1, 1], [], []>} : vector<496x128xbf16>, vector<128x128xbf16>, vector<496x128xf32> -> vector<496x128xf32>
    %38 = arith.truncf %34 : vector<496x128xf32> to vector<496x128xbf16>
    %c0_24 = arith.constant 0 : index
    %c0_25 = arith.constant 0 : index
    %39 = vector.load %arg8[%c0_24, %c0_25] : memref<128x128xbf16, #tpu.memory_space<vmem>>, vector<128x128xbf16>
    %cst_26 = arith.constant dense<0.000000e+00> : vector<496x128xf32>
    %40 = tpu.matmul %38, %39, %cst_26 {dimension_numbers = #tpu.dot_dimension_numbers<[1], [0], [0], [1], [0, 0, 1, 1], [], []>} : vector<496x128xbf16>, vector<128x128xbf16>, vector<496x128xf32> -> vector<496x128xf32>
    %41 = arith.addf %37, %40 : vector<496x128xf32>
    %c0_27 = arith.constant 0 : index
    %c0_28 = arith.constant 0 : index
    %42 = vector.load %arg10[%c0_27, %c0_28] : memref<1x128xf32, #tpu.memory_space<vmem>>, vector<1x128xf32>
    %43 = vector.broadcast %42 : vector<1x128xf32> to vector<496x128xf32>
    %44 = arith.addf %41, %43 : vector<496x128xf32>
    %cst_29 = arith.constant 0.000000e+00 : f32
    %45 = vector.broadcast %cst_29 : f32 to vector<496x128xf32>
    %46 = arith.maximumf %44, %45 : vector<496x128xf32>
    %c8_i32 = arith.constant 8 : i32
    %47 = tpu.dynamic_rotate %46 by %c8_i32 dim 0 : vector<496x128xf32>, i32 -> vector<496x128xf32>
    %c8_i32_30 = arith.constant 8 : i32
    %48 = vector.broadcast %c8_i32_30 : i32 to vector<496x1xi32>
    %49 = arith.cmpi slt, %0, %48 : vector<496x1xi32>
    %cst_31 = arith.constant 0.000000e+00 : f32
    %50 = vector.shape_cast %49 : vector<496x1xi1> to vector<496x1xi1>
    %51 = vector.broadcast %50 : vector<496x1xi1> to vector<496x128xi1>
    %52 = vector.broadcast %cst_31 : f32 to vector<496x128xf32>
    %53 = arith.select %51, %52, %47 : vector<496x128xi1>, vector<496x128xf32>
    %54 = arith.truncf %46 : vector<496x128xf32> to vector<496x128xbf16>
    %c0_32 = arith.constant 0 : index
    %c0_33 = arith.constant 0 : index
    %55 = vector.load %arg12[%c0_32, %c0_33] : memref<128x128xbf16, #tpu.memory_space<vmem>>, vector<128x128xbf16>
    %cst_34 = arith.constant dense<0.000000e+00> : vector<496x128xf32>
    %56 = tpu.matmul %54, %55, %cst_34 {dimension_numbers = #tpu.dot_dimension_numbers<[1], [0], [0], [1], [0, 0, 1, 1], [], []>} : vector<496x128xbf16>, vector<128x128xbf16>, vector<496x128xf32> -> vector<496x128xf32>
    %57 = arith.truncf %53 : vector<496x128xf32> to vector<496x128xbf16>
    %c0_35 = arith.constant 0 : index
    %c0_36 = arith.constant 0 : index
    %58 = vector.load %arg11[%c0_35, %c0_36] : memref<128x128xbf16, #tpu.memory_space<vmem>>, vector<128x128xbf16>
    %cst_37 = arith.constant dense<0.000000e+00> : vector<496x128xf32>
    %59 = tpu.matmul %57, %58, %cst_37 {dimension_numbers = #tpu.dot_dimension_numbers<[1], [0], [0], [1], [0, 0, 1, 1], [], []>} : vector<496x128xbf16>, vector<128x128xbf16>, vector<496x128xf32> -> vector<496x128xf32>
    %60 = arith.addf %56, %59 : vector<496x128xf32>
    %c0_38 = arith.constant 0 : index
    %c0_39 = arith.constant 0 : index
    %61 = vector.load %arg13[%c0_38, %c0_39] : memref<1x128xf32, #tpu.memory_space<vmem>>, vector<1x128xf32>
    %62 = vector.broadcast %61 : vector<1x128xf32> to vector<496x128xf32>
    %63 = arith.addf %60, %62 : vector<496x128xf32>
    %cst_40 = arith.constant 0.000000e+00 : f32
    %64 = vector.broadcast %cst_40 : f32 to vector<496x128xf32>
    %65 = arith.maximumf %63, %64 : vector<496x128xf32>
    %66 = arith.truncf %65 : vector<496x128xf32> to vector<496x128xbf16>
    %c0_41 = arith.constant 0 : index
    %c0_42 = arith.constant 0 : index
    %67 = vector.load %arg14[%c0_41, %c0_42] : memref<496x128xbf16, #tpu.memory_space<vmem>>, vector<496x128xbf16>
    tpu.vector_store %arg14[%c0_41, %c0_42], %66 {strides = array<i32>} : memref<496x128xbf16, #tpu.memory_space<vmem>>, vector<496x128xbf16>,
    return
  }
  func.func @transform_0(%arg0: i32) -> (i32, i32) {
    %c0_i32 = arith.constant 0 : i32
    %c0_i32_0 = arith.constant 0 : i32
    return %arg0, %c0_i32 : i32, i32
  }
  func.func @transform_1(%arg0: i32) -> (i32, i32) {
    %c0_i32 = arith.constant 0 : i32
    %c0_i32_0 = arith.constant 0 : i32
    %c0_i32_1 = arith.constant 0 : i32
    return %c0_i32, %c0_i32_0 : i32, i32
  }
  func.func @transform_2(%arg0: i32) -> (i32, i32) {
    %c0_i32 = arith.constant 0 : i32
    %c0_i32_0 = arith.constant 0 : i32
    %c0_i32_1 = arith.constant 0 : i32
    return %c0_i32, %c0_i32_0 : i32, i32
  }
  func.func @transform_3(%arg0: i32) -> (i32, i32) {
    %c0_i32 = arith.constant 0 : i32
    %c0_i32_0 = arith.constant 0 : i32
    %c0_i32_1 = arith.constant 0 : i32
    return %c0_i32, %c0_i32_0 : i32, i32
  }
  func.func @transform_4(%arg0: i32) -> (i32, i32) {
    %c0_i32 = arith.constant 0 : i32
    %c0_i32_0 = arith.constant 0 : i32
    %c0_i32_1 = arith.constant 0 : i32
    return %c0_i32, %c0_i32_0 : i32, i32
  }
  func.func @transform_5(%arg0: i32) -> (i32, i32) {
    %c0_i32 = arith.constant 0 : i32
    %c0_i32_0 = arith.constant 0 : i32
    %c0_i32_1 = arith.constant 0 : i32
    return %c0_i32, %c0_i32_0 : i32, i32
  }
  func.func @transform_6(%arg0: i32) -> (i32, i32) {
    %c0_i32 = arith.constant 0 : i32
    %c0_i32_0 = arith.constant 0 : i32
    %c0_i32_1 = arith.constant 0 : i32
    return %c0_i32, %c0_i32_0 : i32, i32
  }
  func.func @transform_7(%arg0: i32) -> (i32, i32) {
    %c0_i32 = arith.constant 0 : i32
    %c0_i32_0 = arith.constant 0 : i32
    %c0_i32_1 = arith.constant 0 : i32
    return %c0_i32, %c0_i32_0 : i32, i32
  }
  func.func @transform_8(%arg0: i32) -> (i32, i32) {
    %c0_i32 = arith.constant 0 : i32
    %c0_i32_0 = arith.constant 0 : i32
    %c0_i32_1 = arith.constant 0 : i32
    return %c0_i32, %c0_i32_0 : i32, i32
  }
  func.func @transform_9(%arg0: i32) -> (i32, i32) {
    %c0_i32 = arith.constant 0 : i32
    %c0_i32_0 = arith.constant 0 : i32
    %c0_i32_1 = arith.constant 0 : i32
    return %c0_i32, %c0_i32_0 : i32, i32
  }
  func.func @transform_10(%arg0: i32) -> (i32, i32) {
    %c0_i32 = arith.constant 0 : i32
    %c0_i32_0 = arith.constant 0 : i32
    %c0_i32_1 = arith.constant 0 : i32
    return %c0_i32, %c0_i32_0 : i32, i32
  }
  func.func @transform_11(%arg0: i32) -> (i32, i32) {
    %c0_i32 = arith.constant 0 : i32
    %c0_i32_0 = arith.constant 0 : i32
    %c0_i32_1 = arith.constant 0 : i32
    return %c0_i32, %c0_i32_0 : i32, i32
  }
  func.func @transform_12(%arg0: i32) -> (i32, i32) {
    %c0_i32 = arith.constant 0 : i32
    %c0_i32_0 = arith.constant 0 : i32
    %c0_i32_1 = arith.constant 0 : i32
    return %c0_i32, %c0_i32_0 : i32, i32
  }
  func.func @transform_13(%arg0: i32) -> (i32, i32) {
    %c0_i32 = arith.constant 0 : i32
    %c0_i32_0 = arith.constant 0 : i32
    return %arg0, %c0_i32 : i32, i32
  }
}

module attributes {stable_mosaic.version = 11 : i64} {
  func.func @head_kernel(%arg0: i32, %arg1: memref<32x3968xbf16, #tpu.memory_space<vmem>>, %arg2: memref<3968x128xbf16, #tpu.memory_space<vmem>>, %arg3: memref<1x128xf32, #tpu.memory_space<vmem>>, %arg4: memref<128x128xf32, #tpu.memory_space<vmem>>, %arg5: memref<1x128xf32, #tpu.memory_space<vmem>>, %arg6: memref<32x128xf32, #tpu.memory_space<vmem>>) attributes {dimension_semantics = [#tpu.dimension_semantics<parallel>], iteration_bounds = array<i64: 1>, scalar_prefetch = 0 : i64, scratch_operands = 0 : i64, tpu.core_type = #tpu.core_type<tc>, window_params = [{transform_indices = @transform_0, window_bounds = array<i64: 32, 3968>}, {pipeline_mode = #tpu.pipeline_mode<synchronous>, transform_indices = @transform_1, window_bounds = array<i64: 3968, 128>}, {pipeline_mode = #tpu.pipeline_mode<synchronous>, transform_indices = @transform_2, window_bounds = array<i64: 1, 128>}, {pipeline_mode = #tpu.pipeline_mode<synchronous>, transform_indices = @transform_3, window_bounds = array<i64: 128, 128>}, {pipeline_mode = #tpu.pipeline_mode<synchronous>, transform_indices = @transform_4, window_bounds = array<i64: 1, 128>}, {transform_indices = @transform_5, window_bounds = array<i64: 32, 128>}]} {
    %c0 = arith.constant 0 : index
    %c0_0 = arith.constant 0 : index
    %0 = vector.load %arg1[%c0, %c0_0] : memref<32x3968xbf16, #tpu.memory_space<vmem>>, vector<32x3968xbf16>
    %c0_1 = arith.constant 0 : index
    %c0_2 = arith.constant 0 : index
    %1 = vector.load %arg2[%c0_1, %c0_2] : memref<3968x128xbf16, #tpu.memory_space<vmem>>, vector<3968x128xbf16>
    %cst = arith.constant dense<0.000000e+00> : vector<32x128xf32>
    %2 = tpu.matmul %0, %1, %cst {dimension_numbers = #tpu.dot_dimension_numbers<[1], [0], [0], [1], [0, 0, 1, 1], [], []>} : vector<32x3968xbf16>, vector<3968x128xbf16>, vector<32x128xf32> -> vector<32x128xf32>
    %c0_3 = arith.constant 0 : index
    %c0_4 = arith.constant 0 : index
    %3 = vector.load %arg3[%c0_3, %c0_4] : memref<1x128xf32, #tpu.memory_space<vmem>>, vector<1x128xf32>
    %4 = vector.broadcast %3 : vector<1x128xf32> to vector<32x128xf32>
    %5 = arith.addf %2, %4 : vector<32x128xf32>
    %cst_5 = arith.constant 0.000000e+00 : f32
    %6 = vector.broadcast %cst_5 : f32 to vector<32x128xf32>
    %7 = arith.maximumf %5, %6 : vector<32x128xf32>
    %c0_6 = arith.constant 0 : index
    %c0_7 = arith.constant 0 : index
    %8 = vector.load %arg4[%c0_6, %c0_7] : memref<128x128xf32, #tpu.memory_space<vmem>>, vector<128x128xf32>
    %cst_8 = arith.constant dense<0.000000e+00> : vector<32x128xf32>
    %9 = tpu.matmul %7, %8, %cst_8 {dimension_numbers = #tpu.dot_dimension_numbers<[1], [0], [0], [1], [0, 0, 1, 1], [], []>} : vector<32x128xf32>, vector<128x128xf32>, vector<32x128xf32> -> vector<32x128xf32>
    %c0_9 = arith.constant 0 : index
    %c0_10 = arith.constant 0 : index
    %10 = vector.load %arg5[%c0_9, %c0_10] : memref<1x128xf32, #tpu.memory_space<vmem>>, vector<1x128xf32>
    %11 = vector.broadcast %10 : vector<1x128xf32> to vector<32x128xf32>
    %12 = arith.addf %9, %11 : vector<32x128xf32>
    %cst_11 = arith.constant dense<0xFF800000> : vector<32xf32>
    %13 = vector.multi_reduction <maximumf>, %12, %cst_11 [1] : vector<32x128xf32> to vector<32xf32>
    %14 = vector.shape_cast %13 : vector<32xf32> to vector<32x1xf32>
    %15 = vector.broadcast %14 : vector<32x1xf32> to vector<32x128xf32>
    %16 = arith.subf %12, %15 : vector<32x128xf32>
    %17 = math.exp %16 : vector<32x128xf32>
    %cst_12 = arith.constant dense<0.000000e+00> : vector<32xf32>
    %18 = vector.multi_reduction <add>, %17, %cst_12 [1] : vector<32x128xf32> to vector<32xf32>
    %19 = vector.shape_cast %18 : vector<32xf32> to vector<32x1xf32>
    %20 = math.log %19 : vector<32x1xf32>
    %21 = vector.broadcast %20 : vector<32x1xf32> to vector<32x128xf32>
    %22 = arith.subf %16, %21 : vector<32x128xf32>
    %c0_13 = arith.constant 0 : index
    %c0_14 = arith.constant 0 : index
    %23 = vector.load %arg6[%c0_13, %c0_14] : memref<32x128xf32, #tpu.memory_space<vmem>>, vector<32x128xf32>
    tpu.vector_store %arg6[%c0_13, %c0_14], %22 {strides = array<i32>} : memref<32x128xf32, #tpu.memory_space<vmem>>, vector<32x128xf32>,
    return
  }
  func.func @transform_0(%arg0: i32) -> (i32, i32) {
    %c0_i32 = arith.constant 0 : i32
    %c0_i32_0 = arith.constant 0 : i32
    return %arg0, %c0_i32 : i32, i32
  }
  func.func @transform_1(%arg0: i32) -> (i32, i32) {
    %c0_i32 = arith.constant 0 : i32
    %c0_i32_0 = arith.constant 0 : i32
    %c0_i32_1 = arith.constant 0 : i32
    return %c0_i32, %c0_i32_0 : i32, i32
  }
  func.func @transform_2(%arg0: i32) -> (i32, i32) {
    %c0_i32 = arith.constant 0 : i32
    %c0_i32_0 = arith.constant 0 : i32
    %c0_i32_1 = arith.constant 0 : i32
    return %c0_i32, %c0_i32_0 : i32, i32
  }
  func.func @transform_3(%arg0: i32) -> (i32, i32) {
    %c0_i32 = arith.constant 0 : i32
    %c0_i32_0 = arith.constant 0 : i32
    %c0_i32_1 = arith.constant 0 : i32
    return %c0_i32, %c0_i32_0 : i32, i32
  }
  func.func @transform_4(%arg0: i32) -> (i32, i32) {
    %c0_i32 = arith.constant 0 : i32
    %c0_i32_0 = arith.constant 0 : i32
    %c0_i32_1 = arith.constant 0 : i32
    return %c0_i32, %c0_i32_0 : i32, i32
  }
  func.func @transform_5(%arg0: i32) -> (i32, i32) {
    %c0_i32 = arith.constant 0 : i32
    %c0_i32_0 = arith.constant 0 : i32
    return %arg0, %c0_i32 : i32, i32
  }
}

</mosaic_0001>

<bundles_post_ra>
// kernel: tile.0
= control target key start
LH: loop header
LB: loop body
LE: loop exit
PB: predicated region body
PF: predicated region fallthrough
CT: control target
= control target key end

     0   :  { %s595_s10 = smov 126   ;;  %s596_s11 = smov 127   ;;  %vm3_vm0 = vcmask 7168   ;;  %s1103_s0 = inlined_call_operand.vmem [shape: s32[16,31], index: 0, kind: input, shape index: {}]   ;;  %s1104_s1 = inlined_call_operand.vmem [shape: s32[496,1], index: 1, kind: output, shape index: {}]  }
   0x1   :  { %v25_v0 = vld.sshfl [vmem:[%s1103_s0] sm:$0xff pattern:$0xbcdef012]   ;;  %v451_v2 = vld [vmem:[%s1103_s0 + $0xa] ss:$-1 sm:$0xff]   ;;  %s597_s20 = smov 125  }
   0x2   :  { %v10_v1 = vld.sshfl [vmem:[%s1103_s0] sm:$0xff pattern:$0xabcdef01]   ;;  %26 = vrot.lane.b32.xlu1 %v25_v0, %s595_s10  ;;  %v447_v3 = vld [vmem:[%s1103_s0 + $0x9] ss:$-1 sm:$0xff]   ;;  %s598_s25 = smov 124  }
   0x3   :  { %11 = vrot.lane.b32.xlu0 %v10_v1, %s596_s11  ;;  %v455_v4 = vld [vmem:[%s1103_s0 + $0xb] ss:$-1 sm:$0xff]   ;;  %v40_v5 = vld.sshfl [vmem:[%s1103_s0] sm:$0xff pattern:$0xcdef0123]   ;;  %s599_s30 = smov 123  }
   0x4   :  { %v459_v6 = vld [vmem:[%s1103_s0 + $0xc] ss:$-1 sm:$0xff]   ;;  %v55_v7 = vld.sshfl [vmem:[%s1103_s0] sm:$0xff pattern:$0xdef01234]   ;;  %s600_s6 = smov 122  }
   0x5   :  { %v463_v8 = vld [vmem:[%s1103_s0 + $0xd] ss:$-1 sm:$0xff]   ;;  %v70_v9 = vld.sshfl [vmem:[%s1103_s0] sm:$0xff pattern:$0xef012345]   ;;  %s602_s16 = smov 120  }
   0x6   :  { %35 = vrot.lane.b32.xlu1 %v451_v2, %s595_s10  ;;  %v467_v10 = vld [vmem:[%s1103_s0 + $0xe] ss:$-1 sm:$0xff]   ;;  %v85_v11 = vld.sshfl [vmem:[%s1103_s0] sm:$0xff pattern:$0xf0123456]   ;;  %s603_s19 = smov 119  }
   0x7   :  { %20 = vrot.lane.b32.xlu0 %v447_v3, %s596_s11  ;;  %v471_v12 = vld [vmem:[%s1103_s0 + $0xf] ss:$-1 sm:$0xff]   ;;  %v469_v13 = vld [vmem:[%s1103_s0 + $0x7] ss:$-1 sm:$0xff]   ;;  %s601_s11 = smov 121   ;;  %s604_s22 = smov 118  }
   0x8   :  { %v121_v14 = vld.sshfl [vmem:[%s1103_s0] sm:$0xff pattern:$0x9abcdef0]   ;;  %v473_v15 = vld [vmem:[%s1103_s0 + $0x8] ss:$-1 sm:$0xff]   ;;  %s606_s28 = smov 116  }
   0x9   :  { %v477_v16 = vld [vmem:[%s1103_s0 + $0x9] ss:$-1 sm:$0xff]   ;;  %s607_s2 = smov 115   ;;  %s608_s5 = smov 114  }
   0xa   :  { %50 = vrot.lane.b32.xlu1 %v455_v4, %s597_s20  ;;  %v481_v17 = vld [vmem:[%s1103_s0 + $0xa] ss:$-1 sm:$0xff]   ;;  %s609_s10 = smov 113   ;;  %s610_s15 = smov 112  }
   0xb   :  { %41 = vrot.lane.b32.xlu0 %v40_v5, %s597_s20  ;;  %v485_v18 = vld [vmem:[%s1103_s0 + $0xb] ss:$-1 sm:$0xff]   ;;  %s611_s20 = smov 111   ;;  %s617_s21 = smov 105  }
   0xc   :  { %v489_v19 = vld [vmem:[%s1103_s0 + $0xc] ss:$-1 sm:$0xff]   ;;  %s618_s26 = smov 104   ;;  %s620_s7 = smov 102  }
   0xd   :  { %v493_v20 = vld [vmem:[%s1103_s0 + $0xd] ss:$-1 sm:$0xff]   ;;  %s624_s13 = smov 98  }
   0xe   :  { %65 = vrot.lane.b32.xlu1 %v459_v6, %s598_s25  ;;  %v497_v21 = vld [vmem:[%s1103_s0 + $0xe] ss:$-1 sm:$0xff]  }
   0xf   :  { %56 = vrot.lane.b32.xlu0 %v55_v7, %s598_s25  ;;  %s605_s25 = smov 117   ;;  %v503_v22 = vld [vmem:[%s1103_s0 + $0x7] ss:$-1 sm:$0xff]   ;;  %v501_v23 = vld [vmem:[%s1103_s0 + $0xf] ss:$-1 sm:$0xff]  }
  0x10   :  { %v507_v24 = vld [vmem:[%s1103_s0 + $0x7] ss:$-1 sm:$0xff]   ;;  %v505_v25 = vld [vmem:[%s1103_s0 + $0xf] ss:$-1 sm:$0xff]  }
  0x11   :  { %v511_v26 = vld [vmem:[%s1103_s0 + $0x7] ss:$-1 sm:$0xff]   ;;  %v509_v27 = vld [vmem:[%s1103_s0 + $0xf] ss:$-1 sm:$0xff]  }
  0x12   :  { %80 = vrot.lane.b32.xlu1 %v463_v8, %s599_s30  ;;  %v515_v28 = vld [vmem:[%s1103_s0 + $0x7] ss:$-1 sm:$0xff]   ;;  %v513_v29 = vld [vmem:[%s1103_s0 + $0xf] ss:$-1 sm:$0xff]  }
  0x13   :  { %71 = vrot.lane.b32.xlu0 %v70_v9, %s599_s30  ;;  %v519_v30 = vld [vmem:[%s1103_s0 + $0x7] ss:$-1 sm:$0xff]   ;;  %v517_v31 = vld [vmem:[%s1103_s0 + $0xf] ss:$-1 sm:$0xff]   ;;  %s613_s30 = smov 109  }
  0x14   :  { %v523_v32 = vld [vmem:[%s1103_s0 + $0x7] ss:$-1 sm:$0xff]   ;;  %v521_v33 = vld [vmem:[%s1103_s0 + $0xf] ss:$-1 sm:$0xff]  }
  0x15   :  { %v527_v34 = vld [vmem:[%s1103_s0 + $0x7] ss:$-1 sm:$0xff]   ;;  %v525_v35 = vld [vmem:[%s1103_s0 + $0xf] ss:$-1 sm:$0xff]  }
  0x16   :  { %95 = vrot.lane.b32.xlu1 %v467_v10, %s600_s6  ;;  %v531_v36 = vld [vmem:[%s1103_s0 + $0x7] ss:$-1 sm:$0xff]   ;;  %v529_v37 = vld [vmem:[%s1103_s0 + $0xf] ss:$-1 sm:$0xff]  }
  0x17   :  { %86 = vrot.lane.b32.xlu0 %v85_v11, %s600_s6  ;;  %s614_s6 = smov 108   ;;  %v535_v38 = vld [vmem:[%s1103_s0 + $0x7] ss:$-1 sm:$0xff]   ;;  %v533_v39 = vld [vmem:[%s1103_s0 + $0xf] ss:$-1 sm:$0xff]  }
  0x18   :  { %v539_v40 = vld [vmem:[%s1103_s0 + $0x7] ss:$-1 sm:$0xff]   ;;  %v537_v41 = vld [vmem:[%s1103_s0 + $0xf] ss:$-1 sm:$0xff]  }
  0x19   :  { %v543_v42 = vld [vmem:[%s1103_s0 + $0x7] ss:$-1 sm:$0xff]   ;;  %v541_v43 = vld [vmem:[%s1103_s0 + $0xf] ss:$-1 sm:$0xff]  }
  0x1a   :  { %109 = vrot.lane.b32.xlu1 %v471_v12, %s601_s11  ;;  %v547_v44 = vld [vmem:[%s1103_s0 + $0x7] ss:$-1 sm:$0xff]   ;;  %v545_v45 = vld [vmem:[%s1103_s0 + $0xf] ss:$-1 sm:$0xff]  }
  0x1b   :  { %102 = vrot.lane.b32.xlu0 %v469_v13, %s601_s11  ;;  %s615_s11 = smov 107   ;;  %v551_v46 = vld [vmem:[%s1103_s0 + $0x7] ss:$-1 sm:$0xff]   ;;  %v549_v47 = vld [vmem:[%s1103_s0 + $0xf] ss:$-1 sm:$0xff]  }
  0x1c   :  { %v2_v48 = vld [vmem:[%s1103_s0] sm:$0xff]   ;;  %v443_v49 = vld [vmem:[%s1103_s0 + $0x8] sm:$0xff]  }
  0x1d   :  { %4 = vst.msk [vmem:[%s1104_s1] ss:$31 sm:$0xff] %vm3_vm0, %v2_v48   ;;  %444 = vst.msk [vmem:[%s1104_s1 + $0xf8] ss:$31 sm:$0xff] %vm3_vm0, %v443_v49   ;;  %v555_v50 = vld [vmem:[%s1103_s0 + $0x7] ss:$-1 sm:$0xff]  }
  0x1e   :  { %122 = vrot.lane.b32.xlu1 %v121_v14, %s602_s16  ;;  %v553_v51 = vld [vmem:[%s1103_s0 + $0xf] ss:$-1 sm:$0xff]   ;;  %v559_v52 = vld [vmem:[%s1103_s0 + $0x7] ss:$-1 sm:$0xff]  }
  0x1f   :  { %116 = vrot.lane.b32.xlu0 %v473_v15, %s602_s16  ;;  %s616_s16 = smov 106   ;;  %v557_v53 = vld [vmem:[%s1103_s0 + $0xf] ss:$-1 sm:$0xff]   ;;  %v563_v54 = vld [vmem:[%s1103_s0 + $0x7] ss:$-1 sm:$0xff]  }
  0x20   :  { %v561_v55 = vld [vmem:[%s1103_s0 + $0xf] ss:$-1 sm:$0xff]  }
  0x22   :  { %137 = vrot.lane.b32.xlu1 %v10_v1, %s603_s19 }
  0x23   :  { %131 = vrot.lane.b32.xlu0 %v477_v16, %s603_s19 }
  0x26   :  { %152 = vrot.lane.b32.xlu1 %v25_v0, %s604_s22 }
  0x27   :  { %146 = vrot.lane.b32.xlu0 %v481_v17, %s604_s22 }
  0x2a   :  { %167 = vrot.lane.b32.xlu1 %v40_v5, %s605_s25 }
  0x2b   :  { %161 = vrot.lane.b32.xlu0 %v485_v18, %s605_s25  ;;  %s612_s25 = smov 110  }
  0x2e   :  { %182 = vrot.lane.b32.xlu1 %v55_v7, %s606_s28 }
  0x2f   :  { %176 = vrot.lane.b32.xlu0 %v489_v19, %s606_s28 }
  0x32   :  { %197 = vrot.lane.b32.xlu1 %v70_v9, %s607_s2 }
  0x33   :  { %191 = vrot.lane.b32.xlu0 %v493_v20, %s607_s2  ;;  %s619_s2 = smov 103  }
  0x36   :  { %212 = vrot.lane.b32.xlu1 %v85_v11, %s608_s5 }
  0x37   :  { %206 = vrot.lane.b32.xlu0 %v497_v21, %s608_s5 }
  0x3a   :  { %228 = vrot.lane.b32.xlu1 %v503_v22, %s609_s10 }
  0x3b   :  { %221 = vrot.lane.b32.xlu0 %v501_v23, %s609_s10 }
  0x3e   :  { %242 = vrot.lane.b32.xlu1 %v507_v24, %s610_s15 }
  0x3f   :  { %235 = vrot.lane.b32.xlu0 %v505_v25, %s610_s15 }
  0x42   :  { %256 = vrot.lane.b32.xlu1 %v511_v26, %s611_s20 }
  0x43   :  { %249 = vrot.lane.b32.xlu0 %v509_v27, %s611_s20  ;;  %s621_s20 = smov 101  }
  0x46   :  { %270 = vrot.lane.b32.xlu1 %v515_v28, %s612_s25 }
  0x47   :  { %263 = vrot.lane.b32.xlu0 %v513_v29, %s612_s25  ;;  %s622_s25 = smov 100  }
  0x4a   :  { %284 = vrot.lane.b32.xlu1 %v519_v30, %s613_s30 }
  0x4b   :  { %277 = vrot.lane.b32.xlu0 %v517_v31, %s613_s30  ;;  %s623_s30 = smov 99  }
  0x4e   :  { %298 = vrot.lane.b32.xlu1 %v523_v32, %s614_s6 }
  0x4f   :  { %291 = vrot.lane.b32.xlu0 %v521_v33, %s614_s6 }
  0x52   :  { %312 = vrot.lane.b32.xlu1 %v527_v34, %s615_s11 }
  0x53   :  { %305 = vrot.lane.b32.xlu0 %v525_v35, %s615_s11 }
  0x56   :  { %326 = vrot.lane.b32.xlu1 %v531_v36, %s616_s16 }
  0x57   :  { %319 = vrot.lane.b32.xlu0 %v529_v37, %s616_s16 }
  0x5a   :  { %340 = vrot.lane.b32.xlu1 %v535_v38, %s617_s21 }
  0x5b   :  { %333 = vrot.lane.b32.xlu0 %v533_v39, %s617_s21 }
  0x5e   :  { %354 = vrot.lane.b32.xlu1 %v539_v40, %s618_s26 }
  0x5f   :  { %347 = vrot.lane.b32.xlu0 %v537_v41, %s618_s26 }
  0x62   :  { %368 = vrot.lane.b32.xlu1 %v543_v42, %s619_s2 }
  0x63   :  { %361 = vrot.lane.b32.xlu0 %v541_v43, %s619_s2 }
  0x66   :  { %382 = vrot.lane.b32.xlu1 %v547_v44, %s620_s7 }
  0x67   :  { %375 = vrot.lane.b32.xlu0 %v545_v45, %s620_s7 }
  0x6a   :  { %396 = vrot.lane.b32.xlu1 %v551_v46, %s621_s20 }
  0x6b   :  { %389 = vrot.lane.b32.xlu0 %v549_v47, %s621_s20 }
  0x6e   :  { %410 = vrot.lane.b32.xlu1 %v555_v50, %s622_s25 }
  0x6f   :  { %403 = vrot.lane.b32.xlu0 %v553_v51, %s622_s25 }
  0x72   :  { %424 = vrot.lane.b32.xlu1 %v559_v52, %s623_s30 }
  0x73   :  { %417 = vrot.lane.b32.xlu0 %v557_v53, %s623_s30 }
  0x74   :  { %v27_v56 = vpop.permute.xlu1 %26  }
  0x75   :  { %v12_v57 = vpop.permute.xlu0 %11   ;;  %449 = vst.msk [vmem:[%s1104_s1 + $0x40] ss:$-31 sm:$0x7] %vm3_vm0, %v27_v56   ;;  %450 = vst.msk [vmem:[%s1104_s1 + $0x230] ss:$-31 sm:$0xf8] %vm3_vm0, %v27_v56  }
  0x76   :  { %445 = vst.msk [vmem:[%s1104_s1 + $0x20] ss:$-31 sm:$0x3] %vm3_vm0, %v12_v57   ;;  %446 = vst.msk [vmem:[%s1104_s1 + $0x210] ss:$-31 sm:$0xfc] %vm3_vm0, %v12_v57   ;;  %438 = vrot.lane.b32.xlu1 %v563_v54, %s624_s13 }
  0x77   :  { %431 = vrot.lane.b32.xlu0 %v561_v55, %s624_s13 }
  0x78   :  { %v36_v58 = vpop.permute.xlu1 %35  }
  0x79   :  { %v21_v59 = vpop.permute.xlu0 %20   ;;  %452 = vst.msk [vmem:[%s1104_s1 + $0x138] ss:$-31 sm:$0xff] %vm3_vm0, %v36_v58  }
  0x7a   :  { %448 = vst.msk [vmem:[%s1104_s1 + $0x118] ss:$-31 sm:$0xff] %vm3_vm0, %v21_v59  }
  0x7c   :  { %v51_v60 = vpop.permute.xlu1 %50  }
  0x7d   :  { %v42_v61 = vpop.permute.xlu0 %41   ;;  %456 = vst.msk [vmem:[%s1104_s1 + $0x158] ss:$-31 sm:$0xff] %vm3_vm0, %v51_v60  }
  0x7e   :  { %453 = vst.msk [vmem:[%s1104_s1 + $0x60] ss:$-31 sm:$0xf] %vm3_vm0, %v42_v61   ;;  %454 = vst.msk [vmem:[%s1104_s1 + $0x250] ss:$-31 sm:$0xf0] %vm3_vm0, %v42_v61  }
  0x80   :  { %v66_v62 = vpop.permute.xlu1 %65  }
  0x81   :  { %v57_v63 = vpop.permute.xlu0 %56   ;;  %460 = vst.msk [vmem:[%s1104_s1 + $0x178] ss:$-31 sm:$0xff] %vm3_vm0, %v66_v62  }
  0x82   :  { %457 = vst.msk [vmem:[%s1104_s1 + $0x80] ss:$-31 sm:$0x1f] %vm3_vm0, %v57_v63   ;;  %458 = vst.msk [vmem:[%s1104_s1 + $0x270] ss:$-31 sm:$0xe0] %vm3_vm0, %v57_v63  }
  0x84   :  { %v81_v0 = vpop.permute.xlu1 %80  }
  0x85   :  { %v72_v1 = vpop.permute.xlu0 %71   ;;  %464 = vst.msk [vmem:[%s1104_s1 + $0x198] ss:$-31 sm:$0xff] %vm3_vm0, %v81_v0  }
  0x86   :  { %461 = vst.msk [vmem:[%s1104_s1 + $0xa0] ss:$-31 sm:$0x3f] %vm3_vm0, %v72_v1   ;;  %462 = vst.msk [vmem:[%s1104_s1 + $0x290] ss:$-31 sm:$0xc0] %vm3_vm0, %v72_v1  }
  0x88   :  { %v96_v2 = vpop.permute.xlu1 %95  }
  0x89   :  { %v87_v3 = vpop.permute.xlu0 %86   ;;  %468 = vst.msk [vmem:[%s1104_s1 + $0x1b8] ss:$-31 sm:$0xff] %vm3_vm0, %v96_v2  }
  0x8a   :  { %465 = vst.msk [vmem:[%s1104_s1 + $0xc0] ss:$-31 sm:$0x7f] %vm3_vm0, %v87_v3   ;;  %466 = vst.msk [vmem:[%s1104_s1 + $0x1d0] sm:$0x80] %vm3_vm0, %v87_v3  }
  0x8c   :  { %v110_v4 = vpop.permute.xlu1 %109  }
  0x8d   :  { %v103_v5 = vpop.permute.xlu0 %102   ;;  %472 = vst.msk [vmem:[%s1104_s1 + $0x1d8] ss:$-31 sm:$0xff] %vm3_vm0, %v110_v4  }
  0x8e   :  { %470 = vst.msk [vmem:[%s1104_s1 + $0xe0] ss:$-31 sm:$0xff] %vm3_vm0, %v103_v5  }
  0x90   :  { %v123_v6 = vpop.permute.xlu1 %122  }
  0x91   :  { %v117_v7 = vpop.permute.xlu0 %116   ;;  %475 = vst.msk [vmem:[%s1104_s1 + $0x8] ss:$465 sm:$0x3] %vm3_vm0, %v123_v6   ;;  %476 = vst.msk [vmem:[%s1104_s1 + $0x1f8] ss:$-31 sm:$0xfc] %vm3_vm0, %v123_v6  }
  0x92   :  { %474 = vst.msk [vmem:[%s1104_s1 + $0x100] ss:$-31 sm:$0xff] %vm3_vm0, %v117_v7  }
  0x94   :  { %v138_v8 = vpop.permute.xlu1 %137  }
  0x95   :  { %v132_v9 = vpop.permute.xlu0 %131   ;;  %479 = vst.msk [vmem:[%s1104_s1 + $0x28] ss:$-31 sm:$0x3] %vm3_vm0, %v138_v8   ;;  %480 = vst.msk [vmem:[%s1104_s1 + $0x218] ss:$-31 sm:$0xfc] %vm3_vm0, %v138_v8  }
  0x96   :  { %478 = vst.msk [vmem:[%s1104_s1 + $0x120] ss:$-31 sm:$0xff] %vm3_vm0, %v132_v9  }
  0x98   :  { %v153_v10 = vpop.permute.xlu1 %152  }
  0x99   :  { %v147_v11 = vpop.permute.xlu0 %146   ;;  %483 = vst.msk [vmem:[%s1104_s1 + $0x48] ss:$-31 sm:$0x7] %vm3_vm0, %v153_v10   ;;  %484 = vst.msk [vmem:[%s1104_s1 + $0x238] ss:$-31 sm:$0xf8] %vm3_vm0, %v153_v10  }
  0x9a   :  { %482 = vst.msk [vmem:[%s1104_s1 + $0x140] ss:$-31 sm:$0xff] %vm3_vm0, %v147_v11  }
  0x9c   :  { %v168_v12 = vpop.permute.xlu1 %167  }
  0x9d   :  { %v162_v13 = vpop.permute.xlu0 %161   ;;  %487 = vst.msk [vmem:[%s1104_s1 + $0x68] ss:$-31 sm:$0xf] %vm3_vm0, %v168_v12   ;;  %488 = vst.msk [vmem:[%s1104_s1 + $0x258] ss:$-31 sm:$0xf0] %vm3_vm0, %v168_v12  }
  0x9e   :  { %486 = vst.msk [vmem:[%s1104_s1 + $0x160] ss:$-31 sm:$0xff] %vm3_vm0, %v162_v13  }
  0xa0   :  { %v183_v14 = vpop.permute.xlu1 %182  }
  0xa1   :  { %v177_v15 = vpop.permute.xlu0 %176   ;;  %491 = vst.msk [vmem:[%s1104_s1 + $0x88] ss:$-31 sm:$0x1f] %vm3_vm0, %v183_v14   ;;  %492 = vst.msk [vmem:[%s1104_s1 + $0x278] ss:$-31 sm:$0xe0] %vm3_vm0, %v183_v14  }
  0xa2   :  { %490 = vst.msk [vmem:[%s1104_s1 + $0x180] ss:$-31 sm:$0xff] %vm3_vm0, %v177_v15  }
  0xa4   :  { %v198_v16 = vpop.permute.xlu1 %197  }
  0xa5   :  { %v192_v17 = vpop.permute.xlu0 %191   ;;  %495 = vst.msk [vmem:[%s1104_s1 + $0xa8] ss:$-31 sm:$0x3f] %vm3_vm0, %v198_v16   ;;  %496 = vst.msk [vmem:[%s1104_s1 + $0x298] ss:$-31 sm:$0xc0] %vm3_vm0, %v198_v16  }
  0xa6   :  { %494 = vst.msk [vmem:[%s1104_s1 + $0x1a0] ss:$-31 sm:$0xff] %vm3_vm0, %v192_v17  }
  0xa8   :  { %v213_v18 = vpop.permute.xlu1 %212  }
  0xa9   :  { %v207_v19 = vpop.permute.xlu0 %206   ;;  %499 = vst.msk [vmem:[%s1104_s1 + $0xc8] ss:$-31 sm:$0x7f] %vm3_vm0, %v213_v18   ;;  %500 = vst.msk [vmem:[%s1104_s1 + $0x1d8] sm:$0x80] %vm3_vm0, %v213_v18  }
  0xaa   :  { %498 = vst.msk [vmem:[%s1104_s1 + $0x1c0] ss:$-31 sm:$0xff] %vm3_vm0, %v207_v19  }
  0xac   :  { %v229_v20 = vpop.permute.xlu1 %228  }
  0xad   :  { %v222_v21 = vpop.permute.xlu0 %221   ;;  %504 = vst.msk [vmem:[%s1104_s1 + $0xe8] ss:$-31 sm:$0xff] %vm3_vm0, %v229_v20  }
  0xae   :  { %502 = vst.msk [vmem:[%s1104_s1 + $0x1e0] ss:$-31 sm:$0xff] %vm3_vm0, %v222_v21  }
  0xb0   :  { %v243_v22 = vpop.permute.xlu1 %242  }
  0xb1   :  { %v236_v23 = vpop.permute.xlu0 %235   ;;  %508 = vst.msk [vmem:[%s1104_s1 + $0xe9] ss:$-31 sm:$0xff] %vm3_vm0, %v243_v22  }
  0xb2   :  { %506 = vst.msk [vmem:[%s1104_s1 + $0x1e1] ss:$-31 sm:$0xff] %vm3_vm0, %v236_v23  }
  0xb4   :  { %v257_v24 = vpop.permute.xlu1 %256  }
  0xb5   :  { %v250_v25 = vpop.permute.xlu0 %249   ;;  %512 = vst.msk [vmem:[%s1104_s1 + $0xea] ss:$-31 sm:$0xff] %vm3_vm0, %v257_v24  }
  0xb6   :  { %510 = vst.msk [vmem:[%s1104_s1 + $0x1e2] ss:$-31 sm:$0xff] %vm3_vm0, %v250_v25  }
  0xb8   :  { %v271_v26 = vpop.permute.xlu1 %270  }
  0xb9   :  { %v264_v27 = vpop.permute.xlu0 %263   ;;  %516 = vst.msk [vmem:[%s1104_s1 + $0xeb] ss:$-31 sm:$0xff] %vm3_vm0, %v271_v26  }
  0xba   :  { %514 = vst.msk [vmem:[%s1104_s1 + $0x1e3] ss:$-31 sm:$0xff] %vm3_vm0, %v264_v27  }
  0xbc   :  { %v285_v28 = vpop.permute.xlu1 %284  }
  0xbd   :  { %v278_v29 = vpop.permute.xlu0 %277   ;;  %520 = vst.msk [vmem:[%s1104_s1 + $0xec] ss:$-31 sm:$0xff] %vm3_vm0, %v285_v28  }
  0xbe   :  { %518 = vst.msk [vmem:[%s1104_s1 + $0x1e4] ss:$-31 sm:$0xff] %vm3_vm0, %v278_v29  }
  0xc0   :  { %v299_v30 = vpop.permute.xlu1 %298  }
  0xc1   :  { %v292_v31 = vpop.permute.xlu0 %291   ;;  %524 = vst.msk [vmem:[%s1104_s1 + $0xed] ss:$-31 sm:$0xff] %vm3_vm0, %v299_v30  }
  0xc2   :  { %522 = vst.msk [vmem:[%s1104_s1 + $0x1e5] ss:$-31 sm:$0xff] %vm3_vm0, %v292_v31  }
  0xc4   :  { %v313_v32 = vpop.permute.xlu1 %312  }
  0xc5   :  { %v306_v33 = vpop.permute.xlu0 %305   ;;  %528 = vst.msk [vmem:[%s1104_s1 + $0xee] ss:$-31 sm:$0xff] %vm3_vm0, %v313_v32  }
  0xc6   :  { %526 = vst.msk [vmem:[%s1104_s1 + $0x1e6] ss:$-31 sm:$0xff] %vm3_vm0, %v306_v33  }
  0xc8   :  { %v327_v34 = vpop.permute.xlu1 %326  }
  0xc9   :  { %v320_v35 = vpop.permute.xlu0 %319   ;;  %532 = vst.msk [vmem:[%s1104_s1 + $0xef] ss:$-31 sm:$0xff] %vm3_vm0, %v327_v34  }
  0xca   :  { %530 = vst.msk [vmem:[%s1104_s1 + $0x1e7] ss:$-31 sm:$0xff] %vm3_vm0, %v320_v35  }
  0xcc   :  { %v341_v36 = vpop.permute.xlu1 %340  }
  0xcd   :  { %v334_v37 = vpop.permute.xlu0 %333   ;;  %536 = vst.msk [vmem:[%s1104_s1 + $0xf0] ss:$-31 sm:$0xff] %vm3_vm0, %v341_v36  }
  0xce   :  { %534 = vst.msk [vmem:[%s1104_s1 + $0x1e8] ss:$-31 sm:$0xff] %vm3_vm0, %v334_v37  }
  0xd0   :  { %v355_v38 = vpop.permute.xlu1 %354  }
  0xd1   :  { %v348_v39 = vpop.permute.xlu0 %347   ;;  %540 = vst.msk [vmem:[%s1104_s1 + $0xf1] ss:$-31 sm:$0xff] %vm3_vm0, %v355_v38  }
  0xd2   :  { %538 = vst.msk [vmem:[%s1104_s1 + $0x1e9] ss:$-31 sm:$0xff] %vm3_vm0, %v348_v39  }
  0xd4   :  { %v369_v40 = vpop.permute.xlu1 %368  }
  0xd5   :  { %v362_v41 = vpop.permute.xlu0 %361   ;;  %544 = vst.msk [vmem:[%s1104_s1 + $0xf2] ss:$-31 sm:$0xff] %vm3_vm0, %v369_v40  }
  0xd6   :  { %542 = vst.msk [vmem:[%s1104_s1 + $0x1ea] ss:$-31 sm:$0xff] %vm3_vm0, %v362_v41  }
  0xd8   :  { %v383_v42 = vpop.permute.xlu1 %382  }
  0xd9   :  { %v376_v43 = vpop.permute.xlu0 %375   ;;  %548 = vst.msk [vmem:[%s1104_s1 + $0xf3] ss:$-31 sm:$0xff] %vm3_vm0, %v383_v42  }
  0xda   :  { %546 = vst.msk [vmem:[%s1104_s1 + $0x1eb] ss:$-31 sm:$0xff] %vm3_vm0, %v376_v43  }
  0xdc   :  { %v397_v44 = vpop.permute.xlu1 %396  }
  0xdd   :  { %v390_v45 = vpop.permute.xlu0 %389   ;;  %552 = vst.msk [vmem:[%s1104_s1 + $0xf4] ss:$-31 sm:$0xff] %vm3_vm0, %v397_v44  }
  0xde   :  { %550 = vst.msk [vmem:[%s1104_s1 + $0x1ec] ss:$-31 sm:$0xff] %vm3_vm0, %v390_v45  }
  0xe0   :  { %v411_v46 = vpop.permute.xlu1 %410  }
  0xe1   :  { %v404_v47 = vpop.permute.xlu0 %403   ;;  %556 = vst.msk [vmem:[%s1104_s1 + $0xf5] ss:$-31 sm:$0xff] %vm3_vm0, %v411_v46  }
  0xe2   :  { %554 = vst.msk [vmem:[%s1104_s1 + $0x1ed] ss:$-31 sm:$0xff] %vm3_vm0, %v404_v47  }
  0xe4   :  { %v425_v48 = vpop.permute.xlu1 %424  }
  0xe5   :  { %v418_v49 = vpop.permute.xlu0 %417   ;;  %560 = vst.msk [vmem:[%s1104_s1 + $0xf6] ss:$-31 sm:$0xff] %vm3_vm0, %v425_v48  }
  0xe6   :  { %558 = vst.msk [vmem:[%s1104_s1 + $0x1ee] ss:$-31 sm:$0xff] %vm3_vm0, %v418_v49  }
  0xe8   :  { %v439_v50 = vpop.permute.xlu1 %438  }
  0xe9   :  { %v432_v51 = vpop.permute.xlu0 %431   ;;  %564 = vst.msk [vmem:[%s1104_s1 + $0xf7] ss:$-31 sm:$0xff] %vm3_vm0, %v439_v50  }
  0xea   :  { %562 = vst.msk [vmem:[%s1104_s1 + $0x1ef] ss:$-31 sm:$0xff] %vm3_vm0, %v432_v51  }

// kernel: tcn_forward.3
= control target key start
LH: loop header
LB: loop body
LE: loop exit
PB: predicated region body
PF: predicated region fallthrough
CT: control target
= control target key end

     0   :  { %s5597_s1 = inlined_call_operand.vmem [shape: bf16[3968,128], index: 1, kind: input, shape index: {}]   ;;  %s5598_s0 = inlined_call_operand.vmem [shape: bf16[32,3968], index: 0, kind: input, shape index: {}]   ;;  %s5599_s2 = inlined_call_operand.vmem [shape: f32[1,128], index: 2, kind: input, shape index: {}]   ;;  %s5600_s3 = inlined_call_operand.vmem [shape: f32[128,128], index: 3, kind: input, shape index: {}]   ;;  %s5601_s4 = inlined_call_operand.vmem [shape: f32[1,128], index: 4, kind: input, shape index: {}]   ;;  %s5602_s5 = inlined_call_operand.vmem [shape: f32[32,128], index: 5, kind: output, shape index: {}]  }
   0x1   :  { %v4200_v0 = vld [vmem:[%s5597_s1 + $0x40] sm:$0xff]   ;;  %v4204_v4 = vld [vmem:[%s5597_s1 + $0x48] sm:$0xff]   ;;  %v4208_v8 = vld [vmem:[%s5597_s1 + $0x50] sm:$0xff]  }
   0x2   :  { %v4201_v1 = vld [vmem:[%s5597_s1] sm:$0xff]   ;;  %3644 = vmatprep.subr.bf16.mxu0 %v4200_v0  ;;  %v4205_v5 = vld [vmem:[%s5597_s1 + $0x8] sm:$0xff]   ;;  %v4209_v9 = vld [vmem:[%s5597_s1 + $0x10] sm:$0xff]  }
   0x3   :  { %v4202_v2 = vld [vmem:[%s5597_s1 + $0xc0] sm:$0xff]   ;;  %3645 = vmatpush3.bf16.msra.mxu0 %v4201_v1  ;;  %v4206_v6 = vld [vmem:[%s5597_s1 + $0xc8] sm:$0xff]   ;;  %v4210_v10 = vld [vmem:[%s5597_s1 + $0xd0] sm:$0xff]  }
   0x4   :  { %v4203_v3 = vld [vmem:[%s5597_s1 + $0x80] sm:$0xff]   ;;  %3672 = vmatprep.subr.bf16.mxu1 %v4202_v2  ;;  %3646 = vmatprep.subr.bf16.mxu0 %v4204_v4  ;;  %v4207_v7 = vld [vmem:[%s5597_s1 + $0x88] sm:$0xff]   ;;  %v4211_v11 = vld [vmem:[%s5597_s1 + $0x90] sm:$0xff]  }
   0x5   :  { %3673 = vmatpush3.bf16.msra.mxu1 %v4203_v3  ;;  %v4212_v12 = vld [vmem:[%s5597_s1 + $0x58] sm:$0xff]   ;;  %v4216_v16 = vld [vmem:[%s5597_s1 + $0x60] sm:$0xff]   ;;  %v4220_v20 = vld [vmem:[%s5597_s1 + $0x68] sm:$0xff]  }
   0x6   :  { %3674 = vmatprep.subr.bf16.mxu1 %v4206_v6  ;;  %v4213_v13 = vld [vmem:[%s5597_s1 + $0x18] sm:$0xff]   ;;  %v4217_v17 = vld [vmem:[%s5597_s1 + $0x20] sm:$0xff]   ;;  %v4221_v21 = vld [vmem:[%s5597_s1 + $0x28] sm:$0xff]  }
   0x7   :  { %3647 = vmatpush3.bf16.msra.mxu0 %v4205_v5  ;;  %v4214_v14 = vld [vmem:[%s5597_s1 + $0xd8] sm:$0xff]   ;;  %v4218_v18 = vld [vmem:[%s5597_s1 + $0xe0] sm:$0xff]   ;;  %v4222_v22 = vld [vmem:[%s5597_s1 + $0xe8] sm:$0xff]  }
   0x8   :  { %3648 = vmatprep.subr.bf16.mxu0 %v4208_v8  ;;  %v4215_v15 = vld [vmem:[%s5597_s1 + $0x98] sm:$0xff]   ;;  %v4219_v19 = vld [vmem:[%s5597_s1 + $0xa0] sm:$0xff]   ;;  %v4223_v23 = vld [vmem:[%s5597_s1 + $0xa8] sm:$0xff]  }
   0x9   :  { %3675 = vmatpush3.bf16.msra.mxu1 %v4207_v7  ;;  %v4224_v24 = vld [vmem:[%s5597_s1 + $0x70] sm:$0xff]   ;;  %v4228_v28 = vld [vmem:[%s5597_s1 + $0x78] sm:$0xff]   ;;  %v4233_v32 = vld [vmem:[%s5598_s0 + $0x4] ss:$124 sps:$4 sm:$0xff]  }
   0xa   :  { %3676 = vmatprep.subr.bf16.mxu1 %v4210_v10  ;;  %v4225_v25 = vld [vmem:[%s5597_s1 + $0x30] sm:$0xff]   ;;  %v4229_v29 = vld [vmem:[%s5597_s1 + $0x38] sm:$0xff]   ;;  %2420 = vmatprep.mubr.bf16.mxu0 %v4233_v32  ;;  %v4235_v34 = vld [vmem:[%s5597_s1 + $0x140] sm:$0xff]  }
   0xb   :  { %3649 = vmatpush3.bf16.msra.mxu0 %v4209_v9  ;;  %v4226_v26 = vld [vmem:[%s5597_s1 + $0xf0] sm:$0xff]   ;;  %v4230_v30 = vld [vmem:[%s5597_s1 + $0xf8] sm:$0xff]   ;;  %v4236_v35 = vld [vmem:[%s5598_s0 + $0x8] ss:$124 sps:$4 sm:$0xff]  }
   0xc   :  { %3650 = vmatprep.subr.bf16.mxu0 %v4212_v12  ;;  %v4227_v27 = vld [vmem:[%s5597_s1 + $0xb0] sm:$0xff]   ;;  %v4231_v31 = vld [vmem:[%s5598_s0] ss:$124 sps:$4 sm:$0xff]   ;;  %v4238_v36 = vld [vmem:[%s5598_s0 + $0xc] ss:$124 sps:$4 sm:$0xff]  }
   0xd   :  { %3677 = vmatpush3.bf16.msra.mxu1 %v4211_v11  ;;  %v4234_v33 = vld [vmem:[%s5597_s1 + $0xb8] sm:$0xff]   ;;  %v4239_v37 = vld [vmem:[%s5597_s1 + $0x100] sm:$0xff]   ;;  %2469 = vmatprep.mubr.bf16.mxu1 %v4238_v36  ;;  %v4242_v40 = vld [vmem:[%s5597_s1 + $0x148] sm:$0xff]  }
   0xe   :  { %3678 = vmatprep.subr.bf16.mxu1 %v4214_v14  ;;  %v4240_v38 = vld [vmem:[%s5597_s1 + $0x1c0] sm:$0xff]   ;;  %v4243_v41 = vld [vmem:[%s5597_s1 + $0x108] sm:$0xff]   ;;  %v4246_v44 = vld [vmem:[%s5597_s1 + $0x150] sm:$0xff]  }
   0xf   :  { %3651 = vmatpush3.bf16.msra.mxu0 %v4213_v13  ;;  %v4241_v39 = vld [vmem:[%s5597_s1 + $0x180] sm:$0xff]   ;;  %v4244_v42 = vld [vmem:[%s5597_s1 + $0x1c8] sm:$0xff]   ;;  %v4247_v45 = vld [vmem:[%s5597_s1 + $0x110] sm:$0xff]  }
  0x10   :  { %3652 = vmatprep.subr.bf16.mxu0 %v4216_v16  ;;  %v4245_v43 = vld [vmem:[%s5597_s1 + $0x188] sm:$0xff]   ;;  %v4248_v46 = vld [vmem:[%s5597_s1 + $0x1d0] sm:$0xff]   ;;  %v4250_v48 = vld [vmem:[%s5597_s1 + $0x158] sm:$0xff]  }
  0x11   :  { %3679 = vmatpush3.bf16.msra.mxu1 %v4215_v15  ;;  %v4249_v47 = vld [vmem:[%s5597_s1 + $0x190] sm:$0xff]   ;;  %v4251_v49 = vld [vmem:[%s5597_s1 + $0x118] sm:$0xff]   ;;  %v4254_v52 = vld [vmem:[%s5597_s1 + $0x160] sm:$0xff]  }
  0x12   :  { %3680 = vmatprep.subr.bf16.mxu1 %v4218_v18  ;;  %v4252_v50 = vld [vmem:[%s5597_s1 + $0x1d8] sm:$0xff]   ;;  %v4255_v53 = vld [vmem:[%s5597_s1 + $0x120] sm:$0xff]   ;;  %v4258_v56 = vld [vmem:[%s5597_s1 + $0x168] sm:$0xff]  }
  0x13   :  { %3653 = vmatpush3.bf16.msra.mxu0 %v4217_v17  ;;  %v4253_v51 = vld [vmem:[%s5597_s1 + $0x198] sm:$0xff]   ;;  %v4256_v54 = vld [vmem:[%s5597_s1 + $0x1e0] sm:$0xff]   ;;  %v4261_v58 = vld [vmem:[%s5597_s1 + $0x128] sm:$0xff]  }
  0x14   :  { %3654 = vmatprep.subr.bf16.mxu0 %v4220_v20  ;;  %v4257_v55 = vld [vmem:[%s5597_s1 + $0x1a0] sm:$0xff]   ;;  %v4259_v57 = vld [vmem:[%s5598_s0 + $0xfc] ss:$124 sps:$4 sm:$0xff]   ;;  %v4263_v60 = vld [vmem:[%s5597_s1 + $0x1e8] sm:$0xff]  }
  0x15   :  { %3681 = vmatpush3.bf16.msra.mxu1 %v4219_v19  ;;  %v4262_v59 = vld [vmem:[%s5598_s0 + $0xf8] ss:$124 sps:$4 sm:$0xff]   ;;  %v4264_v61 = vld [vmem:[%s5598_s0 + $0x104] ss:$124 sps:$4 sm:$0xff]   ;;  %v4266_v62 = vld [vmem:[%s5597_s1 + $0x1a8] sm:$0xff]  }
  0x16   :  { %3682 = vmatprep.subr.bf16.mxu1 %v4222_v22  ;;  %v4267_v63 = vld [vmem:[%s5598_s0 + $0x100] ss:$124 sps:$4 sm:$0xff]   ;;  %v4268_v0 = vld [vmem:[%s5597_s1 + $0x170] sm:$0xff]   ;;  %v4286_v16 = vld [vmem:[%s5597_s1 + $0x248] sm:$0xff]  }
  0x17   :  { %3655 = vmatpush3.bf16.msra.mxu0 %v4221_v21  ;;  %v4269_v1 = vld [vmem:[%s5597_s1 + $0x130] sm:$0xff]   ;;  %v4272_v4 = vld [vmem:[%s5597_s1 + $0x178] sm:$0xff]   ;;  %v4279_v10 = vld [vmem:[%s5597_s1 + $0x240] sm:$0xff]  }
  0x18   :  { %3656 = vmatprep.subr.bf16.mxu0 %v4224_v24  ;;  %v4270_v2 = vld [vmem:[%s5597_s1 + $0x1f0] sm:$0xff]   ;;  %v4273_v5 = vld [vmem:[%s5597_s1 + $0x138] sm:$0xff]   ;;  %v4283_v13 = vld [vmem:[%s5597_s1 + $0x200] sm:$0xff]  }
  0x19   :  { %3683 = vmatpush3.bf16.msra.mxu1 %v4223_v23  ;;  %v4271_v3 = vld [vmem:[%s5597_s1 + $0x1b0] sm:$0xff]   ;;  %v4274_v6 = vld [vmem:[%s5597_s1 + $0x1f8] sm:$0xff]   ;;  %v4284_v14 = vld [vmem:[%s5597_s1 + $0x2c0] sm:$0xff]  }
  0x1a   :  { %3684 = vmatprep.subr.bf16.mxu1 %v4226_v26  ;;  %v4275_v7 = vld [vmem:[%s5598_s0 + $0x10] ss:$124 sps:$4 sm:$0xff]   ;;  %v4278_v9 = vld [vmem:[%s5597_s1 + $0x1b8] sm:$0xff]   ;;  %v4285_v15 = vld [vmem:[%s5597_s1 + $0x280] sm:$0xff]  }
  0x1b   :  { %3657 = vmatpush3.bf16.msra.mxu0 %v4225_v25  ;;  %v4277_v8 = vld [vmem:[%s5598_s0 + $0x14] ss:$124 sps:$4 sm:$0xff]   ;;  %v4282_v12 = vld [vmem:[%s5598_s0 + $0x1c] ss:$124 sps:$4 sm:$0xff]   ;;  %v4287_v17 = vld [vmem:[%s5597_s1 + $0x208] sm:$0xff]  }
  0x1c   :  { %3658 = vmatprep.subr.bf16.mxu0 %v4228_v28  ;;  %v4280_v11 = vld [vmem:[%s5598_s0 + $0x18] ss:$124 sps:$4 sm:$0xff]   ;;  %v4288_v18 = vld [vmem:[%s5597_s1 + $0x2c8] sm:$0xff]   ;;  %v4304_v32 = vld [vmem:[%s5597_s1 + $0x260] sm:$0xff]  }
  0x1d   :  { %3685 = vmatpush3.bf16.msra.mxu1 %v4227_v27  ;;  %v4289_v19 = vld [vmem:[%s5598_s0 + $0x10c] ss:$124 sps:$4 sm:$0xff]   ;;  %v4293_v22 = vld [vmem:[%s5597_s1 + $0x250] sm:$0xff]   ;;  %v4300_v28 = vld [vmem:[%s5597_s1 + $0x258] sm:$0xff]  }
  0x1e   :  { %3686 = vmatprep.subr.bf16.mxu1 %v4230_v30  ;;  %v4291_v20 = vld [vmem:[%s5597_s1 + $0x288] sm:$0xff]   ;;  %v4294_v23 = vld [vmem:[%s5598_s0 + $0x114] ss:$124 sps:$4 sm:$0xff]   ;;  %v4302_v30 = vld [vmem:[%s5597_s1 + $0x2d8] sm:$0xff]  }
  0x1f   :  { %3659 = vmatpush3.bf16.msra.mxu0 %v4229_v29  ;;  %v4292_v21 = vld [vmem:[%s5598_s0 + $0x108] ss:$124 sps:$4 sm:$0xff]   ;;  %v4296_v24 = vld [vmem:[%s5597_s1 + $0x210] sm:$0xff]   ;;  %v4301_v29 = vld [vmem:[%s5597_s1 + $0x218] sm:$0xff]  }
  0x20   :  { %3700 = vmatprep.subr.bf16.mxu0 %v4235_v34  ;;  %v4297_v25 = vld [vmem:[%s5598_s0 + $0x110] ss:$124 sps:$4 sm:$0xff]   ;;  %v4306_v34 = vld [vmem:[%s5597_s1 + $0x2e0] sm:$0xff]  }
  0x21   :  { %3687 = vmatpush3.bf16.msra.mxu1 %v4234_v33  ;;  %v4298_v26 = vld [vmem:[%s5597_s1 + $0x2d0] sm:$0xff]   ;;  %v4305_v33 = vld [vmem:[%s5597_s1 + $0x220] sm:$0xff]   ;;  %v4308_v36 = vld [vmem:[%s5597_s1 + $0x268] sm:$0xff]  }
  0x22   :  { %2421 = vmatmul.mubr.bf16.vlgmr.msra.gmra.mrb[0].mxu0 %v4231_v31  ;;  %3728 = vmatprep.subr.bf16.mxu1 %v4240_v38  ;;  %v4299_v27 = vld [vmem:[%s5597_s1 + $0x290] sm:$0xff]   ;;  %v4303_v31 = vld [vmem:[%s5597_s1 + $0x298] sm:$0xff]   ;;  %v4310_v38 = vld [vmem:[%s5597_s1 + $0x2e8] sm:$0xff]  }
  0x23   :  { %3701 = vmatpush3.bf16.msra.mxu0 %v4239_v37  ;;  %2428 = vmatprep.mubr.bf16.mxu0 %v4259_v57  ;;  %v4309_v37 = vld [vmem:[%s5597_s1 + $0x228] sm:$0xff]  }
  0x24   :  { %2470 = vmatmul.mubr.bf16.vlgmr.msra.gmra.mrb[0].mxu1 %v4236_v35  ;;  %3702 = vmatprep.subr.bf16.mxu0 %v4242_v40  ;;  %v4307_v35 = vld [vmem:[%s5597_s1 + $0x2a0] sm:$0xff]   ;;  %v4312_v40 = vld [vmem:[%s5597_s1 + $0x270] sm:$0xff]   ;;  %v4331_v57 = vld [vmem:[%s5597_s1 + $0x308] sm:$0xff]  }
  0x25   :  { %3729 = vmatpush3.bf16.msra.mxu1 %v4241_v39  ;;  %2477 = vmatprep.mubr.bf16.mxu1 %v4264_v61  ;;  %v4311_v39 = vld [vmem:[%s5597_s1 + $0x2a8] sm:$0xff]   ;;  %v4336_v61 = vld [vmem:[%s5598_s0 + $0x118] ss:$124 sps:$4 sm:$0xff]  }
  0x26   :  { %3730 = vmatprep.subr.bf16.mxu1 %v4244_v42  ;;  %v4314_v42 = vld [vmem:[%s5597_s1 + $0x2f0] sm:$0xff]  }
  0x27   :  { %3703 = vmatpush3.bf16.msra.mxu0 %v4243_v41  ;;  %v4313_v41 = vld [vmem:[%s5597_s1 + $0x230] sm:$0xff]  }
  0x28   :  { %3704 = vmatprep.subr.bf16.mxu0 %v4246_v44  ;;  %v4316_v44 = vld [vmem:[%s5597_s1 + $0x278] sm:$0xff]  }
  0x29   :  { %3731 = vmatpush3.bf16.msra.mxu1 %v4245_v43  ;;  %v4315_v43 = vld [vmem:[%s5597_s1 + $0x2b0] sm:$0xff]  }
  0x2a   :  { %3732 = vmatprep.subr.bf16.mxu1 %v4248_v46  ;;  %2429 = vmatmul.mubr.bf16.gmra.mrb[4].mxu0 %v4262_v59  ;;  %v4318_v46 = vld [vmem:[%s5597_s1 + $0x2f8] sm:$0xff]  }
  0x2b   :  { %3705 = vmatpush3.bf16.msra.mxu0 %v4247_v45  ;;  %2518 = vmatprep.mubr.bf16.mxu0 %v4277_v8  ;;  %v4317_v45 = vld [vmem:[%s5597_s1 + $0x238] sm:$0xff]   ;;  %v4348_v8 = vld [vmem:[%s5597_s1 + $0x360] sm:$0xff]  }
  0x2c   :  { %3706 = vmatprep.subr.bf16.mxu0 %v4250_v48  ;;  %2478 = vmatmul.mubr.bf16.gmra.mrb[4].mxu1 %v4267_v63  ;;  %v4321_v48 = vld [vmem:[%s5598_s0 + $0x24] ss:$124 sps:$4 sm:$0xff]   ;;  %v4333_v59 = vld [vmem:[%s5598_s0 + $0x11c] ss:$124 sps:$4 sm:$0xff]  }
  0x2d   :  { %3733 = vmatpush3.bf16.msra.mxu1 %v4249_v47  ;;  %2567 = vmatprep.mubr.bf16.mxu1 %v4282_v12  ;;  %v4319_v47 = vld [vmem:[%s5598_s0 + $0x20] ss:$124 sps:$4 sm:$0xff]   ;;  %v4352_v12 = vld [vmem:[%s5597_s1 + $0x368] sm:$0xff]  }
  0x2e   :  { %3734 = vmatprep.subr.bf16.mxu1 %v4252_v50  ;;  %v4323_v50 = vld [vmem:[%s5597_s1 + $0x340] sm:$0xff]  }
  0x2f   :  { %3707 = vmatpush3.bf16.msra.mxu0 %v4251_v49  ;;  %v4322_v49 = vld [vmem:[%s5597_s1 + $0x2b8] sm:$0xff]   ;;  %v4338_v63 = vld [vmem:[%s5598_s0 + $0x124] ss:$124 sps:$4 sm:$0xff]  }
  0x30   :  { %3708 = vmatprep.subr.bf16.mxu0 %v4254_v52  ;;  %v4326_v52 = vld [vmem:[%s5598_s0 + $0x2c] ss:$124 sps:$4 sm:$0xff]  }
  0x31   :  { %3735 = vmatpush3.bf16.msra.mxu1 %v4253_v51  ;;  %v4324_v51 = vld [vmem:[%s5598_s0 + $0x28] ss:$124 sps:$4 sm:$0xff]  }
  0x32   :  { %3736 = vmatprep.subr.bf16.mxu1 %v4256_v54  ;;  %v4328_v54 = vld [vmem:[%s5597_s1 + $0x3c0] sm:$0xff]  }
  0x33   :  { %3709 = vmatpush3.bf16.msra.mxu0 %v4255_v53  ;;  %v4327_v53 = vld [vmem:[%s5597_s1 + $0x300] sm:$0xff]  }
  0x34   :  { %3710 = vmatprep.subr.bf16.mxu0 %v4258_v56  ;;  %v4330_v56 = vld [vmem:[%s5597_s1 + $0x348] sm:$0xff]  }
  0x35   :  { %3737 = vmatpush3.bf16.msra.mxu1 %v4257_v55  ;;  %v4329_v55 = vld [vmem:[%s5597_s1 + $0x380] sm:$0xff]  }
  0x36   :  { %3738 = vmatprep.subr.bf16.mxu1 %v4263_v60  ;;  %v4335_v60 = vld [vmem:[%s5597_s1 + $0x388] sm:$0xff]  }
  0x37   :  { %3711 = vmatpush3.bf16.msra.mxu0 %v4261_v58  ;;  %v4332_v58 = vld [vmem:[%s5597_s1 + $0x3c8] sm:$0xff]  }
  0x38   :  { %3712 = vmatprep.subr.bf16.mxu0 %v4268_v0  ;;  %v4340_v0 = vld [vmem:[%s5597_s1 + $0x310] sm:$0xff]  }
  0x39   :  { %3739 = vmatpush3.bf16.msra.mxu1 %v4266_v62  ;;  %v4337_v62 = vld [vmem:[%s5597_s1 + $0x350] sm:$0xff]  }
  0x3a   :  { %3740 = vmatprep.subr.bf16.mxu1 %v4270_v2  ;;  %v4342_v2 = vld [vmem:[%s5597_s1 + $0x3d0] sm:$0xff]  }
  0x3b   :  { %3713 = vmatpush3.bf16.msra.mxu0 %v4269_v1  ;;  %v4341_v1 = vld [vmem:[%s5598_s0 + $0x120] ss:$124 sps:$4 sm:$0xff]  }
  0x3c   :  { %3714 = vmatprep.subr.bf16.mxu0 %v4272_v4  ;;  %v4344_v4 = vld [vmem:[%s5597_s1 + $0x358] sm:$0xff]  }
  0x3d   :  { %3741 = vmatpush3.bf16.msra.mxu1 %v4271_v3  ;;  %v4343_v3 = vld [vmem:[%s5597_s1 + $0x390] sm:$0xff]  }
  0x3e   :  { %3742 = vmatprep.subr.bf16.mxu1 %v4274_v6  ;;  %v4346_v6 = vld [vmem:[%s5597_s1 + $0x3d8] sm:$0xff]  }
  0x3f   :  { %3715 = vmatpush3.bf16.msra.mxu0 %v4273_v5  ;;  %v4345_v5 = vld [vmem:[%s5597_s1 + $0x318] sm:$0xff]  }
  0x40   :  { %3756 = vmatprep.subr.bf16.mxu0 %v4279_v10  ;;  %v4350_v10 = vld [vmem:[%s5597_s1 + $0x3e0] sm:$0xff]  }
  0x41   :  { %3743 = vmatpush3.bf16.msra.mxu1 %v4278_v9  ;;  %v4349_v9 = vld [vmem:[%s5597_s1 + $0x320] sm:$0xff]  }
  0x42   :  { %2519 = vmatmul.mubr.bf16.vlgmr.msra.gmra.mrb[8].mxu0 %v4275_v7  ;;  %3784 = vmatprep.subr.bf16.mxu1 %v4284_v14  ;;  %v4347_v7 = vld [vmem:[%s5597_s1 + $0x398] sm:$0xff]   ;;  %v4354_v14 = vld [vmem:[%s5597_s1 + $0x3e8] sm:$0xff]  }
  0x43   :  { %3757 = vmatpush3.bf16.msra.mxu0 %v4283_v13  ;;  %2526 = vmatprep.mubr.bf16.mxu0 %v4289_v19  ;;  %v4353_v13 = vld [vmem:[%s5597_s1 + $0x328] sm:$0xff]   ;;  %v4359_v19 = vld [vmem:[%s5597_s1 + $0x3b0] sm:$0xff]  }
  0x44   :  { %2568 = vmatmul.mubr.bf16.vlgmr.msra.gmra.mrb[8].mxu1 %v4280_v11  ;;  %3758 = vmatprep.subr.bf16.mxu0 %v4286_v16  ;;  %v4351_v11 = vld [vmem:[%s5597_s1 + $0x3a0] sm:$0xff]   ;;  %v4356_v16 = vld [vmem:[%s5597_s1 + $0x370] sm:$0xff]  }
  0x45   :  { %3785 = vmatpush3.bf16.msra.mxu1 %v4285_v15  ;;  %2575 = vmatprep.mubr.bf16.mxu1 %v4294_v23  ;;  %v4355_v15 = vld [vmem:[%s5597_s1 + $0x3a8] sm:$0xff]  }
  0x46   :  { %3786 = vmatprep.subr.bf16.mxu1 %v4288_v18  ;;  %v4358_v18 = vld [vmem:[%s5597_s1 + $0x3f0] sm:$0xff]  }
  0x47   :  { %3759 = vmatpush3.bf16.msra.mxu0 %v4287_v17  ;;  %v4357_v17 = vld [vmem:[%s5597_s1 + $0x330] sm:$0xff]  }
  0x48   :  { %3760 = vmatprep.subr.bf16.mxu0 %v4293_v22  ;;  %v4362_v22 = vld [vmem:[%s5597_s1 + $0x3f8] sm:$0xff]   ;;  %v4363_v23 = vld [vmem:[%s5598_s0 + $0x30] ss:$124 sps:$4 sm:$0xff]  }
  0x49   :  { %3787 = vmatpush3.bf16.msra.mxu1 %v4291_v20  ;;  %v4360_v20 = vld [vmem:[%s5597_s1 + $0x378] sm:$0xff]  }
  0x4a   :  { %2527 = vmatmul.mubr.bf16.gmra.mrb[12].mxu0 %v4292_v21  ;;  %3788 = vmatprep.subr.bf16.mxu1 %v4298_v26  ;;  %v4361_v21 = vld [vmem:[%s5597_s1 + $0x338] sm:$0xff]   ;;  %v4367_v26 = vld [vmem:[%s5597_s1 + $0x440] sm:$0xff]  }
  0x4b   :  { %3761 = vmatpush3.bf16.msra.mxu0 %v4296_v24  ;;  %2616 = vmatprep.mubr.bf16.mxu0 %v4321_v48  ;;  %v4365_v24 = vld [vmem:[%s5598_s0 + $0x34] ss:$124 sps:$4 sm:$0xff]   ;;  %v4392_v48 = vld [vmem:[%s5597_s1 + $0x460] sm:$0xff]  }
  0x4c   :  { %2576 = vmatmul.mubr.bf16.gmra.mrb[12].mxu1 %v4297_v25  ;;  %3762 = vmatprep.subr.bf16.mxu0 %v4300_v28  ;;  %v4366_v25 = vld [vmem:[%s5597_s1 + $0x3b8] sm:$0xff]  }
  0x4d   :  { %3789 = vmatpush3.bf16.msra.mxu1 %v4299_v27  ;;  %2665 = vmatprep.mubr.bf16.mxu1 %v4326_v52  ;;  %v4368_v27 = vld [vmem:[%s5598_s0 + $0x38] ss:$124 sps:$4 sm:$0xff]   ;;  %v4396_v52 = vld [vmem:[%s5597_s1 + $0x468] sm:$0xff]  }
  0x4e   :  { %3790 = vmatprep.subr.bf16.mxu1 %v4302_v30  ;;  %v4370_v28 = vld [vmem:[%s5598_s0 + $0x3c] ss:$124 sps:$4 sm:$0xff]   ;;  %v4372_v30 = vld [vmem:[%s5597_s1 + $0x4c0] sm:$0xff]  }
  0x4f   :  { %3763 = vmatpush3.bf16.msra.mxu0 %v4301_v29  ;;  %v4371_v29 = vld [vmem:[%s5597_s1 + $0x400] sm:$0xff]  }
  0x50   :  { %3764 = vmatprep.subr.bf16.mxu0 %v4304_v32  ;;  %v4374_v32 = vld [vmem:[%s5597_s1 + $0x448] sm:$0xff]  }
  0x51   :  { %3791 = vmatpush3.bf16.msra.mxu1 %v4303_v31  ;;  %v4373_v31 = vld [vmem:[%s5597_s1 + $0x480] sm:$0xff]  }
  0x52   :  { %3792 = vmatprep.subr.bf16.mxu1 %v4306_v34  ;;  %v4376_v34 = vld [vmem:[%s5597_s1 + $0x4c8] sm:$0xff]  }
  0x53   :  { %3765 = vmatpush3.bf16.msra.mxu0 %v4305_v33  ;;  %v4375_v33 = vld [vmem:[%s5597_s1 + $0x408] sm:$0xff]  }
  0x54   :  { %3766 = vmatprep.subr.bf16.mxu0 %v4308_v36  ;;  %v4379_v36 = vld [vmem:[%s5597_s1 + $0x488] sm:$0xff]  }
  0x55   :  { %3793 = vmatpush3.bf16.msra.mxu1 %v4307_v35  ;;  %v4377_v35 = vld [vmem:[%s5598_s0 + $0x12c] ss:$124 sps:$4 sm:$0xff]  }
  0x56   :  { %3794 = vmatprep.subr.bf16.mxu1 %v4310_v38  ;;  %v4381_v38 = vld [vmem:[%s5597_s1 + $0x450] sm:$0xff]  }
  0x57   :  { %3767 = vmatpush3.bf16.msra.mxu0 %v4309_v37  ;;  %v4380_v37 = vld [vmem:[%s5598_s0 + $0x128] ss:$124 sps:$4 sm:$0xff]  }
  0x58   :  { %3768 = vmatprep.subr.bf16.mxu0 %v4312_v40  ;;  %v4384_v40 = vld [vmem:[%s5597_s1 + $0x410] sm:$0xff]  }
  0x59   :  { %3795 = vmatpush3.bf16.msra.mxu1 %v4311_v39  ;;  %v4382_v39 = vld [vmem:[%s5598_s0 + $0x134] ss:$124 sps:$4 sm:$0xff]  }
  0x5a   :  { %3796 = vmatprep.subr.bf16.mxu1 %v4314_v42  ;;  %v4386_v42 = vld [vmem:[%s5597_s1 + $0x4d0] sm:$0xff]  }
  0x5b   :  { %3769 = vmatpush3.bf16.msra.mxu0 %v4313_v41  ;;  %v4385_v41 = vld [vmem:[%s5598_s0 + $0x130] ss:$124 sps:$4 sm:$0xff]  }
  0x5c   :  { %3770 = vmatprep.subr.bf16.mxu0 %v4316_v44  ;;  %v4388_v44 = vld [vmem:[%s5597_s1 + $0x458] sm:$0xff]  }
  0x5d   :  { %3797 = vmatpush3.bf16.msra.mxu1 %v4315_v43  ;;  %v4387_v43 = vld [vmem:[%s5597_s1 + $0x490] sm:$0xff]  }
  0x5e   :  { %3798 = vmatprep.subr.bf16.mxu1 %v4318_v46  ;;  %v4390_v46 = vld [vmem:[%s5597_s1 + $0x4d8] sm:$0xff]  }
  0x5f   :  { %3771 = vmatpush3.bf16.msra.mxu0 %v4317_v45  ;;  %v4389_v45 = vld [vmem:[%s5597_s1 + $0x418] sm:$0xff]  }
  0x60   :  { %3812 = vmatprep.subr.bf16.mxu0 %v4323_v50  ;;  %v4394_v50 = vld [vmem:[%s5597_s1 + $0x4e0] sm:$0xff]  }
  0x61   :  { %3799 = vmatpush3.bf16.msra.mxu1 %v4322_v49  ;;  %v4393_v49 = vld [vmem:[%s5597_s1 + $0x420] sm:$0xff]  }
  0x62   :  { %2617 = vmatmul.mubr.bf16.vlgmr.msra.gmra.mrb[16].mxu0 %v4319_v47  ;;  %3840 = vmatprep.subr.bf16.mxu1 %v4328_v54  ;;  %v4391_v47 = vld [vmem:[%s5597_s1 + $0x498] sm:$0xff]   ;;  %v4398_v54 = vld [vmem:[%s5597_s1 + $0x4e8] sm:$0xff]  }
  0x63   :  { %3813 = vmatpush3.bf16.msra.mxu0 %v4327_v53  ;;  %2624 = vmatprep.mubr.bf16.mxu0 %v4333_v59  ;;  %v4397_v53 = vld [vmem:[%s5597_s1 + $0x428] sm:$0xff]   ;;  %v4403_v59 = vld [vmem:[%s5597_s1 + $0x4b0] sm:$0xff]  }
  0x64   :  { %2666 = vmatmul.mubr.bf16.vlgmr.msra.gmra.mrb[16].mxu1 %v4324_v51  ;;  %3814 = vmatprep.subr.bf16.mxu0 %v4330_v56  ;;  %v4395_v51 = vld [vmem:[%s5597_s1 + $0x4a0] sm:$0xff]   ;;  %v4400_v56 = vld [vmem:[%s5597_s1 + $0x470] sm:$0xff]  }
  0x65   :  { %3841 = vmatpush3.bf16.msra.mxu1 %v4329_v55  ;;  %2673 = vmatprep.mubr.bf16.mxu1 %v4338_v63  ;;  %v4399_v55 = vld [vmem:[%s5597_s1 + $0x4a8] sm:$0xff]   ;;  %v4407_v63 = vld [vmem:[%s5598_s0 + $0x40] ss:$124 sps:$4 sm:$0xff]  }
  0x66   :  { %3842 = vmatprep.subr.bf16.mxu1 %v4332_v58  ;;  %v4402_v58 = vld [vmem:[%s5597_s1 + $0x4f0] sm:$0xff]  }
  0x67   :  { %3815 = vmatpush3.bf16.msra.mxu0 %v4331_v57  ;;  %v4401_v57 = vld [vmem:[%s5597_s1 + $0x430] sm:$0xff]  }
  0x68   :  { %3816 = vmatprep.subr.bf16.mxu0 %v4337_v62  ;;  %v4406_v62 = vld [vmem:[%s5597_s1 + $0x4f8] sm:$0xff]  }
  0x69   :  { %3843 = vmatpush3.bf16.msra.mxu1 %v4335_v60  ;;  %v4404_v60 = vld [vmem:[%s5597_s1 + $0x478] sm:$0xff]  }
  0x6a   :  { %2625 = vmatmul.mubr.bf16.gmra.mrb[20].mxu0 %v4336_v61  ;;  %3844 = vmatprep.subr.bf16.mxu1 %v4342_v2  ;;  %v4405_v61 = vld [vmem:[%s5597_s1 + $0x438] sm:$0xff]   ;;  %v4411_v2 = vld [vmem:[%s5597_s1 + $0x540] sm:$0xff]  }
  0x6b   :  { %3817 = vmatpush3.bf16.msra.mxu0 %v4340_v0  ;;  %2714 = vmatprep.mubr.bf16.mxu0 %v4365_v24  ;;  %v4409_v0 = vld [vmem:[%s5598_s0 + $0x44] ss:$124 sps:$4 sm:$0xff]  }
  0x6c   :  { %2674 = vmatmul.mubr.bf16.gmra.mrb[20].mxu1 %v4341_v1  ;;  %3818 = vmatprep.subr.bf16.mxu0 %v4344_v4  ;;  %v4410_v1 = vld [vmem:[%s5597_s1 + $0x4b8] sm:$0xff]   ;;  %v4414_v4 = vld [vmem:[%s5598_s0 + $0x4c] ss:$124 sps:$4 sm:$0xff]   ;;  %v4436_v24 = vld [vmem:[%s5597_s1 + $0x560] sm:$0xff]  }
  0x6d   :  { %3845 = vmatpush3.bf16.msra.mxu1 %v4343_v3  ;;  %2763 = vmatprep.mubr.bf16.mxu1 %v4370_v28  ;;  %v4412_v3 = vld [vmem:[%s5598_s0 + $0x48] ss:$124 sps:$4 sm:$0xff]  }
  0x6e   :  { %3846 = vmatprep.subr.bf16.mxu1 %v4346_v6  ;;  %v4416_v6 = vld [vmem:[%s5597_s1 + $0x5c0] sm:$0xff]   ;;  %v4440_v28 = vld [vmem:[%s5597_s1 + $0x568] sm:$0xff]  }
  0x6f   :  { %3819 = vmatpush3.bf16.msra.mxu0 %v4345_v5  ;;  %v4415_v5 = vld [vmem:[%s5597_s1 + $0x500] sm:$0xff]  }
  0x70   :  { %3820 = vmatprep.subr.bf16.mxu0 %v4348_v8  ;;  %v4418_v8 = vld [vmem:[%s5597_s1 + $0x548] sm:$0xff]  }
  0x71   :  { %3847 = vmatpush3.bf16.msra.mxu1 %v4347_v7  ;;  %v4417_v7 = vld [vmem:[%s5597_s1 + $0x580] sm:$0xff]  }
  0x72   :  { %3848 = vmatprep.subr.bf16.mxu1 %v4350_v10  ;;  %v4420_v10 = vld [vmem:[%s5597_s1 + $0x5c8] sm:$0xff]  }
  0x73   :  { %3821 = vmatpush3.bf16.msra.mxu0 %v4349_v9  ;;  %v4419_v9 = vld [vmem:[%s5597_s1 + $0x508] sm:$0xff]  }
  0x74   :  { %3822 = vmatprep.subr.bf16.mxu0 %v4352_v12  ;;  %v4423_v12 = vld [vmem:[%s5597_s1 + $0x588] sm:$0xff]  }
  0x75   :  { %3849 = vmatpush3.bf16.msra.mxu1 %v4351_v11  ;;  %v4421_v11 = vld [vmem:[%s5598_s0 + $0x13c] ss:$124 sps:$4 sm:$0xff]  }
  0x76   :  { %3850 = vmatprep.subr.bf16.mxu1 %v4354_v14  ;;  %v4425_v14 = vld [vmem:[%s5597_s1 + $0x550] sm:$0xff]  }
  0x77   :  { %3823 = vmatpush3.bf16.msra.mxu0 %v4353_v13  ;;  %v4424_v13 = vld [vmem:[%s5598_s0 + $0x138] ss:$124 sps:$4 sm:$0xff]  }
  0x78   :  { %3824 = vmatprep.subr.bf16.mxu0 %v4356_v16  ;;  %v4428_v16 = vld [vmem:[%s5597_s1 + $0x510] sm:$0xff]  }
  0x79   :  { %3851 = vmatpush3.bf16.msra.mxu1 %v4355_v15  ;;  %v4426_v15 = vld [vmem:[%s5598_s0 + $0x144] ss:$124 sps:$4 sm:$0xff]  }
  0x7a   :  { %3852 = vmatprep.subr.bf16.mxu1 %v4358_v18  ;;  %v4430_v18 = vld [vmem:[%s5597_s1 + $0x5d0] sm:$0xff]  }
  0x7b   :  { %3825 = vmatpush3.bf16.msra.mxu0 %v4357_v17  ;;  %v4429_v17 = vld [vmem:[%s5598_s0 + $0x140] ss:$124 sps:$4 sm:$0xff]  }
  0x7c   :  { %3826 = vmatprep.subr.bf16.mxu0 %v4360_v20  ;;  %v4432_v20 = vld [vmem:[%s5597_s1 + $0x558] sm:$0xff]  }
  0x7d   :  { %3853 = vmatpush3.bf16.msra.mxu1 %v4359_v19  ;;  %v4431_v19 = vld [vmem:[%s5597_s1 + $0x590] sm:$0xff]  }
  0x7e   :  { %3854 = vmatprep.subr.bf16.mxu1 %v4362_v22  ;;  %v4434_v22 = vld [vmem:[%s5597_s1 + $0x5d8] sm:$0xff]  }
  0x7f   :  { %3827 = vmatpush3.bf16.msra.mxu0 %v4361_v21  ;;  %v4433_v21 = vld [vmem:[%s5597_s1 + $0x518] sm:$0xff]  }
  0x80   :  { %3868 = vmatprep.subr.bf16.mxu0 %v4367_v26  ;;  %v4438_v26 = vld [vmem:[%s5597_s1 + $0x5e0] sm:$0xff]  }
  0x81   :  { %3855 = vmatpush3.bf16.msra.mxu1 %v4366_v25  ;;  %v4437_v25 = vld [vmem:[%s5597_s1 + $0x520] sm:$0xff]  }
  0x82   :  { %2715 = vmatmul.mubr.bf16.vlgmr.msra.gmra.mrb[24].mxu0 %v4363_v23  ;;  %3896 = vmatprep.subr.bf16.mxu1 %v4372_v30  ;;  %v4435_v23 = vld [vmem:[%s5597_s1 + $0x598] sm:$0xff]   ;;  %v4442_v30 = vld [vmem:[%s5597_s1 + $0x5e8] sm:$0xff]  }
  0x83   :  { %3869 = vmatpush3.bf16.msra.mxu0 %v4371_v29  ;;  %2722 = vmatprep.mubr.bf16.mxu0 %v4377_v35  ;;  %v4441_v29 = vld [vmem:[%s5597_s1 + $0x528] sm:$0xff]   ;;  %v4447_v35 = vld [vmem:[%s5597_s1 + $0x5b0] sm:$0xff]  }
  0x84   :  { %2764 = vmatmul.mubr.bf16.vlgmr.msra.gmra.mrb[24].mxu1 %v4368_v27  ;;  %3870 = vmatprep.subr.bf16.mxu0 %v4374_v32  ;;  %v4439_v27 = vld [vmem:[%s5597_s1 + $0x5a0] sm:$0xff]   ;;  %v4444_v32 = vld [vmem:[%s5597_s1 + $0x570] sm:$0xff]  }
  0x85   :  { %3897 = vmatpush3.bf16.msra.mxu1 %v4373_v31  ;;  %2771 = vmatprep.mubr.bf16.mxu1 %v4382_v39  ;;  %v4443_v31 = vld [vmem:[%s5597_s1 + $0x5a8] sm:$0xff]  }
  0x86   :  { %3898 = vmatprep.subr.bf16.mxu1 %v4376_v34  ;;  %v4446_v34 = vld [vmem:[%s5597_s1 + $0x5f0] sm:$0xff]  }
  0x87   :  { %3871 = vmatpush3.bf16.msra.mxu0 %v4375_v33  ;;  %v4445_v33 = vld [vmem:[%s5597_s1 + $0x530] sm:$0xff]  }
  0x88   :  { %3872 = vmatprep.subr.bf16.mxu0 %v4381_v38  ;;  %v4450_v38 = vld [vmem:[%s5597_s1 + $0x5f8] sm:$0xff]   ;;  %v4451_v39 = vld [vmem:[%s5598_s0 + $0x50] ss:$124 sps:$4 sm:$0xff]  }
  0x89   :  { %3899 = vmatpush3.bf16.msra.mxu1 %v4379_v36  ;;  %v4448_v36 = vld [vmem:[%s5597_s1 + $0x578] sm:$0xff]  }
  0x8a   :  { %2723 = vmatmul.mubr.bf16.gmra.mrb[28].mxu0 %v4380_v37  ;;  %3900 = vmatprep.subr.bf16.mxu1 %v4386_v42  ;;  %v4449_v37 = vld [vmem:[%s5597_s1 + $0x538] sm:$0xff]   ;;  %v4455_v42 = vld [vmem:[%s5597_s1 + $0x640] sm:$0xff]  }
  0x8b   :  { %3873 = vmatpush3.bf16.msra.mxu0 %v4384_v40  ;;  %2812 = vmatprep.mubr.bf16.mxu0 %v4409_v0  ;;  %v4453_v40 = vld [vmem:[%s5598_s0 + $0x54] ss:$124 sps:$4 sm:$0xff]   ;;  %v4480_v0 = vld [vmem:[%s5597_s1 + $0x660] sm:$0xff]  }
  0x8c   :  { %2772 = vmatmul.mubr.bf16.gmra.mrb[28].mxu1 %v4385_v41  ;;  %3874 = vmatprep.subr.bf16.mxu0 %v4388_v44  ;;  %v4454_v41 = vld [vmem:[%s5597_s1 + $0x5b8] sm:$0xff]  }
  0x8d   :  { %3901 = vmatpush3.bf16.msra.mxu1 %v4387_v43  ;;  %2861 = vmatprep.mubr.bf16.mxu1 %v4414_v4  ;;  %v4456_v43 = vld [vmem:[%s5598_s0 + $0x58] ss:$124 sps:$4 sm:$0xff]   ;;  %v4484_v4 = vld [vmem:[%s5597_s1 + $0x668] sm:$0xff]  }
  0x8e   :  { %3902 = vmatprep.subr.bf16.mxu1 %v4390_v46  ;;  %v4458_v44 = vld [vmem:[%s5598_s0 + $0x5c] ss:$124 sps:$4 sm:$0xff]   ;;  %v4460_v46 = vld [vmem:[%s5597_s1 + $0x6c0] sm:$0xff]  }
  0x8f   :  { %3875 = vmatpush3.bf16.msra.mxu0 %v4389_v45  ;;  %v4459_v45 = vld [vmem:[%s5597_s1 + $0x600] sm:$0xff]  }
  0x90   :  { %3876 = vmatprep.subr.bf16.mxu0 %v4392_v48  ;;  %v4462_v48 = vld [vmem:[%s5597_s1 + $0x648] sm:$0xff]  }
  0x91   :  { %3903 = vmatpush3.bf16.msra.mxu1 %v4391_v47  ;;  %v4461_v47 = vld [vmem:[%s5597_s1 + $0x680] sm:$0xff]  }
  0x92   :  { %3904 = vmatprep.subr.bf16.mxu1 %v4394_v50  ;;  %v4464_v50 = vld [vmem:[%s5597_s1 + $0x6c8] sm:$0xff]  }
  0x93   :  { %3877 = vmatpush3.bf16.msra.mxu0 %v4393_v49  ;;  %v4463_v49 = vld [vmem:[%s5597_s1 + $0x608] sm:$0xff]  }
  0x94   :  { %3878 = vmatprep.subr.bf16.mxu0 %v4396_v52  ;;  %v4467_v52 = vld [vmem:[%s5597_s1 + $0x688] sm:$0xff]  }
  0x95   :  { %3905 = vmatpush3.bf16.msra.mxu1 %v4395_v51  ;;  %v4465_v51 = vld [vmem:[%s5598_s0 + $0x14c] ss:$124 sps:$4 sm:$0xff]  }
  0x96   :  { %3906 = vmatprep.subr.bf16.mxu1 %v4398_v54  ;;  %v4469_v54 = vld [vmem:[%s5597_s1 + $0x650] sm:$0xff]  }
  0x97   :  { %3879 = vmatpush3.bf16.msra.mxu0 %v4397_v53  ;;  %v4468_v53 = vld [vmem:[%s5598_s0 + $0x148] ss:$124 sps:$4 sm:$0xff]  }
  0x98   :  { %3880 = vmatprep.subr.bf16.mxu0 %v4400_v56  ;;  %v4472_v56 = vld [vmem:[%s5597_s1 + $0x610] sm:$0xff]  }
  0x99   :  { %3907 = vmatpush3.bf16.msra.mxu1 %v4399_v55  ;;  %v4470_v55 = vld [vmem:[%s5598_s0 + $0x154] ss:$124 sps:$4 sm:$0xff]  }
  0x9a   :  { %3908 = vmatprep.subr.bf16.mxu1 %v4402_v58  ;;  %v4474_v58 = vld [vmem:[%s5597_s1 + $0x6d0] sm:$0xff]  }
  0x9b   :  { %3881 = vmatpush3.bf16.msra.mxu0 %v4401_v57  ;;  %v4473_v57 = vld [vmem:[%s5598_s0 + $0x150] ss:$124 sps:$4 sm:$0xff]  }
  0x9c   :  { %3882 = vmatprep.subr.bf16.mxu0 %v4404_v60  ;;  %v4476_v60 = vld [vmem:[%s5597_s1 + $0x658] sm:$0xff]  }
  0x9d   :  { %3909 = vmatpush3.bf16.msra.mxu1 %v4403_v59  ;;  %v4475_v59 = vld [vmem:[%s5597_s1 + $0x690] sm:$0xff]  }
  0x9e   :  { %3910 = vmatprep.subr.bf16.mxu1 %v4406_v62  ;;  %v4478_v62 = vld [vmem:[%s5597_s1 + $0x6d8] sm:$0xff]  }
  0x9f   :  { %3883 = vmatpush3.bf16.msra.mxu0 %v4405_v61  ;;  %v4477_v61 = vld [vmem:[%s5597_s1 + $0x618] sm:$0xff]  }
  0xa0   :  { %3924 = vmatprep.subr.bf16.mxu0 %v4411_v2  ;;  %v4482_v2 = vld [vmem:[%s5597_s1 + $0x6e0] sm:$0xff]  }
  0xa1   :  { %3911 = vmatpush3.bf16.msra.mxu1 %v4410_v1  ;;  %v4481_v1 = vld [vmem:[%s5597_s1 + $0x620] sm:$0xff]  }
  0xa2   :  { %2813 = vmatmul.mubr.bf16.vlgmr.msra.gmra.mrb[32].mxu0 %v4407_v63  ;;  %3952 = vmatprep.subr.bf16.mxu1 %v4416_v6  ;;  %v4479_v63 = vld [vmem:[%s5597_s1 + $0x698] sm:$0xff]   ;;  %v4486_v6 = vld [vmem:[%s5597_s1 + $0x6e8] sm:$0xff]  }
  0xa3   :  { %3925 = vmatpush3.bf16.msra.mxu0 %v4415_v5  ;;  %2820 = vmatprep.mubr.bf16.mxu0 %v4421_v11  ;;  %v4485_v5 = vld [vmem:[%s5597_s1 + $0x628] sm:$0xff]  }
  0xa4   :  { %2862 = vmatmul.mubr.bf16.vlgmr.msra.gmra.mrb[32].mxu1 %v4412_v3  ;;  %3926 = vmatprep.subr.bf16.mxu0 %v4418_v8  ;;  %v4483_v3 = vld [vmem:[%s5597_s1 + $0x6a0] sm:$0xff]   ;;  %v4487_v8 = vld [vmem:[%s5597_s1 + $0x6a8] sm:$0xff]  }
  0xa5   :  { %3953 = vmatpush3.bf16.msra.mxu1 %v4417_v7  ;;  %2869 = vmatprep.mubr.bf16.mxu1 %v4426_v15  ;;  %v4490_v15 = vld [vmem:[%s5597_s1 + $0x6f0] sm:$0xff]  }
  0xa6   :  { %3954 = vmatprep.subr.bf16.mxu1 %v4420_v10  ;;  %v4488_v10 = vld [vmem:[%s5597_s1 + $0x670] sm:$0xff]  }
  0xa7   :  { %3927 = vmatpush3.bf16.msra.mxu0 %v4419_v9 }
  0xa8   :  { %3928 = vmatprep.subr.bf16.mxu0 %v4425_v14 }
  0xa9   :  { %3955 = vmatpush3.bf16.msra.mxu1 %v4423_v12 }
  0xaa   :  { %2821 = vmatmul.mubr.bf16.gmra.mrb[36].mxu0 %v4424_v13  ;;  %3956 = vmatprep.subr.bf16.mxu1 %v4430_v18  ;;  %v4489_v13 = vld [vmem:[%s5597_s1 + $0x630] sm:$0xff]  }
  0xab   :  { %3929 = vmatpush3.bf16.msra.mxu0 %v4428_v16  ;;  %2910 = vmatprep.mubr.bf16.mxu0 %v4453_v40  ;;  %v4511_v40 = vld [vmem:[%s5597_s1 + $0x788] sm:$0xff]  }
  0xac   :  { %2870 = vmatmul.mubr.bf16.gmra.mrb[36].mxu1 %v4429_v17  ;;  %3930 = vmatprep.subr.bf16.mxu0 %v4432_v20  ;;  %v4491_v17 = vld [vmem:[%s5597_s1 + $0x6b0] sm:$0xff]   ;;  %v4492_v20 = vld [vmem:[%s5597_s1 + $0x678] sm:$0xff]  }
  0xad   :  { %3957 = vmatpush3.bf16.msra.mxu1 %v4431_v19  ;;  %2959 = vmatprep.mubr.bf16.mxu1 %v4458_v44  ;;  %v4516_v44 = vld [vmem:[%s5597_s1 + $0x758] sm:$0xff]  }
  0xae   :  { %3958 = vmatprep.subr.bf16.mxu1 %v4434_v22 }
  0xaf   :  { %3931 = vmatpush3.bf16.msra.mxu0 %v4433_v21 }
  0xb0   :  { %3932 = vmatprep.subr.bf16.mxu0 %v4436_v24 }
  0xb1   :  { %3959 = vmatpush3.bf16.msra.mxu1 %v4435_v23  ;;  %v4493_v23 = vld [vmem:[%s5597_s1 + $0x638] sm:$0xff]  }
  0xb2   :  { %3960 = vmatprep.subr.bf16.mxu1 %v4438_v26 }
  0xb3   :  { %3933 = vmatpush3.bf16.msra.mxu0 %v4437_v25  ;;  %v4494_v25 = vld [vmem:[%s5597_s1 + $0x6f8] sm:$0xff]  }
  0xb4   :  { %3934 = vmatprep.subr.bf16.mxu0 %v4440_v28  ;;  %v4497_v28 = vld [vmem:[%s5598_s0 + $0x64] ss:$124 sps:$4 sm:$0xff]  }
  0xb5   :  { %3961 = vmatpush3.bf16.msra.mxu1 %v4439_v27  ;;  %v4495_v27 = vld [vmem:[%s5598_s0 + $0x60] ss:$124 sps:$4 sm:$0xff]  }
  0xb6   :  { %3962 = vmatprep.subr.bf16.mxu1 %v4442_v30  ;;  %v4499_v30 = vld [vmem:[%s5597_s1 + $0x740] sm:$0xff]  }
  0xb7   :  { %3935 = vmatpush3.bf16.msra.mxu0 %v4441_v29  ;;  %v4498_v29 = vld [vmem:[%s5597_s1 + $0x6b8] sm:$0xff]  }
  0xb8   :  { %3936 = vmatprep.subr.bf16.mxu0 %v4444_v32  ;;  %v4502_v32 = vld [vmem:[%s5598_s0 + $0x6c] ss:$124 sps:$4 sm:$0xff]  }
  0xb9   :  { %3963 = vmatpush3.bf16.msra.mxu1 %v4443_v31  ;;  %v4500_v31 = vld [vmem:[%s5598_s0 + $0x68] ss:$124 sps:$4 sm:$0xff]  }
  0xba   :  { %3964 = vmatprep.subr.bf16.mxu1 %v4446_v34  ;;  %v4504_v34 = vld [vmem:[%s5597_s1 + $0x748] sm:$0xff]  }
  0xbb   :  { %3937 = vmatpush3.bf16.msra.mxu0 %v4445_v33  ;;  %v4503_v33 = vld [vmem:[%s5597_s1 + $0x700] sm:$0xff]  }
  0xbc   :  { %3938 = vmatprep.subr.bf16.mxu0 %v4448_v36  ;;  %v4506_v36 = vld [vmem:[%s5597_s1 + $0x708] sm:$0xff]  }
  0xbd   :  { %3965 = vmatpush3.bf16.msra.mxu1 %v4447_v35  ;;  %v4505_v35 = vld [vmem:[%s5597_s1 + $0x780] sm:$0xff]  }
  0xbe   :  { %3966 = vmatprep.subr.bf16.mxu1 %v4450_v38  ;;  %v4509_v38 = vld [vmem:[%s5598_s0 + $0x158] ss:$124 sps:$4 sm:$0xff]  }
  0xbf   :  { %3939 = vmatpush3.bf16.msra.mxu0 %v4449_v37  ;;  %v4507_v37 = vld [vmem:[%s5598_s0 + $0x15c] ss:$124 sps:$4 sm:$0xff]  }
  0xc0   :  { %3980 = vmatprep.subr.bf16.mxu0 %v4455_v42  ;;  %v4514_v42 = vld [vmem:[%s5597_s1 + $0x710] sm:$0xff]  }
  0xc1   :  { %3967 = vmatpush3.bf16.msra.mxu1 %v4454_v41  ;;  %v4512_v41 = vld [vmem:[%s5598_s0 + $0x164] ss:$124 sps:$4 sm:$0xff]  }
  0xc2   :  { %2911 = vmatmul.mubr.bf16.vlgmr.msra.gmra.mrb[40].mxu0 %v4451_v39  ;;  %4008 = vmatprep.subr.bf16.mxu1 %v4460_v46  ;;  %v4510_v39 = vld [vmem:[%s5597_s1 + $0x750] sm:$0xff]  }
  0xc3   :  { %3981 = vmatpush3.bf16.msra.mxu0 %v4459_v45  ;;  %2918 = vmatprep.mubr.bf16.mxu0 %v4465_v51  ;;  %v4517_v45 = vld [vmem:[%s5597_s1 + $0x790] sm:$0xff]  }
  0xc4   :  { %2960 = vmatmul.mubr.bf16.vlgmr.msra.gmra.mrb[40].mxu1 %v4456_v43  ;;  %3982 = vmatprep.subr.bf16.mxu0 %v4462_v48  ;;  %v4515_v43 = vld [vmem:[%s5598_s0 + $0x160] ss:$124 sps:$4 sm:$0xff]  }
  0xc5   :  { %4009 = vmatpush3.bf16.msra.mxu1 %v4461_v47  ;;  %2967 = vmatprep.mubr.bf16.mxu1 %v4470_v55  ;;  %v4518_v47 = vld [vmem:[%s5597_s1 + $0x718] sm:$0xff]   ;;  %v3332_v55 = vld [vmem:[%s5599_s2] ss:$0 sm:$0xff] }
  0xc6   :  { %4010 = vmatprep.subr.bf16.mxu1 %v4464_v50 }
  0xc7   :  { %3983 = vmatpush3.bf16.msra.mxu0 %v4463_v49  ;;  %v4519_v49 = vld [vmem:[%s5597_s1 + $0x760] sm:$0xff]  }
  0xc8   :  { %3984 = vmatprep.subr.bf16.mxu0 %v4469_v54  ;;  %v4521_v54 = vld [vmem:[%s5597_s1 + $0x720] sm:$0xff]  }
  0xc9   :  { %4011 = vmatpush3.bf16.msra.mxu1 %v4467_v52  ;;  %v4520_v52 = vld [vmem:[%s5597_s1 + $0x798] sm:$0xff]  }
  0xca   :  { %2919 = vmatmul.mubr.bf16.gmra.mrb[44].mxu0 %v4468_v53  ;;  %4012 = vmatprep.subr.bf16.mxu1 %v4474_v58  ;;  %v4522_v58 = vld [vmem:[%s5597_s1 + $0x768] sm:$0xff]  }
  0xcb   :  { %3985 = vmatpush3.bf16.msra.mxu0 %v4472_v56  ;;  %3008 = vmatprep.mubr.bf16.mxu0 %v4497_v28  ;;  %v4537_v28 = vld [vmem:[%s5598_s0 + $0x16c] ss:$124 sps:$4 sm:$0xff]  }
  0xcc   :  { %2968 = vmatmul.mubr.bf16.gmra.mrb[44].mxu1 %v4473_v57  ;;  %3986 = vmatprep.subr.bf16.mxu0 %v4476_v60 }
  0xcd   :  { %4013 = vmatpush3.bf16.msra.mxu1 %v4475_v59  ;;  %3057 = vmatprep.mubr.bf16.mxu1 %v4502_v32 }
  0xce   :  { %4014 = vmatprep.subr.bf16.mxu1 %v4478_v62 }
  0xcf   :  { %3987 = vmatpush3.bf16.msra.mxu0 %v4477_v61 }
  0xd0   :  { %3988 = vmatprep.subr.bf16.mxu0 %v4480_v0 }
  0xd1   :  { %4015 = vmatpush3.bf16.msra.mxu1 %v4479_v63  ;;  %v4523_v63 = vld [vmem:[%s5597_s1 + $0x7a0] sm:$0xff]  }
  0xd2   :  { %4016 = vmatprep.subr.bf16.mxu1 %v4482_v2  ;;  %v4524_v2 = vld [vmem:[%s5597_s1 + $0x728] sm:$0xff]  }
  0xd3   :  { %3989 = vmatpush3.bf16.msra.mxu0 %v4481_v1 }
  0xd4   :  { %3990 = vmatprep.subr.bf16.mxu0 %v4484_v4 }
  0xd5   :  { %4017 = vmatpush3.bf16.msra.mxu1 %v4483_v3 }
  0xd6   :  { %4018 = vmatprep.subr.bf16.mxu1 %v4486_v6 }
  0xd7   :  { %3991 = vmatpush3.bf16.msra.mxu0 %v4485_v5 }
  0xd8   :  { %3992 = vmatprep.subr.bf16.mxu0 %v4488_v10  ;;  %v4526_v10 = vld [vmem:[%s5597_s1 + $0x7a8] sm:$0xff]  }
  0xd9   :  { %4019 = vmatpush3.bf16.msra.mxu1 %v4487_v8 }
  0xda   :  { %4020 = vmatprep.subr.bf16.mxu1 %v4490_v15 }
  0xdb   :  { %3993 = vmatpush3.bf16.msra.mxu0 %v4489_v13  ;;  %v4528_v13 = vld [vmem:[%s5597_s1 + $0x778] sm:$0xff]  }
  0xdc   :  { %3994 = vmatprep.subr.bf16.mxu0 %v4492_v20 }
  0xdd   :  { %4021 = vmatpush3.bf16.msra.mxu1 %v4491_v17  ;;  %v4530_v17 = vld [vmem:[%s5597_s1 + $0x738] sm:$0xff]  }
  0xde   :  { %4022 = vmatprep.subr.bf16.mxu1 %v4494_v25  ;;  %v4531_v25 = vld [vmem:[%s5598_s0 + $0x70] ss:$124 sps:$4 sm:$0xff]  }
  0xdf   :  { %3995 = vmatpush3.bf16.msra.mxu0 %v4493_v23  ;;  %v4535_v23 = vld [vmem:[%s5598_s0 + $0x78] ss:$124 sps:$4 sm:$0xff]  }
  0xe0   :  { %4036 = vmatprep.subr.bf16.mxu0 %v4499_v30 }
  0xe1   :  { %4023 = vmatpush3.bf16.msra.mxu1 %v4498_v29 }
  0xe2   :  { %3009 = vmatmul.mubr.bf16.vlgmr.msra.gmra.mrb[48].mxu0 %v4495_v27  ;;  %4094 = vmatprep.subr.bf16.mxu1 %v4505_v35 }
  0xe3   :  { %4037 = vmatpush3.bf16.msra.mxu0 %v4503_v33  ;;  %3016 = vmatprep.mubr.bf16.mxu0 %v4507_v37 }
  0xe4   :  { %3058 = vmatmul.mubr.bf16.vlgmr.msra.gmra.mrb[48].mxu1 %v4500_v31  ;;  %4038 = vmatprep.subr.bf16.mxu0 %v4504_v34 }
  0xe5   :  { %4095 = vmatpush3.bf16.msra.mxu1 %v4505_v35  ;;  %3065 = vmatprep.mubr.bf16.mxu1 %v4512_v41 }
  0xe6   :  { %4096 = vmatprep.subr.bf16.mxu1 %v4511_v40 }
  0xe7   :  { %4039 = vmatpush3.bf16.msra.mxu0 %v4506_v36  ;;  %v4536_v36 = vld [vmem:[%s5598_s0 + $0x170] ss:$124 sps:$4 sm:$0xff]  }
  0xe8   :  { %4040 = vmatprep.subr.bf16.mxu0 %v4510_v39 }
  0xe9   :  { %4097 = vmatpush3.bf16.msra.mxu1 %v4511_v40 }
  0xea   :  { %3017 = vmatmul.mubr.bf16.gmra.mrb[52].mxu0 %v4509_v38  ;;  %4098 = vmatprep.subr.bf16.mxu1 %v4517_v45 }
  0xeb   :  { %4041 = vmatpush3.bf16.msra.mxu0 %v4514_v42  ;;  %v4539_v42 = vld [vmem:[%s5598_s0 + $0x168] ss:$124 sps:$4 sm:$0xff]  }
  0xec   :  { %3066 = vmatmul.mubr.bf16.gmra.mrb[52].mxu1 %v4515_v43  ;;  %4042 = vmatprep.subr.bf16.mxu0 %v4516_v44 }
  0xed   :  { %4099 = vmatpush3.bf16.msra.mxu1 %v4517_v45  ;;  %4110 = vmatprep.mubr.bf16.mxu1 %v4535_v23  ;;  %v3176_v23 = vld [vmem:[%s5600_s3] sm:$0xff] }
  0xee   :  { %4100 = vmatprep.subr.bf16.mxu1 %v4520_v52 }
  0xef   :  { %4043 = vmatpush3.bf16.msra.mxu0 %v4518_v47 }
  0xf0   :  { %4044 = vmatprep.subr.bf16.mxu0 %v4519_v49 }
  0xf1   :  { %4101 = vmatpush3.bf16.msra.mxu1 %v4520_v52 }
  0xf2   :  { %4102 = vmatprep.subr.bf16.mxu1 %v4523_v63 }
  0xf3   :  { %4045 = vmatpush3.bf16.msra.mxu0 %v4521_v54 }
  0xf4   :  { %4046 = vmatprep.subr.bf16.mxu0 %v4522_v58 }
  0xf5   :  { %v3660_v7 = vpop.f32.mrb[0].mxu0  ;;  %4103 = vmatpush3.bf16.msra.mxu1 %v4523_v63 }
  0xf6   :  { %v3661_v9 = vpop.f32.mrb[1].mxu0  ;;  %4104 = vmatprep.subr.bf16.mxu1 %v4526_v10 }
  0xf7   :  { %v5381_v11 = vadd.f32 %v3661_v9, %v3660_v7  ;;  %v3663_v12 = vpop.f32.mrb[2].mxu0  ;;  %v3688_v14 = vpop.f32.mrb[0].mxu1  ;;  %v4525_v7 = vld [vmem:[%s5597_s1 + $0x770] sm:$0xff]   ;;  %4047 = vmatpush3.bf16.msra.mxu0 %v4524_v2 }
  0xf8   :  { %v3664_v16 = vpop.f32.mrb[3].mxu0  ;;  %v3689_v19 = vpop.f32.mrb[1].mxu1  ;;  %4048 = vmatprep.subr.bf16.mxu0 %v4525_v7 }
  0xf9   :  { %v5392_v18 = vadd.f32 %v3664_v16, %v3663_v12  ;;  %v5397_v21 = vadd.f32 %v3689_v19, %v3688_v14  ;;  %v3691_v22 = vpop.f32.mrb[2].mxu1  ;;  %v2423_v57 = vadd.f32 %v5381_v11, %v3332_v55  ;;  %v4527_v11 = vld [vmem:[%s5597_s1 + $0x730] sm:$0xff]   ;;  %4105 = vmatpush3.bf16.msra.mxu1 %v4526_v10 }
  0xfa   :  { %v3692_v24 = vpop.f32.mrb[3].mxu1  ;;  %v4529_v14 = vld [vmem:[%s5597_s1 + $0x7b0] sm:$0xff]  }
  0xfb   :  { %v5405_v26 = vadd.f32 %v3692_v24, %v3691_v22  ;;  %v2426_v59 = vadd.f32 %v5392_v18, %v3332_v55  ;;  %v2472_v3 = vadd.f32 %v5397_v21, %v2423_v57  ;;  %v4533_v18 = vld [vmem:[%s5598_s0 + $0x74] ss:$124 sps:$4 sm:$0xff]   ;;  %4049 = vmatpush3.bf16.msra.mxu0 %v4527_v11  ;;  %v4534_v21 = vld [vmem:[%s5597_s1 + $0x7b8] sm:$0xff]   ;;  %4106 = vmatprep.subr.bf16.mxu1 %v4529_v14 }
  0xfc   :  { %4050 = vmatprep.subr.bf16.mxu0 %v4528_v13  ;;  %3106 = vmatprep.mubr.bf16.mxu0 %v4533_v18 }
  0xfd   :  { %v3666_v46 = vpop.f32.mrb[4].mxu0  ;;  %v2475_v4 = vadd.f32 %v5405_v26, %v2426_v59  ;;  %4107 = vmatpush3.bf16.msra.mxu1 %v4529_v14 }
  0xfe   :  { %v3667_v48 = vpop.f32.mrb[5].mxu0  ;;  %4108 = vmatprep.subr.bf16.mxu1 %v4534_v21 }
  0xff   :  { %v3668_v50 = vadd.f32 %v3667_v48, %v3666_v46  ;;  %v3669_v51 = vpop.f32.mrb[6].mxu0  ;;  %v3694_v53 = vpop.f32.mrb[4].mxu1  ;;  %4051 = vmatpush3.bf16.msra.mxu0 %v4530_v17 }
 0x100   :  { %v3670_v56 = vpop.f32.mrb[7].mxu0  ;;  %v3695_v62 = vpop.f32.mrb[5].mxu1 }
 0x101   :  { %v2431_v60 = vadd.f32 %v3668_v50, %v3332_v55  ;;  %v3671_v61 = vadd.f32 %v3670_v56, %v3669_v51  ;;  %v3696_v0 = vadd.f32 %v3695_v62, %v3694_v53  ;;  %v3697_v1 = vpop.f32.mrb[6].mxu1  ;;  %4109 = vmatpush3.bf16.msra.mxu1 %v4534_v21 }
 0x102   :  { %v3698_v6 = vpop.f32.mrb[7].mxu1  ;;  %3107 = vmatmul.mubr.bf16.vlgmr.msra.gmra.mrb[56].mxu0 %v4531_v25 }
 0x103   :  { %v2434_v5 = vadd.f32 %v3671_v61, %v3332_v55  ;;  %v2480_v8 = vadd.f32 %v3696_v0, %v2431_v60  ;;  %v3699_v9 = vadd.f32 %v3698_v6, %v3697_v1  ;;  %3114 = vmatprep.mubr.bf16.mxu0 %v4537_v28 }
 0x104   :  { %4111 = vmatmul.mubr.bf16.vlgmr.msra.gmra.mrb[56].mxu1 %v4536_v36 }
 0x105   :  { %v2483_v12 = vadd.f32 %v3699_v9, %v2434_v5 }
 0x10a   :  { %3115 = vmatmul.mubr.bf16.gmra.mrb[60].mxu0 %v4539_v42 }
 0x115   :  { %v3716_v15 = vpop.f32.mrb[8].mxu0 }
 0x116   :  { %v3717_v16 = vpop.f32.mrb[9].mxu0 }
 0x117   :  { %v3718_v19 = vadd.f32 %v3717_v16, %v3716_v15  ;;  %v3719_v20 = vpop.f32.mrb[10].mxu0  ;;  %v3744_v22 = vpop.f32.mrb[8].mxu1 }
 0x118   :  { %v3720_v26 = vpop.f32.mrb[11].mxu0  ;;  %v3745_v27 = vpop.f32.mrb[9].mxu1 }
 0x119   :  { %v2521_v24 = vadd.f32 %v3718_v19, %v2472_v3  ;;  %v3721_v29 = vadd.f32 %v3720_v26, %v3719_v20  ;;  %v3746_v30 = vadd.f32 %v3745_v27, %v3744_v22  ;;  %v3747_v31 = vpop.f32.mrb[10].mxu1  ;;  %v3178_v26 = vld [vmem:[%s5600_s3 + $0x10] sm:$0xff]  ;;  %v3179_v27 = vld [vmem:[%s5600_s3 + $0x18] sm:$0xff] }
 0x11a   :  { %v3748_v32 = vpop.f32.mrb[11].mxu1 }
 0x11b   :  { %v2524_v33 = vadd.f32 %v3721_v29, %v2475_v4  ;;  %v2570_v34 = vadd.f32 %v3746_v30, %v2521_v24  ;;  %v3749_v35 = vadd.f32 %v3748_v32, %v3747_v31  ;;  %v3177_v24 = vld [vmem:[%s5600_s3 + $0x8] sm:$0xff]  ;;  %v4156_v29 = vpack.c.bf16 %v3179_v27, %v3178_v26 }
 0x11c   :  { %v4152_v25 = vpack.c.bf16 %v3177_v24, %v3176_v23 }
 0x11d   :  { %v2573_v37 = vadd.f32 %v3749_v35, %v2524_v33  ;;  %v3722_v38 = vpop.f32.mrb[12].mxu0  ;;  %v3180_v33 = vld [vmem:[%s5600_s3 + $0x20] sm:$0xff]  ;;  %v3182_v35 = vld [vmem:[%s5600_s3 + $0x30] sm:$0xff] }
 0x11e   :  { %v3723_v39 = vpop.f32.mrb[13].mxu0  ;;  %4153 = vmatprep.subr.bf16.mxu0 %v4152_v25  ;;  %4184 = vmatprep.subr.bf16.mxu1 %v4152_v25 }
 0x11f   :  { %v3724_v40 = vadd.f32 %v3723_v39, %v3722_v38  ;;  %v3725_v41 = vpop.f32.mrb[14].mxu0  ;;  %v3750_v43 = vpop.f32.mrb[12].mxu1  ;;  %4155 = vmatpush3.bf16.msra.mxu0 %v4152_v25  ;;  %4192 = vmatpush3.bf16.msra.mxu1 %v4152_v25  ;;  %v3183_v39 = vld [vmem:[%s5600_s3 + $0x38] sm:$0xff] }
 0x120   :  { %v3726_v44 = vpop.f32.mrb[15].mxu0  ;;  %v3751_v47 = vpop.f32.mrb[13].mxu1  ;;  %4157 = vmatprep.subr.bf16.mxu0 %v4156_v29  ;;  %4185 = vmatprep.subr.bf16.mxu1 %v4156_v29 }
 0x121   :  { %v2529_v45 = vadd.f32 %v3724_v40, %v2480_v8  ;;  %v3727_v46 = vadd.f32 %v3726_v44, %v3725_v41  ;;  %v3752_v48 = vadd.f32 %v3751_v47, %v3750_v43  ;;  %v3753_v49 = vpop.f32.mrb[14].mxu1  ;;  %v4164_v43 = vpack.c.bf16 %v3183_v39, %v3182_v35  ;;  %v3185_v47 = vld [vmem:[%s5600_s3 + $0x48] sm:$0xff] }
 0x122   :  { %v3754_v51 = vpop.f32.mrb[15].mxu1 }
 0x123   :  { %v2532_v50 = vadd.f32 %v3727_v46, %v2483_v12  ;;  %v2578_v52 = vadd.f32 %v3752_v48, %v2529_v45  ;;  %v3755_v53 = vadd.f32 %v3754_v51, %v3753_v49  ;;  %4159 = vmatpush3.bf16.msra.mxu0 %v4156_v29  ;;  %4193 = vmatpush3.bf16.msra.mxu1 %v4156_v29  ;;  %v3184_v46 = vld [vmem:[%s5600_s3 + $0x40] sm:$0xff] }
 0x125   :  { %v2581_v54 = vadd.f32 %v3755_v53, %v2532_v50 }
 0x135   :  { %v3772_v55 = vpop.f32.mrb[16].mxu0 }
 0x136   :  { %v3773_v56 = vpop.f32.mrb[17].mxu0 }
 0x137   :  { %v3774_v57 = vadd.f32 %v3773_v56, %v3772_v55  ;;  %v3775_v58 = vpop.f32.mrb[18].mxu0  ;;  %v3800_v61 = vpop.f32.mrb[16].mxu1 }
 0x138   :  { %v3776_v59 = vpop.f32.mrb[19].mxu0  ;;  %v3801_v63 = vpop.f32.mrb[17].mxu1 }
 0x139   :  { %v2619_v60 = vadd.f32 %v3774_v57, %v2570_v34  ;;  %v3777_v62 = vadd.f32 %v3776_v59, %v3775_v58  ;;  %v3802_v1 = vadd.f32 %v3801_v63, %v3800_v61  ;;  %v3803_v2 = vpop.f32.mrb[18].mxu1  ;;  %v3181_v34 = vld [vmem:[%s5600_s3 + $0x28] sm:$0xff]  ;;  %v3186_v63 = vld [vmem:[%s5600_s3 + $0x50] sm:$0xff] }
 0x13a   :  { %v3804_v3 = vpop.f32.mrb[19].mxu1  ;;  %v4160_v38 = vpack.c.bf16 %v3181_v34, %v3180_v33 }
 0x13b   :  { %v2622_v0 = vadd.f32 %v3777_v62, %v2573_v37  ;;  %v2668_v4 = vadd.f32 %v3802_v1, %v2619_v60  ;;  %v3805_v5 = vadd.f32 %v3804_v3, %v3803_v2 }
 0x13c   :  { %4161 = vmatprep.subr.bf16.mxu0 %v4160_v38  ;;  %4186 = vmatprep.subr.bf16.mxu1 %v4160_v38 }
 0x13d   :  { %v2671_v6 = vadd.f32 %v3805_v5, %v2622_v0  ;;  %v3778_v7 = vpop.f32.mrb[20].mxu0  ;;  %4163 = vmatpush3.bf16.msra.mxu0 %v4160_v38  ;;  %4194 = vmatpush3.bf16.msra.mxu1 %v4160_v38  ;;  %v3187_v0 = vld [vmem:[%s5600_s3 + $0x58] sm:$0xff] }
 0x13e   :  { %v3779_v8 = vpop.f32.mrb[21].mxu0  ;;  %4165 = vmatprep.subr.bf16.mxu0 %v4164_v43  ;;  %4187 = vmatprep.subr.bf16.mxu1 %v4164_v43 }
 0x13f   :  { %v3780_v9 = vadd.f32 %v3779_v8, %v3778_v7  ;;  %v3781_v10 = vpop.f32.mrb[22].mxu0  ;;  %v3806_v11 = vpop.f32.mrb[20].mxu1  ;;  %v3188_v8 = vld [vmem:[%s5600_s3 + $0x60] sm:$0xff] }
 0x140   :  { %v3782_v12 = vpop.f32.mrb[23].mxu0  ;;  %v3807_v15 = vpop.f32.mrb[21].mxu1 }
 0x141   :  { %v2627_v13 = vadd.f32 %v3780_v9, %v2578_v52  ;;  %v3783_v14 = vadd.f32 %v3782_v12, %v3781_v10  ;;  %v3808_v16 = vadd.f32 %v3807_v15, %v3806_v11  ;;  %v3809_v17 = vpop.f32.mrb[22].mxu1  ;;  %v4168_v52 = vpack.c.bf16 %v3185_v47, %v3184_v46  ;;  %4167 = vmatpush3.bf16.msra.mxu0 %v4164_v43  ;;  %v3189_v9 = vld [vmem:[%s5600_s3 + $0x68] sm:$0xff]  ;;  %v3190_v12 = vld [vmem:[%s5600_s3 + $0x70] sm:$0xff] }
 0x142   :  { %v3810_v19 = vpop.f32.mrb[23].mxu1  ;;  %4195 = vmatpush3.bf16.msra.mxu1 %v4164_v43  ;;  %v4176_v11 = vpack.c.bf16 %v3189_v9, %v3188_v8 }
 0x143   :  { %v2630_v18 = vadd.f32 %v3783_v14, %v2581_v54  ;;  %v2676_v20 = vadd.f32 %v3808_v16, %v2627_v13  ;;  %v3811_v21 = vadd.f32 %v3810_v19, %v3809_v17  ;;  %4169 = vmatprep.subr.bf16.mxu0 %v4168_v52  ;;  %4188 = vmatprep.subr.bf16.mxu1 %v4168_v52  ;;  %v3191_v13 = vld [vmem:[%s5600_s3 + $0x78] sm:$0xff] }
 0x144   :  { %v4180_v14 = vpack.c.bf16 %v3191_v13, %v3190_v12 }
 0x145   :  { %v5531_v22 = vadd.f32 %v3811_v21, %v2630_v18  ;;  %4171 = vmatpush3.bf16.msra.mxu0 %v4168_v52 }
 0x146   :  { %4196 = vmatpush3.bf16.msra.mxu1 %v4168_v52 }
 0x155   :  { %v3828_v28 = vpop.f32.mrb[24].mxu0 }
 0x156   :  { %v3829_v30 = vpop.f32.mrb[25].mxu0 }
 0x157   :  { %v3830_v31 = vadd.f32 %v3829_v30, %v3828_v28  ;;  %v3831_v32 = vpop.f32.mrb[26].mxu0  ;;  %v3856_v36 = vpop.f32.mrb[24].mxu1 }
 0x158   :  { %v3832_v37 = vpop.f32.mrb[27].mxu0  ;;  %v3857_v42 = vpop.f32.mrb[25].mxu1 }
 0x159   :  { %v2717_v40 = vadd.f32 %v3830_v31, %v2668_v4  ;;  %v3833_v41 = vadd.f32 %v3832_v37, %v3831_v32  ;;  %v3858_v44 = vadd.f32 %v3857_v42, %v3856_v36  ;;  %v3859_v45 = vpop.f32.mrb[26].mxu1  ;;  %v4172_v4 = vpack.c.bf16 %v3187_v0, %v3186_v63 }
 0x15a   :  { %v3860_v49 = vpop.f32.mrb[27].mxu1 }
 0x15b   :  { %v2720_v48 = vadd.f32 %v3833_v41, %v2671_v6  ;;  %v2766_v50 = vadd.f32 %v3858_v44, %v2717_v40  ;;  %v3861_v51 = vadd.f32 %v3860_v49, %v3859_v45  ;;  %4173 = vmatprep.subr.bf16.mxu0 %v4172_v4  ;;  %4189 = vmatprep.subr.bf16.mxu1 %v4172_v4 }
 0x15c   :  { %4175 = vmatpush3.bf16.msra.mxu0 %v4172_v4  ;;  %4197 = vmatpush3.bf16.msra.mxu1 %v4172_v4 }
 0x15d   :  { %v2769_v53 = vadd.f32 %v3861_v51, %v2720_v48  ;;  %v3834_v54 = vpop.f32.mrb[28].mxu0  ;;  %4177 = vmatprep.subr.bf16.mxu0 %v4176_v11  ;;  %4190 = vmatprep.subr.bf16.mxu1 %v4176_v11 }
 0x15e   :  { %v3835_v55 = vpop.f32.mrb[29].mxu0 }
 0x15f   :  { %v3836_v56 = vadd.f32 %v3835_v55, %v3834_v54  ;;  %v3837_v57 = vpop.f32.mrb[30].mxu0  ;;  %v3862_v60 = vpop.f32.mrb[28].mxu1 }
 0x160   :  { %v3838_v58 = vpop.f32.mrb[31].mxu0  ;;  %v3863_v62 = vpop.f32.mrb[29].mxu1  ;;  %4179 = vmatpush3.bf16.msra.mxu0 %v4176_v11  ;;  %4198 = vmatpush3.bf16.msra.mxu1 %v4176_v11 }
 0x161   :  { %v2725_v59 = vadd.f32 %v3836_v56, %v2676_v20  ;;  %v3839_v61 = vadd.f32 %v3838_v58, %v3837_v57  ;;  %v3864_v2 = vadd.f32 %v3863_v62, %v3862_v60  ;;  %v3865_v3 = vpop.f32.mrb[30].mxu1  ;;  %4181 = vmatprep.subr.bf16.mxu0 %v4180_v14  ;;  %4191 = vmatprep.subr.bf16.mxu1 %v4180_v14 }
 0x162   :  { %v3866_v5 = vpop.f32.mrb[31].mxu1 }
 0x163   :  { %v2728_v1 = vadd.f32 %v3839_v61, %v5531_v22  ;;  %v2774_v6 = vadd.f32 %v3864_v2, %v2725_v59  ;;  %v3867_v7 = vadd.f32 %v3866_v5, %v3865_v3 }
 0x164   :  { %4183 = vmatpush3.bf16.msra.mxu0 %v4180_v14  ;;  %4199 = vmatpush3.bf16.msra.mxu1 %v4180_v14 }
 0x165   :  { %v2777_v10 = vadd.f32 %v3867_v7, %v2728_v1 }
 0x175   :  { %v3884_v15 = vpop.f32.mrb[32].mxu0 }
 0x176   :  { %v3885_v16 = vpop.f32.mrb[33].mxu0 }
 0x177   :  { %v3886_v17 = vadd.f32 %v3885_v16, %v3884_v15  ;;  %v3887_v18 = vpop.f32.mrb[34].mxu0  ;;  %v3912_v19 = vpop.f32.mrb[32].mxu1 }
 0x178   :  { %v3888_v20 = vpop.f32.mrb[35].mxu0  ;;  %v3913_v23 = vpop.f32.mrb[33].mxu1 }
 0x179   :  { %v2815_v21 = vadd.f32 %v3886_v17, %v2766_v50  ;;  %v3889_v22 = vadd.f32 %v3888_v20, %v3887_v18  ;;  %v3914_v24 = vadd.f32 %v3913_v23, %v3912_v19  ;;  %v3915_v25 = vpop.f32.mrb[34].mxu1 }
 0x17a   :  { %v3916_v27 = vpop.f32.mrb[35].mxu1 }
 0x17b   :  { %v2818_v26 = vadd.f32 %v3889_v22, %v2769_v53  ;;  %v2864_v28 = vadd.f32 %v3914_v24, %v2815_v21  ;;  %v3917_v29 = vadd.f32 %v3916_v27, %v3915_v25 }
 0x17d   :  { %v2867_v30 = vadd.f32 %v3917_v29, %v2818_v26  ;;  %v3890_v31 = vpop.f32.mrb[36].mxu0 }
 0x17e   :  { %v3891_v32 = vpop.f32.mrb[37].mxu0 }
 0x17f   :  { %v3892_v33 = vadd.f32 %v3891_v32, %v3890_v31  ;;  %v3893_v34 = vpop.f32.mrb[38].mxu0  ;;  %v3918_v35 = vpop.f32.mrb[36].mxu1 }
 0x180   :  { %v3894_v36 = vpop.f32.mrb[39].mxu0  ;;  %v3919_v39 = vpop.f32.mrb[37].mxu1 }
 0x181   :  { %v2823_v37 = vadd.f32 %v3892_v33, %v2774_v6  ;;  %v3895_v38 = vadd.f32 %v3894_v36, %v3893_v34  ;;  %v3920_v40 = vadd.f32 %v3919_v39, %v3918_v35  ;;  %v3921_v41 = vpop.f32.mrb[38].mxu1 }
 0x182   :  { %v3922_v43 = vpop.f32.mrb[39].mxu1 }
 0x183   :  { %v2826_v42 = vadd.f32 %v3895_v38, %v2777_v10  ;;  %v2872_v44 = vadd.f32 %v3920_v40, %v2823_v37  ;;  %v3923_v45 = vadd.f32 %v3922_v43, %v3921_v41 }
 0x185   :  { %v2875_v46 = vadd.f32 %v3923_v45, %v2826_v42 }
 0x195   :  { %v3940_v47 = vpop.f32.mrb[40].mxu0 }
 0x196   :  { %v3941_v48 = vpop.f32.mrb[41].mxu0 }
 0x197   :  { %v3942_v49 = vadd.f32 %v3941_v48, %v3940_v47  ;;  %v3943_v50 = vpop.f32.mrb[42].mxu0  ;;  %v3968_v53 = vpop.f32.mrb[40].mxu1 }
 0x198   :  { %v3944_v51 = vpop.f32.mrb[43].mxu0  ;;  %v3969_v55 = vpop.f32.mrb[41].mxu1 }
 0x199   :  { %v2913_v52 = vadd.f32 %v3942_v49, %v2864_v28  ;;  %v3945_v54 = vadd.f32 %v3944_v51, %v3943_v50  ;;  %v3970_v57 = vadd.f32 %v3969_v55, %v3968_v53  ;;  %v3971_v58 = vpop.f32.mrb[42].mxu1 }
 0x19a   :  { %v3972_v59 = vpop.f32.mrb[43].mxu1 }
 0x19b   :  { %v2916_v56 = vadd.f32 %v3945_v54, %v2867_v30  ;;  %v2962_v60 = vadd.f32 %v3970_v57, %v2913_v52  ;;  %v3973_v61 = vadd.f32 %v3972_v59, %v3971_v58 }
 0x19d   :  { %v2965_v62 = vadd.f32 %v3973_v61, %v2916_v56  ;;  %v3946_v63 = vpop.f32.mrb[44].mxu0 }
 0x19e   :  { %v3947_v0 = vpop.f32.mrb[45].mxu0 }
 0x19f   :  { %v3948_v1 = vadd.f32 %v3947_v0, %v3946_v63  ;;  %v3949_v2 = vpop.f32.mrb[46].mxu0  ;;  %v3974_v3 = vpop.f32.mrb[44].mxu1 }
 0x1a0   :  { %v3950_v4 = vpop.f32.mrb[47].mxu0  ;;  %v3975_v7 = vpop.f32.mrb[45].mxu1 }
 0x1a1   :  { %v2921_v5 = vadd.f32 %v3948_v1, %v2872_v44  ;;  %v3951_v6 = vadd.f32 %v3950_v4, %v3949_v2  ;;  %v3976_v8 = vadd.f32 %v3975_v7, %v3974_v3  ;;  %v3977_v9 = vpop.f32.mrb[46].mxu1 }
 0x1a2   :  { %v3978_v11 = vpop.f32.mrb[47].mxu1 }
 0x1a3   :  { %v2924_v10 = vadd.f32 %v3951_v6, %v2875_v46  ;;  %v2970_v12 = vadd.f32 %v3976_v8, %v2921_v5  ;;  %v3979_v13 = vadd.f32 %v3978_v11, %v3977_v9  ;;  %v3643_v11 = vld [vmem:[%s5601_s4] ss:$0 sm:$0xff] }
 0x1a5   :  { %v2973_v14 = vadd.f32 %v3979_v13, %v2924_v10 }
 0x1b5   :  { %v3996_v15 = vpop.f32.mrb[48].mxu0 }
 0x1b6   :  { %v3997_v16 = vpop.f32.mrb[49].mxu0 }
 0x1b7   :  { %v3998_v17 = vadd.f32 %v3997_v16, %v3996_v15  ;;  %v3999_v18 = vpop.f32.mrb[50].mxu0  ;;  %v4024_v19 = vpop.f32.mrb[48].mxu1 }
 0x1b8   :  { %v4000_v20 = vpop.f32.mrb[51].mxu0  ;;  %v4025_v23 = vpop.f32.mrb[49].mxu1 }
 0x1b9   :  { %v3011_v21 = vadd.f32 %v3998_v17, %v2962_v60  ;;  %v4001_v22 = vadd.f32 %v4000_v20, %v3999_v18  ;;  %v4026_v24 = vadd.f32 %v4025_v23, %v4024_v19  ;;  %v4027_v25 = vpop.f32.mrb[50].mxu1 }
 0x1ba   :  { %v4028_v27 = vpop.f32.mrb[51].mxu1 }
 0x1bb   :  { %v3014_v26 = vadd.f32 %v4001_v22, %v2965_v62  ;;  %v3060_v28 = vadd.f32 %v4026_v24, %v3011_v21  ;;  %v4029_v29 = vadd.f32 %v4028_v27, %v4027_v25 }
 0x1bd   :  { %v4002_v30 = vpop.f32.mrb[52].mxu0  ;;  %v3063_v31 = vadd.f32 %v4029_v29, %v3014_v26 }
 0x1be   :  { %v4003_v32 = vpop.f32.mrb[53].mxu0 }
 0x1bf   :  { %v4004_v33 = vadd.f32 %v4003_v32, %v4002_v30  ;;  %v4005_v34 = vpop.f32.mrb[54].mxu0  ;;  %v4030_v37 = vpop.f32.mrb[52].mxu1 }
 0x1c0   :  { %v4006_v35 = vpop.f32.mrb[55].mxu0  ;;  %v4031_v39 = vpop.f32.mrb[53].mxu1 }
 0x1c1   :  { %v3019_v36 = vadd.f32 %v4004_v33, %v2970_v12  ;;  %v4007_v38 = vadd.f32 %v4006_v35, %v4005_v34  ;;  %v4032_v41 = vadd.f32 %v4031_v39, %v4030_v37  ;;  %v4033_v42 = vpop.f32.mrb[54].mxu1 }
 0x1c2   :  { %v4034_v43 = vpop.f32.mrb[55].mxu1 }
 0x1c3   :  { %v3022_v40 = vadd.f32 %v4007_v38, %v2973_v14  ;;  %v3068_v44 = vadd.f32 %v4032_v41, %v3019_v36  ;;  %v4035_v45 = vadd.f32 %v4034_v43, %v4033_v42 }
 0x1c5   :  { %v3071_v46 = vadd.f32 %v4035_v45, %v3022_v40 }
 0x1d5   :  { %v4052_v47 = vpop.f32.mrb[56].mxu0 }
 0x1d6   :  { %v4053_v48 = vpop.f32.mrb[57].mxu0 }
 0x1d7   :  { %v4054_v49 = vadd.f32 %v4053_v48, %v4052_v47  ;;  %v4055_v50 = vpop.f32.mrb[58].mxu0  ;;  %v4112_v53 = vpop.f32.mrb[56].mxu1 }
 0x1d8   :  { %v4056_v51 = vpop.f32.mrb[59].mxu0  ;;  %v3157_v55 = vpop.f32.mrb[57].mxu1 }
 0x1d9   :  { %v4057_v52 = vadd.f32 %v4056_v51, %v4055_v50  ;;  %v3109_v54 = vadd.f32 %v4054_v49, %v3060_v28  ;;  %v4113_v57 = vpop.f32.mrb[58].mxu1 }
 0x1da   :  { %v3160_v59 = vpop.f32.mrb[59].mxu1 }
 0x1db   :  { %v3158_v56 = vadd.f32 %v3157_v55, %v3109_v54  ;;  %v3112_v58 = vadd.f32 %v4057_v52, %v3063_v31 }
 0x1dd   :  { %v3172_v60 = vmax.f32 %v3158_v56, 0.0  ;;  %v3161_v61 = vadd.f32 %v3160_v59, %v3112_v58  ;;  %v4058_v62 = vpop.f32.mrb[60].mxu0 }
 0x1de   :  { %v4059_v63 = vpop.f32.mrb[61].mxu0 }
 0x1df   :  { %v3173_v0 = vmax.f32 %v3161_v61, 0.0  ;;  %v4060_v1 = vadd.f32 %v4059_v63, %v4058_v62  ;;  %v4061_v2 = vpop.f32.mrb[62].mxu0  ;;  %4146 = vmatprep.mubr.f32.mxu0 %v3172_v60 }
 0x1e0   :  { %v4062_v3 = vpop.f32.mrb[63].mxu0 }
 0x1e1   :  { %v3117_v4 = vadd.f32 %v4060_v1, %v3068_v44  ;;  %v4063_v5 = vadd.f32 %v4062_v3, %v4061_v2  ;;  %4147 = vmatmul.mubr.f32.vlgmr.msra.gmra.mrb[64].mxu0 %v3173_v0 }
 0x1e3   :  { %v3120_v6 = vadd.f32 %v4063_v5, %v3071_v46  ;;  %v3166_v7 = vadd.f32 %v4112_v53, %v3117_v4 }
 0x1e5   :  { %v3169_v8 = vadd.f32 %v4113_v57, %v3120_v6  ;;  %v3174_v9 = vmax.f32 %v3166_v7, 0.0 }
 0x1e7   :  { %v3175_v10 = vmax.f32 %v3169_v8, 0.0  ;;  %4149 = vmatprep.mubr.f32.mxu1 %v3174_v9 }
 0x1e9   :  { %4150 = vmatmul.mubr.f32.vlgmr.msra.gmra.mrb[60].mxu1 %v3175_v10 }
 0x2b4   :  { %v4148_v12 = vpop.f32.mrb[64].mxu0 }
 0x2b5   :  { %v3265_v13 = vpop.f32.mrb[65].mxu0  ;;  %v3271_v15 = vadd.f32 %v4148_v12, %v3643_v11 }
 0x2b6   :  { %v3266_v14 = vadd.f32 %v3643_v11, %v3265_v13 }
 0x2b8   :  { %3284 = vmax.xlane.f32.xlu0 %v3266_v14 }
 0x2bc   :  { %v4151_v16 = vpop.f32.mrb[60].mxu1  ;;  %3286 = vmax.xlane.f32.xlu0 %v3271_v15 }
 0x2bd   :  { %v3275_v17 = vpop.f32.mrb[61].mxu1  ;;  %v3281_v19 = vadd.f32 %v4151_v16, %v3643_v11 }
 0x2be   :  { %v3276_v18 = vadd.f32 %v3643_v11, %v3275_v17 }
 0x2c0   :  { %3288 = vmax.xlane.f32.xlu1 %v3276_v18 }
 0x2c4   :  { %3290 = vmax.xlane.f32.xlu1 %v3281_v19 }
 0x345   :  { %v3285_v20 = vpop.xlane.xlu0 %3284 }
 0x346   :  { %v3292_v21 = vsub.f32 %v3266_v14, %v3285_v20 }
 0x348   :  { %v3296_v22 = vmul.f32 1.442695, %v3292_v21 }
 0x349   :  { %v3287_v23 = vpop.xlane.xlu0 %3286 }
 0x34a   :  { %4540 = vpow2.f32 %v3296_v22  ;;  %v3293_v24 = vsub.f32 %v3271_v15, %v3287_v23 }
 0x34c   :  { %v3298_v25 = vmul.f32 1.442695, %v3293_v24 }
 0x34d   :  { %v3289_v26 = vpop.xlane.xlu1 %3288 }
 0x34e   :  { %4542 = vpow2.f32 %v3298_v25  ;;  %v3294_v27 = vsub.f32 %v3276_v18, %v3289_v26 }
 0x350   :  { %v3300_v28 = vmul.f32 1.442695, %v3294_v27 }
 0x351   :  { %v3291_v29 = vpop.xlane.xlu1 %3290 }
 0x352   :  { %4544 = vpow2.f32 %v3300_v28  ;;  %v3295_v30 = vsub.f32 %v3281_v19, %v3291_v29 }
 0x354   :  { %v4541_v31 = vpop.eup %4540  ;;  %v3302_v32 = vmul.f32 1.442695, %v3295_v30 }
 0x355   :  { %3304 = vadd.xlane.f32.xlu0 %v4541_v31 }
 0x356   :  { %4546 = vpow2.f32 %v3302_v32 }
 0x358   :  { %v4543_v33 = vpop.eup %4542 }
 0x359   :  { %3306 = vadd.xlane.f32.xlu1 %v4543_v33 }
 0x35c   :  { %v4545_v34 = vpop.eup %4544 }
 0x35d   :  { %3308 = vadd.xlane.f32.xlu0 %v4545_v34 }
 0x360   :  { %v4547_v35 = vpop.eup %4546 }
 0x361   :  { %3310 = vadd.xlane.f32.xlu1 %v4547_v35 }
 0x3e2   :  { %v3305_v36 = vpop.xlane.xlu0 %3304 }
 0x3e3   :  { %4548 = vlog2.f32 %v3305_v36 }
 0x3e6   :  { %v3307_v37 = vpop.xlane.xlu1 %3306 }
 0x3e7   :  { %4550 = vlog2.f32 %v3307_v37 }
 0x3ea   :  { %v3309_v38 = vpop.xlane.xlu0 %3308 }
 0x3eb   :  { %4552 = vlog2.f32 %v3309_v38 }
 0x3ed   :  { %v4549_v39 = vpop.eup %4548 }
 0x3ee   :  { %v3313_v40 = vmul.f32 0.6931472, %v4549_v39  ;;  %v3311_v41 = vpop.xlane.xlu1 %3310 }
 0x3ef   :  { %4554 = vlog2.f32 %v3311_v41 }
 0x3f0   :  { %v3320_v42 = vsub.f32 %v3292_v21, %v3313_v40 }
 0x3f1   :  { %v4551_v43 = vpop.eup %4550 }
 0x3f2   :  { %3324 = vst [vmem:[%s5602_s5] sm:$0xff] %v3320_v42  ;;  %v3315_v44 = vmul.f32 0.6931472, %v4551_v43 }
 0x3f4   :  { %v3321_v45 = vsub.f32 %v3293_v24, %v3315_v44 }
 0x3f5   :  { %v4553_v46 = vpop.eup %4552 }
 0x3f6   :  { %3325 = vst [vmem:[%s5602_s5 + $0x8] sm:$0xff] %v3321_v45  ;;  %v3317_v47 = vmul.f32 0.6931472, %v4553_v46 }
 0x3f8   :  { %v3322_v48 = vsub.f32 %v3294_v27, %v3317_v47 }
 0x3f9   :  { %v4555_v49 = vpop.eup %4554 }
 0x3fa   :  { %3326 = vst [vmem:[%s5602_s5 + $0x10] sm:$0xff] %v3322_v48  ;;  %v3319_v50 = vmul.f32 0.6931472, %v4555_v49 }
 0x3fc   :  { %v3323_v51 = vsub.f32 %v3295_v30, %v3319_v50 }
 0x3fe   :  { %3327 = vst [vmem:[%s5602_s5 + $0x18] sm:$0xff] %v3323_v51 }

// kernel: tcn_forward.2
= control target key start
LH: loop header
LB: loop body
LE: loop exit
PB: predicated region body
PF: predicated region fallthrough
CT: control target
= control target key end

     0   :  { %s8297_s25 = smov 0   ;;  %s12787_s0 = inlined_call_operand.vmem [shape: f32[992,2], index: 0, kind: input, shape index: {}]   ;;  %s12788_s1 = inlined_call_operand.vmem [shape: s32[496,1], index: 1, kind: input, shape index: {}]   ;;  %s12789_s2 = inlined_call_operand.vmem [shape: f32[2,128], index: 2, kind: input, shape index: {}]   ;;  %s12790_s3 = inlined_call_operand.vmem [shape: f32[1,128], index: 3, kind: input, shape index: {}]   ;;  %s12791_s4 = inlined_call_operand.vmem [shape: bf16[128,128], index: 4, kind: input, shape index: {}]   ;;  %s12792_s5 = inlined_call_operand.vmem [shape: bf16[128,128], index: 5, kind: input, shape index: {}]   ;;  %s12793_s6 = inlined_call_operand.vmem [shape: f32[1,128], index: 6, kind: input, shape index: {}]   ;;  %s12794_s7 = inlined_call_operand.vmem [shape: bf16[128,128], index: 7, kind: input, shape index: {}]   ;;  %s12795_s8 = inlined_call_operand.vmem [shape: bf16[128,128], index: 8, kind: input, shape index: {}]   ;;  %s12796_s9 = inlined_call_operand.vmem [shape: f32[1,128], index: 9, kind: input, shape index: {}]   ;;  %s12797_s10 = inlined_call_operand.vmem [shape: bf16[128,128], index: 10, kind: input, shape index: {}]   ;;  %s12798_s11 = inlined_call_operand.vmem [shape: bf16[128,128], index: 11, kind: input, shape index: {}]   ;;  %s12799_s12 = inlined_call_operand.vmem [shape: f32[1,128], index: 12, kind: input, shape index: {}]   ;;  %s12800_s13 = inlined_call_operand.vmem [shape: bf16[992,128], index: 13, kind: output, shape index: {}]  }
   0x1 LB: > { %s5774_s26 = sadd.s32 4294967295, %s8222_s25   ;;  %p5778_p0 = scmp.ge.s32.totalorder %s8222_s25, 1  ;;  %s8222_s25 = sphi %s8297_s25, %s23_s25  }
   0x2   : > { %p388_p1 = scmp.lt.s32.totalorder %s8222_s25, 3 }
   0x4   : > { %p389_p2 = pnand %p5778_p0, %p388_p1 }
   0x6   : > { %392 = sbr.rel (%p389_p2) target bundleno = 1706 (0x6aa), region = 72 }
   0xd   : > { %v447_v0 = vld [vmem:[%s12788_s1 + $0x10] sm:$0xff]  ;;  %v445_v1 = vld [vmem:[%s12788_s1] sm:$0xff]  ;;  %v448_v2 = vld [vmem:[%s12788_s1 + $0x18] sm:$0xff]  ;;  %vm764_vm0 = vcmask 1041408   ;;  %s432_s16 = smul.u32 62, %s5774_s26  ;;  %v12807_v3 = vmov 0  }
   0xe   : > { %8104 = vset.pattern.permute.xlu1 %v12807_v3  ;;  %8103 = vset.pattern.permute.xlu0 %v12807_v3  ;;  %vm1334_vm1 = vcmp.lt.s32.totalorder %v447_v0, 2  ;;  %vm1332_vm2 = vcmp.lt.s32.totalorder %v445_v1, 2  ;;  %vm1335_vm3 = vcmp.lt.s32.totalorder %v448_v2, 2  ;;  %v8319_v4 = vld [vmem:[%s12788_s1 + $0x8] sm:$0xff]  ;;  %v569_v5 = vld [vmem:[%s12789_s2] sm:$0x3] }
   0xf   : > { %v1396_v6 = vsel %vm1334_vm1, 1, %v12807_v3  ;;  %v1394_v7 = vsel %vm1332_vm2, 1, %v12807_v3  ;;  %vm1333_vm4 = vcmp.lt.s32.totalorder %v8319_v4, 2  ;;  %7155 = vmatprep.subr.msk.mxu0 %vm764_vm0, %v569_v5  ;;  %8090 = vmatprep.subr.msk.mxu1 %vm764_vm0, %v569_v5  ;;  %p433_p3 = scmp.lt.s32.totalorder %s432_s16, 123  ;;  %v450_v8 = vld [vmem:[%s12788_s1 + $0x28] sm:$0xff]  ;;  %v449_v9 = vld [vmem:[%s12788_s1 + $0x20] sm:$0xff] }
  0x10   : > { %1463 = vperm.xlu1 %8104, %v1396_v6   ;;  %1457 = vperm.xlu0 %8103, %v1394_v7   ;;  %v1397_v10 = vsel %vm1335_vm3, 1, %v12807_v3  ;;  %v1395_v11 = vsel %vm1333_vm4, 1, %v12807_v3  ;;  %vm1337_vm5 = vcmp.lt.s32.totalorder %v450_v8, 2  ;;  %vm1336_vm6 = vcmp.lt.s32.totalorder %v449_v9, 2  ;;  %v8345_v12 = vld [vmem:[%s12788_s1 + $0x38] sm:$0xff]  ;;  %v8350_v13 = vld [vmem:[%s12788_s1 + $0x30] sm:$0xff] }
  0x11   : > { %7156 = vmatpush3.msk.msra.mxu0 %vm764_vm0, %v569_v5  ;;  %8091 = vmatpush3.msk.msra.mxu1 %vm764_vm0, %v569_v5  ;;  %s13546_s16 = smov (!%p433_p3, %s432_s16), 123  ;;  %vm577_vm7 = vcmask 15360   ;;  %v1399_v17 = vsel %vm1337_vm5, 1, %v12807_v3  ;;  %v1398_v18 = vsel %vm1336_vm6, 1, %v12807_v3  ;;  %vm1339_vm8 = vcmp.lt.s32.totalorder %v8345_v12, 2  ;;  %v8374_v22 = vld [vmem:[%s12788_s1 + $0x48] sm:$0xff] }
  0x12   : > { %s5779_s26 = sshll.u32 %s13546_s16, 3  ;;  %vm1338_vm9 = vcmp.lt.s32.totalorder %v8350_v13, 2  ;;  %v8379_v23 = vld [vmem:[%s12788_s1 + $0x40] sm:$0xff]  ;;  %v1401_v26 = vsel %vm1339_vm8, 1, %v12807_v3  ;;  %vm1341_vm10 = vcmp.lt.s32.totalorder %v8374_v22, 2  ;;  %v8396_v30 = vld [vmem:[%s12788_s1 + $0x58] sm:$0xff] }
  0x13   : > { %s8355_s17 = scalar_lea.vmem %s12787_s0, %s5779_s26  ;;  %v1400_v27 = vsel %vm1338_vm9, 1, %v12807_v3  ;;  %vm1340_vm11 = vcmp.lt.s32.totalorder %v8379_v23, 2  ;;  %v8401_v31 = vld [vmem:[%s12788_s1 + $0x50] sm:$0xff]  ;;  %v1403_v34 = vsel %vm1341_vm10, 1, %v12807_v3  ;;  %vm1343_vm12 = vcmp.lt.s32.totalorder %v8396_v30, 2  ;;  %v8418_v38 = vld [vmem:[%s12788_s1 + $0x68] sm:$0xff] }
  0x14   : > { %1466 = vperm.xlu1 %8104, %v1397_v10   ;;  %1460 = vperm.xlu0 %8103, %v1395_v11   ;;  %v507_v14 = vld [vmem:[%s8355_s17] sm:$0xff]  ;;  %v508_v16 = vld [vmem:[%s8355_s17 + $0x8] sm:$0xff]  ;;  %v509_v20 = vld [vmem:[%s8355_s17 + $0x10] sm:$0xff]  ;;  %v1402_v35 = vsel %vm1340_vm11, 1, %v12807_v3  ;;  %vm1342_vm13 = vcmp.lt.s32.totalorder %v8401_v31, 2  ;;  %v1405_v42 = vsel %vm1343_vm12, 1, %v12807_v3 }
  0x15   : > { %v539_v15 = vld [vmem:[%s8355_s17 + $0x100] sm:$0xff]  ;;  %7157 = vmatprep.mubr.msk.f32.mxu0 %vm577_vm7, %v507_v14  ;;  %v540_v19 = vld [vmem:[%s8355_s17 + $0x108] sm:$0xff]  ;;  %v541_v21 = vld [vmem:[%s8355_s17 + $0x110] sm:$0xff]  ;;  %v1404_v43 = vsel %vm1342_vm13, 1, %v12807_v3  ;;  %vm1345_vm14 = vcmp.lt.s32.totalorder %v8418_v38, 2  ;;  %s5780_s30 = sshll.u32 %s13546_s16, 2 }
  0x16   : > { %7205 = vmatprep.mubr.msk.f32.mxu1 %vm577_vm7, %v539_v15  ;;  %7158 = vmatmul.mubr.msk.f32.vlgmr.msra.gmra.mrb[0].mxu0 %vm577_vm7, %v508_v16  ;;  %v510_v24 = vld [vmem:[%s8355_s17 + $0x18] sm:$0xff]  ;;  %v511_v28 = vld [vmem:[%s8355_s17 + $0x20] sm:$0xff]  ;;  %v512_v32 = vld [vmem:[%s8355_s17 + $0x28] sm:$0xff]  ;;  %v1407_v50 = vsel %vm1345_vm14, 1, %v12807_v3  ;;  %s12624_s18 = scalar_lea.vmem %s12800_s13, %s5780_s30 }
  0x17   : > { %7206 = vmatmul.mubr.msk.f32.vlgmr.msra.gmra.mrb[0].mxu1 %vm577_vm7, %v540_v19  ;;  %v542_v25 = vld [vmem:[%s8355_s17 + $0x118] sm:$0xff]  ;;  %7160 = vmatprep.mubr.msk.f32.mxu0 %vm577_vm7, %v509_v20  ;;  %v543_v29 = vld [vmem:[%s8355_s17 + $0x120] sm:$0xff]  ;;  %v544_v33 = vld [vmem:[%s8355_s17 + $0x128] sm:$0xff] }
  0x18   : > { %1472 = vperm.xlu1 %8104, %v1399_v17   ;;  %1469 = vperm.xlu0 %8103, %v1398_v18   ;;  %v513_v36 = vld [vmem:[%s8355_s17 + $0x30] sm:$0xff]  ;;  %v8423_v39 = vld [vmem:[%s12788_s1 + $0x60] sm:$0xff]  ;;  %v514_v40 = vld [vmem:[%s8355_s17 + $0x38] sm:$0xff] }
  0x19   : > { %7208 = vmatprep.mubr.msk.f32.mxu1 %vm577_vm7, %v541_v21  ;;  %v545_v37 = vld [vmem:[%s8355_s17 + $0x130] sm:$0xff]  ;;  %v546_v41 = vld [vmem:[%s8355_s17 + $0x138] sm:$0xff]  ;;  %v515_v44 = vld [vmem:[%s8355_s17 + $0x40] sm:$0xff]  ;;  %vm1344_vm15 = vcmp.lt.s32.totalorder %v8423_v39, 2 }
  0x1a   : > { %7161 = vmatmul.mubr.msk.f32.gmra.mrb[2].mxu0 %vm577_vm7, %v510_v24  ;;  %v547_v45 = vld [vmem:[%s8355_s17 + $0x140] sm:$0xff]  ;;  %v8440_v46 = vld [vmem:[%s12788_s1 + $0x78] sm:$0xff]  ;;  %v8445_v47 = vld [vmem:[%s12788_s1 + $0x70] sm:$0xff]  ;;  %v1406_v51 = vsel %vm1344_vm15, 1, %v12807_v3 }
  0x1b   : > { %7209 = vmatmul.mubr.msk.f32.gmra.mrb[2].mxu1 %vm577_vm7, %v542_v25  ;;  %7163 = vmatprep.mubr.msk.f32.mxu0 %vm577_vm7, %v511_v28  ;;  %v516_v48 = vld [vmem:[%s8355_s17 + $0x48] sm:$0xff]  ;;  %v517_v52 = vld [vmem:[%s8355_s17 + $0x50] sm:$0xff]  ;;  %vm1347_vm0 = vcmp.lt.s32.totalorder %v8440_v46, 2  ;;  %vm1346_vm1 = vcmp.lt.s32.totalorder %v8445_v47, 2  ;;  %v8467_v55 = vld [vmem:[%s12788_s1 + $0x80] sm:$0xff] }
  0x1c   : > { %1478 = vperm.xlu1 %8104, %v1401_v26   ;;  %1475 = vperm.xlu0 %8103, %v1400_v27   ;;  %v548_v49 = vld [vmem:[%s8355_s17 + $0x148] sm:$0xff]  ;;  %v549_v53 = vld [vmem:[%s8355_s17 + $0x150] sm:$0xff]  ;;  %v518_v56 = vld [vmem:[%s8355_s17 + $0x58] sm:$0xff]  ;;  %v1409_v58 = vsel %vm1347_vm0, 1, %v12807_v3  ;;  %v1408_v59 = vsel %vm1346_vm1, 1, %v12807_v3  ;;  %vm1348_vm3 = vcmp.lt.s32.totalorder %v8467_v55, 2 }
  0x1d   : > { %7211 = vmatprep.mubr.msk.f32.mxu1 %vm577_vm7, %v543_v29  ;;  %v8462_v54 = vld [vmem:[%s12788_s1 + $0x88] sm:$0xff]  ;;  %v550_v57 = vld [vmem:[%s8355_s17 + $0x158] sm:$0xff]  ;;  %v519_v60 = vld [vmem:[%s8355_s17 + $0x60] sm:$0xff]  ;;  %v1410_v5 = vsel %vm1348_vm3, 1, %v12807_v3 }
  0x1e   : > { %7164 = vmatmul.mubr.msk.f32.gmra.mrb[4].mxu0 %vm577_vm7, %v512_v32  ;;  %v551_v61 = vld [vmem:[%s8355_s17 + $0x160] sm:$0xff]  ;;  %vm1349_vm2 = vcmp.lt.s32.totalorder %v8462_v54, 2  ;;  %v8484_v62 = vld [vmem:[%s12788_s1 + $0x98] sm:$0xff]  ;;  %v8489_v63 = vld [vmem:[%s12788_s1 + $0x90] sm:$0xff] }
  0x1f   : > { %7212 = vmatmul.mubr.msk.f32.gmra.mrb[4].mxu1 %vm577_vm7, %v544_v33  ;;  %7166 = vmatprep.mubr.msk.f32.mxu0 %vm577_vm7, %v513_v36  ;;  %v520_v0 = vld [vmem:[%s8355_s17 + $0x68] sm:$0xff]  ;;  %v1411_v2 = vsel %vm1349_vm2, 1, %v12807_v3  ;;  %v521_v6 = vld [vmem:[%s8355_s17 + $0x70] sm:$0xff]  ;;  %vm1351_vm4 = vcmp.lt.s32.totalorder %v8484_v62, 2  ;;  %vm1350_vm5 = vcmp.lt.s32.totalorder %v8489_v63, 2  ;;  %v8511_v9 = vld [vmem:[%s12788_s1 + $0xa0] sm:$0xff] }
  0x20   : > { %1484 = vperm.xlu1 %8104, %v1403_v34   ;;  %1481 = vperm.xlu0 %8103, %v1402_v35   ;;  %v552_v1 = vld [vmem:[%s8355_s17 + $0x168] sm:$0xff]  ;;  %v553_v7 = vld [vmem:[%s8355_s17 + $0x170] sm:$0xff]  ;;  %v522_v10 = vld [vmem:[%s8355_s17 + $0x78] sm:$0xff]  ;;  %v1413_v14 = vsel %vm1351_vm4, 1, %v12807_v3  ;;  %v1412_v15 = vsel %vm1350_vm5, 1, %v12807_v3  ;;  %vm1352_vm8 = vcmp.lt.s32.totalorder %v8511_v9, 2 }
  0x21   : > { %7214 = vmatprep.mubr.msk.f32.mxu1 %vm577_vm7, %v545_v37  ;;  %v8506_v8 = vld [vmem:[%s12788_s1 + $0xa8] sm:$0xff]  ;;  %v554_v11 = vld [vmem:[%s8355_s17 + $0x178] sm:$0xff]  ;;  %v523_v16 = vld [vmem:[%s8355_s17 + $0x80] sm:$0xff]  ;;  %v1414_v25 = vsel %vm1352_vm8, 1, %v12807_v3 }
  0x22   : > { %7167 = vmatmul.mubr.msk.f32.gmra.mrb[6].mxu0 %vm577_vm7, %v514_v40  ;;  %v555_v17 = vld [vmem:[%s8355_s17 + $0x180] sm:$0xff]  ;;  %vm1353_vm6 = vcmp.lt.s32.totalorder %v8506_v8, 2  ;;  %v8528_v18 = vld [vmem:[%s12788_s1 + $0xb8] sm:$0xff]  ;;  %v8533_v19 = vld [vmem:[%s12788_s1 + $0xb0] sm:$0xff] }
  0x23   : > { %7215 = vmatmul.mubr.msk.f32.gmra.mrb[6].mxu1 %vm577_vm7, %v546_v41  ;;  %7169 = vmatprep.mubr.msk.f32.mxu0 %vm577_vm7, %v515_v44  ;;  %v524_v20 = vld [vmem:[%s8355_s17 + $0x88] sm:$0xff]  ;;  %v1415_v24 = vsel %vm1353_vm6, 1, %v12807_v3  ;;  %v525_v26 = vld [vmem:[%s8355_s17 + $0x90] sm:$0xff]  ;;  %vm1355_vm9 = vcmp.lt.s32.totalorder %v8528_v18, 2  ;;  %vm1354_vm10 = vcmp.lt.s32.totalorder %v8533_v19, 2  ;;  %v8555_v29 = vld [vmem:[%s12788_s1 + $0xc0] sm:$0xff] }
  0x24   : > { %1490 = vperm.xlu1 %8104, %v1405_v42   ;;  %1487 = vperm.xlu0 %8103, %v1404_v43   ;;  %v556_v21 = vld [vmem:[%s8355_s17 + $0x188] sm:$0xff]  ;;  %v557_v27 = vld [vmem:[%s8355_s17 + $0x190] sm:$0xff]  ;;  %v526_v32 = vld [vmem:[%s8355_s17 + $0x98] sm:$0xff]  ;;  %v1417_v34 = vsel %vm1355_vm9, 1, %v12807_v3  ;;  %v1416_v35 = vsel %vm1354_vm10, 1, %v12807_v3  ;;  %vm1356_vm12 = vcmp.lt.s32.totalorder %v8555_v29, 2 }
  0x25   : > { %7217 = vmatprep.mubr.msk.f32.mxu1 %vm577_vm7, %v547_v45  ;;  %v8550_v28 = vld [vmem:[%s12788_s1 + $0xc8] sm:$0xff]  ;;  %v558_v33 = vld [vmem:[%s8355_s17 + $0x198] sm:$0xff]  ;;  %v527_v36 = vld [vmem:[%s8355_s17 + $0xa0] sm:$0xff] }
  0x26   : > { %7170 = vmatmul.mubr.msk.f32.gmra.mrb[8].mxu0 %vm577_vm7, %v516_v48  ;;  %v559_v37 = vld [vmem:[%s8355_s17 + $0x1a0] sm:$0xff]  ;;  %vm1357_vm11 = vcmp.lt.s32.totalorder %v8550_v28, 2  ;;  %v8572_v40 = vld [vmem:[%s12788_s1 + $0xd8] sm:$0xff]  ;;  %v8577_v41 = vld [vmem:[%s12788_s1 + $0xd0] sm:$0xff]  ;;  %v1418_v48 = vsel %vm1356_vm12, 1, %v12807_v3 }
  0x27   : > { %7218 = vmatmul.mubr.msk.f32.gmra.mrb[8].mxu1 %vm577_vm7, %v548_v49  ;;  %7172 = vmatprep.mubr.msk.f32.mxu0 %vm577_vm7, %v517_v52  ;;  %v528_v42 = vld [vmem:[%s8355_s17 + $0xa8] sm:$0xff]  ;;  %v529_v44 = vld [vmem:[%s8355_s17 + $0xb0] sm:$0xff]  ;;  %v1419_v45 = vsel %vm1357_vm11, 1, %v12807_v3  ;;  %vm1359_vm13 = vcmp.lt.s32.totalorder %v8572_v40, 2  ;;  %vm1358_vm14 = vcmp.lt.s32.totalorder %v8577_v41, 2 }
  0x28   : > { %1496 = vperm.xlu1 %8104, %v1407_v50   ;;  %1493 = vperm.xlu0 %8103, %v1406_v51   ;;  %v560_v43 = vld [vmem:[%s8355_s17 + $0x1a8] sm:$0xff]  ;;  %v8594_v50 = vld [vmem:[%s12788_s1 + $0xe0] sm:$0xff]  ;;  %v8599_v51 = vld [vmem:[%s12788_s1 + $0xf8] sm:$0xff] }
  0x29   : > { %7220 = vmatprep.mubr.msk.f32.mxu1 %vm577_vm7, %v549_v53  ;;  %v8589_v49 = vld [vmem:[%s12788_s1 + $0xe8] sm:$0xff]  ;;  %v561_v52 = vld [vmem:[%s8355_s17 + $0x1b0] sm:$0xff]  ;;  %vm1360_vm0 = vcmp.lt.s32.totalorder %v8594_v50, 2  ;;  %vm1363_vm1 = vcmp.lt.s32.totalorder %v8599_v51, 2 }
  0x2a   : > { %7173 = vmatmul.mubr.msk.f32.gmra.mrb[10].mxu0 %vm577_vm7, %v518_v56  ;;  %v8607_v53 = vld [vmem:[%s12788_s1 + $0xf0] sm:$0xff]  ;;  %v530_v56 = vld [vmem:[%s8355_s17 + $0xb8] sm:$0xff]  ;;  %vm1361_vm15 = vcmp.lt.s32.totalorder %v8589_v49, 2 }
  0x2b   : > { %7221 = vmatmul.mubr.msk.f32.gmra.mrb[10].mxu1 %vm577_vm7, %v550_v57  ;;  %7175 = vmatprep.mubr.msk.f32.mxu0 %vm577_vm7, %v519_v60  ;;  %v562_v57 = vld [vmem:[%s8355_s17 + $0x1b8] sm:$0xff]  ;;  %v8621_v60 = vld [vmem:[%s12788_s1 + $0x108] sm:$0xff]  ;;  %vm1362_vm2 = vcmp.lt.s32.totalorder %v8607_v53, 2 }
  0x2c   : > { %1502 = vperm.xlu1 %8104, %v1409_v58   ;;  %1499 = vperm.xlu0 %8103, %v1408_v59   ;;  %v531_v58 = vld [vmem:[%s8355_s17 + $0xc0] sm:$0xff]  ;;  %vm1365_vm3 = vcmp.lt.s32.totalorder %v8621_v60, 2 }
  0x2d   : > { %7223 = vmatprep.mubr.msk.f32.mxu1 %vm577_vm7, %v551_v61  ;;  %v563_v59 = vld [vmem:[%s8355_s17 + $0x1c0] sm:$0xff]  ;;  %v1421_v61 = vsel %vm1359_vm13, 1, %v12807_v3 }
  0x2e   : > { %7176 = vmatmul.mubr.msk.f32.gmra.mrb[12].mxu0 %vm577_vm7, %v520_v0  ;;  %v1420_v0 = vsel %vm1358_vm14, 1, %v12807_v3 }
  0x2f   : > { %7224 = vmatmul.mubr.msk.f32.gmra.mrb[12].mxu1 %vm577_vm7, %v552_v1  ;;  %7178 = vmatprep.mubr.msk.f32.mxu0 %vm577_vm7, %v521_v6  ;;  %v8635_v1 = vld [vmem:[%s12788_s1 + $0x100] sm:$0xff]  ;;  %v1423_v6 = vsel %vm1361_vm15, 1, %v12807_v3 }
  0x30   : > { %1508 = vperm.xlu1 %8104, %v1411_v2   ;;  %1505 = vperm.xlu0 %8103, %v1410_v5   ;;  %v532_v2 = vld [vmem:[%s8355_s17 + $0xc8] sm:$0xff]  ;;  %vm1364_vm4 = vcmp.lt.s32.totalorder %v8635_v1, 2 }
  0x31   : > { %7226 = vmatprep.mubr.msk.f32.mxu1 %vm577_vm7, %v553_v7  ;;  %v564_v5 = vld [vmem:[%s8355_s17 + $0x1c8] sm:$0xff]  ;;  %v1422_v7 = vsel %vm1360_vm0, 1, %v12807_v3 }
  0x32   : > { %7179 = vmatmul.mubr.msk.f32.gmra.mrb[14].mxu0 %vm577_vm7, %v522_v10  ;;  %v1425_v10 = vsel %vm1363_vm1, 1, %v12807_v3 }
  0x33   : > { %7227 = vmatmul.mubr.msk.f32.gmra.mrb[14].mxu1 %vm577_vm7, %v554_v11  ;;  %7181 = vmatprep.mubr.msk.f32.mxu0 %vm577_vm7, %v523_v16  ;;  %v533_v11 = vld [vmem:[%s8355_s17 + $0xd0] sm:$0xff]  ;;  %v8654_v16 = vld [vmem:[%s12788_s1 + $0x118] sm:$0xff] }
  0x34   : > { %1514 = vperm.xlu1 %8104, %v1413_v14   ;;  %1511 = vperm.xlu0 %8103, %v1412_v15   ;;  %v565_v14 = vld [vmem:[%s8355_s17 + $0x1d0] sm:$0xff]  ;;  %v1424_v15 = vsel %vm1362_vm2, 1, %v12807_v3  ;;  %vm1367_vm5 = vcmp.lt.s32.totalorder %v8654_v16, 2 }
  0x35   : > { %7229 = vmatprep.mubr.msk.f32.mxu1 %vm577_vm7, %v555_v17  ;;  %v534_v17 = vld [vmem:[%s8355_s17 + $0xd8] sm:$0xff] }
  0x36   : > { %7182 = vmatmul.mubr.msk.f32.gmra.mrb[16].mxu0 %vm577_vm7, %v524_v20  ;;  %v566_v20 = vld [vmem:[%s8355_s17 + $0x1d8] sm:$0xff] }
  0x37   : > { %7230 = vmatmul.mubr.msk.f32.gmra.mrb[16].mxu1 %vm577_vm7, %v556_v21  ;;  %7184 = vmatprep.mubr.msk.f32.mxu0 %vm577_vm7, %v525_v26  ;;  %v1427_v21 = vsel %vm1365_vm3, 1, %v12807_v3  ;;  %v8670_v26 = vld [vmem:[%s12788_s1 + $0x128] sm:$0xff] }
  0x38   : > { %1520 = vperm.xlu1 %8104, %v1415_v24   ;;  %1517 = vperm.xlu0 %8103, %v1414_v25   ;;  %v8662_v24 = vld [vmem:[%s12788_s1 + $0x110] sm:$0xff]  ;;  %v1426_v25 = vsel %vm1364_vm4, 1, %v12807_v3  ;;  %vm1369_vm8 = vcmp.lt.s32.totalorder %v8670_v26, 2 }
  0x39   : > { %7232 = vmatprep.mubr.msk.f32.mxu1 %vm577_vm7, %v557_v27  ;;  %v535_v27 = vld [vmem:[%s8355_s17 + $0xe0] sm:$0xff]  ;;  %vm1366_vm6 = vcmp.lt.s32.totalorder %v8662_v24, 2 }
  0x3a   : > { %7185 = vmatmul.mubr.msk.f32.gmra.mrb[18].mxu0 %vm577_vm7, %v526_v32  ;;  %v567_v32 = vld [vmem:[%s8355_s17 + $0x1e0] sm:$0xff] }
  0x3b   : > { %7233 = vmatmul.mubr.msk.f32.gmra.mrb[18].mxu1 %vm577_vm7, %v558_v33  ;;  %7187 = vmatprep.mubr.msk.f32.mxu0 %vm577_vm7, %v527_v36  ;;  %v536_v33 = vld [vmem:[%s8355_s17 + $0xe8] sm:$0xff]  ;;  %v537_v36 = vld [vmem:[%s8355_s17 + $0xf0] sm:$0xff] }
  0x3c   : > { %1526 = vperm.xlu1 %8104, %v1417_v34   ;;  %1523 = vperm.xlu0 %8103, %v1416_v35   ;;  %v568_v34 = vld [vmem:[%s8355_s17 + $0x1e8] sm:$0xff]  ;;  %v8686_v35 = vld [vmem:[%s12788_s1 + $0x120] sm:$0xff] }
  0x3d   : > { %7235 = vmatprep.mubr.msk.f32.mxu1 %vm577_vm7, %v559_v37  ;;  %v538_v37 = vld [vmem:[%s8355_s17 + $0xf8] sm:$0xff]  ;;  %vm1368_vm9 = vcmp.lt.s32.totalorder %v8686_v35, 2 }
  0x3e   : > { %7188 = vmatmul.mubr.msk.f32.gmra.mrb[20].mxu0 %vm577_vm7, %v528_v42  ;;  %v1429_v42 = vsel %vm1367_vm5, 1, %v12807_v3 }
  0x3f   : > { %7236 = vmatmul.mubr.msk.f32.gmra.mrb[20].mxu1 %vm577_vm7, %v560_v43  ;;  %7190 = vmatprep.mubr.msk.f32.mxu0 %vm577_vm7, %v529_v44  ;;  %v1428_v43 = vsel %vm1366_vm6, 1, %v12807_v3  ;;  %v8697_v44 = vld [vmem:[%s12788_s1 + $0x138] sm:$0xff] }
  0x40   : > { %1532 = vperm.xlu1 %8104, %v1419_v45   ;;  %1529 = vperm.xlu0 %8103, %v1418_v48   ;;  %v1431_v45 = vsel %vm1369_vm8, 1, %v12807_v3  ;;  %v8706_v48 = vld [vmem:[%s12788_s1 + $0x130] sm:$0xff]  ;;  %vm1371_vm10 = vcmp.lt.s32.totalorder %v8697_v44, 2 }
  0x41   : > { %7238 = vmatprep.mubr.msk.f32.mxu1 %vm577_vm7, %v561_v52  ;;  %v8105_v52 = vld [vmem:[%s12792_s5] sm:$0xff]   ;;  %vm1370_vm11 = vcmp.lt.s32.totalorder %v8706_v48, 2 }
  0x42   : > { %7191 = vmatmul.mubr.msk.f32.gmra.mrb[22].mxu0 %vm577_vm7, %v530_v56  ;;  %v1430_v56 = vsel %vm1368_vm9, 1, %v12807_v3 }
  0x43   : > { %7239 = vmatmul.mubr.msk.f32.gmra.mrb[22].mxu1 %vm577_vm7, %v562_v57  ;;  %7193 = vmatprep.mubr.msk.f32.mxu0 %vm577_vm7, %v531_v58  ;;  %v8716_v57 = vld [vmem:[%s12788_s1 + $0x148] sm:$0xff]  ;;  %v12805_v58 = vmov 0.0  }
  0x44   : > { %1538 = vperm.xlu1 %8104, %v1421_v61   ;;  %1535 = vperm.xlu0 %8103, %v1420_v0   ;;  %v8106_v61 = vld [vmem:[%s12792_s5 + $0x8] sm:$0xff]   ;;  %vm1373_vm12 = vcmp.lt.s32.totalorder %v8716_v57, 2  ;;  %v8735_v0 = vld [vmem:[%s12788_s1 + $0x158] sm:$0xff] }
  0x45   : > { %7241 = vmatprep.mubr.msk.f32.mxu1 %vm577_vm7, %v563_v59  ;;  %7390 = vmatprep.subr.bf16.mxu0 %v12805_v58  ;;  %v8725_v59 = vld [vmem:[%s12788_s1 + $0x140] sm:$0xff]  ;;  %vm1375_vm13 = vcmp.lt.s32.totalorder %v8735_v0, 2 }
  0x46   : > { %7194 = vmatmul.mubr.msk.f32.gmra.mrb[24].mxu0 %vm577_vm7, %v532_v2  ;;  %7250 = vmatprep.subr.bf16.mxu1 %v12805_v58  ;;  %v1433_v2 = vsel %vm1371_vm10, 1, %v12807_v3  ;;  %vm8226_vm10 = vmmov 0  }
  0x47   : > { %7242 = vmatmul.mubr.msk.f32.gmra.mrb[24].mxu1 %vm577_vm7, %v564_v5  ;;  %7196 = vmatprep.mubr.msk.f32.mxu0 %vm577_vm7, %v533_v11  ;;  %v8743_v5 = vld [vmem:[%s12788_s1 + $0x150] sm:$0xff]  ;;  %v8753_v11 = vld [vmem:[%s12788_s1 + $0x168] sm:$0xff] }
  0x48   : > { %1544 = vperm.xlu1 %8104, %v1423_v6   ;;  %1541 = vperm.xlu0 %8103, %v1422_v7   ;;  %v1432_v6 = vsel %vm1370_vm11, 1, %v12807_v3  ;;  %v8107_v7 = vld [vmem:[%s12792_s5 + $0x10] sm:$0xff]   ;;  %vm1374_vm14 = vcmp.lt.s32.totalorder %v8743_v5, 2  ;;  %vm1377_vm15 = vcmp.lt.s32.totalorder %v8753_v11, 2 }
  0x49   : > { %7244 = vmatprep.mubr.msk.f32.mxu1 %vm577_vm7, %v565_v14  ;;  %7391 = vmatpush3.bf16.msra.mxu0 %v8105_v52  ;;  %v8111_v52 = vld [vmem:[%s12792_s5 + $0x30] sm:$0xff]  }
  0x4a   : > { %7197 = vmatmul.mubr.msk.f32.gmra.mrb[26].mxu0 %vm577_vm7, %v534_v17  ;;  %7392 = vmatprep.subr.bf16.mxu0 %v12805_v58  ;;  %v8108_v17 = vld [vmem:[%s12792_s5 + $0x18] sm:$0xff]  }
  0x4b   : > { %7245 = vmatmul.mubr.msk.f32.gmra.mrb[26].mxu1 %vm577_vm7, %v566_v20  ;;  %7199 = vmatprep.mubr.msk.f32.mxu0 %vm577_vm7, %v535_v27  ;;  %v8771_v20 = vld [vmem:[%s12788_s1 + $0x178] sm:$0xff]  ;;  %v1436_v27 = vsel %vm1374_vm14, 1, %v12807_v3 }
  0x4c   : > { %1550 = vperm.xlu1 %8104, %v1425_v10   ;;  %1547 = vperm.xlu0 %8103, %v1424_v15   ;;  %v1435_v10 = vsel %vm1373_vm12, 1, %v12807_v3  ;;  %v8762_v15 = vld [vmem:[%s12788_s1 + $0x160] sm:$0xff]  ;;  %vm1379_vm1 = vcmp.lt.s32.totalorder %v8771_v20, 2 }
  0x4d   : > { %7247 = vmatprep.mubr.msk.f32.mxu1 %vm577_vm7, %v567_v32  ;;  %7393 = vmatpush3.bf16.msra.mxu0 %v8106_v61  ;;  %v8109_v32 = vld [vmem:[%s12792_s5 + $0x20] sm:$0xff]   ;;  %vm1376_vm0 = vcmp.lt.s32.totalorder %v8762_v15, 2  ;;  %v8820_v61 = vld [vmem:[%s12788_s1 + $0x190] sm:$0xff] }
  0x4e   : > { %7200 = vmatmul.mubr.msk.f32.gmra.mrb[28].mxu0 %vm577_vm7, %v536_v33  ;;  %7394 = vmatprep.subr.bf16.mxu0 %v12805_v58  ;;  %v1439_v33 = vsel %vm1377_vm15, 1, %v12807_v3  ;;  %vm1382_vm6 = vcmp.lt.s32.totalorder %v8820_v61, 2 }
  0x4f   : > { %7248 = vmatmul.mubr.msk.f32.gmra.mrb[28].mxu1 %vm577_vm7, %v568_v34  ;;  %7202 = vmatprep.mubr.msk.f32.mxu0 %vm577_vm7, %v537_v36  ;;  %v1438_v34 = vsel %vm1376_vm0, 1, %v12807_v3  ;;  %v8793_v36 = vld [vmem:[%s12788_s1 + $0x188] sm:$0xff] }
  0x50   : > { %1556 = vperm.xlu1 %8104, %v1427_v21   ;;  %1553 = vperm.xlu0 %8103, %v1426_v25   ;;  %v1437_v21 = vsel %vm1375_vm13, 1, %v12807_v3  ;;  %v8778_v25 = vld [vmem:[%s12788_s1 + $0x170] sm:$0xff]  ;;  %vm1381_vm3 = vcmp.lt.s32.totalorder %v8793_v36, 2 }
  0x51   : > { %7395 = vmatpush3.bf16.msra.mxu0 %v8107_v7  ;;  %vm1378_vm2 = vcmp.lt.s32.totalorder %v8778_v25, 2  ;;  %v8112_v7 = vld [vmem:[%s12792_s5 + $0x38] sm:$0xff]   ;;  %7266 = vmatprep.mubr.msk.bf16.mxu1 %vm8226_vm10, %v12805_v58 }
  0x52   : > { %7203 = vmatmul.mubr.msk.f32.gmra.mrb[30].mxu0 %vm577_vm7, %v538_v37  ;;  %vm1372_vm7 = vcmp.lt.s32.totalorder %v8725_v59, 2  ;;  %7396 = vmatprep.subr.bf16.mxu0 %v12805_v58  ;;  %v8110_v37 = vld [vmem:[%s12792_s5 + $0x28] sm:$0xff]  }
  0x53   : > { %v1434_v14 = vsel %vm1372_vm7, 1, %v12807_v3  ;;  %7406 = vmatprep.mubr.msk.bf16.mxu0 %vm8226_vm10, %v12805_v58 }
  0x54   : > { %1562 = vperm.xlu1 %8104, %v1429_v42   ;;  %1559 = vperm.xlu0 %8103, %v1428_v43   ;;  %v8801_v42 = vld [vmem:[%s12788_s1 + $0x180] sm:$0xff]  ;;  %v1441_v43 = vsel %vm1379_vm1, 1, %v12807_v3 }
  0x55   : > { %7397 = vmatpush3.bf16.msra.mxu0 %v8108_v17  ;;  %vm1380_vm4 = vcmp.lt.s32.totalorder %v8801_v42, 2 }
  0x56   : > { %7398 = vmatprep.subr.bf16.mxu0 %v12805_v58 }
  0x58   : > { %1568 = vperm.xlu1 %8104, %v1431_v45   ;;  %1565 = vperm.xlu0 %8103, %v1430_v56   ;;  %v1440_v45 = vsel %vm1378_vm2, 1, %v12807_v3  ;;  %v8815_v56 = vld [vmem:[%s12788_s1 + $0x198] sm:$0xff]  ;;  %vm2775_vm2 = vcmp.lt.s32.totalorder %v8319_v4, 4 }
  0x59   : > { %7399 = vmatpush3.bf16.msra.mxu0 %v8109_v32  ;;  %vm1383_vm5 = vcmp.lt.s32.totalorder %v8815_v56, 2  ;;  %v8856_v32 = vld [vmem:[%s12788_s1 + $0x1b0] sm:$0xff]  ;;  %v8931_v4 = vld [vmem:[%s12788_s1 + $0x18] sm:$0xff] }
  0x5a   : > { %7400 = vmatprep.subr.bf16.mxu0 %v12805_v58  ;;  %v1445_v17 = vsel %vm1383_vm5, 1, %v12807_v3  ;;  %vm1386_vm12 = vcmp.lt.s32.totalorder %v8856_v32, 2  ;;  %12920 = vst [vmem:[#allocation6_spill] sm:$0xff] %v8931_v4 }
  0x5c   : > { %1574 = vperm.xlu1 %8104, %v1433_v2   ;;  %1571 = vperm.xlu0 %8103, %v1432_v6   ;;  %v1443_v2 = vsel %vm1381_vm3, 1, %v12807_v3  ;;  %v1442_v6 = vsel %vm1380_vm4, 1, %v12807_v3  ;;  %vm2777_vm4 = vcmp.lt.s32.totalorder %v8931_v4, 4 }
  0x5d   : > { %7401 = vmatpush3.bf16.msra.mxu0 %v8110_v37  ;;  %v8113_v37 = vld [vmem:[%s12791_s4] sm:$0xff]  }
  0x5e   : > { %7402 = vmatprep.subr.bf16.mxu0 %v12805_v58  ;;  %7251 = vmatpush3.bf16.msra.mxu1 %v8113_v37  ;;  %v8906_v37 = vld [vmem:[%s12788_s1 + $0x1e0] sm:$0xff] }
  0x5f   : > { %7252 = vmatprep.subr.bf16.mxu1 %v12805_v58  ;;  %12918 = vst [vmem:[#allocation4_spill] sm:$0xff] %v8906_v37  ;;  %vm1392_vm1 = vcmp.lt.s32.totalorder %v8906_v37, 2  ;;  %v12926_v37 = vmov 0.0  }
  0x60   : > { %1580 = vperm.xlu1 %8104, %v1435_v10   ;;  %1577 = vperm.xlu0 %8103, %v1434_v14   ;;  %v8833_v10 = vld [vmem:[%s12788_s1 + $0x1a8] sm:$0xff]  ;;  %v8838_v14 = vld [vmem:[%s12788_s1 + $0x1a0] sm:$0xff] }
  0x61   : > { %7403 = vmatpush3.bf16.msra.mxu0 %v8111_v52  ;;  %vm1385_vm8 = vcmp.lt.s32.totalorder %v8833_v10, 2  ;;  %vm1384_vm9 = vcmp.lt.s32.totalorder %v8838_v14, 2 }
  0x62   : > { %7404 = vmatprep.subr.bf16.mxu0 %v12805_v58 }
  0x64   : > { %1586 = vperm.xlu1 %8104, %v1437_v21   ;;  %1583 = vperm.xlu0 %8103, %v1436_v27   ;;  %v1444_v21 = vsel %vm1382_vm6, 1, %v12807_v3  ;;  %v8851_v27 = vld [vmem:[%s12788_s1 + $0x1b8] sm:$0xff] }
  0x65   : > { %7405 = vmatpush3.bf16.msra.mxu0 %v8112_v7  ;;  %vm1387_vm11 = vcmp.lt.s32.totalorder %v8851_v27, 2  ;;  %v8889_v7 = vld [vmem:[%s12788_s1 + $0x1d0] sm:$0xff] }
  0x66   : > { %7670 = vmatprep.subr.bf16.mxu0 %v12805_v58  ;;  %v1449_v52 = vsel %vm1387_vm11, 1, %v12807_v3  ;;  %12917 = vst [vmem:[#allocation3_spill] sm:$0xff] %v8889_v7  ;;  %vm1390_vm15 = vcmp.lt.s32.totalorder %v8889_v7, 2  ;;  %vm2780_vm11 = vcmp.lt.s32.totalorder %v8350_v13, 4 }
  0x68   : > { %1592 = vperm.xlu1 %8104, %v1439_v33   ;;  %1589 = vperm.xlu0 %8103, %v1438_v34   ;;  %v1447_v33 = vsel %vm1385_vm8, 1, %v12807_v3  ;;  %v1446_v34 = vsel %vm1384_vm9, 1, %v12807_v3  ;;  %vm2781_vm9 = vcmp.lt.s32.totalorder %v8345_v12, 4 }
  0x6c   : > { %1598 = vperm.xlu1 %8104, %v1441_v43   ;;  %1595 = vperm.xlu0 %8103, %v1440_v45   ;;  %v8869_v43 = vld [vmem:[%s12788_s1 + $0x1c8] sm:$0xff]  ;;  %v8874_v45 = vld [vmem:[%s12788_s1 + $0x1c0] sm:$0xff] }
  0x6d   : > { %vm1389_vm7 = vcmp.lt.s32.totalorder %v8869_v43, 2  ;;  %vm1388_vm13 = vcmp.lt.s32.totalorder %v8874_v45, 2 }
  0x70   : > { %1604 = vperm.xlu1 %8104, %v1443_v2   ;;  %1601 = vperm.xlu0 %8103, %v1442_v6   ;;  %v1448_v2 = vsel %vm1386_vm12, 1, %v12807_v3  ;;  %v8884_v6 = vld [vmem:[%s12788_s1 + $0x1d8] sm:$0xff]  ;;  %vm2783_vm12 = vcmp.lt.s32.totalorder %v8374_v22, 4 }
  0x71   : > { %12916 = vst [vmem:[#allocation2_spill] sm:$0xff] %v8884_v6  ;;  %vm1391_vm14 = vcmp.lt.s32.totalorder %v8884_v6, 2  ;;  %v1454_v6 = vsel %vm1392_vm1, 1, %v12807_v3  ;;  %vm2789_vm1 = vcmp.lt.s32.totalorder %v8440_v46, 4 }
  0x74   : > { %1610 = vperm.xlu1 %8104, %v1445_v17   ;;  %1607 = vperm.xlu0 %8103, %v1444_v21   ;;  %v1451_v17 = vsel %vm1389_vm7, 1, %v12807_v3  ;;  %v1450_v21 = vsel %vm1388_vm13, 1, %v12807_v3  ;;  %vm2782_vm7 = vcmp.lt.s32.totalorder %v8379_v23, 4  ;;  %vm2785_vm13 = vcmp.lt.s32.totalorder %v8396_v30, 4  ;;  %v8118_v23 = vld [vmem:[%s12791_s4 + $0x28] sm:$0xff]  }
  0x78   : > { %1616 = vperm.xlu1 %8104, %v1447_v33   ;;  %1613 = vperm.xlu0 %8103, %v1446_v34   ;;  %v8114_v33 = vld [vmem:[%s12791_s4 + $0x8] sm:$0xff]  }
  0x79   : > { %v8901_v34 = vld [vmem:[%s12788_s1 + $0x1e8] sm:$0xff]  ;;  %7253 = vmatpush3.bf16.msra.mxu1 %v8114_v33  ;;  %v2837_v33 = vsel %vm2775_vm2, 1, %v12807_v3  ;;  %vm2788_vm2 = vcmp.lt.s32.totalorder %v8445_v47, 4 }
  0x7a   : > { %7254 = vmatprep.subr.bf16.mxu1 %v12805_v58  ;;  %vm1393_vm0 = vcmp.lt.s32.totalorder %v8901_v34, 2 }
  0x7b   : > { %v1455_v7 = vsel %vm1393_vm0, 1, %v12807_v3  ;;  %vm2786_vm0 = vcmp.lt.s32.totalorder %v8423_v39, 4 }
  0x7c   : > { %1622 = vperm.xlu1 %8104, %v1449_v52   ;;  %1619 = vperm.xlu0 %8103, %v1448_v2   ;;  %v1453_v52 = vsel %vm1391_vm14, 1, %v12807_v3  ;;  %v1452_v2 = vsel %vm1390_vm15, 1, %v12807_v3  ;;  %vm2784_vm14 = vcmp.lt.s32.totalorder %v8401_v31, 4  ;;  %vm2787_vm15 = vcmp.lt.s32.totalorder %v8418_v38, 4 }
  0x80   : > { %1628 = vperm.xlu1 %8104, %v1451_v17   ;;  %1625 = vperm.xlu0 %8103, %v1450_v21   ;;  %v8115_v17 = vld [vmem:[%s12791_s4 + $0x10] sm:$0xff]   ;;  %v8922_v21 = vld [vmem:[%s12788_s1] sm:$0xff] }
  0x81   : > { %12919 = vst [vmem:[#allocation5_spill] sm:$0xff] %v8922_v21  ;;  %vm2774_vm3 = vcmp.lt.s32.totalorder %v8922_v21, 4  ;;  %7255 = vmatpush3.bf16.msra.mxu1 %v8115_v17  ;;  %v8116_v17 = vld [vmem:[%s12791_s4 + $0x18] sm:$0xff]  }
  0x82   : > { %7256 = vmatprep.subr.bf16.mxu1 %v12805_v58  ;;  %v8948_v58 = vld [vmem:[%s12788_s1 + $0x28] sm:$0xff] }
  0x83   : > { %12922 = vst [vmem:[#allocation8_spill] sm:$0xff] %v8948_v58  ;;  %vm2779_vm6 = vcmp.lt.s32.totalorder %v8948_v58, 4 }
  0x84   : > { %1634 = vperm.xlu1 %8104, %v1453_v52   ;;  %1631 = vperm.xlu0 %8103, %v1452_v2   ;;  %v2836_v52 = vsel %vm2774_vm3, 1, %v12807_v3  ;;  %v8937_v2 = vld [vmem:[%s12788_s1 + $0x10] sm:$0xff]  ;;  %vm2791_vm3 = vcmp.lt.s32.totalorder %v8462_v54, 4 }
  0x85   : > { %12921 = vst [vmem:[#allocation7_spill] sm:$0xff] %v8937_v2  ;;  %vm2776_vm5 = vcmp.lt.s32.totalorder %v8937_v2, 4  ;;  %7257 = vmatpush3.bf16.msra.mxu1 %v8116_v17  ;;  %v12925_v2 = vmov 0   ;;  %v8117_v17 = vld [vmem:[%s12791_s4 + $0x20] sm:$0xff]  }
  0x86   : > { %v2841_v4 = vsel %vm2779_vm6, 1, %v12925_v2  ;;  %7258 = vmatprep.subr.bf16.mxu1 %v12926_v37  ;;  %vm2792_vm6 = vcmp.lt.s32.totalorder %v8489_v63, 4 }
  0x88   : > { %1640 = vperm.xlu1 %8104, %v1455_v7   ;;  %1637 = vperm.xlu0 %8103, %v1454_v6   ;;  %v2839_v6 = vsel %vm2777_vm4, 1, %v12807_v3  ;;  %v2838_v7 = vsel %vm2776_vm5, 1, %v12807_v3  ;;  %vm2790_vm4 = vcmp.lt.s32.totalorder %v8467_v55, 4  ;;  %vm2793_vm5 = vcmp.lt.s32.totalorder %v8484_v62, 4 }
  0x89   : > { %7259 = vmatpush3.bf16.msra.mxu1 %v8117_v17 }
  0x8a   : > { %7260 = vmatprep.subr.bf16.mxu1 %v12926_v37 }
  0x8c   : > { %2902 = vperm.xlu1 %8104, %v2837_v33   ;;  %2899 = vperm.xlu0 %8103, %v2836_v52   ;;  %v8954_v33 = vld [vmem:[%s12788_s1 + $0x20] sm:$0xff] }
  0x8d   : > { %12923 = vst [vmem:[#allocation9_spill] sm:$0xff] %v8954_v33  ;;  %vm2778_vm8 = vcmp.lt.s32.totalorder %v8954_v33, 4  ;;  %7261 = vmatpush3.bf16.msra.mxu1 %v8118_v23  ;;  %v8119_v23 = vld [vmem:[%s12791_s4 + $0x30] sm:$0xff]  }
  0x8e   : > { %v2840_v21 = vsel %vm2778_vm8, 1, %v12925_v2  ;;  %7262 = vmatprep.subr.bf16.mxu1 %v12926_v37  ;;  %vm2795_vm8 = vcmp.lt.s32.totalorder %v8506_v8, 4 }
  0x8f   : > { %v8957_v52 = vpop.permute.xlu1 %1463  ;;  %v8959_v3 = vpop.permute.xlu0 %1457 }
  0x90   : > { %12924 = vst [vmem:[#allocation10_spill] sm:$0xff] %v8957_v52  ;;  %2908 = vperm.xlu1 %8104, %v2839_v6   ;;  %2905 = vperm.xlu0 %8103, %v2838_v7   ;;  %v2843_v6 = vsel %vm2781_vm9, 1, %v12925_v2  ;;  %v2842_v7 = vsel %vm2780_vm11, 1, %v12925_v2  ;;  %vm2794_vm9 = vcmp.lt.s32.totalorder %v8511_v9, 4  ;;  %vm2797_vm11 = vcmp.lt.s32.totalorder %v8528_v18, 4 }
  0x91   : > { %7263 = vmatpush3.bf16.msra.mxu1 %v8119_v23  ;;  %v2852_v23 = vsel %vm2790_vm4, 1, %v12925_v2  ;;  %v2859_v8 = vsel %vm2797_vm11, 1, %v12925_v2  ;;  %vm2807_vm4 = vcmp.lt.s32.totalorder %v8621_v60, 4  ;;  %vm2810_vm11 = vcmp.lt.s32.totalorder %v8686_v35, 4 }
  0x92   : > { %7264 = vmatprep.subr.bf16.mxu1 %v12926_v37 }
  0x93   : > { %v8966_v58 = vpop.permute.xlu1 %1466  ;;  %v8968_v33 = vpop.permute.xlu0 %1460 }
  0x94   : > { %12927 = vst [vmem:[#allocation11_spill] sm:$0xff] %v8966_v58  ;;  %2914 = vperm.xlu1 %8104, %v2841_v4   ;;  %2911 = vperm.xlu0 %8103, %v2840_v21   ;;  %v2845_v4 = vsel %vm2783_vm12, 1, %v12925_v2  ;;  %v2844_v21 = vsel %vm2782_vm7, 1, %v12925_v2  ;;  %vm2796_vm12 = vcmp.lt.s32.totalorder %v8533_v19, 4  ;;  %vm2799_vm7 = vcmp.lt.s32.totalorder %v8550_v28, 4 }
  0x95   : > { %v2858_v9 = vsel %vm2796_vm12, 1, %v12925_v2  ;;  %v2861_v19 = vsel %vm2799_vm7, 1, %v12925_v2  ;;  %vm2813_vm12 = vcmp.lt.s32.totalorder %v8697_v44, 4  ;;  %vm2812_vm7 = vcmp.lt.s32.totalorder %v8706_v48, 4 }
  0x96   : > { %v2874_v35 = vsel %vm2812_vm7, 1, %v12925_v2  ;;  %vm2829_vm7 = vcmp.lt.s32.totalorder %v8851_v27, 4 }
  0x97   : > { %v8978_v12 = vpop.permute.xlu1 %1472  ;;  %v8980_v13 = vpop.permute.xlu0 %1469 }
  0x98   : > { %12928 = vst [vmem:[#allocation12_spill] sm:$0xff] %v8978_v12  ;;  %12929 = vst [vmem:[#allocation13_spill] sm:$0xff] %v8980_v13  ;;  %2920 = vperm.xlu1 %8104, %v2843_v6   ;;  %2917 = vperm.xlu0 %8103, %v2842_v7   ;;  %v2847_v6 = vsel %vm2785_vm13, 1, %v12925_v2  ;;  %v2846_v7 = vsel %vm2784_vm14, 1, %v12925_v2  ;;  %vm2798_vm13 = vcmp.lt.s32.totalorder %v8555_v29, 4  ;;  %vm2801_vm14 = vcmp.lt.s32.totalorder %v8572_v40, 4 }
  0x99   : > { %v2863_v28 = vsel %vm2801_vm14, 1, %v12925_v2  ;;  %vm2814_vm14 = vcmp.lt.s32.totalorder %v8725_v59, 4 }
  0x9a   : > { %v2876_v48 = vsel %vm2814_vm14, 1, %v12925_v2  ;;  %vm2831_vm14 = vcmp.lt.s32.totalorder %v8869_v43, 4  ;;  %v12966_v43 = vld [vmem:[#allocation6_spill] sm:$0xff] }
  0x9b   : > { %v8986_v17 = vpop.permute.xlu1 %1478  ;;  %v8988_v22 = vpop.permute.xlu0 %1475 }
  0x9c   : > { %12930 = vst [vmem:[#allocation14_spill] sm:$0xff] %v8986_v17  ;;  %12931 = vst [vmem:[#allocation15_spill] sm:$0xff] %v8988_v22  ;;  %2926 = vperm.xlu1 %8104, %v2845_v4   ;;  %2923 = vperm.xlu0 %8103, %v2844_v21   ;;  %v2849_v4 = vsel %vm2787_vm15, 1, %v12925_v2  ;;  %v2848_v21 = vsel %vm2786_vm0, 1, %v12925_v2  ;;  %vm2800_vm15 = vcmp.lt.s32.totalorder %v8577_v41, 4  ;;  %vm2803_vm0 = vcmp.lt.s32.totalorder %v8589_v49, 4 }
  0x9d   : > { %v2862_v29 = vsel %vm2800_vm15, 1, %v12925_v2  ;;  %v2865_v40 = vsel %vm2803_vm0, 1, %v12925_v2  ;;  %vm2817_vm15 = vcmp.lt.s32.totalorder %v8735_v0, 4  ;;  %vm2816_vm0 = vcmp.lt.s32.totalorder %v8743_v5, 4 }
  0x9e   : > { %v2879_v59 = vsel %vm2817_vm15, 1, %v12925_v2  ;;  %vm2830_vm15 = vcmp.lt.s32.totalorder %v8874_v45, 4 }
  0x9f   : > { %v8998_v30 = vpop.permute.xlu1 %1484  ;;  %v9000_v31 = vpop.permute.xlu0 %1481 }
  0xa0   : > { %12932 = vst [vmem:[#allocation16_spill] sm:$0xff] %v8998_v30  ;;  %12933 = vst [vmem:[#allocation17_spill] sm:$0xff] %v9000_v31  ;;  %2932 = vperm.xlu1 %8104, %v2847_v6   ;;  %2929 = vperm.xlu0 %8103, %v2846_v7   ;;  %v2851_v6 = vsel %vm2789_vm1, 1, %v12925_v2  ;;  %v2850_v7 = vsel %vm2788_vm2, 1, %v12925_v2  ;;  %vm2802_vm1 = vcmp.lt.s32.totalorder %v8594_v50, 4  ;;  %vm2805_vm2 = vcmp.lt.s32.totalorder %v8599_v51, 4 }
  0xa1   : > { %v2864_v41 = vsel %vm2802_vm1, 1, %v12925_v2  ;;  %v2867_v50 = vsel %vm2805_vm2, 1, %v12925_v2  ;;  %v2869_v51 = vsel %vm2807_vm4, 1, %v12925_v2  ;;  %vm2819_vm1 = vcmp.lt.s32.totalorder %v8753_v11, 4 }
  0xa2   : > { %vm2818_vm2 = vcmp.lt.s32.totalorder %v8762_v15, 4  ;;  %v2881_v0 = vsel %vm2819_vm1, 1, %v12925_v2  ;;  %vm2820_vm4 = vcmp.lt.s32.totalorder %v8778_v25, 4 }
  0xa3   : > { %v9009_v38 = vpop.permute.xlu1 %1490  ;;  %v9011_v39 = vpop.permute.xlu0 %1487  ;;  %v2880_v5 = vsel %vm2818_vm2, 1, %v12925_v2  ;;  %v2882_v15 = vsel %vm2820_vm4, 1, %v12925_v2 }
  0xa4   : > { %12934 = vst [vmem:[#allocation18_spill] sm:$0xff] %v9009_v38  ;;  %12935 = vst [vmem:[#allocation19_spill] sm:$0xff] %v9011_v39  ;;  %2938 = vperm.xlu1 %8104, %v2849_v4   ;;  %2935 = vperm.xlu0 %8103, %v2848_v21   ;;  %v8120_v4 = vld [vmem:[%s12791_s4 + $0x38] sm:$0xff]   ;;  %v2853_v21 = vsel %vm2791_vm3, 1, %v12925_v2  ;;  %vm2804_vm3 = vcmp.lt.s32.totalorder %v8607_v53, 4  ;;  %v8172_v39 = vld [vmem:[%s12788_s1 + $0x90] sm:$0xff] }
  0xa5   : > { %7265 = vmatpush3.bf16.msra.mxu1 %v8120_v4  ;;  %v2857_v4 = vsel %vm2795_vm8, 1, %v12925_v2  ;;  %vm2808_vm8 = vcmp.lt.s32.totalorder %v8662_v24, 4 }
  0xa6   : > { %7530 = vmatprep.subr.bf16.mxu1 %v12926_v37 }
  0xa7   : > { %v9018_v46 = vpop.permute.xlu1 %1496  ;;  %v9020_v47 = vpop.permute.xlu0 %1493 }
  0xa8   : > { %12936 = vst [vmem:[#allocation20_spill] sm:$0xff] %v9018_v46  ;;  %12937 = vst [vmem:[#allocation21_spill] sm:$0xff] %v9020_v47  ;;  %2944 = vperm.xlu1 %8104, %v2851_v6   ;;  %2941 = vperm.xlu0 %8103, %v2850_v7   ;;  %v2855_v6 = vsel %vm2793_vm5, 1, %v12925_v2  ;;  %v2854_v7 = vsel %vm2792_vm6, 1, %v12925_v2  ;;  %vm2806_vm5 = vcmp.lt.s32.totalorder %v8635_v1, 4  ;;  %vm2809_vm6 = vcmp.lt.s32.totalorder %v8654_v16, 4 }
  0xa9   : > { %v2868_v53 = vsel %vm2806_vm5, 1, %v12925_v2  ;;  %v2871_v60 = vsel %vm2809_vm6, 1, %v12925_v2  ;;  %v2870_v1 = vsel %vm2808_vm8, 1, %v12925_v2  ;;  %vm2823_vm5 = vcmp.lt.s32.totalorder %v8793_v36, 4  ;;  %v8171_v46 = vld [vmem:[%s12788_s1 + $0x98] sm:$0xff] }
  0xaa   : > { %vm2822_vm6 = vcmp.lt.s32.totalorder %v8801_v42, 4  ;;  %vm2825_vm8 = vcmp.lt.s32.totalorder %v8815_v56, 4  ;;  %v2885_v25 = vsel %vm2823_vm5, 1, %v12925_v2  ;;  %v9149_v42 = vld [vmem:[%s12790_s3] ss:$0 sm:$0xff] }
  0xab   : > { %v9029_v54 = vpop.permute.xlu1 %1502  ;;  %v9031_v55 = vpop.permute.xlu0 %1499  ;;  %v2884_v36 = vsel %vm2822_vm6, 1, %v12925_v2  ;;  %v2887_v56 = vsel %vm2825_vm8, 1, %v12925_v2  ;;  %vm4094_vm8 = vcmp.lt.s32.totalorder %v12966_v43, 8 }
  0xac   : > { %12938 = vst [vmem:[#allocation22_spill] sm:$0xff] %v9029_v54  ;;  %12939 = vst [vmem:[#allocation23_spill] sm:$0xff] %v9031_v55  ;;  %2950 = vperm.xlu1 %8104, %v2853_v21   ;;  %2947 = vperm.xlu0 %8103, %v2852_v23   ;;  %v2856_v55 = vsel %vm2794_vm9, 1, %v12925_v2  ;;  %vm2811_vm9 = vcmp.lt.s32.totalorder %v8670_v26, 4  ;;  %v2875_v26 = vsel %vm2813_vm12, 1, %v12925_v2  ;;  %vm2826_vm12 = vcmp.lt.s32.totalorder %v8838_v14, 4 }
  0xad   : > { %v2873_v24 = vsel %vm2811_vm9, 1, %v12925_v2  ;;  %vm2824_vm9 = vcmp.lt.s32.totalorder %v8820_v61, 4  ;;  %v9157_v14 = vsel %vm2826_vm12, 1, %v12925_v2 }
  0xae   : > { %v2886_v61 = vsel %vm2824_vm9, 1, %v12925_v2 }
  0xaf   : > { %v9038_v62 = vpop.permute.xlu1 %1508  ;;  %v9040_v63 = vpop.permute.xlu0 %1505 }
  0xb0   : > { %12940 = vst [vmem:[#allocation24_spill] sm:$0xff] %v9038_v62  ;;  %12941 = vst [vmem:[#allocation25_spill] sm:$0xff] %v9040_v63  ;;  %2956 = vperm.xlu1 %8104, %v2855_v6   ;;  %2953 = vperm.xlu0 %8103, %v2854_v7   ;;  %v2860_v7 = vsel %vm2798_vm13, 1, %v12925_v2  ;;  %vm2815_vm13 = vcmp.lt.s32.totalorder %v8716_v57, 4  ;;  %v8170_v63 = vld [vmem:[%s12788_s1 + $0x80] sm:$0xff] }
  0xb1   : > { %v2877_v44 = vsel %vm2815_vm13, 1, %v12925_v2  ;;  %vm2828_vm13 = vcmp.lt.s32.totalorder %v8856_v32, 4 }
  0xb3   : > { %v9046_v21 = vpop.permute.xlu1 %1514  ;;  %v9048_v23 = vpop.permute.xlu0 %1511 }
  0xb4   : > { %12942 = vst [vmem:[#allocation26_spill] sm:$0xff] %v9046_v21  ;;  %12943 = vst [vmem:[#allocation27_spill] sm:$0xff] %v9048_v23  ;;  %2962 = vperm.xlu1 %8104, %v2857_v4   ;;  %2959 = vperm.xlu0 %8103, %v2856_v55  }
  0xb7   : > { %v9054_v6 = vpop.permute.xlu1 %1520  ;;  %v9056_v18 = vpop.permute.xlu0 %1517 }
  0xb8   : > { %2968 = vperm.xlu1 %8104, %v2859_v8   ;;  %2965 = vperm.xlu0 %8103, %v2858_v9   ;;  %12944 = vst [vmem:[#allocation28_spill] sm:$0xff] %v9054_v6  ;;  %12945 = vst [vmem:[#allocation29_spill] sm:$0xff] %v9056_v18  ;;  %v2866_v9 = vsel %vm2804_vm3, 1, %v12925_v2  ;;  %vm2821_vm3 = vcmp.lt.s32.totalorder %v8771_v20, 4 }
  0xb9   : > { %v2883_v11 = vsel %vm2821_vm3, 1, %v12925_v2  ;;  %vm2835_vm3 = vcmp.lt.s32.totalorder %v8901_v34, 4  ;;  %v9231_v34 = vsel %vm4094_vm8, 1, %v12925_v2 }
  0xbb   : > { %v9066_v55 = vpop.permute.xlu1 %1526  ;;  %v9068_v4 = vpop.permute.xlu0 %1523 }
  0xbc   : > { %2974 = vperm.xlu1 %8104, %v2861_v19   ;;  %2971 = vperm.xlu0 %8103, %v2860_v7   ;;  %12946 = vst [vmem:[#allocation30_spill] sm:$0xff] %v9066_v55  ;;  %12947 = vst [vmem:[#allocation31_spill] sm:$0xff] %v9068_v4 }
  0xbf   : > { %v9074_v8 = vpop.permute.xlu1 %1532  ;;  %v9076_v49 = vpop.permute.xlu0 %1529 }
  0xc0   : > { %2980 = vperm.xlu1 %8104, %v2863_v28   ;;  %2977 = vperm.xlu0 %8103, %v2862_v29   ;;  %12948 = vst [vmem:[#allocation32_spill] sm:$0xff] %v9074_v8  ;;  %12949 = vst [vmem:[#allocation33_spill] sm:$0xff] %v9076_v49  ;;  %v2872_v29 = vsel %vm2810_vm11, 1, %v12925_v2  ;;  %vm2827_vm11 = vcmp.lt.s32.totalorder %v8833_v10, 4  ;;  %v8163_v49 = vld [vmem:[%s12788_s1 + $0x58] sm:$0xff] }
  0xc1   : > { %v9154_v10 = vsel %vm2827_vm11, 1, %v12925_v2 }
  0xc3   : > { %v9086_v19 = vpop.permute.xlu1 %1538  ;;  %v9088_v7 = vpop.permute.xlu0 %1535 }
  0xc4   : > { %2986 = vperm.xlu1 %8104, %v2865_v40   ;;  %2983 = vperm.xlu0 %8103, %v2864_v41   ;;  %12950 = vst [vmem:[#allocation34_spill] sm:$0xff] %v9086_v19  ;;  %12951 = vst [vmem:[#allocation35_spill] sm:$0xff] %v9088_v7 }
  0xc7   : > { %v9094_v28 = vpop.permute.xlu1 %1544  ;;  %v9096_v16 = vpop.permute.xlu0 %1541 }
  0xc8   : > { %2992 = vperm.xlu1 %8104, %v2867_v50   ;;  %2989 = vperm.xlu0 %8103, %v2866_v9   ;;  %12952 = vst [vmem:[#allocation36_spill] sm:$0xff] %v9094_v28  ;;  %12953 = vst [vmem:[#allocation37_spill] sm:$0xff] %v9096_v16  ;;  %v2878_v9 = vsel %vm2816_vm0, 1, %v12925_v2  ;;  %v8162_v16 = vld [vmem:[%s12788_s1 + $0x40] sm:$0xff] }
  0xcb   : > { %v9106_v40 = vpop.permute.xlu1 %1550  ;;  %v9108_v41 = vpop.permute.xlu0 %1547 }
  0xcc   : > { %2998 = vperm.xlu1 %8104, %v2869_v51   ;;  %2995 = vperm.xlu0 %8103, %v2868_v53   ;;  %12954 = vst [vmem:[#allocation38_spill] sm:$0xff] %v9106_v40  ;;  %12955 = vst [vmem:[#allocation39_spill] sm:$0xff] %v9108_v41  ;;  %v1267_v51 = vlaneseq }
  0xce   : > { %v9138_v20 = vshrl.u32 %v1267_v51, 7  ;;  %v12965_v51 = vld [vmem:[#allocation5_spill] sm:$0xff] }
  0xcf   : > { %v9114_v50 = vpop.permute.xlu1 %1556  ;;  %v9116_v57 = vpop.permute.xlu0 %1553  ;;  %vm4091_vm6 = vcmp.lt.s32.totalorder %v12965_v51, 8 }
  0xd0   : > { %3004 = vperm.xlu1 %8104, %v2871_v60   ;;  %3001 = vperm.xlu0 %8103, %v2870_v1   ;;  %12956 = vst [vmem:[#allocation40_spill] sm:$0xff] %v9114_v50  ;;  %12957 = vst [vmem:[#allocation41_spill] sm:$0xff] %v9116_v57  ;;  %v9164_v1 = vsel %vm2829_vm7, 1, %v12925_v2  ;;  %vm1269_vm2 = vcmp.lt.s32.totalorder %v9138_v20, 2 }
  0xd3   : > { %v9126_v53 = vpop.permute.xlu1 %1562  ;;  %v9128_v60 = vpop.permute.xlu0 %1559 }
  0xd4   : > { %3010 = vperm.xlu1 %8104, %v2873_v24   ;;  %3007 = vperm.xlu0 %8103, %v2872_v29   ;;  %12958 = vst [vmem:[#allocation42_spill] sm:$0xff] %v9126_v53  ;;  %12959 = vst [vmem:[#allocation43_spill] sm:$0xff] %v9128_v60  ;;  %v9167_v24 = vsel %vm2828_vm13, 1, %v12925_v2  ;;  %v12962_v29 = vld [vmem:[#allocation2_spill] sm:$0xff] }
  0xd5   : > { %vm2833_vm0 = vcmp.lt.s32.totalorder %v12962_v29, 4 }
  0xd6   : > { %v9197_v45 = vsel %vm2833_vm0, 1, %v12925_v2  ;;  %vm4102_vm0 = vcmp.lt.s32.totalorder %v8163_v49, 8  ;;  %v8167_v49 = vld [vmem:[%s12788_s1 + $0x78] sm:$0xff] }
  0xd7   : > { %v9159_v27 = vpop.permute.xlu1 %1568  ;;  %v9161_v32 = vpop.permute.xlu0 %1565 }
  0xd8   : > { %3016 = vperm.xlu1 %8104, %v2875_v26   ;;  %3013 = vperm.xlu0 %8103, %v2874_v35   ;;  %12960 = vst [vmem:[#allocation44_spill] sm:$0xff] %v9159_v27  ;;  %12961 = vst [vmem:[#allocation45_spill] sm:$0xff] %v9161_v32  ;;  %v12963_v26 = vld [vmem:[#allocation3_spill] sm:$0xff]  ;;  %v12968_v27 = vld [vmem:[#allocation8_spill] sm:$0xff] }
  0xd9   : > { %vm2832_vm1 = vcmp.lt.s32.totalorder %v12963_v26, 4  ;;  %v12967_v32 = vld [vmem:[#allocation7_spill] sm:$0xff]  ;;  %vm4096_vm11 = vcmp.lt.s32.totalorder %v12968_v27, 8 }
  0xda   : > { %vm4093_vm9 = vcmp.lt.s32.totalorder %v12967_v32, 8  ;;  %v9248_v43 = vsel %vm4096_vm11, 1, %v12925_v2  ;;  %v8160_v32 = vld [vmem:[%s12788_s1 + $0x30] sm:$0xff]  ;;  %v8161_v27 = vld [vmem:[%s12788_s1 + $0x48] sm:$0xff]  ;;  %vm4110_vm11 = vcmp.lt.s32.totalorder %v8171_v46, 8  ;;  %v8174_v46 = vld [vmem:[%s12788_s1 + $0xa0] sm:$0xff] }
  0xdb   : > { %v9236_v50 = vpop.permute.xlu0 %1571  ;;  %v9243_v51 = vsel %vm4093_vm9, 1, %v12925_v2  ;;  %vm4097_vm13 = vcmp.lt.s32.totalorder %v8160_v32, 8  ;;  %vm4107_vm9 = vcmp.lt.s32.totalorder %v8170_v63, 8  ;;  %v9409_v17 = vsel %vm4110_vm11, 1, %v12925_v2 }
  0xdc   : > { %3022 = vperm.xlu1 %8104, %v2877_v44   ;;  %3019 = vperm.xlu0 %8103, %v2876_v48   ;;  %v9177_v48 = vsel %vm2831_vm14, 1, %v12925_v2  ;;  %12971 = vst [vmem:[#allocation3_spill] sm:$0xff] %v9236_v50  ;;  %vm4100_vm14 = vcmp.lt.s32.totalorder %v8161_v27, 8  ;;  %v9296_v8 = vsel %vm4097_vm13, 1, %v12925_v2  ;;  %v8166_v27 = vld [vmem:[%s12788_s1 + $0x60] sm:$0xff]  ;;  %12981 = vst [vmem:[#allocation49_spill] sm:$0xff] %v9409_v17 }
  0xdd   : > { %v9300_v4 = vsel %vm4100_vm14, 1, %v12925_v2  ;;  %vm4111_vm13 = vcmp.lt.s32.totalorder %v8174_v46, 8  ;;  %v8176_v46 = vld [vmem:[%s12788_s1 + $0xb0] sm:$0xff]  ;;  %v8182_v17 = vld [vmem:[%s12788_s1 + $0xe0] sm:$0xff] }
  0xde   : > { %v9451_v13 = vsel %vm4111_vm13, 1, %v12925_v2 }
  0xdf   : > { %v9318_v6 = vpop.permute.xlu0 %1577  ;;  %12984 = vst [vmem:[#allocation52_spill] sm:$0xff] %v9451_v13 }
  0xe0   : > { %3028 = vperm.xlu1 %8104, %v2879_v59   ;;  %3025 = vperm.xlu0 %8103, %v2878_v9   ;;  %v9182_v59 = vsel %vm2830_vm15, 1, %v12925_v2  ;;  %v12964_v9 = vld [vmem:[#allocation4_spill] sm:$0xff]  ;;  %vm4099_vm15 = vcmp.lt.s32.totalorder %v8162_v16, 8  ;;  %12975 = vst [vmem:[#allocation7_spill] sm:$0xff] %v9318_v6 }
  0xe1   : > { %vm2834_vm4 = vcmp.lt.s32.totalorder %v12964_v9, 4  ;;  %v12969_v9 = vld [vmem:[#allocation9_spill] sm:$0xff]  ;;  %v9311_v32 = vsel %vm4099_vm15, 1, %v12925_v2  ;;  %vm4113_vm15 = vcmp.lt.s32.totalorder %v8176_v46, 8 }
  0xe2   : > { %vm4095_vm12 = vcmp.lt.s32.totalorder %v12969_v9, 8  ;;  %v8165_v9 = vld [vmem:[%s12788_s1 + $0x68] sm:$0xff] }
  0xe3   : > { %v9397_v22 = vpop.permute.xlu0 %1583 }
  0xe4   : > { %3034 = vperm.xlu1 %8104, %v2881_v0   ;;  %3031 = vperm.xlu0 %8103, %v2880_v5   ;;  %v8158_v5 = vld [vmem:[%s12788_s1 + $0x8] sm:$0xff]  ;;  %12979 = vst [vmem:[#allocation47_spill] sm:$0xff] %v9397_v22 }
  0xe5   : > { %vm4092_vm5 = vcmp.lt.s32.totalorder %v8158_v5, 8 }
  0xe6   : > { %v9221_v57 = vsel %vm4092_vm5, 1, %v12925_v2  ;;  %vm4106_vm5 = vcmp.lt.s32.totalorder %v8167_v49, 8 }
  0xe8   : > { %3040 = vperm.xlu1 %8104, %v2883_v11   ;;  %3037 = vperm.xlu0 %8103, %v2882_v15  }
  0xe9   : > { %v7159_v35 = vpop.f32.mrb[0].mxu0 }
  0xea   : > { %v9171_v44 = vpop.f32.mrb[0].mxu1  ;;  %v840_v0 = vadd.f32 %v7159_v35, %v9149_v42  ;;  %v834_v11 = vpop.f32.mrb[1].mxu0  ;;  %v9202_v35 = vsel %vm2832_vm1, 1, %v12925_v2 }
  0xeb   : > { %v9192_v15 = vpop.f32.mrb[1].mxu1  ;;  %v835_v53 = vadd.f32 %v9149_v42, %v834_v11  ;;  %v9234_v11 = vpop.permute.xlu1 %1574  ;;  %v9529_v52 = vadd.f32 %v9171_v44, %v9149_v42  ;;  %v8185_v44 = vld [vmem:[%s12788_s1 + $0x108] sm:$0xff] }
  0xec   : > { %3046 = vperm.xlu1 %8104, %v2885_v25   ;;  %3043 = vperm.xlu0 %8103, %v2884_v36   ;;  %v1144_v60 = vmax.f32 %v840_v0, 0.0  ;;  %v9210_v25 = vsel %vm2835_vm3, 1, %v12925_v2  ;;  %v9215_v36 = vsel %vm2834_vm4, 1, %v12925_v2  ;;  %v9226_v0 = vsel %vm4091_vm6, 1, %v12925_v2  ;;  %12970 = vst [vmem:[#allocation2_spill] sm:$0xff] %v9234_v11 }
  0xed   : > { %v7162_v26 = vpop.f32.mrb[2].mxu0  ;;  %v1143_v5 = vmax.f32 %v835_v53, 0.0  ;;  %v8159_v53 = vld [vmem:[%s12788_s1 + $0x38] sm:$0xff]  ;;  %vm4104_vm3 = vcmp.lt.s32.totalorder %v8165_v9, 8  ;;  %vm4103_vm4 = vcmp.lt.s32.totalorder %v8166_v27, 8  ;;  %12996 = vst [vmem:[#allocation62_spill] sm:$0xff] %v9529_v52 }
  0xee   : > { %v9217_v29 = vpop.f32.mrb[2].mxu1  ;;  %v9238_v41 = vrot.slane %v1144_v60, 6  ;;  %v850_v11 = vadd.f32 %v7162_v26, %v9149_v42  ;;  %v844_v50 = vpop.f32.mrb[3].mxu0  ;;  %vm4098_vm7 = vcmp.lt.s32.totalorder %v8159_v53, 8  ;;  %v9267_v26 = vsel %vm4095_vm12, 1, %v12925_v2 }
  0xef   : > { %v9250_v40 = vpop.f32.mrb[3].mxu1  ;;  %v845_v7 = vadd.f32 %v9149_v42, %v844_v50  ;;  %v9347_v21 = vsel %vm4103_vm4, 1, %v12925_v2  ;;  %vm4109_vm12 = vcmp.lt.s32.totalorder %v8172_v39, 8  ;;  %v8175_v39 = vld [vmem:[%s12788_s1 + $0xb8] sm:$0xff]  ;;  %vm4124_vm11 = vcmp.lt.s32.totalorder %v8185_v44, 8 }
  0xf0   : > { %3052 = vperm.xlu1 %8104, %v2887_v56   ;;  %3049 = vperm.xlu0 %8103, %v2886_v61   ;;  %v9262_v56 = vrot.slane %v1143_v5, 6  ;;  %v1766_v61 = vpack.c.bf16 %v1144_v60, %v1143_v5  ;;  %v8164_v60 = vld [vmem:[%s12788_s1 + $0x50] sm:$0xff]  ;;  %v9292_v5 = vsel %vm4098_vm7, 1, %v12925_v2  ;;  %v1146_v55 = vmax.f32 %v850_v11, 0.0  ;;  %v9316_v11 = vpop.permute.xlu1 %1580 }
  0xf1   : > { %v7165_v19 = vpop.f32.mrb[4].mxu0  ;;  %vm4101_vm1 = vcmp.lt.s32.totalorder %v8164_v60, 8  ;;  %12974 = vst [vmem:[#allocation6_spill] sm:$0xff] %v9316_v11  ;;  %v8168_v60 = vld [vmem:[%s12788_s1 + $0x70] sm:$0xff]  ;;  %vm4114_vm14 = vcmp.lt.s32.totalorder %v8175_v39, 8 }
  0xf2   : > { %12972 = vst [vmem:[#allocation4_spill] sm:$0xff] %v9262_v56  ;;  %v9272_v28 = vpop.f32.mrb[4].mxu1  ;;  %v9288_v50 = vsel %vm1269_vm2, %v9262_v56, %v9238_v41  ;;  %7407 = vmatmul.mubr.bf16.vlgmr.msra.gmra.mrb[32].mxu0 %v1766_v61  ;;  %v9307_v61 = vadd.f32 %v7165_v19, %v9149_v42  ;;  %v854_v53 = vpop.f32.mrb[5].mxu0  ;;  %v9324_v19 = vsel %vm4102_vm0, 1, %v12925_v2  ;;  %v9328_v16 = vsel %vm4101_vm1, 1, %v12925_v2 }
  0xf3   : > { %12973 = vst [vmem:[#allocation5_spill] sm:$0xff] %v9288_v50  ;;  %v9302_v18 = vpop.f32.mrb[5].mxu1  ;;  %7410 = vmatprep.mubr.msk.bf16.mxu0 %vm8226_vm10, %v12926_v37  ;;  %v9334_v23 = vrot.slane %v1146_v55, 6  ;;  %vm4105_vm6 = vcmp.lt.s32.totalorder %v8168_v60, 8  ;;  %v9454_v12 = vsel %vm4114_vm14, 1, %v12925_v2  ;;  %vm6643_vm14 = vcmp.ne.s32.totalorder %v8959_v3, 1 }
  0xf4   : > { %3058 = vperm.xlu1 %8104, %v9154_v10   ;;  %3055 = vperm.xlu0 %8103, %v9157_v14   ;;  %v1145_v10 = vmax.f32 %v845_v7, 0.0  ;;  %v9332_v14 = vsel %vm4104_vm3, 1, %v12925_v2  ;;  %v855_v7 = vadd.f32 %v9149_v42, %v854_v53  ;;  %v8169_v53 = vld [vmem:[%s12788_s1 + $0x88] sm:$0xff]  ;;  %v1148_v27 = vmax.f32 %v9307_v61, 0.0  ;;  %v9395_v30 = vpop.permute.xlu1 %1586  ;;  %12985 = vst [vmem:[#allocation53_spill] sm:$0xff] %v9454_v12 }
  0xf5   : > { %v7168_v6 = vpop.f32.mrb[6].mxu0  ;;  %vm4108_vm8 = vcmp.lt.s32.totalorder %v8169_v53, 8  ;;  %12978 = vst [vmem:[#allocation46_spill] sm:$0xff] %v9395_v30 }
  0xf6   : > { %v9336_v11 = vpop.f32.mrb[6].mxu1  ;;  %v1207_v9 = vrot.slane %v1145_v10, 6  ;;  %v1767_v54 = vpack.c.bf16 %v1146_v55, %v1145_v10  ;;  %v864_v47 = vpop.f32.mrb[7].mxu0  ;;  %v1147_v38 = vmax.f32 %v855_v7, 0.0  ;;  %v8173_v55 = vld [vmem:[%s12788_s1 + $0xa8] sm:$0xff]  ;;  %v9380_v10 = vadd.f32 %v7168_v6, %v9149_v42 }
  0xf7   : > { %v9355_v62 = vpop.f32.mrb[7].mxu1  ;;  %vm4112_vm7 = vcmp.lt.s32.totalorder %v8173_v55, 8  ;;  %v9383_v7 = vadd.f32 %v9149_v42, %v864_v47  ;;  %v9401_v47 = vsel %vm4108_vm8, 1, %v12925_v2  ;;  %v9405_v6 = vsel %vm4107_vm9, 1, %v12925_v2  ;;  %v9481_v55 = vpop.permute.xlu0 %1589 }
  0xf8   : > { %3064 = vperm.xlu1 %8104, %v9164_v1   ;;  %3061 = vperm.xlu0 %8103, %v9167_v24   ;;  %v9368_v1 = vsel %vm4106_vm5, 1, %v12925_v2  ;;  %v9372_v24 = vsel %vm4105_vm6, 1, %v12925_v2  ;;  %v9388_v60 = vsel %vm1269_vm2, %v1207_v9, %v9334_v23  ;;  %v9393_v31 = vsel %vm1269_vm2, %v9238_v41, %v1207_v9  ;;  %12980 = vst [vmem:[#allocation48_spill] sm:$0xff] %v9405_v6 }
  0xf9   : > { %v7171_v49 = vpop.f32.mrb[8].mxu0  ;;  %12976 = vst [vmem:[#allocation8_spill] sm:$0xff] %v9388_v60  ;;  %12977 = vst [vmem:[#allocation9_spill] sm:$0xff] %v9393_v31  ;;  %v9413_v41 = vsel %vm4109_vm12, 1, %v12925_v2  ;;  %v1768_v53 = vpack.c.bf16 %v1148_v27, %v1147_v38  ;;  %v9426_v22 = vrot.slane %v1148_v27, 6  ;;  %v12986_v31 = vmax.f32 %v9383_v7, 0.0 }
  0xfa   : > { %v9377_v61 = vpop.f32.mrb[8].mxu1  ;;  %7411 = vmatmul.mubr.bf16.gmra.mrb[36].mxu0 %v1767_v54  ;;  %12982 = vst [vmem:[#allocation50_spill] sm:$0xff] %v9413_v41  ;;  %v874_v63 = vpop.f32.mrb[9].mxu0  ;;  %v9438_v54 = vrot.slane %v1147_v38, 6  ;;  %v9443_v27 = vadd.f32 %v7171_v49, %v9149_v42  ;;  %v8177_v38 = vld [vmem:[%s12788_s1 + $0xc8] sm:$0xff]  ;;  %v8178_v49 = vld [vmem:[%s12788_s1 + $0xc0] sm:$0xff] }
  0xfb   : > { %v9415_v9 = vpop.f32.mrb[9].mxu1  ;;  %7414 = vmatprep.mubr.msk.bf16.mxu0 %vm8226_vm10, %v12926_v37  ;;  %v9446_v39 = vadd.f32 %v9149_v42, %v874_v63  ;;  %vm4116_vm0 = vcmp.lt.s32.totalorder %v8177_v38, 8  ;;  %vm4115_vm1 = vcmp.lt.s32.totalorder %v8178_v49, 8  ;;  %v12987_v60 = vmax.f32 %v9380_v10, 0.0  ;;  %12989 = vst [vmem:[#allocation55_spill] sm:$0xff] %v9481_v55 }
  0xfc   : > { %3070 = vperm.xlu1 %8104, %v9177_v48   ;;  %3067 = vperm.xlu0 %8103, %v9182_v59   ;;  %v9433_v59 = vsel %vm4112_vm7, 1, %v12925_v2  ;;  %vm4119_vm6 = vcmp.lt.s32.totalorder %v8182_v17, 8  ;;  %v9575_v17 = vsel %vm1269_vm2, %v9334_v23, %v9438_v54  ;;  %v8187_v23 = vld [vmem:[%s12788_s1 + $0x118] sm:$0xff] }
  0xfd   : > { %12983 = vst [vmem:[#allocation51_spill] sm:$0xff] %v9433_v59  ;;  %v7174_v48 = vpop.f32.mrb[10].mxu0  ;;  %v9471_v12 = vpack.c.bf16 %v12987_v60, %v12986_v31  ;;  %v8179_v59 = vld [vmem:[%s12788_s1 + $0xd8] sm:$0xff]  ;;  %v9486_v31 = vsel %vm4113_vm15, 1, %v12925_v2  ;;  %v8181_v60 = vld [vmem:[%s12788_s1 + $0xe8] sm:$0xff]  ;;  %v12997_v38 = vmax.f32 %v9446_v39, 0.0 }
  0xfe   : > { %v9440_v30 = vpop.f32.mrb[10].mxu1  ;;  %v884_v13 = vpop.f32.mrb[11].mxu0  ;;  %vm4118_vm3 = vcmp.lt.s32.totalorder %v8179_v59, 8  ;;  %12990 = vst [vmem:[#allocation56_spill] sm:$0xff] %v9486_v31  ;;  %vm4120_vm5 = vcmp.lt.s32.totalorder %v8181_v60, 8  ;;  %v9497_v55 = vadd.f32 %v7174_v48, %v9149_v42  ;;  %v8183_v31 = vld [vmem:[%s12788_s1 + $0xf8] sm:$0xff] }
  0xff   : > { %v9462_v63 = vpop.f32.mrb[11].mxu1  ;;  %v9500_v41 = vadd.f32 %v9149_v42, %v884_v13  ;;  %vm4122_vm8 = vcmp.lt.s32.totalorder %v8183_v31, 8  ;;  %v9513_v48 = vsel %vm4116_vm0, 1, %v12925_v2  ;;  %v9517_v13 = vsel %vm4115_vm1, 1, %v12925_v2  ;;  %13002 = vst [vmem:[#allocation66_spill] sm:$0xff] %v9575_v17 }
 0x100   : > { %3076 = vperm.xlu1 %8104, %v9197_v45   ;;  %3073 = vperm.xlu0 %8103, %v9202_v35   ;;  %v8180_v45 = vld [vmem:[%s12788_s1 + $0xd0] sm:$0xff]  ;;  %v9479_v35 = vpop.permute.xlu1 %1592  ;;  %12992 = vst [vmem:[#allocation58_spill] sm:$0xff] %v9513_v48  ;;  %12993 = vst [vmem:[#allocation59_spill] sm:$0xff] %v9517_v13  ;;  %v9521_v56 = vsel %vm4118_vm3, 1, %v12925_v2  ;;  %v12998_v59 = vmax.f32 %v9443_v27, 0.0  ;;  %vm4126_vm7 = vcmp.lt.s32.totalorder %v8187_v23, 8 }
 0x101   : > { %vm4117_vm4 = vcmp.lt.s32.totalorder %v8180_v45, 8  ;;  %12988 = vst [vmem:[#allocation54_spill] sm:$0xff] %v9479_v35  ;;  %v7177_v46 = vpop.f32.mrb[12].mxu0  ;;  %v9506_v35 = vsel %vm1269_vm2, %v9438_v54, %v9426_v22  ;;  %12994 = vst [vmem:[#allocation60_spill] sm:$0xff] %v9521_v56  ;;  %v8184_v45 = vld [vmem:[%s12788_s1 + $0xf0] sm:$0xff]  ;;  %v9620_v54 = vadd.f32 %v9149_v42, %v9302_v18  ;;  %v13013_v48 = vmax.f32 %v9497_v55, 0.0 }
 0x102   : > { %v9494_v50 = vpop.f32.mrb[12].mxu1  ;;  %12991 = vst [vmem:[#allocation57_spill] sm:$0xff] %v9506_v35  ;;  %7415 = vmatmul.mubr.bf16.gmra.mrb[40].mxu0 %v1768_v53  ;;  %v9525_v58 = vsel %vm4117_vm4, 1, %v12925_v2  ;;  %v9539_v49 = vpack.c.bf16 %v12998_v59, %v12997_v38  ;;  %v894_v56 = vpop.f32.mrb[13].mxu0  ;;  %vm4121_vm9 = vcmp.lt.s32.totalorder %v8184_v45, 8  ;;  %v9556_v38 = vsel %vm4119_vm6, 1, %v12925_v2 }
 0x103   : > { %12995 = vst [vmem:[#allocation61_spill] sm:$0xff] %v9525_v58  ;;  %v9531_v53 = vpop.f32.mrb[13].mxu1  ;;  %7418 = vmatprep.mubr.msk.bf16.mxu0 %vm8226_vm10, %v12926_v37  ;;  %13000 = vst [vmem:[#allocation64_spill] sm:$0xff] %v9556_v38  ;;  %v9560_v59 = vsel %vm4122_vm8, 1, %v12925_v2  ;;  %v9566_v13 = vadd.f32 %v7177_v46, %v9149_v42  ;;  %v9583_v44 = vsel %vm4121_vm9, 1, %v12925_v2  ;;  %v9586_v46 = vsel %vm4124_vm11, 1, %v12925_v2 }
 0x104   : > { %3082 = vperm.xlu1 %8104, %v9210_v25   ;;  %3079 = vperm.xlu0 %8103, %v9215_v36   ;;  %v9552_v36 = vsel %vm4120_vm5, 1, %v12925_v2  ;;  %13001 = vst [vmem:[#allocation65_spill] sm:$0xff] %v9560_v59  ;;  %v9569_v25 = vadd.f32 %v9149_v42, %v894_v56  ;;  %v9577_v31 = vpop.permute.xlu1 %1598  ;;  %v9579_v59 = vpop.permute.xlu0 %1595  ;;  %13005 = vst [vmem:[#allocation69_spill] sm:$0xff] %v9583_v44  ;;  %v8186_v56 = vld [vmem:[%s12788_s1 + $0x100] sm:$0xff]  ;;  %v9597_v45 = vadd.f32 %v9149_v42, %v9192_v15  ;;  %v8188_v44 = vld [vmem:[%s12788_s1 + $0x110] sm:$0xff] }
 0x105   : > { %12999 = vst [vmem:[#allocation63_spill] sm:$0xff] %v9552_v36  ;;  %v7180_v60 = vpop.f32.mrb[14].mxu0  ;;  %13003 = vst [vmem:[#allocation67_spill] sm:$0xff] %v9577_v31  ;;  %vm4123_vm12 = vcmp.lt.s32.totalorder %v8186_v56, 8  ;;  %vm4125_vm13 = vcmp.lt.s32.totalorder %v8188_v44, 8  ;;  %v9612_v15 = vadd.f32 %v9149_v42, %v9250_v40  ;;  %v9640_v18 = vadd.f32 %v9336_v11, %v9149_v42 }
 0x106   : > { %v9562_v58 = vpop.f32.mrb[14].mxu1  ;;  %13004 = vst [vmem:[#allocation68_spill] sm:$0xff] %v9579_v59  ;;  %13006 = vst [vmem:[#allocation70_spill] sm:$0xff] %v9586_v46  ;;  %v9601_v59 = vadd.f32 %v9217_v29, %v9149_v42  ;;  %v904_v46 = vpop.f32.mrb[15].mxu0  ;;  %v9616_v29 = vadd.f32 %v9272_v28, %v9149_v42  ;;  %v13012_v28 = vmax.f32 %v9500_v41, 0.0  ;;  %v9652_v38 = vsel %vm4125_vm13, 1, %v12925_v2 }
 0x107   : > { %13007 = vst [vmem:[#allocation71_spill] sm:$0xff] %v9597_v45  ;;  %v9603_v31 = vpop.f32.mrb[15].mxu1  ;;  %13009 = vst [vmem:[#allocation73_spill] sm:$0xff] %v9612_v15  ;;  %v9630_v40 = vadd.f32 %v9149_v42, %v904_v46  ;;  %v9649_v46 = vsel %vm4126_vm7, 1, %v12925_v2  ;;  %v13023_v11 = vmax.f32 %v9566_v13, 0.0  ;;  %v13078_v35 = vmax.f32 %v9566_v13, 0.0 }
 0x108   : > { %13008 = vst [vmem:[#allocation72_spill] sm:$0xff] %v9601_v59  ;;  %4219 = vperm.xlu1 %8104, %v9221_v57   ;;  %4216 = vperm.xlu0 %8103, %v9226_v0   ;;  %13010 = vst [vmem:[#allocation74_spill] sm:$0xff] %v9616_v29  ;;  %v9623_v57 = vadd.f32 %v7180_v60, %v9149_v42  ;;  %v9636_v6 = vpack.c.bf16 %v13013_v48, %v13012_v28  ;;  %v9645_v60 = vsel %vm4123_vm12, 1, %v12925_v2  ;;  %v9667_v2 = vpop.permute.xlu1 %1604 }
 0x109   : > { %13011 = vst [vmem:[#allocation75_spill] sm:$0xff] %v9620_v54  ;;  %v7183_v36 = vpop.f32.mrb[16].mxu0  ;;  %13014 = vst [vmem:[#allocation76_spill] sm:$0xff] %v9640_v18  ;;  %v13018_v48 = vmax.f32 %v9529_v52, 0.0  ;;  %vm6642_vm15 = vcmp.ne.s32.totalorder %v8968_v33, 1 }
 0x10a   : > { %v9625_v0 = vpop.f32.mrb[16].mxu1  ;;  %7419 = vmatmul.mubr.bf16.gmra.mrb[44].mxu0 %v9471_v12  ;;  %13015 = vst [vmem:[#allocation77_spill] sm:$0xff] %v9645_v60  ;;  %13016 = vst [vmem:[#allocation78_spill] sm:$0xff] %v9649_v46  ;;  %v9665_v56 = vadd.f32 %v7183_v36, %v9149_v42  ;;  %v914_v23 = vpop.f32.mrb[17].mxu0  ;;  %v9697_v36 = vadd.f32 %v9377_v61, %v9149_v42  ;;  %v13024_v46 = vmax.f32 %v9597_v45, 0.0 }
 0x10b   : > { %13017 = vst [vmem:[#allocation79_spill] sm:$0xff] %v9652_v38  ;;  %v9656_v28 = vrot.slane %v13018_v48, 6  ;;  %v9660_v12 = vpop.f32.mrb[17].mxu1  ;;  %13020 = vst [vmem:[#allocation81_spill] sm:$0xff] %v9667_v2  ;;  %v9669_v38 = vpop.permute.xlu0 %1601  ;;  %7422 = vmatprep.mubr.msk.bf16.mxu0 %vm8226_vm10, %v12926_v37  ;;  %v9682_v2 = vadd.f32 %v9149_v42, %v914_v23  ;;  %v13022_v48 = vmax.f32 %v9569_v25, 0.0  ;;  %v9712_v60 = vadd.f32 %v9149_v42, %v9415_v9 }
 0x10c   : > { %4225 = vperm.xlu1 %8104, %v9231_v34   ;;  %4222 = vperm.xlu0 %8103, %v9243_v51   ;;  %13021 = vst [vmem:[#allocation82_spill] sm:$0xff] %v9669_v38  ;;  %v9693_v34 = vadd.f32 %v9149_v42, %v9355_v62  ;;  %v13032_v9 = vmax.f32 %v9620_v54, 0.0  ;;  %vm5855_vm3 = vmpackc.low %vm6642_vm15, %vm6643_vm14 }
 0x10d   : > { %13019 = vst [vmem:[#allocation80_spill] sm:$0xff] %v9656_v28  ;;  %v7186_v38 = vpop.f32.mrb[18].mxu0  ;;  %v9688_v44 = vpack.c.bf16 %v13023_v11, %v13022_v48  ;;  %v9704_v28 = vrot.slane %v13024_v46, 6  ;;  %v13026_v11 = vmax.f32 %v9601_v59, 0.0  ;;  %v13028_v46 = vmax.f32 %v9612_v15, 0.0 }
 0x10e   : > { %v9677_v51 = vpop.f32.mrb[18].mxu1  ;;  %v9700_v23 = vadd.f32 %v7186_v38, %v9149_v42  ;;  %v924_v38 = vpop.f32.mrb[19].mxu0  ;;  %v9729_v59 = vrot.slane %v13032_v9, 6  ;;  %v13037_v9 = vmax.f32 %v9682_v2, 0.0 }
 0x10f   : > { %13025 = vst [vmem:[#allocation83_spill] sm:$0xff] %v9704_v28  ;;  %v9708_v48 = vrot.slane %v13026_v11, 6  ;;  %v9714_v62 = vpop.f32.mrb[19].mxu1  ;;  %v9721_v28 = vrot.slane %v13028_v46, 6  ;;  %v13030_v11 = vmax.f32 %v9616_v29, 0.0  ;;  %v9739_v15 = vadd.f32 %v9149_v42, %v924_v38  ;;  %v9753_v29 = vpop.permute.xlu1 %1610 }
 0x110   : > { %4231 = vperm.xlu1 %8104, %v9248_v43   ;;  %4228 = vperm.xlu0 %8103, %v9267_v26   ;;  %13033 = vst [vmem:[#allocation87_spill] sm:$0xff] %v9729_v59  ;;  %v9733_v43 = vadd.f32 %v9440_v30, %v9149_v42  ;;  %v13038_v59 = vmax.f32 %v9665_v56, 0.0  ;;  %13040 = vst [vmem:[#allocation90_spill] sm:$0xff] %v9753_v29  ;;  %v9755_v54 = vpop.permute.xlu0 %1607  ;;  %v13042_v38 = vmax.f32 %v9640_v18, 0.0 }
 0x111   : > { %13027 = vst [vmem:[#allocation84_spill] sm:$0xff] %v9708_v48  ;;  %13029 = vst [vmem:[#allocation85_spill] sm:$0xff] %v9721_v28  ;;  %v9725_v48 = vrot.slane %v13030_v11, 6  ;;  %v7189_v46 = vpop.f32.mrb[20].mxu0  ;;  %v13034_v28 = vmax.f32 %v9630_v40, 0.0  ;;  %v13035_v11 = vmax.f32 %v9623_v57, 0.0 }
 0x112   : > { %v9735_v26 = vpop.f32.mrb[20].mxu1  ;;  %v9751_v30 = vpack.c.bf16 %v13038_v59, %v13037_v9  ;;  %13041 = vst [vmem:[#allocation91_spill] sm:$0xff] %v9755_v54  ;;  %v9759_v61 = vrot.slane %v13042_v38, 6  ;;  %7423 = vmatmul.mubr.bf16.gmra.mrb[48].mxu0 %v9539_v49  ;;  %v12847_v38 = vmax.f32 %v9739_v15, 0.0  ;;  %v9779_v45 = vadd.f32 %v7189_v46, %v9149_v42 }
 0x113   : > { %13031 = vst [vmem:[#allocation86_spill] sm:$0xff] %v9725_v48  ;;  %v9745_v48 = vpack.c.bf16 %v13035_v11, %v13034_v28  ;;  %v9765_v28 = vadd.f32 %v9149_v42, %v9462_v63  ;;  %v13044_v11 = vmax.f32 %v9380_v10, 0.0  ;;  %v9773_v54 = vpop.f32.mrb[21].mxu1  ;;  %v934_v63 = vpop.f32.mrb[21].mxu0  ;;  %v9784_v59 = vadd.f32 %v9494_v50, %v9149_v42  ;;  %7426 = vmatprep.mubr.msk.bf16.mxu0 %vm8226_vm10, %v12926_v37 }
 0x114   : > { %13039 = vst [vmem:[#allocation89_spill] sm:$0xff] %v9751_v30  ;;  %13043 = vst [vmem:[#allocation92_spill] sm:$0xff] %v9759_v61  ;;  %4237 = vperm.xlu1 %8104, %v9292_v5   ;;  %4234 = vperm.xlu0 %8103, %v9296_v8   ;;  %v9788_v10 = vadd.f32 %v9149_v42, %v9531_v53  ;;  %v9793_v8 = vadd.f32 %v9149_v42, %v934_v63  ;;  %v13046_v5 = vmax.f32 %v9383_v7, 0.0  ;;  %v9839_v49 = vpop.permute.xlu0 %1613 }
 0x115   : > { %13036 = vst [vmem:[#allocation88_spill] sm:$0xff] %v9745_v48  ;;  %v9771_v9 = vrot.slane %v13044_v11, 6  ;;  %13045 = vst [vmem:[#allocation93_spill] sm:$0xff] %v9784_v59  ;;  %v7192_v52 = vpop.f32.mrb[22].mxu0  ;;  %v13047_v50 = vmax.f32 %v9700_v23, 0.0  ;;  %v13048_v63 = vmax.f32 %v9693_v34, 0.0 }
 0x116   : > { %v1211_v46 = vrot.slane %v13046_v5, 6  ;;  %v9797_v11 = vpop.f32.mrb[22].mxu1  ;;  %v13050_v7 = vmax.f32 %v9697_v36, 0.0  ;;  %v13052_v30 = vmax.f32 %v9712_v60, 0.0  ;;  %13055 = vst [vmem:[#allocation98_spill] sm:$0xff] %v9839_v49 }
 0x117   : > { %v9804_v53 = vpack.c.bf16 %v13047_v50, %v12847_v38  ;;  %v9810_v61 = vrot.slane %v13048_v63, 6  ;;  %v9824_v50 = vadd.f32 %v9562_v58, %v9149_v42  ;;  %v9828_v63 = vadd.f32 %v9149_v42, %v9603_v31  ;;  %v9830_v29 = vpop.f32.mrb[23].mxu1  ;;  %v944_v38 = vpop.f32.mrb[23].mxu0 }
 0x118   : > { %v9814_v5 = vrot.slane %v13050_v7, 6  ;;  %v9820_v48 = vrot.slane %v13052_v30, 6  ;;  %4243 = vperm.xlu1 %8104, %v9300_v4   ;;  %4240 = vperm.xlu0 %8103, %v9311_v32   ;;  %v9835_v7 = vadd.f32 %v7192_v52, %v9149_v42  ;;  %v9837_v30 = vpop.permute.xlu1 %1616  ;;  %v13056_v58 = vmax.f32 %v9733_v43, 0.0 }
 0x119   : > { %13049 = vst [vmem:[#allocation94_spill] sm:$0xff] %v9810_v61  ;;  %13054 = vst [vmem:[#allocation97_spill] sm:$0xff] %v9837_v30  ;;  %v13058_v4 = vmax.f32 %v9443_v27, 0.0  ;;  %v9855_v30 = vadd.f32 %v9149_v42, %v944_v38  ;;  %v7195_v49 = vpop.f32.mrb[24].mxu0  ;;  %v13059_v61 = vmax.f32 %v9793_v8, 0.0  ;;  %v9866_v27 = vsel %vm1269_vm2, %v1211_v46, %v9771_v9 }
 0x11a   : > { %13051 = vst [vmem:[#allocation95_spill] sm:$0xff] %v9814_v5  ;;  %13053 = vst [vmem:[#allocation96_spill] sm:$0xff] %v9820_v48  ;;  %v9843_v18 = vrot.slane %v13056_v58, 6  ;;  %v9851_v32 = vpop.f32.mrb[24].mxu1  ;;  %v13060_v58 = vmax.f32 %v9779_v45, 0.0  ;;  %v9874_v38 = vadd.f32 %v9625_v0, %v9149_v42  ;;  %v13065_v52 = vmax.f32 %v9446_v39, 0.0  ;;  %7427 = vmatmul.mubr.bf16.gmra.mrb[52].mxu0 %v9636_v6 }
 0x11b   : > { %v9849_v5 = vrot.slane %v13058_v4, 6  ;;  %13062 = vst [vmem:[#allocation101_spill] sm:$0xff] %v9866_v27  ;;  %v13063_v4 = vmax.f32 %v9765_v28, 0.0  ;;  %v9891_v0 = vpop.f32.mrb[25].mxu1  ;;  %7430 = vmatprep.mubr.msk.bf16.mxu0 %vm8226_vm10, %v12926_v37 }
 0x11c   : > { %13057 = vst [vmem:[#allocation99_spill] sm:$0xff] %v9843_v18  ;;  %v9861_v18 = vpack.c.bf16 %v13060_v58, %v13059_v61  ;;  %v9878_v31 = vrot.slane %v13065_v52, 6  ;;  %v13066_v61 = vmax.f32 %v9497_v55, 0.0  ;;  %4249 = vperm.xlu1 %8104, %v9324_v19   ;;  %4246 = vperm.xlu0 %8103, %v9328_v16   ;;  %v954_v55 = vpop.f32.mrb[25].mxu0  ;;  %v13067_v52 = vmax.f32 %v9784_v59, 0.0 }
 0x11d   : > { %v9870_v48 = vrot.slane %v13063_v4, 6  ;;  %v9889_v4 = vadd.f32 %v9149_v42, %v9660_v12  ;;  %v13069_v12 = vmax.f32 %v9500_v41, 0.0  ;;  %v13070_v19 = vmax.f32 %v9788_v10, 0.0 }
 0x11e   : > { %13061 = vst [vmem:[#allocation100_spill] sm:$0xff] %v9861_v18  ;;  %v9882_v58 = vrot.slane %v13066_v61, 6  ;;  %v9898_v6 = vrot.slane %v13067_v52, 6  ;;  %v9902_v61 = vadd.f32 %v9677_v51, %v9149_v42  ;;  %v9909_v18 = vadd.f32 %v7195_v49, %v9149_v42  ;;  %v9917_v52 = vpop.f32.mrb[26].mxu1  ;;  %v7198_v51 = vpop.f32.mrb[26].mxu0 }
 0x11f   : > { %13064 = vst [vmem:[#allocation102_spill] sm:$0xff] %v9870_v48  ;;  %v9906_v17 = vrot.slane %v13069_v12, 6  ;;  %v9915_v16 = vrot.slane %v13070_v19, 6  ;;  %v9920_v39 = vadd.f32 %v9149_v42, %v954_v55  ;;  %v9925_v41 = vsel %vm1269_vm2, %v9426_v22, %v1211_v46  ;;  %v9933_v48 = vpop.permute.xlu1 %1622  ;;  %v9935_v19 = vpop.permute.xlu0 %1619 }
 0x120   : > { %13068 = vst [vmem:[#allocation103_spill] sm:$0xff] %v9898_v6  ;;  %13072 = vst [vmem:[#allocation105_spill] sm:$0xff] %v9925_v41  ;;  %v13073_v49 = vmax.f32 %v9855_v30, 0.0  ;;  %v13074_v12 = vmax.f32 %v9835_v7, 0.0  ;;  %v9940_v55 = vadd.f32 %v9149_v42, %v9714_v62  ;;  %v9944_v22 = vrot.slane %v13078_v35, 6  ;;  %v9963_v35 = vpop.f32.mrb[27].mxu1  ;;  %4255 = vperm.xlu1 %8104, %v9332_v14   ;;  %4252 = vperm.xlu0 %8103, %v9347_v21  }
 0x121   : > { %13071 = vst [vmem:[#allocation104_spill] sm:$0xff] %v9915_v16  ;;  %13076 = vst [vmem:[#allocation107_spill] sm:$0xff] %v9933_v48  ;;  %v13079_v46 = vmax.f32 %v9569_v25, 0.0  ;;  %v13084_v62 = vmax.f32 %v9623_v57, 0.0  ;;  %v964_v13 = vpop.f32.mrb[27].mxu0  ;;  %v13086_v57 = vmax.f32 %v9874_v38, 0.0 }
 0x122   : > { %v9931_v6 = vpack.c.bf16 %v13074_v12, %v13073_v49  ;;  %13077 = vst [vmem:[#allocation108_spill] sm:$0xff] %v9935_v19  ;;  %v13080_v49 = vmax.f32 %v9824_v50, 0.0  ;;  %v13082_v19 = vmax.f32 %v9828_v63, 0.0  ;;  %v9980_v21 = vadd.f32 %v9149_v42, %v964_v13  ;;  %7431 = vmatmul.mubr.bf16.gmra.mrb[56].mxu0 %v9688_v44 }
 0x123   : > { %v9948_v59 = vrot.slane %v13079_v46, 6  ;;  %v9976_v46 = vadd.f32 %v7198_v51, %v9149_v42  ;;  %v9992_v51 = vrot.slane %v13086_v57, 6  ;;  %v13088_v25 = vmax.f32 %v9630_v40, 0.0  ;;  %7434 = vmatprep.mubr.msk.bf16.mxu0 %vm8226_vm10, %v12926_v37 }
 0x124   : > { %13075 = vst [vmem:[#allocation106_spill] sm:$0xff] %v9931_v6  ;;  %v9952_v12 = vrot.slane %v13080_v49, 6  ;;  %v9956_v48 = vrot.slane %v13082_v19, 6  ;;  %v9961_v6 = vrot.slane %v13084_v62, 6  ;;  %v9972_v19 = vadd.f32 %v9735_v26, %v9149_v42  ;;  %v7249_v49 = vpop.f32.mrb[28].mxu1  ;;  %v7201_v62 = vpop.f32.mrb[28].mxu0  ;;  %4261 = vperm.xlu1 %8104, %v9368_v1   ;;  %4258 = vperm.xlu0 %8103, %v9372_v24  }
 0x125   : > { %v9988_v26 = vsel %vm1269_vm2, %v9878_v31, %v9849_v5  ;;  %13087 = vst [vmem:[#allocation112_spill] sm:$0xff] %v9992_v51  ;;  %v9997_v13 = vrot.slane %v13088_v25, 6  ;;  %v13089_v16 = vmax.f32 %v9889_v4, 0.0  ;;  %v13091_v41 = vmax.f32 %v9665_v56, 0.0  ;;  %v10015_v40 = vpop.f32.mrb[29].mxu1  ;;  %v974_v25 = vpop.f32.mrb[29].mxu0 }
 0x126   : > { %13081 = vst [vmem:[#allocation109_spill] sm:$0xff] %v9952_v12  ;;  %13083 = vst [vmem:[#allocation110_spill] sm:$0xff] %v9956_v48  ;;  %v10000_v48 = vadd.f32 %v7249_v49, %v9149_v42  ;;  %v13092_v57 = vmax.f32 %v9682_v2, 0.0  ;;  %v10020_v44 = vadd.f32 %v7201_v62, %v9149_v42  ;;  %v13094_v56 = vmax.f32 %v9902_v61, 0.0  ;;  %v10033_v1 = vpop.permute.xlu0 %1625 }
 0x127   : > { %13085 = vst [vmem:[#allocation111_spill] sm:$0xff] %v9988_v26  ;;  %v10005_v12 = vrot.slane %v13089_v16, 6  ;;  %v10009_v27 = vrot.slane %v13091_v41, 6  ;;  %v10022_v16 = vpop.permute.xlu1 %1628  ;;  %13096 = vst [vmem:[#allocation116_spill] sm:$0xff] %v10033_v1  ;;  %v10037_v62 = vadd.f32 %v9149_v42, %v974_v25  ;;  %v13098_v49 = vmax.f32 %v9920_v39, 0.0 }
 0x128   : > { %v10013_v14 = vrot.slane %v13092_v57, 6  ;;  %13093 = vst [vmem:[#allocation114_spill] sm:$0xff] %v10022_v16  ;;  %v10026_v41 = vrot.slane %v13094_v56, 6  ;;  %v7204_v16 = vpop.f32.mrb[30].mxu0  ;;  %v10043_v56 = vsel %vm1269_vm2, %v9771_v9, %v9878_v31  ;;  %v13099_v2 = vmax.f32 %v9909_v18, 0.0  ;;  %4267 = vperm.xlu1 %8104, %v9401_v47  }
 0x129   : > { %13090 = vst [vmem:[#allocation113_spill] sm:$0xff] %v10005_v12  ;;  %13097 = vst [vmem:[#allocation117_spill] sm:$0xff] %v10043_v56  ;;  %v13101_v1 = vmax.f32 %v9940_v55, 0.0  ;;  %v13103_v25 = vmax.f32 %v9700_v23, 0.0  ;;  %v13104_v12 = vmax.f32 %v10000_v48, 0.0  ;;  %v10067_v31 = vadd.f32 %v9149_v42, %v9773_v54 }
 0x12a   : > { %13095 = vst [vmem:[#allocation115_spill] sm:$0xff] %v10026_v41  ;;  %v10049_v57 = vpack.c.bf16 %v13099_v2, %v13098_v49  ;;  %v13106_v2 = vmax.f32 %v9739_v15, 0.0  ;;  %v13110_v9 = vmax.f32 %v9972_v19, 0.0  ;;  %v10083_v15 = vadd.f32 %v9797_v11, %v9149_v42 }
 0x12b   : > { %v10053_v41 = vrot.slane %v13101_v1, 6  ;;  %v10057_v24 = vrot.slane %v13103_v25, 6  ;;  %v10061_v51 = vrot.slane %v13104_v12, 6  ;;  %v13107_v25 = vld [vmem:[#allocation48_spill] sm:$0xff]  ;;  %v984_v12 = vpop.f32.mrb[31].mxu0  ;;  %v10097_v1 = vadd.f32 %v9149_v42, %v9830_v29 }
 0x12c   : > { %13100 = vst [vmem:[#allocation118_spill] sm:$0xff] %v10049_v57  ;;  %v1223_v49 = vrot.slane %v13106_v2, 6  ;;  %4264 = vperm.xlu0 %8103, %v13107_v25   ;;  %v13108_v57 = vld [vmem:[#allocation10_spill] sm:$0xff]  ;;  %v10079_v54 = vrot.slane %v13110_v9, 6  ;;  %v13112_v2 = vld [vmem:[#allocation4_spill] sm:$0xff]  ;;  %v10093_v25 = vsel %vm1269_vm2, %v9906_v17, %v9882_v58  ;;  %v13113_v9 = vld [vmem:[#allocation5_spill] sm:$0xff]  ;;  %v10104_v11 = vsel %vm1269_vm2, %v9849_v5, %v9906_v17 }
 0x12d   : > { %13102 = vst [vmem:[#allocation119_spill] sm:$0xff] %v10053_v41  ;;  %13105 = vst [vmem:[#allocation120_spill] sm:$0xff] %v10061_v51  ;;  %vm6645_vm0 = vcmp.ne.s32.totalorder %v13108_v57, 1  ;;  %v13109_v41 = vld [vmem:[#allocation11_spill] sm:$0xff]  ;;  %v1331_v47 = vsel %vm1269_vm2, %v10061_v51, %v13112_v2  ;;  %v13114_v2 = vmax.f32 %v9980_v21, 0.0  ;;  %v13115_v56 = vmax.f32 %v9976_v46, 0.0 }
 0x12e   : > { %vm6644_vm1 = vcmp.ne.s32.totalorder %v13109_v41, 1  ;;  %13111 = vst [vmem:[#allocation48_spill] sm:$0xff] %v10079_v54  ;;  %v5856_v23 = vpack.c.bf16 %v13113_v9, %v1331_v47  ;;  %v10113_v51 = vadd.f32 %v7204_v16, %v9149_v42  ;;  %v13116_v54 = vld [vmem:[#allocation88_spill] sm:$0xff]  ;;  %v10122_v17 = vsel %vm1269_vm2, %v9948_v59, %v9944_v22  ;;  %v10134_v16 = vpop.permute.xlu1 %1634  ;;  %v13121_v9 = vld [vmem:[#allocation49_spill] sm:$0xff] }
 0x12f   : > { %v10110_v26 = vpack.c.bf16 %v13115_v56, %v13114_v2  ;;  %7435 = vmatmul.mubr.bf16.gmra.mrb[60].mxu0 %v13116_v54  ;;  %13117 = vst [vmem:[#allocation10_spill] sm:$0xff] %v10122_v17  ;;  %v10128_v5 = vsel %vm1269_vm2, %v9882_v58, %v9948_v59  ;;  %13119 = vst [vmem:[#allocation4_spill] sm:$0xff] %v10134_v16  ;;  %v10136_v56 = vpop.permute.xlu0 %1631  ;;  %v10141_v47 = vadd.f32 %v9851_v32, %v9149_v42  ;;  %v13122_v2 = vld [vmem:[#allocation50_spill] sm:$0xff] }
 0x130   : > { %13118 = vst [vmem:[#allocation11_spill] sm:$0xff] %v10128_v5  ;;  %13120 = vst [vmem:[#allocation5_spill] sm:$0xff] %v10136_v56  ;;  %4273 = vperm.xlu1 %8104, %v13121_v9   ;;  %4270 = vperm.xlu0 %8103, %v13122_v2   ;;  %v13123_v33 = vmax.f32 %v10037_v62, 0.0  ;;  %v13124_v59 = vmax.f32 %v10020_v44, 0.0  ;;  %v985_v32 = vadd.f32 %v9149_v42, %v984_v12  ;;  %v1174_v54 = vmax.f32 %v10113_v51, 0.0  ;;  %v13138_v51 = vld [vmem:[#allocation52_spill] sm:$0xff] }
 0x131   : > { %7267 = vmatmul.mubr.msk.bf16.vlgmr.msra.gmra.mrb[32].mxu1 %vm5855_vm3, %v5856_v23  ;;  %7438 = vmatprep.mubr.msk.bf16.mxu0 %vm8226_vm10, %v12926_v37  ;;  %v10161_v9 = vsel %vm1269_vm2, %v9997_v13, %v9961_v6  ;;  %v10167_v2 = vsel %vm1269_vm2, %v9944_v22, %v9997_v13  ;;  %v10177_v12 = vsel %vm1269_vm2, %v10013_v14, %v10009_v27  ;;  %v13130_v22 = vld [vmem:[#allocation71_spill] sm:$0xff]  ;;  %v13153_v5 = vmax.f32 %v9909_v18, 0.0  ;;  %vm5860_vm6 = vmpackc.low %vm6644_vm1, %vm6645_vm0 }
 0x132   : > { %v10151_v58 = vpack.c.bf16 %v13124_v59, %v13123_v33  ;;  %13126 = vst [vmem:[#allocation49_spill] sm:$0xff] %v10161_v9  ;;  %13127 = vst [vmem:[#allocation50_spill] sm:$0xff] %v10167_v2  ;;  %7270 = vmatprep.mubr.msk.bf16.mxu1 %vm8226_vm10, %v12926_v37  ;;  %v10183_v33 = vsel %vm1269_vm2, %v9961_v6, %v10013_v14  ;;  %v13131_v13 = vmax.f32 %v13130_v22, 0.0  ;;  %v13132_v59 = vld [vmem:[#allocation62_spill] sm:$0xff]  ;;  %v1173_v56 = vmax.f32 %v985_v32, 0.0  ;;  %v13139_v32 = vld [vmem:[#allocation12_spill] sm:$0xff] }
 0x133   : > { %13128 = vst [vmem:[#allocation121_spill] sm:$0xff] %v10177_v12  ;;  %13129 = vst [vmem:[#allocation122_spill] sm:$0xff] %v10183_v33  ;;  %v13133_v3 = vmax.f32 %v13132_v59, 0.0  ;;  %v13135_v2 = vmax.f32 %v10067_v31, 0.0  ;;  %v10202_v14 = vadd.f32 %v9149_v42, %v9891_v0  ;;  %vm6646_vm4 = vcmp.ne.s32.totalorder %v13139_v32, 1  ;;  %v13140_v59 = vld [vmem:[#allocation13_spill] sm:$0xff] }
 0x134   : > { %13125 = vst [vmem:[#allocation88_spill] sm:$0xff] %v10151_v58  ;;  %4276 = vperm.xlu0 %8103, %v13138_v51   ;;  %vm6647_vm5 = vcmp.ne.s32.totalorder %v13140_v59, 1  ;;  %v10212_v23 = vpack.c.bf16 %v1174_v54, %v1173_v56  ;;  %v10217_v0 = vsel %vm1269_vm2, %v1223_v49, %v10057_v24  ;;  %v13145_v51 = vmax.f32 %v10083_v15, 0.0  ;;  %v13147_v33 = vld [vmem:[#allocation73_spill] sm:$0xff] }
 0x135   : > { %v10189_v29 = vpack.c.bf16 %v13133_v3, %v13131_v13  ;;  %v10197_v9 = vrot.slane %v13135_v2, 6  ;;  %v13136_v3 = vmax.f32 %v9779_v45, 0.0  ;;  %v13137_v13 = vld [vmem:[#allocation51_spill] sm:$0xff]  ;;  %v13141_v2 = vmax.f32 %v9793_v8, 0.0  ;;  %vm5865_vm11 = vmpackc.low %vm6646_vm4, %vm6647_vm5 }
 0x136   : > { %4279 = vperm.xlu1 %8104, %v13137_v13   ;;  %13142 = vst [vmem:[#allocation62_spill] sm:$0xff] %v10212_v23  ;;  %v10222_v45 = vsel %vm1269_vm2, %v10009_v27, %v1223_v49  ;;  %v10226_v13 = vpop.permute.xlu0 %1637  ;;  %v10230_v8 = vrot.slane %v13145_v51, 6  ;;  %v13148_v12 = vmax.f32 %v13147_v33, 0.0  ;;  %v13149_v23 = vld [vmem:[#allocation72_spill] sm:$0xff]  ;;  %v13151_v49 = vmax.f32 %v10097_v1, 0.0 }
 0x137   : > { %13134 = vst [vmem:[#allocation71_spill] sm:$0xff] %v10189_v29  ;;  %v1226_v22 = vrot.slane %v13136_v3, 6  ;;  %v1225_v16 = vrot.slane %v13141_v2, 6  ;;  %v10224_v3 = vpop.permute.xlu1 %1640  ;;  %13144 = vst [vmem:[#allocation52_spill] sm:$0xff] %v10226_v13  ;;  %v13146_v2 = vmax.f32 %v9835_v7, 0.0  ;;  %v13150_v58 = vmax.f32 %v13149_v23, 0.0 }
 0x138   : > { %13143 = vst [vmem:[#allocation51_spill] sm:$0xff] %v10224_v3  ;;  %v10244_v3 = vrot.slane %v13151_v49, 6  ;;  %v13152_v13 = vmax.f32 %v9855_v30, 0.0  ;;  %v1230_v7 = vrot.slane %v13153_v5, 6  ;;  %v13155_v29 = vld [vmem:[#allocation89_spill] sm:$0xff]  ;;  %v10264_v18 = vadd.f32 %v9917_v52, %v9149_v42  ;;  %v13162_v49 = vld [vmem:[#allocation8_spill] sm:$0xff] }
 0x139   : > { %v1228_v6 = vrot.slane %v13146_v2, 6  ;;  %v10240_v27 = vpack.c.bf16 %v13150_v58, %v13148_v12  ;;  %v13154_v2 = vmax.f32 %v9920_v39, 0.0  ;;  %7439 = vmatmul.mubr.bf16.gmra.mrb[64].mxu0 %v13155_v29  ;;  %v13156_v58 = vmax.f32 %v10141_v47, 0.0  ;;  %v13158_v12 = vld [vmem:[#allocation53_spill] sm:$0xff]  ;;  %v13159_v29 = vld [vmem:[#allocation56_spill] sm:$0xff] }
 0x13a   : > { %v1227_v51 = vrot.slane %v13152_v13, 6  ;;  %v13157_v39 = vmax.f32 %v9976_v46, 0.0  ;;  %4285 = vperm.xlu1 %8104, %v13158_v12   ;;  %4282 = vperm.xlu0 %8103, %v13159_v29   ;;  %v13160_v41 = vmax.f32 %v9980_v21, 0.0  ;;  %v13161_v33 = vmax.f32 %v10020_v44, 0.0  ;;  %v13166_v29 = vld [vmem:[#allocation75_spill] sm:$0xff] }
 0x13b   : > { %v1229_v17 = vrot.slane %v13154_v2, 6  ;;  %v10259_v23 = vrot.slane %v13156_v58, 6  ;;  %v13163_v2 = vld [vmem:[#allocation9_spill] sm:$0xff]  ;;  %7442 = vmatprep.mubr.msk.bf16.mxu0 %vm8226_vm10, %v12926_v37  ;;  %v10281_v52 = vsel %vm1269_vm2, %v1225_v16, %v1226_v22  ;;  %v10286_v46 = vsel %vm1269_vm2, %v10057_v24, %v1225_v16  ;;  %v13178_v12 = vld [vmem:[#allocation15_spill] sm:$0xff] }
 0x13c   : > { %v1232_v5 = vrot.slane %v13157_v39, 6  ;;  %v1231_v57 = vrot.slane %v13160_v41, 6  ;;  %v1234_v13 = vrot.slane %v13161_v33, 6  ;;  %v13164_v58 = vpack.c.bf16 %v13162_v49, %v13163_v2  ;;  %v13168_v33 = vld [vmem:[#allocation74_spill] sm:$0xff] }
 0x13d   : > { %v13165_v21 = vmax.f32 %v10037_v62, 0.0  ;;  %v1235_v39 = vrot.slane %v1173_v56, 6  ;;  %v13167_v41 = vmax.f32 %v13166_v29, 0.0  ;;  %v13169_v49 = vmax.f32 %v13168_v33, 0.0  ;;  %v13171_v56 = vld [vmem:[#allocation76_spill] sm:$0xff]  ;;  %v10320_v33 = vpop.permute.xlu0 %2899 }
 0x13e   : > { %7271 = vmatmul.mubr.msk.bf16.gmra.mrb[36].mxu1 %vm5860_vm6, %v13164_v58  ;;  %v10302_v24 = vsel %vm1269_vm2, %v1227_v51, %v1228_v6  ;;  %v10306_v62 = vsel %vm1269_vm2, %v1226_v22, %v1227_v51  ;;  %v13170_v16 = vmax.f32 %v9693_v34, 0.0  ;;  %v13172_v58 = vmax.f32 %v13171_v56, 0.0  ;;  %13174 = vst [vmem:[#allocation13_spill] sm:$0xff] %v10320_v33  ;;  %v13175_v51 = vld [vmem:[#allocation58_spill] sm:$0xff]  ;;  %v13176_v34 = vld [vmem:[#allocation59_spill] sm:$0xff]  ;;  %v13211_v33 = vld [vmem:[#allocation92_spill] sm:$0xff] }
 0x13f   : > { %v1233_v44 = vrot.slane %v13165_v21, 6  ;;  %7274 = vmatprep.mubr.msk.bf16.mxu1 %vm8226_vm10, %v12926_v37  ;;  %v10298_v2 = vpack.c.bf16 %v13169_v49, %v13167_v41  ;;  %v10316_v29 = vsel %vm1269_vm2, %v1229_v17, %v1230_v7  ;;  %v10318_v41 = vpop.permute.xlu1 %2902  ;;  %v10324_v49 = vadd.f32 %v9149_v42, %v9963_v35  ;;  %4291 = vperm.xlu1 %8104, %v13175_v51  }
 0x140   : > { %v10312_v21 = vpack.c.bf16 %v13172_v58, %v13170_v16  ;;  %13173 = vst [vmem:[#allocation12_spill] sm:$0xff] %v10318_v41  ;;  %v1236_v22 = vrot.slane %v1174_v54, 6  ;;  %4288 = vperm.xlu0 %8103, %v13176_v34   ;;  %v10332_v56 = vsel %vm1269_vm2, %v1228_v6, %v1229_v17  ;;  %v13177_v58 = vld [vmem:[#allocation14_spill] sm:$0xff]  ;;  %vm6649_vm9 = vcmp.ne.s32.totalorder %v13178_v12, 1  ;;  %v13209_v6 = vld [vmem:[#allocation63_spill] sm:$0xff] }
 0x141   : > { %vm6648_vm8 = vcmp.ne.s32.totalorder %v13177_v58, 1  ;;  %v13179_v54 = vmax.f32 %v9712_v60, 0.0  ;;  %v13180_v51 = vmax.f32 %v9697_v36, 0.0  ;;  %v10346_v34 = vsel %vm1269_vm2, %v1231_v57, %v1232_v5  ;;  %7443 = vmatmul.mubr.bf16.gmra.mrb[68].mxu0 %v9804_v53  ;;  %v13236_v58 = vld [vmem:[#allocation105_spill] sm:$0xff] }
 0x142   : > { %v10350_v17 = vsel %vm1269_vm2, %v1230_v7, %v1231_v57  ;;  %v13181_v16 = vmax.f32 %v9765_v28, 0.0  ;;  %v13182_v35 = vmax.f32 %v9733_v43, 0.0  ;;  %v10362_v36 = vsel %vm1269_vm2, %v1233_v44, %v1234_v13  ;;  %v13184_v28 = vld [vmem:[#allocation93_spill] sm:$0xff]  ;;  %7446 = vmatprep.mubr.msk.bf16.mxu0 %vm8226_vm10, %v12926_v37  ;;  %vm5870_vm13 = vmpackc.low %vm6648_vm8, %vm6649_vm9 }
 0x143   : > { %v10342_v30 = vpack.c.bf16 %v13180_v51, %v13179_v54  ;;  %v10366_v54 = vsel %vm1269_vm2, %v1232_v5, %v1233_v44  ;;  %v13183_v57 = vmax.f32 %v9788_v10, 0.0  ;;  %v13185_v51 = vmax.f32 %v13184_v28, 0.0  ;;  %v13186_v5 = vld [vmem:[#allocation60_spill] sm:$0xff]  ;;  %v13187_v44 = vld [vmem:[#allocation61_spill] sm:$0xff] }
 0x144   : > { %v10358_v60 = vpack.c.bf16 %v13182_v35, %v13181_v16  ;;  %v10379_v16 = vsel %vm1269_vm2, %v1235_v39, %v1236_v22  ;;  %v10383_v35 = vsel %vm1269_vm2, %v1234_v13, %v1235_v39  ;;  %v1202_v53 = vmax.f32 %v10264_v18, 0.0  ;;  %4297 = vperm.xlu1 %8104, %v13186_v5   ;;  %4294 = vperm.xlu0 %8103, %v13187_v44   ;;  %v13190_v28 = vld [vmem:[#allocation57_spill] sm:$0xff]  ;;  %v13191_v18 = vld [vmem:[#allocation66_spill] sm:$0xff] }
 0x145   : > { %v10375_v43 = vpack.c.bf16 %v13185_v51, %v13183_v57  ;;  %v1135_v10 = vadd.f32 %v9149_v42, %v10015_v40  ;;  %v13188_v13 = vmax.f32 %v9828_v63, 0.0  ;;  %v13189_v39 = vmax.f32 %v9824_v50, 0.0  ;;  %v13193_v42 = vld [vmem:[#allocation80_spill] sm:$0xff]  ;;  %v13194_v40 = vld [vmem:[#allocation83_spill] sm:$0xff] }
 0x146   : > { %v1201_v32 = vmax.f32 %v10324_v49, 0.0  ;;  %v13192_v51 = vpack.c.bf16 %v13190_v28, %v13191_v18  ;;  %v10412_v5 = vsel %vm1269_vm2, %v13194_v40, %v13193_v42  ;;  %v10417_v50 = vsel %vm1269_vm2, %v1236_v22, %v13194_v40  ;;  %v13199_v18 = vld [vmem:[#allocation84_spill] sm:$0xff]  ;;  %v13203_v28 = vld [vmem:[#allocation86_spill] sm:$0xff]  ;;  %v13204_v57 = vld [vmem:[#allocation87_spill] sm:$0xff] }
 0x147   : > { %v10400_v59 = vpack.c.bf16 %v13189_v39, %v13188_v13  ;;  %v13195_v63 = vmax.f32 %v9889_v4, 0.0  ;;  %v13196_v49 = vmax.f32 %v9874_v38, 0.0  ;;  %v10425_v13 = vpop.permute.xlu1 %2908  ;;  %v10427_v39 = vpop.permute.xlu0 %2905  ;;  %v13201_v4 = vmax.f32 %v9940_v55, 0.0 }
 0x148   : > { %7275 = vmatmul.mubr.msk.bf16.gmra.mrb[40].mxu1 %vm5865_vm11, %v13192_v51  ;;  %13197 = vst [vmem:[#allocation73_spill] sm:$0xff] %v10425_v13  ;;  %13198 = vst [vmem:[#allocation72_spill] sm:$0xff] %v10427_v39  ;;  %v13200_v51 = vld [vmem:[#allocation85_spill] sm:$0xff]  ;;  %v13202_v40 = vmax.f32 %v9902_v61, 0.0  ;;  %v10457_v7 = vsel %vm1269_vm2, %v13204_v57, %v13203_v28  ;;  %v13205_v55 = vmax.f32 %v10067_v31, 0.0  ;;  %v13206_v61 = vmax.f32 %v9972_v19, 0.0  ;;  %4303 = vperm.xlu1 %8104, %v13209_v6  }
 0x149   : > { %v10423_v44 = vpack.c.bf16 %v13196_v49, %v13195_v63  ;;  %7278 = vmatprep.mubr.msk.bf16.mxu1 %vm8226_vm10, %v12926_v37  ;;  %v10437_v22 = vsel %vm1269_vm2, %v13200_v51, %v13199_v18  ;;  %v10443_v38 = vsel %vm1269_vm2, %v13193_v42, %v13200_v51  ;;  %v10463_v42 = vsel %vm1269_vm2, %v13199_v18, %v13204_v57  ;;  %v13210_v39 = vld [vmem:[#allocation64_spill] sm:$0xff]  ;;  %v13212_v57 = vld [vmem:[#allocation94_spill] sm:$0xff]  ;;  %v13214_v18 = vld [vmem:[#allocation17_spill] sm:$0xff] }
 0x14a   : > { %v10449_v63 = vpack.c.bf16 %v13202_v40, %v13201_v4  ;;  %v10469_v51 = vpack.c.bf16 %v13206_v61, %v13205_v55  ;;  %v13208_v4 = vmax.f32 %v10202_v14, 0.0  ;;  %v1203_v49 = vmax.f32 %v1135_v10, 0.0  ;;  %4300 = vperm.xlu0 %8103, %v13210_v39   ;;  %v13213_v19 = vld [vmem:[#allocation16_spill] sm:$0xff]  ;;  %v13218_v61 = vld [vmem:[#allocation95_spill] sm:$0xff] }
 0x14b   : > { %v10481_v31 = vsel %vm1269_vm2, %v13212_v57, %v13211_v33  ;;  %vm6650_vm12 = vcmp.ne.s32.totalorder %v13213_v19, 1  ;;  %vm6651_vm7 = vcmp.ne.s32.totalorder %v13214_v18, 1  ;;  %v10489_v6 = vsel %vm1269_vm2, %v13203_v28, %v13212_v57  ;;  %v8191_v19 = vld [vmem:[%s12788_s1 + $0x138] sm:$0xff] }
 0x14c   : > { %13207 = vst [vmem:[#allocation89_spill] sm:$0xff] %v10469_v51  ;;  %v1261_v40 = vrot.slane %v13208_v4, 6  ;;  %v13215_v10 = vmax.f32 %v10097_v1, 0.0  ;;  %v13216_v39 = vmax.f32 %v10083_v15, 0.0  ;;  %v13219_v4 = vld [vmem:[#allocation96_spill] sm:$0xff]  ;;  %v13222_v15 = vmax.f32 %v10202_v14, 0.0  ;;  %vm5875_vm0 = vmpackc.low %vm6650_vm12, %vm6651_vm7 }
 0x14d   : > { %v10501_v13 = vsel %vm1269_vm2, %v13219_v4, %v13218_v61  ;;  %v10507_v41 = vsel %vm1269_vm2, %v13211_v33, %v13219_v4  ;;  %v13223_v57 = vmax.f32 %v10141_v47, 0.0  ;;  %v13227_v33 = vld [vmem:[#allocation100_spill] sm:$0xff]  ;;  %v10532_v1 = vpack.c.bf16 %v1202_v53, %v1201_v32  ;;  %v13229_v14 = vld [vmem:[#allocation103_spill] sm:$0xff] }
 0x14e   : > { %v10495_v55 = vpack.c.bf16 %v13216_v39, %v13215_v10  ;;  %13220 = vst [vmem:[#allocation56_spill] sm:$0xff] %v10501_v13  ;;  %13221 = vst [vmem:[#allocation8_spill] sm:$0xff] %v10507_v41  ;;  %v13225_v39 = vld [vmem:[#allocation99_spill] sm:$0xff]  ;;  %7447 = vmatmul.mubr.bf16.gmra.mrb[72].mxu0 %v13227_v33  ;;  %v13230_v47 = vld [vmem:[#allocation104_spill] sm:$0xff]  ;;  %v1264_v33 = vrot.slane %v1202_v53, 6  ;;  %v1263_v28 = vrot.slane %v1201_v32, 6 }
 0x14f   : > { %v10517_v10 = vpack.c.bf16 %v13223_v57, %v13222_v15  ;;  %13228 = vst [vmem:[#allocation75_spill] sm:$0xff] %v10532_v1  ;;  %v10538_v15 = vsel %vm1269_vm2, %v13230_v47, %v13229_v14  ;;  %v10544_v57 = vsel %vm1269_vm2, %v13225_v39, %v13230_v47  ;;  %v13233_v1 = vld [vmem:[#allocation65_spill] sm:$0xff]  ;;  %v1265_v12 = vrot.slane %v1203_v49, 6  ;;  %7450 = vmatprep.mubr.msk.bf16.mxu0 %vm8226_vm10, %v12926_v37 }
 0x150   : > { %13217 = vst [vmem:[#allocation53_spill] sm:$0xff] %v10495_v55  ;;  %v13226_v55 = vld [vmem:[#allocation102_spill] sm:$0xff]  ;;  %4309 = vperm.xlu1 %8104, %v13233_v1   ;;  %v13235_v47 = vld [vmem:[#allocation101_spill] sm:$0xff]  ;;  %v13238_v53 = vmax.f32 %v10000_v48, 0.0 }
 0x151   : > { %13224 = vst [vmem:[#allocation9_spill] sm:$0xff] %v10517_v10  ;;  %v10523_v51 = vsel %vm1269_vm2, %v13226_v55, %v13225_v39  ;;  %v10530_v4 = vsel %vm1269_vm2, %v13218_v61, %v13226_v55  ;;  %v10550_v55 = vpop.permute.xlu1 %2914  ;;  %v10552_v61 = vpop.permute.xlu0 %2911  ;;  %v13234_v10 = vld [vmem:[#allocation69_spill] sm:$0xff]  ;;  %v13237_v13 = vpack.c.bf16 %v13235_v47, %v13236_v58 }
 0x152   : > { %13231 = vst [vmem:[#allocation74_spill] sm:$0xff] %v10550_v55  ;;  %13232 = vst [vmem:[#allocation76_spill] sm:$0xff] %v10552_v61  ;;  %4306 = vperm.xlu0 %8103, %v13234_v10   ;;  %v10567_v32 = vpack.c.bf16 %v13238_v53, %v1203_v49  ;;  %v13239_v1 = vld [vmem:[#allocation109_spill] sm:$0xff]  ;;  %v13240_v10 = vld [vmem:[#allocation110_spill] sm:$0xff] }
 0x153   : > { %7279 = vmatmul.mubr.msk.bf16.gmra.mrb[44].mxu1 %vm5870_vm13, %v13237_v13  ;;  %v10573_v41 = vsel %vm1269_vm2, %v13240_v10, %v13239_v1  ;;  %v10579_v39 = vsel %vm1269_vm2, %v13229_v14, %v13240_v10  ;;  %v13242_v13 = vld [vmem:[#allocation112_spill] sm:$0xff]  ;;  %v13243_v49 = vld [vmem:[#allocation113_spill] sm:$0xff]  ;;  %v13245_v14 = vld [vmem:[#allocation115_spill] sm:$0xff] }
 0x154   : > { %13241 = vst [vmem:[#allocation58_spill] sm:$0xff] %v10579_v39  ;;  %7282 = vmatprep.mubr.msk.bf16.mxu1 %vm8226_vm10, %v12926_v37  ;;  %v10589_v47 = vsel %vm1269_vm2, %v13243_v49, %v13242_v13  ;;  %v10595_v58 = vsel %vm1269_vm2, %v13239_v1, %v13243_v49  ;;  %v13246_v53 = vld [vmem:[#allocation119_spill] sm:$0xff]  ;;  %v13248_v55 = vld [vmem:[#allocation48_spill] sm:$0xff]  ;;  %v10621_v49 = vsel %vm1269_vm2, %v13245_v14, %v10197_v9  ;;  %v13251_v39 = vld [vmem:[#allocation70_spill] sm:$0xff] }
 0x155   : > { %13244 = vst [vmem:[#allocation59_spill] sm:$0xff] %v10595_v58  ;;  %v10601_v10 = vsel %vm1269_vm2, %v13246_v53, %v13245_v14  ;;  %v10609_v61 = vsel %vm1269_vm2, %v13242_v13, %v13246_v53  ;;  %v10615_v1 = vsel %vm1269_vm2, %v10197_v9, %v13248_v55  ;;  %13250 = vst [vmem:[#allocation93_spill] sm:$0xff] %v10621_v49  ;;  %4315 = vperm.xlu1 %8104, %v13251_v39   ;;  %v13252_v48 = vld [vmem:[#allocation77_spill] sm:$0xff]  ;;  %v8189_v13 = vld [vmem:[%s12788_s1 + $0x128] sm:$0xff]  ;;  %v10657_v58 = vpop.permute.xlu1 %2920  ;;  %v10659_v49 = vpop.permute.xlu0 %2917 }
 0x156   : > { %13247 = vst [vmem:[#allocation14_spill] sm:$0xff] %v10609_v61  ;;  %13249 = vst [vmem:[#allocation15_spill] sm:$0xff] %v10615_v1  ;;  %4312 = vperm.xlu0 %8103, %v13252_v48   ;;  %vm4128_vm14 = vcmp.lt.s32.totalorder %v8189_v13, 8  ;;  %v8190_v53 = vld [vmem:[%s12788_s1 + $0x120] sm:$0xff]  ;;  %v10639_v39 = vsel %vm1269_vm2, %v10244_v3, %v10230_v8  ;;  %v10645_v48 = vsel %vm1269_vm2, %v13248_v55, %v10244_v3 }
 0x157   : > { %vm4127_vm15 = vcmp.lt.s32.totalorder %v8190_v53, 8  ;;  %v10650_v14 = vsel %vm1269_vm2, %v1261_v40, %v10259_v23  ;;  %v10655_v9 = vsel %vm1269_vm2, %v10230_v8, %v1261_v40  ;;  %13253 = vst [vmem:[#allocation60_spill] sm:$0xff] %v10657_v58  ;;  %13254 = vst [vmem:[#allocation61_spill] sm:$0xff] %v10659_v49  ;;  %v10667_v55 = vsel %vm1269_vm2, %v1263_v28, %v1264_v33  ;;  %v13256_v8 = vld [vmem:[#allocation106_spill] sm:$0xff]  ;;  %v13257_v49 = vld [vmem:[#allocation120_spill] sm:$0xff] }
 0x158   : > { %v10672_v61 = vsel %vm1269_vm2, %v10259_v23, %v1263_v28  ;;  %7451 = vmatmul.mubr.bf16.gmra.mrb[76].mxu0 %v13256_v8  ;;  %v10680_v1 = vsel %vm1269_vm2, %v1265_v12, %v13257_v49  ;;  %v10684_v3 = vsel %vm1269_vm2, %v1264_v33, %v1265_v12  ;;  %v13258_v23 = vld [vmem:[#allocation78_spill] sm:$0xff]  ;;  %v13259_v28 = vld [vmem:[#allocation79_spill] sm:$0xff]  ;;  %v13261_v58 = vld [vmem:[#allocation117_spill] sm:$0xff]  ;;  %vm4130_vm2 = vcmp.lt.s32.totalorder %v8191_v19, 8 }
 0x159   : > { %13255 = vst [vmem:[#allocation57_spill] sm:$0xff] %v10672_v61  ;;  %4321 = vperm.xlu1 %8104, %v13258_v23   ;;  %v13260_v40 = vld [vmem:[#allocation111_spill] sm:$0xff]  ;;  %v13263_v61 = vmov 0   ;;  %7454 = vmatprep.mubr.msk.bf16.mxu0 %vm8226_vm10, %v12926_v37  ;;  %v8192_v12 = vld [vmem:[%s12788_s1 + $0x130] sm:$0xff]  ;;  %v10713_v13 = vpop.permute.xlu0 %2923  ;;  %v13264_v53 = vld [vmem:[#allocation18_spill] sm:$0xff] }
 0x15a   : > { %4318 = vperm.xlu0 %8103, %v13259_v28   ;;  %v13262_v49 = vpack.c.bf16 %v13260_v40, %v13261_v58  ;;  %v4190_v33 = vsel %vm4128_vm14, 1, %v13263_v61  ;;  %v4189_v18 = vsel %vm4127_vm15, 1, %v13263_v61  ;;  %vm4129_vm1 = vcmp.lt.s32.totalorder %v8192_v12, 8  ;;  %v10711_v58 = vpop.permute.xlu1 %2926  ;;  %v13265_v40 = vld [vmem:[#allocation19_spill] sm:$0xff]  ;;  %v8194_v19 = vld [vmem:[%s12788_s1 + $0x140] sm:$0xff] }
 0x15b   : > { %vm6652_vm3 = vcmp.ne.s32.totalorder %v13264_v53, 1  ;;  %vm6653_vm4 = vcmp.ne.s32.totalorder %v13265_v40, 1  ;;  %v4192_v23 = vsel %vm4130_vm2, 1, %v13263_v61  ;;  %v4191_v28 = vsel %vm4129_vm1, 1, %v13263_v61 }
 0x15c   : > { %7283 = vmatmul.mubr.msk.bf16.gmra.mrb[48].mxu1 %vm5875_vm0, %v13262_v49  ;;  %v8193_v49 = vld [vmem:[%s12788_s1 + $0x148] sm:$0xff]  ;;  %vm4131_vm6 = vcmp.lt.s32.totalorder %v8194_v19, 8  ;;  %vm5880_vm8 = vmpackc.low %vm6652_vm3, %vm6653_vm4 }
 0x15d   : > { %7286 = vmatprep.mubr.msk.bf16.mxu1 %vm8226_vm10, %v12926_v37  ;;  %4327 = vperm.xlu1 %8104, %v4190_v33   ;;  %vm4132_vm5 = vcmp.lt.s32.totalorder %v8193_v49, 8  ;;  %v13266_v33 = vld [vmem:[#allocation118_spill] sm:$0xff]  ;;  %v4193_v53 = vsel %vm4131_vm6, 1, %v13263_v61  ;;  %v10735_v49 = vpop.permute.xlu0 %2929 }
 0x15e   : > { %4324 = vperm.xlu0 %8103, %v4189_v18   ;;  %v13267_v18 = vpack.c.bf16 %v10093_v25, %v10104_v11  ;;  %v4194_v12 = vsel %vm4132_vm5, 1, %v13263_v61  ;;  %v10733_v40 = vpop.permute.xlu1 %2932  ;;  %v8196_v25 = vld [vmem:[%s12788_s1 + $0x150] sm:$0xff] }
 0x15f   : > { %vm4133_vm11 = vcmp.lt.s32.totalorder %v8196_v25, 8  ;;  %v13268_v11 = vld [vmem:[#allocation20_spill] sm:$0xff]  ;;  %v13271_v25 = vld [vmem:[#allocation10_spill] sm:$0xff] }
 0x160   : > { %7455 = vmatmul.mubr.bf16.gmra.mrb[80].mxu0 %v13266_v33  ;;  %vm6654_vm12 = vcmp.ne.s32.totalorder %v13268_v11, 1  ;;  %v4195_v33 = vsel %vm4133_vm11, 1, %v13263_v61  ;;  %v13272_v11 = vld [vmem:[#allocation11_spill] sm:$0xff] }
 0x161   : > { %4333 = vperm.xlu1 %8104, %v4192_v23   ;;  %7458 = vmatprep.mubr.msk.bf16.mxu0 %vm8226_vm10, %v12926_v37  ;;  %v8195_v23 = vld [vmem:[%s12788_s1 + $0x158] sm:$0xff] }
 0x162   : > { %4330 = vperm.xlu0 %8103, %v4191_v28   ;;  %vm4134_vm9 = vcmp.lt.s32.totalorder %v8195_v23, 8  ;;  %v13269_v28 = vld [vmem:[#allocation21_spill] sm:$0xff]  ;;  %v8198_v23 = vld [vmem:[%s12788_s1 + $0x160] sm:$0xff] }
 0x163   : > { %vm6655_vm7 = vcmp.ne.s32.totalorder %v13269_v28, 1  ;;  %v4196_v19 = vsel %vm4134_vm9, 1, %v13263_v61  ;;  %vm4135_vm14 = vcmp.lt.s32.totalorder %v8198_v23, 8  ;;  %v13273_v28 = vpack.c.bf16 %v13271_v25, %v13272_v11  ;;  %v13275_v23 = vld [vmem:[#allocation23_spill] sm:$0xff] }
 0x164   : > { %7287 = vmatmul.mubr.msk.bf16.gmra.mrb[52].mxu1 %vm5880_vm8, %v13267_v18  ;;  %v8197_v18 = vld [vmem:[%s12788_s1 + $0x168] sm:$0xff]  ;;  %vm5885_vm15 = vmpackc.low %vm6654_vm12, %vm6655_vm7  ;;  %v4197_v8 = vsel %vm4135_vm14, 1, %v13263_v61  ;;  %vm6657_vm3 = vcmp.ne.s32.totalorder %v13275_v23, 1 }
 0x165   : > { %7290 = vmatprep.mubr.msk.bf16.mxu1 %vm8226_vm10, %v12926_v37  ;;  %4339 = vperm.xlu1 %8104, %v4194_v12   ;;  %vm4136_vm13 = vcmp.lt.s32.totalorder %v8197_v18, 8  ;;  %v10756_v12 = vpop.permute.xlu1 %2938 }
 0x166   : > { %4336 = vperm.xlu0 %8103, %v4193_v53   ;;  %v10758_v53 = vpop.permute.xlu0 %2935  ;;  %v4198_v18 = vsel %vm4136_vm13, 1, %v13263_v61 }
 0x167   : > { %13270 = vst [vmem:[#allocation66_spill] sm:$0xff] %v10758_v53 }
 0x168   : > { %7459 = vmatmul.mubr.bf16.gmra.mrb[84].mxu0 %v10110_v26  ;;  %v8199_v26 = vld [vmem:[%s12788_s1 + $0x178] sm:$0xff] }
 0x169   : > { %4345 = vperm.xlu1 %8104, %v4196_v19   ;;  %7462 = vmatprep.mubr.msk.bf16.mxu0 %vm8226_vm10, %v12926_v37  ;;  %vm4138_vm0 = vcmp.lt.s32.totalorder %v8199_v26, 8  ;;  %v8200_v19 = vld [vmem:[%s12788_s1 + $0x170] sm:$0xff]  ;;  %v8201_v26 = vld [vmem:[%s12788_s1 + $0x188] sm:$0xff] }
 0x16a   : > { %4342 = vperm.xlu0 %8103, %v4195_v33   ;;  %vm4137_vm2 = vcmp.lt.s32.totalorder %v8200_v19, 8  ;;  %v13274_v33 = vld [vmem:[#allocation22_spill] sm:$0xff]  ;;  %v4200_v25 = vsel %vm4138_vm0, 1, %v13263_v61  ;;  %v10781_v53 = vpop.permute.xlu0 %2941  ;;  %vm4140_vm4 = vcmp.lt.s32.totalorder %v8201_v26, 8  ;;  %v13279_v19 = vld [vmem:[#allocation49_spill] sm:$0xff] }
 0x16b   : > { %vm6656_vm1 = vcmp.ne.s32.totalorder %v13274_v33, 1  ;;  %v4199_v11 = vsel %vm4137_vm2, 1, %v13263_v61  ;;  %13277 = vst [vmem:[#allocation83_spill] sm:$0xff] %v10781_v53  ;;  %v13280_v33 = vld [vmem:[#allocation50_spill] sm:$0xff]  ;;  %v4202_v53 = vsel %vm4140_vm4, 1, %v13263_v61  ;;  %v8203_v26 = vld [vmem:[%s12788_s1 + $0x198] sm:$0xff] }
 0x16c   : > { %7291 = vmatmul.mubr.msk.bf16.gmra.mrb[56].mxu1 %vm5885_vm15, %v13273_v28  ;;  %v10779_v28 = vpop.permute.xlu1 %2944  ;;  %vm5890_vm6 = vmpackc.low %vm6656_vm1, %vm6657_vm3  ;;  %v13281_v23 = vpack.c.bf16 %v13279_v19, %v13280_v33  ;;  %vm4142_vm8 = vcmp.lt.s32.totalorder %v8203_v26, 8  ;;  %v13285_v19 = vld [vmem:[#allocation25_spill] sm:$0xff]  ;;  %v8205_v26 = vld [vmem:[%s12788_s1 + $0x1a8] sm:$0xff] }
 0x16d   : > { %7294 = vmatprep.mubr.msk.bf16.mxu1 %vm8226_vm10, %v12926_v37  ;;  %4351 = vperm.xlu1 %8104, %v4198_v18   ;;  %13276 = vst [vmem:[#allocation80_spill] sm:$0xff] %v10779_v28  ;;  %v13278_v18 = vld [vmem:[#allocation88_spill] sm:$0xff]  ;;  %vm6659_vm12 = vcmp.ne.s32.totalorder %v13285_v19, 1  ;;  %v4204_v33 = vsel %vm4142_vm8, 1, %v13263_v61  ;;  %vm4144_vm7 = vcmp.lt.s32.totalorder %v8205_v26, 8  ;;  %v8121_v26 = vld [vmem:[%s12795_s8] sm:$0xff]  }
 0x16e   : > { %4348 = vperm.xlu0 %8103, %v4197_v8   ;;  %v8202_v8 = vld [vmem:[%s12788_s1 + $0x180] sm:$0xff]  ;;  %7671 = vmatpush3.bf16.msra.mxu0 %v8121_v26  ;;  %v13293_v26 = vld [vmem:[#allocation71_spill] sm:$0xff] }
 0x16f   : > { %vm4139_vm5 = vcmp.lt.s32.totalorder %v8202_v8, 8  ;;  %v10807_v8 = vpop.permute.xlu0 %2947  ;;  %7672 = vmatprep.subr.bf16.mxu0 %v12926_v37 }
 0x170   : > { %7463 = vmatmul.mubr.bf16.gmra.mrb[88].mxu0 %v13278_v18  ;;  %v4201_v28 = vsel %vm4139_vm5, 1, %v13263_v61  ;;  %13283 = vst [vmem:[#allocation85_spill] sm:$0xff] %v10807_v8  ;;  %v13284_v18 = vld [vmem:[#allocation24_spill] sm:$0xff]  ;;  %v4206_v8 = vsel %vm4144_vm7, 1, %v13263_v61 }
 0x171   : > { %4357 = vperm.xlu1 %8104, %v4200_v25   ;;  %7466 = vmatprep.mubr.msk.bf16.mxu0 %vm8226_vm10, %v12926_v37  ;;  %v8204_v25 = vld [vmem:[%s12788_s1 + $0x190] sm:$0xff]  ;;  %vm6658_vm11 = vcmp.ne.s32.totalorder %v13284_v18, 1  ;;  %v13288_v18 = vld [vmem:[#allocation122_spill] sm:$0xff] }
 0x172   : > { %4354 = vperm.xlu0 %8103, %v4199_v11   ;;  %vm4141_vm9 = vcmp.lt.s32.totalorder %v8204_v25, 8  ;;  %v10805_v11 = vpop.permute.xlu1 %2950  ;;  %v8206_v25 = vld [vmem:[%s12788_s1 + $0x1a0] sm:$0xff]  ;;  %vm5895_vm14 = vmpackc.low %vm6658_vm11, %vm6659_vm12 }
 0x173   : > { %13282 = vst [vmem:[#allocation84_spill] sm:$0xff] %v10805_v11  ;;  %vm4143_vm13 = vcmp.lt.s32.totalorder %v8206_v25, 8 }
 0x174   : > { %7295 = vmatmul.mubr.msk.bf16.gmra.mrb[60].mxu1 %vm5890_vm6, %v13281_v23  ;;  %v4203_v23 = vsel %vm4141_vm9, 1, %v13263_v61  ;;  %v4205_v11 = vsel %vm4143_vm13, 1, %v13263_v61 }
 0x175   : > { %7298 = vmatprep.mubr.msk.bf16.mxu1 %vm8226_vm10, %v12926_v37  ;;  %4363 = vperm.xlu1 %8104, %v4202_v53   ;;  %v13286_v53 = vld [vmem:[#allocation62_spill] sm:$0xff] }
 0x176   : > { %4360 = vperm.xlu0 %8103, %v4201_v28   ;;  %v13287_v28 = vld [vmem:[#allocation121_spill] sm:$0xff]  ;;  %v10830_v25 = vpop.permute.xlu1 %2956 }
 0x177   : > { %v13289_v19 = vpack.c.bf16 %v13287_v28, %v13288_v18  ;;  %v13291_v28 = vld [vmem:[#allocation26_spill] sm:$0xff]  ;;  %v13292_v18 = vld [vmem:[#allocation27_spill] sm:$0xff] }
 0x178   : > { %7467 = vmatmul.mubr.bf16.gmra.mrb[92].mxu0 %v13286_v53  ;;  %v10832_v53 = vpop.permute.xlu0 %2953  ;;  %vm6660_vm2 = vcmp.ne.s32.totalorder %v13291_v28, 1  ;;  %vm6661_vm1 = vcmp.ne.s32.totalorder %v13292_v18, 1  ;;  %v13295_v18 = vpack.c.bf16 %v10217_v0, %v10222_v45  ;;  %v8212_v0 = vld [vmem:[%s12788_s1 + $0x1d0] sm:$0xff] }
 0x179   : > { %4369 = vperm.xlu1 %8104, %v4204_v33   ;;  %7470 = vmatprep.mubr.msk.bf16.mxu0 %vm8226_vm10, %v12926_v37  ;;  %13290 = vst [vmem:[#allocation86_spill] sm:$0xff] %v10832_v53  ;;  %v8207_v33 = vld [vmem:[%s12788_s1 + $0x1b8] sm:$0xff]  ;;  %vm5900_vm5 = vmpackc.low %vm6660_vm2, %vm6661_vm1  ;;  %vm4149_vm8 = vcmp.lt.s32.totalorder %v8212_v0, 8  ;;  %v8123_v45 = vld [vmem:[%s12795_s8 + $0x10] sm:$0xff]  }
 0x17a   : > { %4366 = vperm.xlu0 %8103, %v4203_v23   ;;  %vm4146_vm15 = vcmp.lt.s32.totalorder %v8207_v33, 8  ;;  %v8208_v23 = vld [vmem:[%s12788_s1 + $0x1b0] sm:$0xff]  ;;  %v8209_v33 = vld [vmem:[%s12788_s1 + $0x1c8] sm:$0xff] }
 0x17b   : > { %vm4145_vm0 = vcmp.lt.s32.totalorder %v8208_v23, 8  ;;  %vm4148_vm3 = vcmp.lt.s32.totalorder %v8209_v33, 8  ;;  %v10857_v23 = vpop.permute.xlu1 %2962 }
 0x17c   : > { %7299 = vmatmul.mubr.msk.bf16.gmra.mrb[64].mxu1 %vm5895_vm14, %v13289_v19  ;;  %v4208_v19 = vsel %vm4146_vm15, 1, %v13263_v61  ;;  %v4207_v53 = vsel %vm4145_vm0, 1, %v13263_v61  ;;  %v10859_v28 = vpop.permute.xlu0 %2959  ;;  %v4210_v33 = vsel %vm4148_vm3, 1, %v13263_v61 }
 0x17d   : > { %7302 = vmatprep.mubr.msk.bf16.mxu1 %vm8226_vm10, %v12926_v37  ;;  %4375 = vperm.xlu1 %8104, %v4206_v8   ;;  %v8210_v8 = vld [vmem:[%s12788_s1 + $0x1c0] sm:$0xff]  ;;  %13294 = vst [vmem:[#allocation87_spill] sm:$0xff] %v10859_v28 }
 0x17e   : > { %4372 = vperm.xlu0 %8103, %v4205_v11   ;;  %vm4147_vm4 = vcmp.lt.s32.totalorder %v8210_v8, 8  ;;  %v8122_v11 = vld [vmem:[%s12795_s8 + $0x8] sm:$0xff]  }
 0x17f   : > { %v4209_v8 = vsel %vm4147_vm4, 1, %v13263_v61  ;;  %7673 = vmatpush3.bf16.msra.mxu0 %v8122_v11  ;;  %v10884_v28 = vpop.permute.xlu1 %2968  ;;  %v8213_v11 = vld [vmem:[%s12788_s1 + $0x1e8] sm:$0xff] }
 0x180   : > { %7471 = vmatmul.mubr.bf16.gmra.mrb[96].mxu0 %v13293_v26  ;;  %v8211_v26 = vld [vmem:[%s12788_s1 + $0x1d8] sm:$0xff]  ;;  %7674 = vmatprep.subr.bf16.mxu0 %v12926_v37  ;;  %13298 = vst [vmem:[#allocation63_spill] sm:$0xff] %v10884_v28  ;;  %v10886_v0 = vpop.permute.xlu0 %2965  ;;  %vm4152_vm12 = vcmp.lt.s32.totalorder %v8213_v11, 8 }
 0x181   : > { %4381 = vperm.xlu1 %8104, %v4208_v19   ;;  %7474 = vmatprep.mubr.msk.bf16.mxu0 %vm8226_vm10, %v12926_v37  ;;  %vm4150_vm6 = vcmp.lt.s32.totalorder %v8211_v26, 8  ;;  %v13297_v19 = vld [vmem:[#allocation29_spill] sm:$0xff]  ;;  %v4211_v26 = vsel %vm4149_vm8, 1, %v13263_v61  ;;  %13299 = vst [vmem:[#allocation64_spill] sm:$0xff] %v10886_v0 }
 0x182   : > { %4378 = vperm.xlu0 %8103, %v4207_v53   ;;  %v13296_v53 = vld [vmem:[#allocation28_spill] sm:$0xff]  ;;  %vm6663_vm11 = vcmp.ne.s32.totalorder %v13297_v19, 1  ;;  %v4214_v19 = vsel %vm4152_vm12, 1, %v13263_v61 }
 0x183   : > { %vm6662_vm9 = vcmp.ne.s32.totalorder %v13296_v53, 1  ;;  %7675 = vmatpush3.bf16.msra.mxu0 %v8123_v45  ;;  %v13300_v53 = vpack.c.bf16 %v10281_v52, %v10286_v46  ;;  %v10912_v45 = vpop.permute.xlu1 %2974  ;;  %v13303_v46 = vld [vmem:[#allocation30_spill] sm:$0xff] }
 0x184   : > { %7303 = vmatmul.mubr.msk.bf16.gmra.mrb[68].mxu1 %vm5900_vm5, %v13295_v18  ;;  %v4212_v18 = vsel %vm4150_vm6, 1, %v13263_v61  ;;  %7676 = vmatprep.subr.bf16.mxu0 %v12926_v37  ;;  %vm5905_vm13 = vmpackc.low %vm6662_vm9, %vm6663_vm11  ;;  %13301 = vst [vmem:[#allocation92_spill] sm:$0xff] %v10912_v45  ;;  %v10914_v52 = vpop.permute.xlu0 %2971  ;;  %vm6664_vm14 = vcmp.ne.s32.totalorder %v13303_v46, 1  ;;  %v13329_v46 = vld [vmem:[#allocation89_spill] sm:$0xff] }
 0x185   : > { %7306 = vmatprep.mubr.msk.bf16.mxu1 %vm8226_vm10, %v12926_v37  ;;  %4387 = vperm.xlu1 %8104, %v4210_v33   ;;  %v8214_v33 = vld [vmem:[%s12788_s1 + $0x1e0] sm:$0xff]  ;;  %13302 = vst [vmem:[#allocation94_spill] sm:$0xff] %v10914_v52 }
 0x186   : > { %4384 = vperm.xlu0 %8103, %v4209_v8   ;;  %vm4151_vm7 = vcmp.lt.s32.totalorder %v8214_v33, 8  ;;  %v8124_v8 = vld [vmem:[%s12795_s8 + $0x18] sm:$0xff]   ;;  %v13306_v33 = vld [vmem:[#allocation32_spill] sm:$0xff] }
 0x187   : > { %v4213_v11 = vsel %vm4151_vm7, 1, %v13263_v61  ;;  %7677 = vmatpush3.bf16.msra.mxu0 %v8124_v8  ;;  %v13304_v61 = vld [vmem:[#allocation31_spill] sm:$0xff]  ;;  %vm6666_vm2 = vcmp.ne.s32.totalorder %v13306_v33, 1  ;;  %v8127_v8 = vld [vmem:[%s12795_s8 + $0x30] sm:$0xff]  }
 0x188   : > { %7475 = vmatmul.mubr.bf16.gmra.mrb[100].mxu0 %v10240_v27  ;;  %v8125_v27 = vld [vmem:[%s12795_s8 + $0x20] sm:$0xff]   ;;  %7678 = vmatprep.subr.bf16.mxu0 %v12926_v37  ;;  %vm6665_vm15 = vcmp.ne.s32.totalorder %v13304_v61, 1 }
 0x189   : > { %4393 = vperm.xlu1 %8104, %v4212_v18   ;;  %7478 = vmatprep.mubr.msk.bf16.mxu0 %vm8226_vm10, %v12926_v37  ;;  %vm5910_vm0 = vmpackc.low %vm6664_vm14, %vm6665_vm15  ;;  %v13305_v18 = vpack.c.bf16 %v10302_v24, %v10306_v62  ;;  %v8128_v24 = vld [vmem:[%s12794_s7] sm:$0xff]   ;;  %v13308_v62 = vpack.c.bf16 %v10316_v29, %v10332_v56  ;;  %v13311_v29 = vpack.c.bf16 %v10346_v34, %v10350_v17  ;;  %v13312_v56 = vld [vmem:[#allocation36_spill] sm:$0xff] }
 0x18a   : > { %4390 = vperm.xlu0 %8103, %v4211_v26   ;;  %v8126_v26 = vld [vmem:[%s12795_s8 + $0x28] sm:$0xff]   ;;  %7531 = vmatpush3.bf16.msra.mxu1 %v8128_v24  ;;  %vm6670_vm8 = vcmp.ne.s32.totalorder %v13312_v56, 1  ;;  %v13315_v34 = vld [vmem:[#allocation38_spill] sm:$0xff] }
 0x18b   : > { %7679 = vmatpush3.bf16.msra.mxu0 %v8125_v27  ;;  %7532 = vmatprep.subr.bf16.mxu1 %v12926_v37  ;;  %vm6672_vm12 = vcmp.ne.s32.totalorder %v13315_v34, 1  ;;  %v13316_v17 = vld [vmem:[#allocation39_spill] sm:$0xff] }
 0x18c   : > { %7307 = vmatmul.mubr.msk.bf16.gmra.mrb[72].mxu1 %vm5905_vm13, %v13300_v53  ;;  %7680 = vmatprep.subr.bf16.mxu0 %v12926_v37  ;;  %v8129_v53 = vld [vmem:[%s12795_s8 + $0x38] sm:$0xff]   ;;  %vm6673_vm7 = vcmp.ne.s32.totalorder %v13316_v17, 1  ;;  %v13322_v27 = vld [vmem:[#allocation43_spill] sm:$0xff] }
 0x18d   : > { %7310 = vmatprep.mubr.msk.bf16.mxu1 %vm8226_vm10, %v12926_v37  ;;  %4399 = vperm.xlu1 %8104, %v4214_v19   ;;  %v13310_v19 = vld [vmem:[#allocation35_spill] sm:$0xff]  ;;  %vm5930_vm13 = vmpackc.low %vm6672_vm12, %vm6673_vm7 }
 0x18e   : > { %4396 = vperm.xlu0 %8103, %v4213_v11   ;;  %vm6669_vm5 = vcmp.ne.s32.totalorder %v13310_v19, 1  ;;  %v13313_v11 = vld [vmem:[#allocation37_spill] sm:$0xff]  ;;  %v13338_v19 = vld [vmem:[#allocation47_spill] sm:$0xff] }
 0x18f   : > { %7681 = vmatpush3.bf16.msra.mxu0 %v8126_v26  ;;  %vm6671_vm9 = vcmp.ne.s32.totalorder %v13313_v11, 1  ;;  %v13332_v26 = vld [vmem:[#allocation7_spill] sm:$0xff]  ;;  %v13339_v11 = vld [vmem:[#allocation9_spill] sm:$0xff] }
 0x190   : > { %7479 = vmatmul.mubr.bf16.gmra.mrb[104].mxu0 %v10298_v2  ;;  %v13307_v2 = vld [vmem:[#allocation33_spill] sm:$0xff]  ;;  %7682 = vmatprep.subr.bf16.mxu0 %v12926_v37  ;;  %vm5925_vm11 = vmpackc.low %vm6670_vm8, %vm6671_vm9  ;;  %vm6683_vm7 = vcmp.ne.s32.totalorder %v13332_v26, 1 }
 0x191   : > { %7482 = vmatprep.mubr.msk.bf16.mxu0 %vm8226_vm10, %v12926_v37  ;;  %vm6667_vm1 = vcmp.ne.s32.totalorder %v13307_v2, 1  ;;  %v13334_v2 = vld [vmem:[#allocation56_spill] sm:$0xff] }
 0x192   : > { %vm5915_vm3 = vmpackc.low %vm6666_vm2, %vm6667_vm1  ;;  %vm6677_vm1 = vcmp.ne.s32.totalorder %v13322_v27, 1  ;;  %v13345_v27 = vld [vmem:[#allocation67_spill] sm:$0xff] }
 0x193   : > { %7683 = vmatpush3.bf16.msra.mxu0 %v8127_v8  ;;  %v13335_v8 = vld [vmem:[#allocation8_spill] sm:$0xff] }
 0x194   : > { %7311 = vmatmul.mubr.msk.bf16.gmra.mrb[76].mxu1 %vm5910_vm0, %v13305_v18  ;;  %7684 = vmatprep.subr.bf16.mxu0 %v12926_v37  ;;  %v13331_v18 = vld [vmem:[#allocation6_spill] sm:$0xff]  ;;  %v13336_v24 = vpack.c.bf16 %v13334_v2, %v13335_v8 }
 0x195   : > { %7314 = vmatprep.mubr.msk.bf16.mxu1 %vm8226_vm10, %v12926_v37  ;;  %vm6682_vm12 = vcmp.ne.s32.totalorder %v13331_v18, 1 }
 0x197   : > { %7685 = vmatpush3.bf16.msra.mxu0 %v8129_v53 }
 0x198   : > { %7483 = vmatmul.mubr.bf16.gmra.mrb[108].mxu0 %v10312_v21  ;;  %v13309_v21 = vld [vmem:[#allocation34_spill] sm:$0xff]  ;;  %7950 = vmatprep.subr.bf16.mxu0 %v12926_v37 }
 0x199   : > { %7486 = vmatprep.mubr.msk.bf16.mxu0 %vm8226_vm10, %v12926_v37  ;;  %vm6668_vm4 = vcmp.ne.s32.totalorder %v13309_v21, 1  ;;  %v13337_v21 = vld [vmem:[#allocation46_spill] sm:$0xff] }
 0x19a   : > { %vm5920_vm6 = vmpackc.low %vm6668_vm4, %vm6669_vm5 }
 0x19c   : > { %7315 = vmatmul.mubr.msk.bf16.gmra.mrb[80].mxu1 %vm5915_vm3, %v13308_v62 }
 0x19d   : > { %7318 = vmatprep.mubr.msk.bf16.mxu1 %vm8226_vm10, %v12926_v37 }
 0x1a0   : > { %7487 = vmatmul.mubr.bf16.gmra.mrb[112].mxu0 %v10342_v30  ;;  %v13314_v30 = vpack.c.bf16 %v10362_v36, %v10366_v54  ;;  %v8130_v36 = vld [vmem:[%s12794_s7 + $0x8] sm:$0xff]   ;;  %v13318_v54 = vld [vmem:[#allocation40_spill] sm:$0xff] }
 0x1a1   : > { %7490 = vmatprep.mubr.msk.bf16.mxu0 %vm8226_vm10, %v12926_v37  ;;  %7533 = vmatpush3.bf16.msra.mxu1 %v8130_v36  ;;  %vm6674_vm14 = vcmp.ne.s32.totalorder %v13318_v54, 1  ;;  %v13342_v36 = vld [vmem:[#allocation55_spill] sm:$0xff] }
 0x1a2   : > { %7534 = vmatprep.subr.bf16.mxu1 %v12926_v37 }
 0x1a4   : > { %7319 = vmatmul.mubr.msk.bf16.gmra.mrb[84].mxu1 %vm5920_vm6, %v13311_v29 }
 0x1a5   : > { %7322 = vmatprep.mubr.msk.bf16.mxu1 %vm8226_vm10, %v12926_v37 }
 0x1a8   : > { %7491 = vmatmul.mubr.bf16.gmra.mrb[116].mxu0 %v10358_v60  ;;  %v13317_v60 = vpack.c.bf16 %v10379_v16, %v10383_v35  ;;  %v13320_v16 = vpack.c.bf16 %v10412_v5, %v10417_v50  ;;  %v13321_v35 = vld [vmem:[#allocation42_spill] sm:$0xff]  ;;  %v13324_v5 = vld [vmem:[#allocation44_spill] sm:$0xff]  ;;  %v13325_v50 = vld [vmem:[#allocation45_spill] sm:$0xff] }
 0x1a9   : > { %7494 = vmatprep.mubr.msk.bf16.mxu0 %vm8226_vm10, %v12926_v37  ;;  %vm6676_vm2 = vcmp.ne.s32.totalorder %v13321_v35, 1  ;;  %vm6678_vm4 = vcmp.ne.s32.totalorder %v13324_v5, 1  ;;  %vm6679_vm5 = vcmp.ne.s32.totalorder %v13325_v50, 1 }
 0x1aa   : > { %vm5940_vm3 = vmpackc.low %vm6676_vm2, %vm6677_vm1  ;;  %vm6687_vm1 = vcmp.ne.s32.totalorder %v13342_v36, 1 }
 0x1ab   : > { %vm5945_vm6 = vmpackc.low %vm6678_vm4, %vm6679_vm5  ;;  %vm6688_vm4 = vcmp.ne.s32.totalorder %v13345_v27, 1  ;;  %v13363_v27 = vld [vmem:[#allocation108_spill] sm:$0xff] }
 0x1ac   : > { %7323 = vmatmul.mubr.msk.bf16.gmra.mrb[88].mxu1 %vm5925_vm11, %v13314_v30  ;;  %v13340_v30 = vpack.c.bf16 %v10523_v51, %v10530_v4  ;;  %v13344_v51 = vpack.c.bf16 %v10538_v15, %v10544_v57  ;;  %v13347_v15 = vld [vmem:[#allocation58_spill] sm:$0xff] }
 0x1ad   : > { %7326 = vmatprep.mubr.msk.bf16.mxu1 %vm8226_vm10, %v12926_v37  ;;  %v13348_v57 = vpack.c.bf16 %v10573_v41, %v13347_v15 }
 0x1b0   : > { %7495 = vmatmul.mubr.bf16.gmra.mrb[120].mxu0 %v10375_v43  ;;  %v13319_v43 = vld [vmem:[#allocation41_spill] sm:$0xff] }
 0x1b1   : > { %7498 = vmatprep.mubr.msk.bf16.mxu0 %vm8226_vm10, %v12926_v37  ;;  %vm6675_vm15 = vcmp.ne.s32.totalorder %v13319_v43, 1 }
 0x1b2   : > { %vm5935_vm0 = vmpackc.low %vm6674_vm14, %vm6675_vm15  ;;  %vm6684_vm14 = vcmp.ne.s32.totalorder %v13337_v21, 1  ;;  %vm6685_vm15 = vcmp.ne.s32.totalorder %v13338_v19, 1  ;;  %v13357_v19 = vld [vmem:[#allocation97_spill] sm:$0xff] }
 0x1b4   : > { %7327 = vmatmul.mubr.msk.bf16.gmra.mrb[92].mxu1 %vm5930_vm13, %v13317_v60  ;;  %vm5955_vm13 = vmpackc.low %vm6682_vm12, %vm6683_vm7  ;;  %v13341_v60 = vld [vmem:[#allocation54_spill] sm:$0xff] }
 0x1b5   : > { %7330 = vmatprep.mubr.msk.bf16.mxu1 %vm8226_vm10, %v12926_v37  ;;  %vm6686_vm2 = vcmp.ne.s32.totalorder %v13341_v60, 1  ;;  %v13360_v60 = vld [vmem:[#allocation93_spill] sm:$0xff] }
 0x1b8   : > { %7499 = vmatmul.mubr.bf16.gmra.mrb[124].mxu0 %v10400_v59  ;;  %v13323_v59 = vpack.c.bf16 %v10437_v22, %v10443_v38  ;;  %v13327_v22 = vld [vmem:[#allocation2_spill] sm:$0xff]  ;;  %v13328_v38 = vld [vmem:[#allocation3_spill] sm:$0xff] }
 0x1b9   : > { %7502 = vmatprep.mubr.msk.bf16.mxu0 %vm8226_vm10, %v12926_v37  ;;  %vm6680_vm8 = vcmp.ne.s32.totalorder %v13327_v22, 1  ;;  %vm6681_vm9 = vcmp.ne.s32.totalorder %v13328_v38, 1 }
 0x1ba   : > { %vm5950_vm11 = vmpackc.low %vm6680_vm8, %vm6681_vm9 }
 0x1bc   : > { %7331 = vmatmul.mubr.msk.bf16.gmra.mrb[96].mxu1 %vm5935_vm0, %v13320_v16  ;;  %vm5960_vm0 = vmpackc.low %vm6684_vm14, %vm6685_vm15  ;;  %v13343_v16 = vld [vmem:[#allocation75_spill] sm:$0xff]  ;;  %vm6694_vm14 = vcmp.ne.s32.totalorder %v13357_v19, 1 }
 0x1bd   : > { %7334 = vmatprep.mubr.msk.bf16.mxu1 %vm8226_vm10, %v12926_v37 }
 0x1c0   : > { %7503 = vmatmul.mubr.bf16.gmra.mrb[128].mxu0 %v10423_v44  ;;  %v13326_v44 = vpack.c.bf16 %v10457_v7, %v10463_v42  ;;  %v8131_v7 = vld [vmem:[%s12794_s7 + $0x10] sm:$0xff]  }
 0x1c1   : > { %7506 = vmatprep.mubr.msk.bf16.mxu0 %vm8226_vm10, %v12926_v37  ;;  %7535 = vmatpush3.bf16.msra.mxu1 %v8131_v7  ;;  %v13351_v7 = vld [vmem:[#allocation59_spill] sm:$0xff] }
 0x1c2   : > { %7536 = vmatprep.subr.bf16.mxu1 %v12926_v37 }
 0x1c4   : > { %7335 = vmatmul.mubr.msk.bf16.gmra.mrb[100].mxu1 %vm5940_vm3, %v13323_v59  ;;  %vm5965_vm3 = vmpackc.low %vm6686_vm2, %vm6687_vm1  ;;  %v13346_v59 = vld [vmem:[#allocation68_spill] sm:$0xff]  ;;  %vm6697_vm1 = vcmp.ne.s32.totalorder %v13363_v27, 1 }
 0x1c5   : > { %7338 = vmatprep.mubr.msk.bf16.mxu1 %vm8226_vm10, %v12926_v37  ;;  %v11030_v42 = vpop.f32.mrb[32].mxu0  ;;  %vm6689_vm5 = vcmp.ne.s32.totalorder %v13346_v59, 1 }
 0x1c6   : > { %v7408_v61 = vpop.f32.mrb[33].mxu0 }
 0x1c7   : > { %v11035_v33 = vpop.f32.mrb[34].mxu0  ;;  %v13352_v61 = vpack.c.bf16 %v10589_v47, %v13351_v7 }
 0x1c8   : > { %7507 = vmatmul.mubr.bf16.gmra.mrb[132].mxu0 %v10449_v63  ;;  %v13330_v63 = vpack.c.bf16 %v10481_v31, %v10489_v6  ;;  %v7409_v31 = vpop.f32.mrb[35].mxu0  ;;  %v13333_v6 = vld [vmem:[#allocation53_spill] sm:$0xff] }
 0x1c9   : > { %7510 = vmatprep.mubr.msk.bf16.mxu0 %vm8226_vm10, %v12926_v37  ;;  %v13353_v31 = vld [vmem:[#allocation90_spill] sm:$0xff] }
 0x1ca   : > { %vm6692_vm12 = vcmp.ne.s32.totalorder %v13353_v31, 1 }
 0x1cc   : > { %7339 = vmatmul.mubr.msk.bf16.gmra.mrb[104].mxu1 %vm5945_vm6, %v13326_v44  ;;  %vm5970_vm6 = vmpackc.low %vm6688_vm4, %vm6689_vm5  ;;  %v8132_v44 = vld [vmem:[%s12794_s7 + $0x18] sm:$0xff]  }
 0x1cd   : > { %7342 = vmatprep.mubr.msk.bf16.mxu1 %vm8226_vm10, %v12926_v37  ;;  %v11045_v62 = vpop.f32.mrb[36].mxu0  ;;  %7537 = vmatpush3.bf16.msra.mxu1 %v8132_v44 }
 0x1ce   : > { %v7412_v53 = vpop.f32.mrb[37].mxu0  ;;  %7538 = vmatprep.subr.bf16.mxu1 %v12926_v37 }
 0x1cf   : > { %v11049_v29 = vpop.f32.mrb[38].mxu0 }
 0x1d0   : > { %7511 = vmatmul.mubr.bf16.gmra.mrb[136].mxu0 %v13329_v46  ;;  %v7413_v56 = vpop.f32.mrb[39].mxu0  ;;  %v13350_v46 = vld [vmem:[#allocation82_spill] sm:$0xff] }
 0x1d1   : > { %7514 = vmatprep.mubr.msk.bf16.mxu0 %vm8226_vm10, %v12926_v37  ;;  %vm6691_vm9 = vcmp.ne.s32.totalorder %v13350_v46, 1  ;;  %v13358_v56 = vld [vmem:[#allocation98_spill] sm:$0xff] }
 0x1d2   : > { %vm6695_vm15 = vcmp.ne.s32.totalorder %v13358_v56, 1 }
 0x1d4   : > { %7343 = vmatmul.mubr.msk.bf16.gmra.mrb[108].mxu1 %vm5950_vm11, %v13330_v63 }
 0x1d5   : > { %7346 = vmatprep.mubr.msk.bf16.mxu1 %vm8226_vm10, %v12926_v37  ;;  %v11059_v34 = vpop.f32.mrb[40].mxu0 }
 0x1d6   : > { %v7416_v17 = vpop.f32.mrb[41].mxu0 }
 0x1d7   : > { %v11063_v54 = vpop.f32.mrb[42].mxu0  ;;  %v13359_v17 = vld [vmem:[#allocation15_spill] sm:$0xff] }
 0x1d8   : > { %7515 = vmatmul.mubr.bf16.gmra.mrb[140].mxu0 %v13333_v6  ;;  %v7417_v43 = vpop.f32.mrb[43].mxu0  ;;  %v13354_v6 = vld [vmem:[#allocation91_spill] sm:$0xff]  ;;  %v13361_v36 = vpack.c.bf16 %v13359_v17, %v13360_v60 }
 0x1d9   : > { %7518 = vmatprep.mubr.msk.bf16.mxu0 %vm8226_vm10, %v12926_v37  ;;  %vm6693_vm7 = vcmp.ne.s32.totalorder %v13354_v6, 1  ;;  %v13365_v6 = vld [vmem:[#allocation114_spill] sm:$0xff] }
 0x1da   : > { %vm6698_vm4 = vcmp.ne.s32.totalorder %v13365_v6, 1 }
 0x1dc   : > { %7347 = vmatmul.mubr.msk.bf16.gmra.mrb[112].mxu1 %vm5955_vm13, %v13336_v24  ;;  %vm5980_vm13 = vmpackc.low %vm6692_vm12, %vm6693_vm7  ;;  %v13355_v24 = vld [vmem:[#allocation14_spill] sm:$0xff] }
 0x1dd   : > { %7350 = vmatprep.mubr.msk.bf16.mxu1 %vm8226_vm10, %v12926_v37  ;;  %v11073_v4 = vpop.f32.mrb[44].mxu0  ;;  %v13356_v53 = vpack.c.bf16 %v10601_v10, %v13355_v24 }
 0x1de   : > { %v7420_v35 = vpop.f32.mrb[45].mxu0 }
 0x1df   : > { %v11077_v5 = vpop.f32.mrb[46].mxu0  ;;  %v13362_v35 = vld [vmem:[#allocation107_spill] sm:$0xff] }
 0x1e0   : > { %7519 = vmatmul.mubr.bf16.gmra.mrb[144].mxu0 %v13339_v11  ;;  %v7421_v50 = vpop.f32.mrb[47].mxu0  ;;  %vm6696_vm2 = vcmp.ne.s32.totalorder %v13362_v35, 1 }
 0x1e1   : > { %7522 = vmatprep.mubr.msk.bf16.mxu0 %vm8226_vm10, %v12926_v37 }
 0x1e4   : > { %7351 = vmatmul.mubr.msk.bf16.gmra.mrb[116].mxu1 %vm5960_vm0, %v13340_v30  ;;  %vm5985_vm0 = vmpackc.low %vm6694_vm14, %vm6695_vm15 }
 0x1e5   : > { %7354 = vmatprep.mubr.msk.bf16.mxu1 %vm8226_vm10, %v12926_v37  ;;  %v11090_v22 = vpop.f32.mrb[48].mxu0 }
 0x1e6   : > { %v7424_v38 = vpop.f32.mrb[49].mxu0 }
 0x1e7   : > { %v11095_v63 = vpop.f32.mrb[50].mxu0 }
 0x1e8   : > { %7523 = vmatmul.mubr.bf16.gmra.mrb[148].mxu0 %v13343_v16  ;;  %v7425_v41 = vpop.f32.mrb[51].mxu0  ;;  %v11129_v16 = vld [vmem:[%s12793_s6] ss:$0 sm:$0xff] }
 0x1e9   : > { %7526 = vmatprep.mubr.msk.bf16.mxu0 %vm8226_vm10, %v12926_v37 }
 0x1ec   : > { %7355 = vmatmul.mubr.msk.bf16.gmra.mrb[120].mxu1 %vm5965_vm3, %v13344_v51  ;;  %vm5990_vm3 = vmpackc.low %vm6696_vm2, %vm6697_vm1 }
 0x1ed   : > { %7358 = vmatprep.mubr.msk.bf16.mxu1 %vm8226_vm10, %v12926_v37  ;;  %v11102_v18 = vpop.f32.mrb[52].mxu0 }
 0x1ee   : > { %v7428_v26 = vpop.f32.mrb[53].mxu0 }
 0x1ef   : > { %v11106_v2 = vpop.f32.mrb[54].mxu0 }
 0x1f0   : > { %7527 = vmatmul.mubr.bf16.gmra.mrb[152].mxu0 %v10567_v32  ;;  %v13349_v32 = vld [vmem:[#allocation81_spill] sm:$0xff]  ;;  %v7429_v8 = vpop.f32.mrb[55].mxu0 }
 0x1f1   : > { %7686 = vmatprep.mubr.msk.bf16.mxu0 %vm8226_vm10, %v12926_v37  ;;  %vm6690_vm8 = vcmp.ne.s32.totalorder %v13349_v32, 1  ;;  %v13366_v8 = vld [vmem:[#allocation116_spill] sm:$0xff] }
 0x1f2   : > { %vm5975_vm11 = vmpackc.low %vm6690_vm8, %vm6691_vm9  ;;  %vm6699_vm5 = vcmp.ne.s32.totalorder %v13366_v8, 1 }
 0x1f3   : > { %vm5995_vm8 = vmpackc.low %vm6698_vm4, %vm6699_vm5 }
 0x1f4   : > { %7359 = vmatmul.mubr.msk.bf16.gmra.mrb[124].mxu1 %vm5970_vm6, %v13348_v57  ;;  %vm2711_vm6 = vcmp.lt.s32.totalorder %v9138_v20, 4 }
 0x1f5   : > { %7362 = vmatprep.mubr.msk.bf16.mxu1 %vm8226_vm10, %v12926_v37  ;;  %v11113_v47 = vpop.f32.mrb[56].mxu0 }
 0x1f6   : > { %v7432_v21 = vpop.f32.mrb[57].mxu0 }
 0x1f7   : > { %v11117_v11 = vpop.f32.mrb[58].mxu0 }
 0x1f8   : > { %v7433_v30 = vpop.f32.mrb[59].mxu0 }
 0x1fc   : > { %7363 = vmatmul.mubr.msk.bf16.gmra.mrb[128].mxu1 %vm5975_vm11, %v13352_v61  ;;  %v13364_v61 = vpack.c.bf16 %v10639_v39, %v10645_v48 }
 0x1fd   : > { %7366 = vmatprep.mubr.msk.bf16.mxu1 %vm8226_vm10, %v12926_v37 }
 0x202   : > { %v11124_v10 = vpop.f32.mrb[60].mxu0 }
 0x203   : > { %v7436_v51 = vpop.f32.mrb[61].mxu0 }
 0x204   : > { %7367 = vmatmul.mubr.msk.bf16.gmra.mrb[132].mxu1 %vm5980_vm13, %v13356_v53  ;;  %v1942_v43 = vpop.f32.mrb[32].mxu1  ;;  %v11134_v15 = vpop.f32.mrb[62].mxu0 }
 0x205   : > { %7370 = vmatprep.mubr.msk.bf16.mxu1 %vm8226_vm10, %v12926_v37  ;;  %v2272_v59 = vadd.f32 %v11030_v42, %v1942_v43  ;;  %v7268_v50 = vpop.f32.mrb[33].mxu1  ;;  %v7437_v44 = vpop.f32.mrb[63].mxu0  ;;  %v8133_v42 = vld [vmem:[%s12794_s7 + $0x20] sm:$0xff]  }
 0x206   : > { %v1945_v57 = vpop.f32.mrb[34].mxu1  ;;  %7539 = vmatpush3.bf16.msra.mxu1 %v8133_v42  ;;  %v13368_v44 = vld [vmem:[#allocation4_spill] sm:$0xff] }
 0x207   : > { %v2525_v38 = vadd.f32 %v11129_v16, %v2272_v59  ;;  %v2275_v32 = vadd.f32 %v11035_v33, %v1945_v57  ;;  %v7269_v46 = vpop.f32.mrb[35].mxu1  ;;  %7540 = vmatprep.subr.bf16.mxu1 %v12926_v37  ;;  %vm6700_vm9 = vcmp.ne.s32.totalorder %v13368_v44, 1 }
 0x209   : > { %v2587_v41 = vmax.f32 %v2525_v38, 0.0  ;;  %v2526_v7 = vadd.f32 %v11129_v16, %v2275_v32  ;;  %v13369_v38 = vld [vmem:[#allocation5_spill] sm:$0xff] }
 0x20a   : > { %vm6701_vm11 = vcmp.ne.s32.totalorder %v13369_v38, 1 }
 0x20b   : > { %v2588_v31 = vmax.f32 %v2526_v7, 0.0  ;;  %v11155_v39 = vrot.slane %v2587_v41, 4  ;;  %vm6000_vm12 = vmpackc.low %vm6700_vm9, %vm6701_vm11 }
 0x20c   : > { %7371 = vmatmul.mubr.msk.bf16.gmra.mrb[136].mxu1 %vm5985_vm0, %v13361_v36  ;;  %v11147_v26 = vpop.f32.mrb[64].mxu0 }
 0x20d   : > { %7374 = vmatprep.mubr.msk.bf16.mxu1 %vm8226_vm10, %v12926_v37  ;;  %v7440_v33 = vpop.f32.mrb[65].mxu0  ;;  %v2650_v48 = vrot.slane %v2588_v31, 4  ;;  %v3208_v21 = vpack.c.bf16 %v2588_v31, %v2587_v41 }
 0x20e   : > { %v11151_v53 = vpop.f32.mrb[66].mxu0 }
 0x20f   : > { %v7441_v30 = vpop.f32.mrb[67].mxu0  ;;  %7687 = vmatmul.mubr.bf16.vlgmr.msra.gmra.mrb[156].mxu0 %v3208_v21  ;;  %v11163_v51 = vsel %vm2711_vm6, %v11155_v39, %v2650_v48 }
 0x210   : > { %7690 = vmatprep.mubr.msk.bf16.mxu0 %vm8226_vm10, %v12926_v37 }
 0x211   : > { %v1950_v24 = vpop.f32.mrb[36].mxu1 }
 0x212   : > { %v2280_v19 = vadd.f32 %v11045_v62, %v1950_v24  ;;  %v7272_v56 = vpop.f32.mrb[37].mxu1 }
 0x213   : > { %v1953_v17 = vpop.f32.mrb[38].mxu1 }
 0x214   : > { %7375 = vmatmul.mubr.msk.bf16.gmra.mrb[140].mxu1 %vm5990_vm3, %v13364_v61  ;;  %v2527_v60 = vadd.f32 %v11129_v16, %v2280_v19  ;;  %v2283_v36 = vadd.f32 %v11049_v29, %v1953_v17  ;;  %v7273_v43 = vpop.f32.mrb[39].mxu1  ;;  %v13367_v29 = vpack.c.bf16 %v10650_v14, %v10655_v9  ;;  %v11177_v27 = vpop.f32.mrb[68].mxu0 }
 0x215   : > { %7378 = vmatprep.mubr.msk.bf16.mxu1 %vm8226_vm10, %v12926_v37  ;;  %v7444_v57 = vpop.f32.mrb[69].mxu0  ;;  %v13373_v43 = vld [vmem:[#allocation52_spill] sm:$0xff] }
 0x216   : > { %v2528_v62 = vadd.f32 %v11129_v16, %v2283_v36  ;;  %v2589_v35 = vmax.f32 %v2527_v60, 0.0  ;;  %v11181_v46 = vpop.f32.mrb[70].mxu0  ;;  %v13372_v36 = vld [vmem:[#allocation51_spill] sm:$0xff]  ;;  %vm6703_vm13 = vcmp.ne.s32.totalorder %v13373_v43, 1 }
 0x217   : > { %v7445_v61 = vpop.f32.mrb[71].mxu0  ;;  %vm6702_vm7 = vcmp.ne.s32.totalorder %v13372_v36, 1 }
 0x218   : > { %v2590_v59 = vmax.f32 %v2528_v62, 0.0  ;;  %v2651_v50 = vrot.slane %v2589_v35, 4  ;;  %vm6005_vm14 = vmpackc.low %vm6702_vm7, %vm6703_vm13  ;;  %vm6712_vm7 = vcmp.ne.s32.totalorder %v10711_v58, 1  ;;  %vm6713_vm13 = vcmp.ne.s32.totalorder %v10713_v13, 1 }
 0x21a   : > { %v2652_v14 = vrot.slane %v2590_v59, 4  ;;  %v3209_v7 = vpack.c.bf16 %v2590_v59, %v2589_v35  ;;  %v11186_v42 = vsel %vm2711_vm6, %v2650_v48, %v2651_v50 }
 0x21b   : > { %v1958_v32 = vpop.f32.mrb[40].mxu1 }
 0x21c   : > { %7379 = vmatmul.mubr.msk.bf16.gmra.mrb[144].mxu1 %vm5995_vm8, %v13367_v29  ;;  %v2288_v41 = vadd.f32 %v11059_v34, %v1958_v32  ;;  %v7276_v9 = vpop.f32.mrb[41].mxu1  ;;  %7691 = vmatmul.mubr.bf16.gmra.mrb[160].mxu0 %v3209_v7  ;;  %v11192_v24 = vsel %vm2711_vm6, %v2651_v50, %v2652_v14 }
 0x21d   : > { %7382 = vmatprep.mubr.msk.bf16.mxu1 %vm8226_vm10, %v12926_v37  ;;  %v1961_v31 = vpop.f32.mrb[42].mxu1  ;;  %7694 = vmatprep.mubr.msk.bf16.mxu0 %vm8226_vm10, %v12926_v37 }
 0x21e   : > { %v2529_v33 = vadd.f32 %v11129_v16, %v2288_v41  ;;  %v2291_v6 = vadd.f32 %v11063_v54, %v1961_v31  ;;  %v7277_v8 = vpop.f32.mrb[43].mxu1  ;;  %v13370_v54 = vld [vmem:[#allocation57_spill] sm:$0xff] }
 0x21f   : > { %v13371_v21 = vpack.c.bf16 %v10667_v55, %v13370_v54 }
 0x220   : > { %v2530_v48 = vadd.f32 %v11129_v16, %v2291_v6  ;;  %v2591_v19 = vmax.f32 %v2529_v33, 0.0 }
 0x221   : > { %v11208_v56 = vpop.f32.mrb[72].mxu0 }
 0x222   : > { %v2592_v30 = vmax.f32 %v2530_v48, 0.0  ;;  %v2653_v17 = vrot.slane %v2591_v19, 4  ;;  %v7448_v60 = vpop.f32.mrb[73].mxu0 }
 0x223   : > { %v11212_v29 = vpop.f32.mrb[74].mxu0 }
 0x224   : > { %7383 = vmatmul.mubr.msk.bf16.gmra.mrb[148].mxu1 %vm6000_vm12, %v13371_v21  ;;  %v2654_v59 = vrot.slane %v2592_v30, 4  ;;  %v3210_v50 = vpack.c.bf16 %v2592_v30, %v2591_v19  ;;  %v7449_v57 = vpop.f32.mrb[75].mxu0  ;;  %v11217_v44 = vsel %vm2711_vm6, %v2652_v14, %v2653_v17 }
 0x225   : > { %7386 = vmatprep.mubr.msk.bf16.mxu1 %vm8226_vm10, %v12926_v37 }
 0x226   : > { %v1966_v62 = vpop.f32.mrb[44].mxu1  ;;  %7695 = vmatmul.mubr.bf16.gmra.mrb[164].mxu0 %v3210_v50  ;;  %v11223_v7 = vsel %vm2711_vm6, %v2653_v17, %v2654_v59 }
 0x227   : > { %v2296_v35 = vadd.f32 %v11073_v4, %v1966_v62  ;;  %v7280_v55 = vpop.f32.mrb[45].mxu1  ;;  %7698 = vmatprep.mubr.msk.bf16.mxu0 %vm8226_vm10, %v12926_v37 }
 0x228   : > { %v1969_v38 = vpop.f32.mrb[46].mxu1 }
 0x229   : > { %v2531_v32 = vadd.f32 %v11129_v16, %v2296_v35  ;;  %v2299_v41 = vadd.f32 %v11077_v5, %v1969_v38  ;;  %v7281_v9 = vpop.f32.mrb[47].mxu1  ;;  %v13374_v5 = vpack.c.bf16 %v10680_v1, %v10684_v3  ;;  %v8134_v35 = vld [vmem:[%s12794_s7 + $0x28] sm:$0xff]  }
 0x22a   : > { %7541 = vmatpush3.bf16.msra.mxu1 %v8134_v35 }
 0x22b   : > { %v2532_v14 = vadd.f32 %v11129_v16, %v2299_v41  ;;  %v2593_v61 = vmax.f32 %v2531_v32, 0.0  ;;  %v11237_v31 = vpop.f32.mrb[76].mxu0  ;;  %7542 = vmatprep.subr.bf16.mxu1 %v12926_v37 }
 0x22c   : > { %7387 = vmatmul.mubr.msk.bf16.gmra.mrb[152].mxu1 %vm6005_vm14, %v13374_v5  ;;  %v7452_v8 = vpop.f32.mrb[77].mxu0  ;;  %vm6047_vm14 = vmpackc.low %vm6712_vm7, %vm6713_vm13  ;;  %vm6722_vm7 = vcmp.ne.s32.totalorder %v10830_v25, 1 }
 0x22d   : > { %7546 = vmatprep.mubr.msk.bf16.mxu1 %vm8226_vm10, %v12926_v37  ;;  %v2594_v33 = vmax.f32 %v2532_v14, 0.0  ;;  %v2655_v6 = vrot.slane %v2593_v61, 4  ;;  %v11241_v54 = vpop.f32.mrb[78].mxu0 }
 0x22e   : > { %v7453_v60 = vpop.f32.mrb[79].mxu0 }
 0x22f   : > { %v1974_v48 = vpop.f32.mrb[48].mxu1  ;;  %v2656_v30 = vrot.slane %v2594_v33, 4  ;;  %v3211_v17 = vpack.c.bf16 %v2594_v33, %v2593_v61  ;;  %v11246_v1 = vsel %vm2711_vm6, %v2654_v59, %v2655_v6 }
 0x230   : > { %v2304_v21 = vadd.f32 %v11090_v22, %v1974_v48  ;;  %v7284_v19 = vpop.f32.mrb[49].mxu1 }
 0x231   : > { %v1977_v3 = vpop.f32.mrb[50].mxu1  ;;  %7699 = vmatmul.mubr.bf16.gmra.mrb[168].mxu0 %v3211_v17  ;;  %v11255_v22 = vsel %vm2711_vm6, %v2655_v6, %v2656_v30 }
 0x232   : > { %v2533_v36 = vadd.f32 %v11129_v16, %v2304_v21  ;;  %v2307_v43 = vadd.f32 %v11095_v63, %v1977_v3  ;;  %v7285_v62 = vpop.f32.mrb[51].mxu1  ;;  %7702 = vmatprep.mubr.msk.bf16.mxu0 %vm8226_vm10, %v12926_v37 }
 0x233   : > { %v11262_v63 = vpop.f32.mrb[80].mxu0 }
 0x234   : > { %v2534_v59 = vadd.f32 %v11129_v16, %v2307_v43  ;;  %v2595_v50 = vmax.f32 %v2533_v36, 0.0  ;;  %v7456_v32 = vpop.f32.mrb[81].mxu0 }
 0x235   : > { %v11265_v9 = vpop.f32.mrb[82].mxu0 }
 0x236   : > { %v2596_v57 = vmax.f32 %v2534_v59, 0.0  ;;  %v2657_v38 = vrot.slane %v2595_v50, 4  ;;  %v7457_v6 = vpop.f32.mrb[83].mxu0 }
 0x237   : > { %v1982_v41 = vpop.f32.mrb[52].mxu1 }
 0x238   : > { %v2312_v14 = vadd.f32 %v11102_v18, %v1982_v41  ;;  %v7288_v5 = vpop.f32.mrb[53].mxu1  ;;  %v2658_v61 = vrot.slane %v2596_v57, 4  ;;  %v3212_v33 = vpack.c.bf16 %v2596_v57, %v2595_v50  ;;  %v11270_v8 = vsel %vm2711_vm6, %v2656_v30, %v2657_v38 }
 0x239   : > { %v1985_v48 = vpop.f32.mrb[54].mxu1 }
 0x23a   : > { %v2535_v21 = vadd.f32 %v11129_v16, %v2312_v14  ;;  %v2315_v19 = vadd.f32 %v11106_v2, %v1985_v48  ;;  %v7289_v17 = vpop.f32.mrb[55].mxu1  ;;  %7703 = vmatmul.mubr.bf16.gmra.mrb[172].mxu0 %v3212_v33  ;;  %v11276_v60 = vsel %vm2711_vm6, %v2657_v38, %v2658_v61 }
 0x23b   : > { %7706 = vmatprep.mubr.msk.bf16.mxu0 %vm8226_vm10, %v12926_v37  ;;  %v11283_v36 = vpop.f32.mrb[84].mxu0 }
 0x23c   : > { %v2536_v30 = vadd.f32 %v11129_v16, %v2315_v19  ;;  %v2597_v3 = vmax.f32 %v2535_v21, 0.0  ;;  %v7460_v2 = vpop.f32.mrb[85].mxu0 }
 0x23d   : > { %v11285_v59 = vpop.f32.mrb[86].mxu0 }
 0x23e   : > { %v2598_v43 = vmax.f32 %v2536_v30, 0.0  ;;  %v2659_v62 = vrot.slane %v2597_v3, 4  ;;  %v7461_v41 = vpop.f32.mrb[87].mxu0 }
 0x23f   : > { %v1990_v35 = vpop.f32.mrb[56].mxu1 }
 0x240   : > { %v2320_v50 = vadd.f32 %v11113_v47, %v1990_v35  ;;  %v7292_v57 = vpop.f32.mrb[57].mxu1  ;;  %v2660_v38 = vrot.slane %v2598_v43, 4  ;;  %v3213_v32 = vpack.c.bf16 %v2598_v43, %v2597_v3  ;;  %v11290_v14 = vsel %vm2711_vm6, %v2658_v61, %v2659_v62  ;;  %v8135_v47 = vld [vmem:[%s12794_s7 + $0x30] sm:$0xff]  }
 0x241   : > { %v1993_v5 = vpop.f32.mrb[58].mxu1  ;;  %7543 = vmatpush3.bf16.msra.mxu1 %v8135_v47 }
 0x242   : > { %v2537_v33 = vadd.f32 %v11129_v16, %v2320_v50  ;;  %v2323_v6 = vadd.f32 %v11117_v11, %v1993_v5  ;;  %v7293_v48 = vpop.f32.mrb[59].mxu1  ;;  %7707 = vmatmul.mubr.bf16.gmra.mrb[176].mxu0 %v3213_v32  ;;  %v11296_v21 = vsel %vm2711_vm6, %v2659_v62, %v2660_v38  ;;  %7544 = vmatprep.subr.bf16.mxu1 %v12926_v37 }
 0x243   : > { %7710 = vmatprep.mubr.msk.bf16.mxu0 %vm8226_vm10, %v12926_v37  ;;  %v11303_v17 = vpop.f32.mrb[88].mxu0  ;;  %v13415_v58 = vpack.c.bf16 %v11296_v21, %v11290_v14 }
 0x244   : > { %v2538_v61 = vadd.f32 %v11129_v16, %v2323_v6  ;;  %v2599_v19 = vmax.f32 %v2537_v33, 0.0  ;;  %v7464_v11 = vpop.f32.mrb[89].mxu0 }
 0x245   : > { %v11305_v2 = vpop.f32.mrb[90].mxu0 }
 0x246   : > { %v2600_v30 = vmax.f32 %v2538_v61, 0.0  ;;  %v2661_v3 = vrot.slane %v2599_v19, 4  ;;  %v7465_v32 = vpop.f32.mrb[91].mxu0 }
 0x247   : > { %v1998_v43 = vpop.f32.mrb[60].mxu1 }
 0x248   : > { %v2328_v62 = vadd.f32 %v11124_v10, %v1998_v43  ;;  %v7296_v35 = vpop.f32.mrb[61].mxu1  ;;  %v2662_v50 = vrot.slane %v2600_v30, 4  ;;  %v3214_v57 = vpack.c.bf16 %v2600_v30, %v2599_v19  ;;  %v11310_v41 = vsel %vm2711_vm6, %v2660_v38, %v2661_v3 }
 0x249   : > { %v2001_v5 = vpop.f32.mrb[62].mxu1 }
 0x24a   : > { %v2539_v33 = vadd.f32 %v11129_v16, %v2328_v62  ;;  %v2331_v6 = vadd.f32 %v11134_v15, %v2001_v5  ;;  %v7297_v48 = vpop.f32.mrb[63].mxu1  ;;  %7711 = vmatmul.mubr.bf16.gmra.mrb[180].mxu0 %v3214_v57  ;;  %v11316_v61 = vsel %vm2711_vm6, %v2661_v3, %v2662_v50 }
 0x24b   : > { %7714 = vmatprep.mubr.msk.bf16.mxu0 %vm8226_vm10, %v12926_v37  ;;  %v11323_v30 = vpop.f32.mrb[92].mxu0 }
 0x24c   : > { %v2540_v38 = vadd.f32 %v11129_v16, %v2331_v6  ;;  %v2601_v19 = vmax.f32 %v2539_v33, 0.0  ;;  %v7468_v11 = vpop.f32.mrb[93].mxu0 }
 0x24d   : > { %v11325_v35 = vpop.f32.mrb[94].mxu0 }
 0x24e   : > { %v2602_v43 = vmax.f32 %v2540_v38, 0.0  ;;  %v2663_v15 = vrot.slane %v2601_v19, 4  ;;  %v7469_v48 = vpop.f32.mrb[95].mxu0 }
 0x24f   : > { %v2006_v62 = vpop.f32.mrb[64].mxu1 }
 0x250   : > { %v2336_v3 = vadd.f32 %v11147_v26, %v2006_v62  ;;  %v7300_v57 = vpop.f32.mrb[65].mxu1  ;;  %v2664_v32 = vrot.slane %v2602_v43, 4  ;;  %v3215_v5 = vpack.c.bf16 %v2602_v43, %v2601_v19  ;;  %v11330_v10 = vsel %vm2711_vm6, %v2662_v50, %v2663_v15 }
 0x251   : > { %v2009_v6 = vpop.f32.mrb[66].mxu1 }
 0x252   : > { %v2541_v33 = vadd.f32 %v11129_v16, %v2336_v3  ;;  %v2339_v11 = vadd.f32 %v11151_v53, %v2009_v6  ;;  %v7301_v38 = vpop.f32.mrb[67].mxu1  ;;  %7715 = vmatmul.mubr.bf16.gmra.mrb[184].mxu0 %v3215_v5  ;;  %v11339_v26 = vsel %vm2711_vm6, %v2663_v15, %v2664_v32 }
 0x253   : > { %7718 = vmatprep.mubr.msk.bf16.mxu0 %vm8226_vm10, %v12926_v37  ;;  %v11346_v53 = vpop.f32.mrb[96].mxu0 }
 0x254   : > { %v2542_v19 = vadd.f32 %v11129_v16, %v2339_v11  ;;  %v2603_v43 = vmax.f32 %v2541_v33, 0.0  ;;  %v7472_v62 = vpop.f32.mrb[97].mxu0 }
 0x255   : > { %v11349_v15 = vpop.f32.mrb[98].mxu0 }
 0x256   : > { %v2604_v3 = vmax.f32 %v2542_v19, 0.0  ;;  %v2665_v57 = vrot.slane %v2603_v43, 4  ;;  %v7473_v38 = vpop.f32.mrb[99].mxu0 }
 0x257   : > { %v2014_v5 = vpop.f32.mrb[68].mxu1 }
 0x258   : > { %v2344_v48 = vadd.f32 %v11177_v27, %v2014_v5  ;;  %v7304_v6 = vpop.f32.mrb[69].mxu1  ;;  %v2666_v18 = vrot.slane %v2604_v3, 4  ;;  %v3216_v50 = vpack.c.bf16 %v2604_v3, %v2603_v43  ;;  %v11354_v33 = vsel %vm2711_vm6, %v2664_v32, %v2665_v57 }
 0x259   : > { %v2017_v47 = vpop.f32.mrb[70].mxu1 }
 0x25a   : > { %v2543_v11 = vadd.f32 %v11129_v16, %v2344_v48  ;;  %v2347_v62 = vadd.f32 %v11181_v46, %v2017_v47  ;;  %v7305_v19 = vpop.f32.mrb[71].mxu1  ;;  %7719 = vmatmul.mubr.bf16.gmra.mrb[188].mxu0 %v3216_v50  ;;  %v11360_v55 = vsel %vm2711_vm6, %v2665_v57, %v2666_v18 }
 0x25b   : > { %7722 = vmatprep.mubr.msk.bf16.mxu0 %vm8226_vm10, %v12926_v37  ;;  %v11367_v3 = vpop.f32.mrb[100].mxu0 }
 0x25c   : > { %v2544_v32 = vadd.f32 %v11129_v16, %v2347_v62  ;;  %v2605_v43 = vmax.f32 %v2543_v11, 0.0  ;;  %v7476_v5 = vpop.f32.mrb[101].mxu0 }
 0x25d   : > { %v11369_v50 = vpop.f32.mrb[102].mxu0 }
 0x25e   : > { %v2606_v48 = vmax.f32 %v2544_v32, 0.0  ;;  %v2667_v46 = vrot.slane %v2605_v43, 4  ;;  %v7477_v47 = vpop.f32.mrb[103].mxu0 }
 0x25f   : > { %v2022_v6 = vpop.f32.mrb[72].mxu1 }
 0x260   : > { %v2352_v57 = vadd.f32 %v11208_v56, %v2022_v6  ;;  %v7308_v38 = vpop.f32.mrb[73].mxu1  ;;  %v2668_v19 = vrot.slane %v2606_v48, 4  ;;  %v3217_v4 = vpack.c.bf16 %v2606_v48, %v2605_v43  ;;  %v11374_v27 = vsel %vm2711_vm6, %v2666_v18, %v2667_v46 }
 0x261   : > { %v2025_v62 = vpop.f32.mrb[74].mxu1 }
 0x262   : > { %v2545_v11 = vadd.f32 %v11129_v16, %v2352_v57  ;;  %v2355_v5 = vadd.f32 %v11212_v29, %v2025_v62  ;;  %v7309_v32 = vpop.f32.mrb[75].mxu1  ;;  %7723 = vmatmul.mubr.bf16.gmra.mrb[192].mxu0 %v3217_v4  ;;  %v11380_v34 = vsel %vm2711_vm6, %v2667_v46, %v2668_v19 }
 0x263   : > { %7726 = vmatprep.mubr.msk.bf16.mxu0 %vm8226_vm10, %v12926_v37  ;;  %v11387_v48 = vpop.f32.mrb[104].mxu0 }
 0x264   : > { %v2546_v18 = vadd.f32 %v11129_v16, %v2355_v5  ;;  %v2607_v43 = vmax.f32 %v2545_v11, 0.0  ;;  %v7480_v6 = vpop.f32.mrb[105].mxu0 }
 0x265   : > { %v11389_v4 = vpop.f32.mrb[106].mxu0 }
 0x266   : > { %v2608_v57 = vmax.f32 %v2546_v18, 0.0  ;;  %v2669_v29 = vrot.slane %v2607_v43, 4  ;;  %v7481_v62 = vpop.f32.mrb[107].mxu0 }
 0x267   : > { %v2030_v38 = vpop.f32.mrb[76].mxu1 }
 0x268   : > { %v2360_v46 = vadd.f32 %v11237_v31, %v2030_v38  ;;  %v7312_v47 = vpop.f32.mrb[77].mxu1  ;;  %v2670_v32 = vrot.slane %v2608_v57, 4  ;;  %v3218_v52 = vpack.c.bf16 %v2608_v57, %v2607_v43  ;;  %v11394_v56 = vsel %vm2711_vm6, %v2668_v19, %v2669_v29 }
 0x269   : > { %13375 = vst [vmem:[#allocation16_spill] sm:$0xff] %v11394_v56  ;;  %v2033_v5 = vpop.f32.mrb[78].mxu1 }
 0x26a   : > { %v2547_v11 = vadd.f32 %v11129_v16, %v2360_v46  ;;  %v2363_v6 = vadd.f32 %v11241_v54, %v2033_v5  ;;  %v7313_v18 = vpop.f32.mrb[79].mxu1  ;;  %7727 = vmatmul.mubr.bf16.gmra.mrb[196].mxu0 %v3218_v52  ;;  %v11400_v45 = vsel %vm2711_vm6, %v2669_v29, %v2670_v32 }
 0x26b   : > { %7730 = vmatprep.mubr.msk.bf16.mxu0 %vm8226_vm10, %v12926_v37  ;;  %v11407_v57 = vpop.f32.mrb[108].mxu0 }
 0x26c   : > { %v2548_v19 = vadd.f32 %v11129_v16, %v2363_v6  ;;  %v2609_v43 = vmax.f32 %v2547_v11, 0.0  ;;  %v7484_v38 = vpop.f32.mrb[109].mxu0 }
 0x26d   : > { %v11409_v52 = vpop.f32.mrb[110].mxu0 }
 0x26e   : > { %v2610_v46 = vmax.f32 %v2548_v19, 0.0  ;;  %v2671_v54 = vrot.slane %v2609_v43, 4  ;;  %v7485_v5 = vpop.f32.mrb[111].mxu0 }
 0x26f   : > { %v2038_v47 = vpop.f32.mrb[80].mxu1 }
 0x270   : > { %v2368_v29 = vadd.f32 %v11262_v63, %v2038_v47  ;;  %v7316_v62 = vpop.f32.mrb[81].mxu1  ;;  %v2672_v18 = vrot.slane %v2610_v46, 4  ;;  %v3219_v0 = vpack.c.bf16 %v2610_v46, %v2609_v43  ;;  %v11414_v31 = vsel %vm2711_vm6, %v2670_v32, %v2671_v54  ;;  %v8136_v63 = vld [vmem:[%s12794_s7 + $0x38] sm:$0xff]  }
 0x271   : > { %13376 = vst [vmem:[#allocation17_spill] sm:$0xff] %v11414_v31  ;;  %v2041_v6 = vpop.f32.mrb[82].mxu1  ;;  %7545 = vmatpush3.bf16.msra.mxu1 %v8136_v63 }
 0x272   : > { %v2549_v11 = vadd.f32 %v11129_v16, %v2368_v29  ;;  %v2371_v38 = vadd.f32 %v11265_v9, %v2041_v6  ;;  %v7317_v19 = vpop.f32.mrb[83].mxu1  ;;  %7731 = vmatmul.mubr.bf16.gmra.mrb[200].mxu0 %v3219_v0  ;;  %v11420_v28 = vsel %vm2711_vm6, %v2671_v54, %v2672_v18  ;;  %7810 = vmatprep.subr.bf16.mxu1 %v12926_v37 }
 0x273   : > { %13377 = vst [vmem:[#allocation95_spill] sm:$0xff] %v11420_v28  ;;  %7734 = vmatprep.mubr.msk.bf16.mxu0 %vm8226_vm10, %v12926_v37  ;;  %v11430_v9 = vpop.f32.mrb[112].mxu0 }
 0x274   : > { %v2550_v43 = vadd.f32 %v11129_v16, %v2371_v38  ;;  %v2611_v46 = vmax.f32 %v2549_v11, 0.0  ;;  %v7488_v0 = vpop.f32.mrb[113].mxu0 }
 0x275   : > { %v11433_v62 = vpop.f32.mrb[114].mxu0 }
 0x276   : > { %v2612_v47 = vmax.f32 %v2550_v43, 0.0  ;;  %v2673_v54 = vrot.slane %v2611_v46, 4  ;;  %v7489_v19 = vpop.f32.mrb[115].mxu0 }
 0x277   : > { %v2046_v29 = vpop.f32.mrb[84].mxu1 }
 0x278   : > { %v2376_v5 = vadd.f32 %v11283_v36, %v2046_v29  ;;  %v7320_v6 = vpop.f32.mrb[85].mxu1  ;;  %v2674_v56 = vrot.slane %v2612_v47, 4  ;;  %v3220_v32 = vpack.c.bf16 %v2612_v47, %v2611_v46  ;;  %v11438_v11 = vsel %vm2711_vm6, %v2672_v18, %v2673_v54 }
 0x279   : > { %13378 = vst [vmem:[#allocation96_spill] sm:$0xff] %v11438_v11  ;;  %v2049_v38 = vpop.f32.mrb[86].mxu1 }
 0x27a   : > { %v2551_v63 = vadd.f32 %v11129_v16, %v2376_v5  ;;  %v2379_v43 = vadd.f32 %v11285_v59, %v2049_v38  ;;  %v7321_v0 = vpop.f32.mrb[87].mxu1  ;;  %7735 = vmatmul.mubr.bf16.gmra.mrb[204].mxu0 %v3220_v32  ;;  %v11444_v31 = vsel %vm2711_vm6, %v2673_v54, %v2674_v56 }
 0x27b   : > { %13379 = vst [vmem:[#allocation99_spill] sm:$0xff] %v11444_v31  ;;  %7738 = vmatprep.mubr.msk.bf16.mxu0 %vm8226_vm10, %v12926_v37  ;;  %v11451_v47 = vpop.f32.mrb[116].mxu0 }
 0x27c   : > { %v2552_v18 = vadd.f32 %v11129_v16, %v2379_v43  ;;  %v2613_v46 = vmax.f32 %v2551_v63, 0.0  ;;  %v7492_v29 = vpop.f32.mrb[117].mxu0 }
 0x27d   : > { %v11453_v32 = vpop.f32.mrb[118].mxu0 }
 0x27e   : > { %v2614_v5 = vmax.f32 %v2552_v18, 0.0  ;;  %v2675_v59 = vrot.slane %v2613_v46, 4  ;;  %v7493_v38 = vpop.f32.mrb[119].mxu0 }
 0x27f   : > { %v2054_v6 = vpop.f32.mrb[88].mxu1 }
 0x280   : > { %v2384_v54 = vadd.f32 %v11303_v17, %v2054_v6  ;;  %v7324_v19 = vpop.f32.mrb[89].mxu1  ;;  %v2676_v0 = vrot.slane %v2614_v5, 4  ;;  %v3221_v28 = vpack.c.bf16 %v2614_v5, %v2613_v46  ;;  %v11458_v36 = vsel %vm2711_vm6, %v2674_v56, %v2675_v59 }
 0x281   : > { %13380 = vst [vmem:[#allocation102_spill] sm:$0xff] %v11458_v36  ;;  %v2057_v43 = vpop.f32.mrb[90].mxu1 }
 0x282   : > { %v2553_v63 = vadd.f32 %v11129_v16, %v2384_v54  ;;  %v2387_v29 = vadd.f32 %v11305_v2, %v2057_v43  ;;  %v7325_v18 = vpop.f32.mrb[91].mxu1  ;;  %7739 = vmatmul.mubr.bf16.gmra.mrb[208].mxu0 %v3221_v28  ;;  %v11464_v11 = vsel %vm2711_vm6, %v2675_v59, %v2676_v0 }
 0x283   : > { %13381 = vst [vmem:[#allocation100_spill] sm:$0xff] %v11464_v11  ;;  %7742 = vmatprep.mubr.msk.bf16.mxu0 %vm8226_vm10, %v12926_v37  ;;  %v11471_v5 = vpop.f32.mrb[120].mxu0 }
 0x284   : > { %v2554_v56 = vadd.f32 %v11129_v16, %v2387_v29  ;;  %v2615_v46 = vmax.f32 %v2553_v63, 0.0  ;;  %v7496_v6 = vpop.f32.mrb[121].mxu0 }
 0x285   : > { %v11473_v28 = vpop.f32.mrb[122].mxu0 }
 0x286   : > { %v2616_v54 = vmax.f32 %v2554_v56, 0.0  ;;  %v2677_v2 = vrot.slane %v2615_v46, 4  ;;  %v7497_v43 = vpop.f32.mrb[123].mxu0 }
 0x287   : > { %v2062_v19 = vpop.f32.mrb[92].mxu1 }
 0x288   : > { %v2392_v59 = vadd.f32 %v11323_v30, %v2062_v19  ;;  %v7328_v38 = vpop.f32.mrb[93].mxu1  ;;  %v2678_v18 = vrot.slane %v2616_v54, 4  ;;  %v3222_v31 = vpack.c.bf16 %v2616_v54, %v2615_v46  ;;  %v11478_v17 = vsel %vm2711_vm6, %v2676_v0, %v2677_v2 }
 0x289   : > { %13382 = vst [vmem:[#allocation103_spill] sm:$0xff] %v11478_v17  ;;  %v2065_v29 = vpop.f32.mrb[94].mxu1 }
 0x28a   : > { %v2555_v63 = vadd.f32 %v11129_v16, %v2392_v59  ;;  %v2395_v6 = vadd.f32 %v11325_v35, %v2065_v29  ;;  %v7329_v56 = vpop.f32.mrb[95].mxu1  ;;  %7743 = vmatmul.mubr.bf16.gmra.mrb[212].mxu0 %v3222_v31  ;;  %v11484_v36 = vsel %vm2711_vm6, %v2677_v2, %v2678_v18 }
 0x28b   : > { %13383 = vst [vmem:[#allocation104_spill] sm:$0xff] %v11484_v36  ;;  %7746 = vmatprep.mubr.msk.bf16.mxu0 %vm8226_vm10, %v12926_v37  ;;  %v11491_v54 = vpop.f32.mrb[124].mxu0 }
 0x28c   : > { %v2556_v0 = vadd.f32 %v11129_v16, %v2395_v6  ;;  %v2617_v46 = vmax.f32 %v2555_v63, 0.0  ;;  %v7500_v19 = vpop.f32.mrb[125].mxu0 }
 0x28d   : > { %v11493_v31 = vpop.f32.mrb[126].mxu0 }
 0x28e   : > { %v2618_v59 = vmax.f32 %v2556_v0, 0.0  ;;  %v2679_v35 = vrot.slane %v2617_v46, 4  ;;  %v7501_v29 = vpop.f32.mrb[127].mxu0 }
 0x28f   : > { %v2070_v38 = vpop.f32.mrb[96].mxu1 }
 0x290   : > { %v2400_v2 = vadd.f32 %v11346_v53, %v2070_v38  ;;  %v7332_v43 = vpop.f32.mrb[97].mxu1  ;;  %v2680_v56 = vrot.slane %v2618_v59, 4  ;;  %v3223_v11 = vpack.c.bf16 %v2618_v59, %v2617_v46  ;;  %v11498_v30 = vsel %vm2711_vm6, %v2678_v18, %v2679_v35 }
 0x291   : > { %13384 = vst [vmem:[#allocation65_spill] sm:$0xff] %v11498_v30  ;;  %v2073_v6 = vpop.f32.mrb[98].mxu1 }
 0x292   : > { %v2557_v63 = vadd.f32 %v11129_v16, %v2400_v2  ;;  %v2403_v19 = vadd.f32 %v11349_v15, %v2073_v6  ;;  %v7333_v0 = vpop.f32.mrb[99].mxu1  ;;  %7747 = vmatmul.mubr.bf16.gmra.mrb[216].mxu0 %v3223_v11  ;;  %v11504_v17 = vsel %vm2711_vm6, %v2679_v35, %v2680_v56 }
 0x293   : > { %13385 = vst [vmem:[#allocation69_spill] sm:$0xff] %v11504_v17  ;;  %7750 = vmatprep.mubr.msk.bf16.mxu0 %vm8226_vm10, %v12926_v37  ;;  %v11511_v59 = vpop.f32.mrb[128].mxu0 }
 0x294   : > { %v2558_v18 = vadd.f32 %v11129_v16, %v2403_v19  ;;  %v2619_v46 = vmax.f32 %v2557_v63, 0.0  ;;  %v7504_v38 = vpop.f32.mrb[129].mxu0 }
 0x295   : > { %v11513_v11 = vpop.f32.mrb[130].mxu0 }
 0x296   : > { %v2620_v2 = vmax.f32 %v2558_v18, 0.0  ;;  %v2681_v15 = vrot.slane %v2619_v46, 4  ;;  %v7505_v6 = vpop.f32.mrb[131].mxu0 }
 0x297   : > { %v2078_v43 = vpop.f32.mrb[100].mxu1 }
 0x298   : > { %v2408_v35 = vadd.f32 %v11367_v3, %v2078_v43  ;;  %v7336_v29 = vpop.f32.mrb[101].mxu1  ;;  %v2682_v0 = vrot.slane %v2620_v2, 4  ;;  %v3224_v36 = vpack.c.bf16 %v2620_v2, %v2619_v46  ;;  %v11518_v53 = vsel %vm2711_vm6, %v2680_v56, %v2681_v15 }
 0x299   : > { %13386 = vst [vmem:[#allocation101_spill] sm:$0xff] %v11518_v53  ;;  %v2081_v19 = vpop.f32.mrb[102].mxu1 }
 0x29a   : > { %v2559_v63 = vadd.f32 %v11129_v16, %v2408_v35  ;;  %v2411_v38 = vadd.f32 %v11369_v50, %v2081_v19  ;;  %v7337_v18 = vpop.f32.mrb[103].mxu1  ;;  %7751 = vmatmul.mubr.bf16.gmra.mrb[220].mxu0 %v3224_v36  ;;  %v11524_v30 = vsel %vm2711_vm6, %v2681_v15, %v2682_v0 }
 0x29b   : > { %13387 = vst [vmem:[#allocation105_spill] sm:$0xff] %v11524_v30  ;;  %7754 = vmatprep.mubr.msk.bf16.mxu0 %vm8226_vm10, %v12926_v37  ;;  %v11531_v2 = vpop.f32.mrb[132].mxu0 }
 0x29c   : > { %v2560_v56 = vadd.f32 %v11129_v16, %v2411_v38  ;;  %v2621_v46 = vmax.f32 %v2559_v63, 0.0  ;;  %v7508_v43 = vpop.f32.mrb[133].mxu0 }
 0x29d   : > { %v11533_v36 = vpop.f32.mrb[134].mxu0 }
 0x29e   : > { %v2622_v35 = vmax.f32 %v2560_v56, 0.0  ;;  %v2683_v50 = vrot.slane %v2621_v46, 4  ;;  %v7509_v19 = vpop.f32.mrb[135].mxu0 }
 0x29f   : > { %v2086_v29 = vpop.f32.mrb[104].mxu1 }
 0x2a0   : > { %v2416_v15 = vadd.f32 %v11387_v48, %v2086_v29  ;;  %v7340_v6 = vpop.f32.mrb[105].mxu1  ;;  %v2684_v18 = vrot.slane %v2622_v35, 4  ;;  %v3225_v17 = vpack.c.bf16 %v2622_v35, %v2621_v46  ;;  %v11538_v3 = vsel %vm2711_vm6, %v2682_v0, %v2683_v50 }
 0x2a1   : > { %13388 = vst [vmem:[#allocation109_spill] sm:$0xff] %v11538_v3  ;;  %v2089_v38 = vpop.f32.mrb[106].mxu1 }
 0x2a2   : > { %v2561_v63 = vadd.f32 %v11129_v16, %v2416_v15  ;;  %v2419_v43 = vadd.f32 %v11389_v4, %v2089_v38  ;;  %v7341_v56 = vpop.f32.mrb[107].mxu1  ;;  %7755 = vmatmul.mubr.bf16.gmra.mrb[224].mxu0 %v3225_v17  ;;  %v11544_v53 = vsel %vm2711_vm6, %v2683_v50, %v2684_v18 }
 0x2a3   : > { %13389 = vst [vmem:[#allocation110_spill] sm:$0xff] %v11544_v53  ;;  %7758 = vmatprep.mubr.msk.bf16.mxu0 %vm8226_vm10, %v12926_v37  ;;  %v11551_v35 = vpop.f32.mrb[136].mxu0 }
 0x2a4   : > { %v2562_v0 = vadd.f32 %v11129_v16, %v2419_v43  ;;  %v2623_v46 = vmax.f32 %v2561_v63, 0.0  ;;  %v7512_v29 = vpop.f32.mrb[137].mxu0 }
 0x2a5   : > { %v11553_v17 = vpop.f32.mrb[138].mxu0 }
 0x2a6   : > { %v2624_v15 = vmax.f32 %v2562_v0, 0.0  ;;  %v2685_v4 = vrot.slane %v2623_v46, 4  ;;  %v7513_v38 = vpop.f32.mrb[139].mxu0 }
 0x2a7   : > { %v2094_v6 = vpop.f32.mrb[108].mxu1 }
 0x2a8   : > { %v2424_v50 = vadd.f32 %v11407_v57, %v2094_v6  ;;  %v7344_v19 = vpop.f32.mrb[109].mxu1  ;;  %v2686_v56 = vrot.slane %v2624_v15, 4  ;;  %v3226_v30 = vpack.c.bf16 %v2624_v15, %v2623_v46  ;;  %v11558_v48 = vsel %vm2711_vm6, %v2684_v18, %v2685_v4 }
 0x2a9   : > { %13390 = vst [vmem:[#allocation112_spill] sm:$0xff] %v11558_v48  ;;  %v2097_v43 = vpop.f32.mrb[110].mxu1 }
 0x2aa   : > { %v2563_v63 = vadd.f32 %v11129_v16, %v2424_v50  ;;  %v2427_v29 = vadd.f32 %v11409_v52, %v2097_v43  ;;  %v7345_v0 = vpop.f32.mrb[111].mxu1  ;;  %7759 = vmatmul.mubr.bf16.gmra.mrb[228].mxu0 %v3226_v30  ;;  %v11564_v3 = vsel %vm2711_vm6, %v2685_v4, %v2686_v56 }
 0x2ab   : > { %13391 = vst [vmem:[#allocation113_spill] sm:$0xff] %v11564_v3  ;;  %7762 = vmatprep.mubr.msk.bf16.mxu0 %vm8226_vm10, %v12926_v37  ;;  %v11571_v15 = vpop.f32.mrb[140].mxu0 }
 0x2ac   : > { %v2564_v18 = vadd.f32 %v11129_v16, %v2427_v29  ;;  %v2625_v46 = vmax.f32 %v2563_v63, 0.0  ;;  %v7516_v6 = vpop.f32.mrb[141].mxu0 }
 0x2ad   : > { %v11573_v30 = vpop.f32.mrb[142].mxu0 }
 0x2ae   : > { %v2626_v50 = vmax.f32 %v2564_v18, 0.0  ;;  %v2687_v52 = vrot.slane %v2625_v46, 4  ;;  %v7517_v43 = vpop.f32.mrb[143].mxu0 }
 0x2af   : > { %v2102_v19 = vpop.f32.mrb[112].mxu1 }
 0x2b0   : > { %v2432_v4 = vadd.f32 %v11430_v9, %v2102_v19  ;;  %v7348_v38 = vpop.f32.mrb[113].mxu1  ;;  %v2688_v0 = vrot.slane %v2626_v50, 4  ;;  %v3227_v53 = vpack.c.bf16 %v2626_v50, %v2625_v46  ;;  %v11578_v57 = vsel %vm2711_vm6, %v2686_v56, %v2687_v52 }
 0x2b1   : > { %13392 = vst [vmem:[#allocation115_spill] sm:$0xff] %v11578_v57  ;;  %v2105_v29 = vpop.f32.mrb[114].mxu1 }
 0x2b2   : > { %v2565_v63 = vadd.f32 %v11129_v16, %v2432_v4  ;;  %v2435_v6 = vadd.f32 %v11433_v62, %v2105_v29  ;;  %v7349_v18 = vpop.f32.mrb[115].mxu1  ;;  %7763 = vmatmul.mubr.bf16.gmra.mrb[232].mxu0 %v3227_v53  ;;  %v11584_v48 = vsel %vm2711_vm6, %v2687_v52, %v2688_v0 }
 0x2b3   : > { %13393 = vst [vmem:[#allocation119_spill] sm:$0xff] %v11584_v48  ;;  %7766 = vmatprep.mubr.msk.bf16.mxu0 %vm8226_vm10, %v12926_v37  ;;  %v11591_v50 = vpop.f32.mrb[144].mxu0 }
 0x2b4   : > { %v2566_v56 = vadd.f32 %v11129_v16, %v2435_v6  ;;  %v2627_v46 = vmax.f32 %v2565_v63, 0.0  ;;  %v7520_v19 = vpop.f32.mrb[145].mxu0 }
 0x2b5   : > { %v11593_v53 = vpop.f32.mrb[146].mxu0 }
 0x2b6   : > { %v2628_v4 = vmax.f32 %v2566_v56, 0.0  ;;  %v2689_v62 = vrot.slane %v2627_v46, 4  ;;  %v7521_v29 = vpop.f32.mrb[147].mxu0 }
 0x2b7   : > { %v2110_v38 = vpop.f32.mrb[116].mxu1 }
 0x2b8   : > { %v2440_v52 = vadd.f32 %v11451_v47, %v2110_v38  ;;  %v7352_v43 = vpop.f32.mrb[117].mxu1  ;;  %v2690_v18 = vrot.slane %v2628_v4, 4  ;;  %v3228_v3 = vpack.c.bf16 %v2628_v4, %v2627_v46  ;;  %v11598_v9 = vsel %vm2711_vm6, %v2688_v0, %v2689_v62 }
 0x2b9   : > { %13394 = vst [vmem:[#allocation48_spill] sm:$0xff] %v11598_v9  ;;  %v2113_v6 = vpop.f32.mrb[118].mxu1 }
 0x2ba   : > { %v2567_v63 = vadd.f32 %v11129_v16, %v2440_v52  ;;  %v2443_v19 = vadd.f32 %v11453_v32, %v2113_v6  ;;  %v7353_v56 = vpop.f32.mrb[119].mxu1  ;;  %7767 = vmatmul.mubr.bf16.gmra.mrb[236].mxu0 %v3228_v3  ;;  %v11604_v57 = vsel %vm2711_vm6, %v2689_v62, %v2690_v18 }
 0x2bb   : > { %13395 = vst [vmem:[#allocation70_spill] sm:$0xff] %v11604_v57  ;;  %7770 = vmatprep.mubr.msk.bf16.mxu0 %vm8226_vm10, %v12926_v37  ;;  %v11611_v4 = vpop.f32.mrb[148].mxu0 }
 0x2bc   : > { %v2568_v0 = vadd.f32 %v11129_v16, %v2443_v19  ;;  %v2629_v46 = vmax.f32 %v2567_v63, 0.0  ;;  %v7524_v38 = vpop.f32.mrb[149].mxu0  ;;  %v11623_v63 = vld [vmem:[%s12793_s6] ss:$0 sm:$0xff] }
 0x2bd   : > { %v11613_v3 = vpop.f32.mrb[150].mxu0 }
 0x2be   : > { %v2630_v52 = vmax.f32 %v2568_v0, 0.0  ;;  %v2691_v32 = vrot.slane %v2629_v46, 4  ;;  %v7525_v6 = vpop.f32.mrb[151].mxu0 }
 0x2bf   : > { %v2118_v43 = vpop.f32.mrb[120].mxu1 }
 0x2c0   : > { %v2448_v62 = vadd.f32 %v11471_v5, %v2118_v43  ;;  %v7356_v29 = vpop.f32.mrb[121].mxu1  ;;  %v2692_v56 = vrot.slane %v2630_v52, 4  ;;  %v3229_v48 = vpack.c.bf16 %v2630_v52, %v2629_v46  ;;  %v11618_v47 = vsel %vm2711_vm6, %v2690_v18, %v2691_v32 }
 0x2c1   : > { %13396 = vst [vmem:[#allocation77_spill] sm:$0xff] %v11618_v47  ;;  %v2121_v16 = vpop.f32.mrb[122].mxu1 }
 0x2c2   : > { %v2569_v19 = vadd.f32 %v11623_v63, %v2448_v62  ;;  %v2451_v0 = vadd.f32 %v11473_v28, %v2121_v16  ;;  %v7357_v38 = vpop.f32.mrb[123].mxu1  ;;  %7771 = vmatmul.mubr.bf16.gmra.mrb[240].mxu0 %v3229_v48  ;;  %v11629_v5 = vsel %vm2711_vm6, %v2691_v32, %v2692_v56 }
 0x2c3   : > { %7774 = vmatprep.mubr.msk.bf16.mxu0 %vm8226_vm10, %v12926_v37  ;;  %v11636_v43 = vpop.f32.mrb[152].mxu0 }
 0x2c4   : > { %v2570_v46 = vadd.f32 %v11623_v63, %v2451_v0  ;;  %v2631_v52 = vmax.f32 %v2569_v19, 0.0  ;;  %v7528_v62 = vpop.f32.mrb[153].mxu0 }
 0x2c5   : > { %v11638_v48 = vpop.f32.mrb[154].mxu0 }
 0x2c6   : > { %v2632_v29 = vmax.f32 %v2570_v46, 0.0  ;;  %v2693_v28 = vrot.slane %v2631_v52, 4  ;;  %v7529_v38 = vpop.f32.mrb[155].mxu0 }
 0x2c7   : > { %v2126_v6 = vpop.f32.mrb[124].mxu1 }
 0x2c8   : > { %v2456_v32 = vadd.f32 %v11491_v54, %v2126_v6  ;;  %v7360_v16 = vpop.f32.mrb[125].mxu1  ;;  %v2694_v9 = vrot.slane %v2632_v29, 4  ;;  %v3230_v57 = vpack.c.bf16 %v2632_v29, %v2631_v52  ;;  %v11643_v18 = vsel %vm2711_vm6, %v2692_v56, %v2693_v28 }
 0x2c9   : > { %13397 = vst [vmem:[#allocation106_spill] sm:$0xff] %v11643_v18  ;;  %v2129_v0 = vpop.f32.mrb[126].mxu1 }
 0x2ca   : > { %v2571_v19 = vadd.f32 %v11623_v63, %v2456_v32  ;;  %v2459_v62 = vadd.f32 %v11493_v31, %v2129_v0  ;;  %v7361_v46 = vpop.f32.mrb[127].mxu1  ;;  %7775 = vmatmul.mubr.bf16.gmra.mrb[244].mxu0 %v3230_v57  ;;  %v11649_v47 = vsel %vm2711_vm6, %v2693_v28, %v2694_v9 }
 0x2cb   : > { %7778 = vmatprep.mubr.msk.bf16.mxu0 %vm8226_vm10, %v12926_v37 }
 0x2cc   : > { %v2572_v56 = vadd.f32 %v11623_v63, %v2459_v62  ;;  %v2633_v52 = vmax.f32 %v2571_v19, 0.0 }
 0x2ce   : > { %v2634_v29 = vmax.f32 %v2572_v56, 0.0  ;;  %v2695_v6 = vrot.slane %v2633_v52, 4 }
 0x2cf   : > { %v2134_v32 = vpop.f32.mrb[128].mxu1 }
 0x2d0   : > { %v2464_v31 = vadd.f32 %v11511_v59, %v2134_v32  ;;  %v7364_v16 = vpop.f32.mrb[129].mxu1  ;;  %v2696_v57 = vrot.slane %v2634_v29, 4  ;;  %v3231_v38 = vpack.c.bf16 %v2634_v29, %v2633_v52  ;;  %v11659_v28 = vsel %vm2711_vm6, %v2694_v9, %v2695_v6 }
 0x2d1   : > { %v2137_v0 = vpop.f32.mrb[130].mxu1 }
 0x2d2   : > { %v2573_v46 = vadd.f32 %v11623_v63, %v2464_v31  ;;  %v2467_v54 = vadd.f32 %v11513_v11, %v2137_v0  ;;  %v7365_v18 = vpop.f32.mrb[131].mxu1  ;;  %7779 = vmatmul.mubr.bf16.gmra.mrb[248].mxu0 %v3231_v38  ;;  %v11665_v19 = vsel %vm2711_vm6, %v2695_v6, %v2696_v57 }
 0x2d3   : > { %7782 = vmatprep.mubr.msk.bf16.mxu0 %vm8226_vm10, %v12926_v37 }
 0x2d4   : > { %v2574_v9 = vadd.f32 %v11623_v63, %v2467_v54  ;;  %v2635_v62 = vmax.f32 %v2573_v46, 0.0 }
 0x2d6   : > { %v2636_v56 = vmax.f32 %v2574_v9, 0.0  ;;  %v2697_v52 = vrot.slane %v2635_v62, 4 }
 0x2d7   : > { %v2142_v29 = vpop.f32.mrb[132].mxu1 }
 0x2d8   : > { %v2472_v11 = vadd.f32 %v11531_v2, %v2142_v29  ;;  %v7368_v18 = vpop.f32.mrb[133].mxu1  ;;  %v2698_v32 = vrot.slane %v2636_v56, 4  ;;  %v3232_v31 = vpack.c.bf16 %v2636_v56, %v2635_v62  ;;  %v11675_v6 = vsel %vm2711_vm6, %v2696_v57, %v2697_v52 }
 0x2d9   : > { %v2145_v16 = vpop.f32.mrb[134].mxu1 }
 0x2da   : > { %v2575_v38 = vadd.f32 %v11623_v63, %v2472_v11  ;;  %v2475_v0 = vadd.f32 %v11533_v36, %v2145_v16  ;;  %v7369_v59 = vpop.f32.mrb[135].mxu1  ;;  %7783 = vmatmul.mubr.bf16.gmra.mrb[252].mxu0 %v3232_v31  ;;  %v11681_v54 = vsel %vm2711_vm6, %v2697_v52, %v2698_v32 }
 0x2db   : > { %7786 = vmatprep.mubr.msk.bf16.mxu0 %vm8226_vm10, %v12926_v37 }
 0x2dc   : > { %v2637_v46 = vmax.f32 %v2575_v38, 0.0  ;;  %v2576_v57 = vadd.f32 %v11623_v63, %v2475_v0 }
 0x2de   : > { %v2699_v9 = vrot.slane %v2637_v46, 4  ;;  %v2638_v62 = vmax.f32 %v2576_v57, 0.0 }
 0x2df   : > { %v2150_v56 = vpop.f32.mrb[136].mxu1 }
 0x2e0   : > { %v2700_v29 = vrot.slane %v2638_v62, 4  ;;  %v3233_v36 = vpack.c.bf16 %v2638_v62, %v2637_v46  ;;  %v11690_v59 = vsel %vm2711_vm6, %v2698_v32, %v2699_v9  ;;  %v2480_v52 = vadd.f32 %v11551_v35, %v2150_v56  ;;  %v7372_v11 = vpop.f32.mrb[137].mxu1 }
 0x2e1   : > { %v2153_v18 = vpop.f32.mrb[138].mxu1 }
 0x2e2   : > { %v11695_v31 = vsel %vm2711_vm6, %v2699_v9, %v2700_v29  ;;  %v2577_v16 = vadd.f32 %v11623_v63, %v2480_v52  ;;  %v2483_v38 = vadd.f32 %v11553_v17, %v2153_v18  ;;  %v7373_v0 = vpop.f32.mrb[139].mxu1  ;;  %7787 = vmatmul.mubr.bf16.gmra.mrb[0].mxu0 %v3233_v36 }
 0x2e3   : > { %7790 = vmatprep.mubr.msk.bf16.mxu0 %vm8226_vm10, %v12926_v37 }
 0x2e4   : > { %v2639_v32 = vmax.f32 %v2577_v16, 0.0  ;;  %v2578_v35 = vadd.f32 %v11623_v63, %v2483_v38 }
 0x2e6   : > { %v2701_v57 = vrot.slane %v2639_v32, 4  ;;  %v2640_v62 = vmax.f32 %v2578_v35, 0.0 }
 0x2e7   : > { %v2158_v56 = vpop.f32.mrb[140].mxu1 }
 0x2e8   : > { %v11706_v9 = vsel %vm2711_vm6, %v2700_v29, %v2701_v57  ;;  %v2702_v52 = vrot.slane %v2640_v62, 4  ;;  %v3234_v17 = vpack.c.bf16 %v2640_v62, %v2639_v32  ;;  %v2488_v36 = vadd.f32 %v11571_v15, %v2158_v56  ;;  %v7376_v11 = vpop.f32.mrb[141].mxu1  ;;  %v11720_v62 = vpop.f32.mrb[156].mxu0 }
 0x2e9   : > { %v2161_v18 = vpop.f32.mrb[142].mxu1  ;;  %v7688_v11 = vpop.f32.mrb[157].mxu0 }
 0x2ea   : > { %v11711_v0 = vsel %vm2711_vm6, %v2701_v57, %v2702_v52  ;;  %v2579_v16 = vadd.f32 %v11623_v63, %v2488_v36  ;;  %v2491_v38 = vadd.f32 %v11573_v30, %v2161_v18  ;;  %v7377_v35 = vpop.f32.mrb[143].mxu1  ;;  %7791 = vmatmul.mubr.bf16.gmra.mrb[4].mxu0 %v3234_v17  ;;  %v11722_v36 = vpop.f32.mrb[158].mxu0 }
 0x2eb   : > { %7794 = vmatprep.mubr.msk.bf16.mxu0 %vm8226_vm10, %v12926_v37  ;;  %13398 = vst [vmem:[#allocation120_spill] sm:$0xff] %v11722_v36 }
 0x2ec   : > { %v2641_v32 = vmax.f32 %v2579_v16, 0.0  ;;  %v2580_v15 = vadd.f32 %v11623_v63, %v2491_v38  ;;  %v7689_v16 = vpop.f32.mrb[159].mxu0 }
 0x2ee   : > { %v2703_v56 = vrot.slane %v2641_v32, 4  ;;  %v2642_v57 = vmax.f32 %v2580_v15, 0.0 }
 0x2ef   : > { %v2166_v46 = vpop.f32.mrb[144].mxu1 }
 0x2f0   : > { %v11726_v30 = vsel %vm2711_vm6, %v2702_v52, %v2703_v56  ;;  %v2704_v17 = vrot.slane %v2642_v57, 4  ;;  %v3235_v18 = vpack.c.bf16 %v2642_v57, %v2641_v32  ;;  %v2496_v35 = vadd.f32 %v11591_v50, %v2166_v46  ;;  %v7380_v29 = vpop.f32.mrb[145].mxu1 }
 0x2f1   : > { %13399 = vst [vmem:[#allocation78_spill] sm:$0xff] %v11726_v30  ;;  %v2169_v2 = vpop.f32.mrb[146].mxu1  ;;  %v11740_v29 = vpop.f32.mrb[160].mxu0 }
 0x2f2   : > { %v11731_v38 = vsel %vm2711_vm6, %v2703_v56, %v2704_v17  ;;  %v2581_v15 = vadd.f32 %v11623_v63, %v2496_v35  ;;  %v2499_v11 = vadd.f32 %v11593_v53, %v2169_v2  ;;  %v7381_v36 = vpop.f32.mrb[147].mxu1  ;;  %7795 = vmatmul.mubr.bf16.gmra.mrb[8].mxu0 %v3235_v18  ;;  %v7692_v57 = vpop.f32.mrb[161].mxu0 }
 0x2f3   : > { %7798 = vmatprep.mubr.msk.bf16.mxu0 %vm8226_vm10, %v12926_v37  ;;  %v11742_v35 = vpop.f32.mrb[162].mxu0 }
 0x2f4   : > { %v2643_v50 = vmax.f32 %v2581_v15, 0.0  ;;  %v2582_v46 = vadd.f32 %v11623_v63, %v2499_v11  ;;  %13400 = vst [vmem:[#allocation79_spill] sm:$0xff] %v11742_v35  ;;  %v7693_v15 = vpop.f32.mrb[163].mxu0 }
 0x2f6   : > { %v2705_v32 = vrot.slane %v2643_v50, 4  ;;  %v2644_v56 = vmax.f32 %v2582_v46, 0.0 }
 0x2f7   : > { %v2174_v16 = vpop.f32.mrb[148].mxu1 }
 0x2f8   : > { %v11746_v53 = vsel %vm2711_vm6, %v2704_v17, %v2705_v32  ;;  %v2706_v2 = vrot.slane %v2644_v56, 4  ;;  %v3236_v36 = vpack.c.bf16 %v2644_v56, %v2643_v50  ;;  %v2504_v18 = vadd.f32 %v11611_v4, %v2174_v16  ;;  %v7384_v52 = vpop.f32.mrb[149].mxu1 }
 0x2f9   : > { %13401 = vst [vmem:[#allocation111_spill] sm:$0xff] %v11746_v53  ;;  %v2177_v30 = vpop.f32.mrb[150].mxu1  ;;  %v11760_v50 = vpop.f32.mrb[164].mxu0 }
 0x2fa   : > { %v11751_v11 = vsel %vm2711_vm6, %v2705_v32, %v2706_v2  ;;  %v2583_v46 = vadd.f32 %v11623_v63, %v2504_v18  ;;  %v2507_v57 = vadd.f32 %v11613_v3, %v2177_v30  ;;  %v7385_v35 = vpop.f32.mrb[151].mxu1  ;;  %7799 = vmatmul.mubr.bf16.gmra.mrb[12].mxu0 %v3236_v36  ;;  %v7696_v16 = vpop.f32.mrb[165].mxu0 }
 0x2fb   : > { %7802 = vmatprep.mubr.msk.bf16.mxu0 %vm8226_vm10, %v12926_v37  ;;  %v11762_v18 = vpop.f32.mrb[166].mxu0 }
 0x2fc   : > { %v2645_v4 = vmax.f32 %v2583_v46, 0.0  ;;  %v2584_v52 = vadd.f32 %v11623_v63, %v2507_v57  ;;  %13402 = vst [vmem:[#allocation117_spill] sm:$0xff] %v11762_v18  ;;  %v7697_v46 = vpop.f32.mrb[167].mxu0 }
 0x2fe   : > { %v2707_v56 = vrot.slane %v2645_v4, 4  ;;  %v2646_v32 = vmax.f32 %v2584_v52, 0.0 }
 0x2ff   : > { %v2182_v15 = vpop.f32.mrb[152].mxu1 }
 0x300   : > { %v11766_v3 = vsel %vm2711_vm6, %v2706_v2, %v2707_v56  ;;  %v2708_v30 = vrot.slane %v2646_v32, 4  ;;  %v3237_v35 = vpack.c.bf16 %v2646_v32, %v2645_v4  ;;  %v2512_v36 = vadd.f32 %v11636_v43, %v2182_v15  ;;  %v7388_v17 = vpop.f32.mrb[153].mxu1  ;;  %v13404_v2 = vld [vmem:[#allocation13_spill] sm:$0xff] }
 0x301   : > { %v2185_v53 = vpop.f32.mrb[154].mxu1  ;;  %vm6705_vm0 = vcmp.ne.s32.totalorder %v13404_v2, 1 }
 0x302   : > { %v11771_v57 = vsel %vm2711_vm6, %v2707_v56, %v2708_v30  ;;  %v2585_v52 = vadd.f32 %v11623_v63, %v2512_v36  ;;  %v2515_v16 = vadd.f32 %v11638_v48, %v2185_v53  ;;  %v7389_v18 = vpop.f32.mrb[155].mxu1  ;;  %7803 = vmatmul.mubr.bf16.gmra.mrb[16].mxu0 %v3237_v35  ;;  %v13403_v36 = vld [vmem:[#allocation12_spill] sm:$0xff] }
 0x303   : > { %7806 = vmatprep.mubr.msk.bf16.mxu0 %vm8226_vm10, %v12926_v37  ;;  %vm6704_vm15 = vcmp.ne.s32.totalorder %v13403_v36, 1  ;;  %v13409_v36 = vld [vmem:[#allocation76_spill] sm:$0xff] }
 0x304   : > { %v2647_v43 = vmax.f32 %v2585_v52, 0.0  ;;  %v2586_v17 = vadd.f32 %v11623_v63, %v2515_v16  ;;  %v11780_v4 = vpop.f32.mrb[168].mxu0  ;;  %vm6027_vm2 = vmpackc.low %vm6704_vm15, %vm6705_vm0  ;;  %vm6714_vm15 = vcmp.ne.s32.totalorder %v10733_v40, 1  ;;  %vm6715_vm0 = vcmp.ne.s32.totalorder %v10735_v49, 1 }
 0x305   : > { %v7700_v15 = vpop.f32.mrb[169].mxu0  ;;  %v13417_v40 = vpack.c.bf16 %v11316_v61, %v11310_v41 }
 0x306   : > { %v2709_v32 = vrot.slane %v2647_v43, 4  ;;  %v2648_v56 = vmax.f32 %v2586_v17, 0.0  ;;  %v11782_v46 = vpop.f32.mrb[170].mxu0 }
 0x307   : > { %v7701_v35 = vpop.f32.mrb[171].mxu0 }
 0x308   : > { %v11786_v48 = vsel %vm2711_vm6, %v2708_v30, %v2709_v32  ;;  %v2710_v53 = vrot.slane %v2648_v56, 4  ;;  %v3238_v18 = vpack.c.bf16 %v2648_v56, %v2647_v43  ;;  %v13408_v35 = vld [vmem:[#allocation74_spill] sm:$0xff] }
 0x309   : > { %vm6708_vm5 = vcmp.ne.s32.totalorder %v13408_v35, 1 }
 0x30a   : > { %v11792_v63 = vsel %vm2711_vm6, %v2709_v32, %v2710_v53  ;;  %v2773_v52 = vsel %vm2711_vm6, %v2710_v53, %v11155_v39  ;;  %7807 = vmatmul.mubr.bf16.gmra.mrb[20].mxu0 %v3238_v18  ;;  %v13405_v39 = vld [vmem:[#allocation73_spill] sm:$0xff]  ;;  %v13407_v32 = vpack.c.bf16 %v11192_v24, %v11186_v42  ;;  %vm6709_vm6 = vcmp.ne.s32.totalorder %v13409_v36, 1 }
 0x30b   : > { %v6028_v16 = vpack.c.bf16 %v11163_v51, %v2773_v52  ;;  %7966 = vmatprep.mubr.msk.bf16.mxu0 %vm8226_vm10, %v12926_v37  ;;  %vm6706_vm1 = vcmp.ne.s32.totalorder %v13405_v39, 1  ;;  %v13406_v51 = vld [vmem:[#allocation72_spill] sm:$0xff]  ;;  %vm6037_vm8 = vmpackc.low %vm6708_vm5, %vm6709_vm6  ;;  %v13410_v52 = vpack.c.bf16 %v11223_v7, %v11217_v44  ;;  %v13412_v39 = vld [vmem:[#allocation61_spill] sm:$0xff] }
 0x30c   : > { %vm6707_vm3 = vcmp.ne.s32.totalorder %v13406_v51, 1  ;;  %vm6711_vm11 = vcmp.ne.s32.totalorder %v13412_v39, 1  ;;  %v13413_v51 = vpack.c.bf16 %v11255_v22, %v11246_v1  ;;  %v13419_v39 = vld [vmem:[#allocation83_spill] sm:$0xff] }
 0x30d   : > { %7547 = vmatmul.mubr.msk.bf16.vlgmr.msra.gmra.mrb[156].mxu1 %vm6027_vm2, %v6028_v16  ;;  %v11802_v2 = vpop.f32.mrb[172].mxu0  ;;  %vm6032_vm4 = vmpackc.low %vm6706_vm1, %vm6707_vm3  ;;  %vm6716_vm1 = vcmp.ne.s32.totalorder %v10756_v12, 1  ;;  %vm6719_vm6 = vcmp.ne.s32.totalorder %v13419_v39, 1  ;;  %v13420_v12 = vpack.c.bf16 %v11339_v26, %v11330_v10  ;;  %v13423_v10 = vpack.c.bf16 %v11360_v55, %v11354_v33  ;;  %v8139_v55 = vld [vmem:[%s12798_s11 + $0x10] sm:$0xff]  }
 0x30e   : > { %v7704_v43 = vpop.f32.mrb[173].mxu0  ;;  %7550 = vmatprep.mubr.msk.bf16.mxu1 %vm8226_vm10, %v12926_v37  ;;  %vm6052_vm2 = vmpackc.low %vm6714_vm15, %vm6715_vm0  ;;  %v13425_v33 = vpack.c.bf16 %v11380_v34, %v11374_v27  ;;  %vm6724_vm15 = vcmp.ne.s32.totalorder %v10857_v23, 1  ;;  %v13426_v34 = vld [vmem:[#allocation87_spill] sm:$0xff]  ;;  %v8141_v27 = vld [vmem:[%s12798_s11 + $0x20] sm:$0xff]  }
 0x30f   : > { %v11806_v17 = vpop.f32.mrb[174].mxu0  ;;  %vm6725_vm0 = vcmp.ne.s32.totalorder %v13426_v34, 1  ;;  %v13427_v39 = vld [vmem:[#allocation16_spill] sm:$0xff] }
 0x310   : > { %v7705_v20 = vpop.f32.mrb[175].mxu0  ;;  %v8144_v34 = vld [vmem:[%s12798_s11 + $0x30] sm:$0xff]  }
 0x311   : > { %v13411_v20 = vld [vmem:[#allocation60_spill] sm:$0xff] }
 0x312   : > { %vm6710_vm9 = vcmp.ne.s32.totalorder %v13411_v20, 1  ;;  %v13418_v20 = vld [vmem:[#allocation80_spill] sm:$0xff] }
 0x313   : > { %vm6042_vm12 = vmpackc.low %vm6710_vm9, %vm6711_vm11  ;;  %vm6718_vm5 = vcmp.ne.s32.totalorder %v13418_v20, 1  ;;  %v8140_v20 = vld [vmem:[%s12798_s11 + $0x18] sm:$0xff]  }
 0x315   : > { %7551 = vmatmul.mubr.msk.bf16.gmra.mrb[160].mxu1 %vm6032_vm4, %v13407_v32  ;;  %v11813_v56 = vpop.f32.mrb[176].mxu0 }
 0x316   : > { %v7708_v15 = vpop.f32.mrb[177].mxu0  ;;  %7554 = vmatprep.mubr.msk.bf16.mxu1 %vm8226_vm10, %v12926_v37 }
 0x317   : > { %v11817_v53 = vpop.f32.mrb[178].mxu0 }
 0x318   : > { %v7709_v18 = vpop.f32.mrb[179].mxu0 }
 0x319   : > { %v13414_v18 = vpack.c.bf16 %v11276_v60, %v11270_v8 }
 0x31d   : > { %7555 = vmatmul.mubr.msk.bf16.gmra.mrb[164].mxu1 %vm6037_vm8, %v13410_v52  ;;  %v11824_v42 = vpop.f32.mrb[180].mxu0  ;;  %vm6062_vm8 = vmpackc.low %vm6718_vm5, %vm6719_vm6 }
 0x31e   : > { %v7712_v24 = vpop.f32.mrb[181].mxu0  ;;  %7558 = vmatprep.mubr.msk.bf16.mxu1 %vm8226_vm10, %v12926_v37 }
 0x31f   : > { %v11828_v16 = vpop.f32.mrb[182].mxu0  ;;  %v13416_v24 = vld [vmem:[#allocation66_spill] sm:$0xff] }
 0x320   : > { %v7713_v43 = vpop.f32.mrb[183].mxu0  ;;  %vm6717_vm3 = vcmp.ne.s32.totalorder %v13416_v24, 1  ;;  %v13424_v24 = vld [vmem:[#allocation86_spill] sm:$0xff] }
 0x321   : > { %vm6057_vm4 = vmpackc.low %vm6716_vm1, %vm6717_vm3  ;;  %vm6723_vm13 = vcmp.ne.s32.totalorder %v13424_v24, 1 }
 0x325   : > { %7559 = vmatmul.mubr.msk.bf16.gmra.mrb[168].mxu1 %vm6042_vm12, %v13413_v51  ;;  %v11835_v44 = vpop.f32.mrb[184].mxu0 }
 0x326   : > { %v7716_v7 = vpop.f32.mrb[185].mxu0  ;;  %7562 = vmatprep.mubr.msk.bf16.mxu1 %vm8226_vm10, %v12926_v37 }
 0x327   : > { %v11839_v32 = vpop.f32.mrb[186].mxu0 }
 0x328   : > { %v7717_v15 = vpop.f32.mrb[187].mxu0 }
 0x329   : > { %v8137_v15 = vld [vmem:[%s12798_s11] sm:$0xff]  }
 0x32a   : > { %7951 = vmatpush3.bf16.msra.mxu0 %v8137_v15 }
 0x32b   : > { %7952 = vmatprep.subr.bf16.mxu0 %v12926_v37 }
 0x32d   : > { %7563 = vmatmul.mubr.msk.bf16.gmra.mrb[172].mxu1 %vm6047_vm14, %v13414_v18  ;;  %v11846_v1 = vpop.f32.mrb[188].mxu0  ;;  %v13421_v18 = vld [vmem:[#allocation84_spill] sm:$0xff]  ;;  %vm6072_vm14 = vmpackc.low %vm6722_vm7, %vm6723_vm13 }
 0x32e   : > { %v7720_v22 = vpop.f32.mrb[189].mxu0  ;;  %7566 = vmatprep.mubr.msk.bf16.mxu1 %vm8226_vm10, %v12926_v37  ;;  %vm6720_vm9 = vcmp.ne.s32.totalorder %v13421_v18, 1  ;;  %v13429_v18 = vld [vmem:[#allocation63_spill] sm:$0xff] }
 0x32f   : > { %v11850_v35 = vpop.f32.mrb[190].mxu0  ;;  %v13422_v22 = vld [vmem:[#allocation85_spill] sm:$0xff]  ;;  %vm6726_vm1 = vcmp.ne.s32.totalorder %v13429_v18, 1  ;;  %v2978_v18 = vpop.permute.xlu0 %2977 }
 0x330   : > { %v7721_v36 = vpop.f32.mrb[191].mxu0  ;;  %vm6721_vm11 = vcmp.ne.s32.totalorder %v13422_v22, 1  ;;  %v13430_v22 = vld [vmem:[#allocation64_spill] sm:$0xff] }
 0x331   : > { %vm6067_vm12 = vmpackc.low %vm6720_vm9, %vm6721_vm11  ;;  %vm6727_vm3 = vcmp.ne.s32.totalorder %v13430_v22, 1  ;;  %vm6731_vm11 = vcmp.ne.s32.totalorder %v2978_v18, 1  ;;  %v13443_v18 = vld [vmem:[#allocation103_spill] sm:$0xff] }
 0x335   : > { %7567 = vmatmul.mubr.msk.bf16.gmra.mrb[176].mxu1 %vm6052_vm2, %v13415_v58  ;;  %v11857_v13 = vpop.f32.mrb[192].mxu0  ;;  %vm6077_vm2 = vmpackc.low %vm6724_vm15, %vm6725_vm0 }
 0x336   : > { %v7724_v8 = vpop.f32.mrb[193].mxu0  ;;  %7570 = vmatprep.mubr.msk.bf16.mxu1 %vm8226_vm10, %v12926_v37 }
 0x337   : > { %v11861_v60 = vpop.f32.mrb[194].mxu0 }
 0x338   : > { %v7725_v52 = vpop.f32.mrb[195].mxu0 }
 0x339   : > { %v8138_v52 = vld [vmem:[%s12798_s11 + $0x8] sm:$0xff]  }
 0x33a   : > { %7953 = vmatpush3.bf16.msra.mxu0 %v8138_v52  ;;  %v8142_v52 = vld [vmem:[%s12798_s11 + $0x28] sm:$0xff]  }
 0x33b   : > { %7954 = vmatprep.subr.bf16.mxu0 %v12926_v37 }
 0x33d   : > { %7571 = vmatmul.mubr.msk.bf16.gmra.mrb[180].mxu1 %vm6057_vm4, %v13417_v40  ;;  %v11868_v49 = vpop.f32.mrb[196].mxu0  ;;  %vm6082_vm4 = vmpackc.low %vm6726_vm1, %vm6727_vm3 }
 0x33e   : > { %v7728_v14 = vpop.f32.mrb[197].mxu0  ;;  %7574 = vmatprep.mubr.msk.bf16.mxu1 %vm8226_vm10, %v12926_v37  ;;  %7955 = vmatpush3.bf16.msra.mxu0 %v8139_v55 }
 0x33f   : > { %v11872_v21 = vpop.f32.mrb[198].mxu0  ;;  %7956 = vmatprep.subr.bf16.mxu0 %v12926_v37 }
 0x340   : > { %v7729_v43 = vpop.f32.mrb[199].mxu0 }
 0x342   : > { %7957 = vmatpush3.bf16.msra.mxu0 %v8140_v20  ;;  %v8143_v20 = vld [vmem:[%s12797_s10] sm:$0xff]  }
 0x343   : > { %7958 = vmatprep.subr.bf16.mxu0 %v12926_v37  ;;  %7811 = vmatpush3.bf16.msra.mxu1 %v8143_v20  ;;  %v2984_v20 = vpop.permute.xlu0 %2983 }
 0x344   : > { %7812 = vmatprep.subr.bf16.mxu1 %v12926_v37  ;;  %vm6733_vm13 = vcmp.ne.s32.totalorder %v2984_v20, 1  ;;  %v13446_v20 = vld [vmem:[#allocation69_spill] sm:$0xff] }
 0x345   : > { %7575 = vmatmul.mubr.msk.bf16.gmra.mrb[184].mxu1 %vm6062_vm8, %v13420_v12  ;;  %v11879_v41 = vpop.f32.mrb[200].mxu0  ;;  %v13428_v12 = vpack.c.bf16 %v11400_v45, %v13427_v39  ;;  %v13432_v45 = vld [vmem:[#allocation17_spill] sm:$0xff]  ;;  %v13436_v39 = vld [vmem:[#allocation99_spill] sm:$0xff] }
 0x346   : > { %v7732_v61 = vpop.f32.mrb[201].mxu0  ;;  %7578 = vmatprep.mubr.msk.bf16.mxu1 %vm8226_vm10, %v12926_v37  ;;  %7959 = vmatpush3.bf16.msra.mxu0 %v8141_v27  ;;  %v2981_v27 = vpop.permute.xlu1 %2980 }
 0x347   : > { %v11883_v51 = vpop.f32.mrb[202].mxu0  ;;  %7960 = vmatprep.subr.bf16.mxu0 %v12926_v37  ;;  %vm6730_vm9 = vcmp.ne.s32.totalorder %v2981_v27, 1 }
 0x348   : > { %v7733_v7 = vpop.f32.mrb[203].mxu0 }
 0x34a   : > { %7961 = vmatpush3.bf16.msra.mxu0 %v8142_v52  ;;  %v2987_v52 = vpop.permute.xlu1 %2986 }
 0x34b   : > { %7962 = vmatprep.subr.bf16.mxu0 %v12926_v37  ;;  %vm6732_vm7 = vcmp.ne.s32.totalorder %v2987_v52, 1 }
 0x34d   : > { %7579 = vmatmul.mubr.msk.bf16.gmra.mrb[188].mxu1 %vm6067_vm12, %v13423_v10  ;;  %v11894_v26 = vpop.f32.mrb[204].mxu0  ;;  %v13431_v10 = vld [vmem:[#allocation95_spill] sm:$0xff]  ;;  %vm6092_vm12 = vmpackc.low %vm6730_vm9, %vm6731_vm11 }
 0x34e   : > { %v7736_v36 = vpop.f32.mrb[205].mxu0  ;;  %7582 = vmatprep.mubr.msk.bf16.mxu1 %vm8226_vm10, %v12926_v37  ;;  %7963 = vmatpush3.bf16.msra.mxu0 %v8144_v34  ;;  %v2993_v27 = vpop.permute.xlu1 %2992 }
 0x34f   : > { %v11898_v58 = vpop.f32.mrb[206].mxu0  ;;  %v13433_v36 = vpack.c.bf16 %v13431_v10, %v13432_v45  ;;  %7964 = vmatprep.subr.bf16.mxu0 %v12926_v37  ;;  %v8145_v45 = vld [vmem:[%s12798_s11 + $0x38] sm:$0xff]   ;;  %vm6734_vm15 = vcmp.ne.s32.totalorder %v2993_v27, 1  ;;  %v8146_v27 = vld [vmem:[%s12797_s10 + $0x8] sm:$0xff]  }
 0x350   : > { %v7737_v8 = vpop.f32.mrb[207].mxu0  ;;  %7813 = vmatpush3.bf16.msra.mxu1 %v8146_v27  ;;  %v13456_v27 = vld [vmem:[#allocation110_spill] sm:$0xff] }
 0x351   : > { %7814 = vmatprep.subr.bf16.mxu1 %v12926_v37 }
 0x352   : > { %7965 = vmatpush3.bf16.msra.mxu0 %v8145_v45  ;;  %v2999_v52 = vpop.permute.xlu1 %2998 }
 0x353   : > { %vm6736_vm1 = vcmp.ne.s32.totalorder %v2999_v52, 1 }
 0x355   : > { %7583 = vmatmul.mubr.msk.bf16.gmra.mrb[192].mxu1 %vm6072_vm14, %v13425_v33  ;;  %v11912_v40 = vpop.f32.mrb[208].mxu0  ;;  %vm6097_vm14 = vmpackc.low %vm6732_vm7, %vm6733_vm13 }
 0x356   : > { %v7740_v14 = vpop.f32.mrb[209].mxu0  ;;  %7586 = vmatprep.mubr.msk.bf16.mxu1 %vm8226_vm10, %v12926_v37 }
 0x357   : > { %v11916_v25 = vpop.f32.mrb[210].mxu0  ;;  %v13434_v14 = vld [vmem:[#allocation92_spill] sm:$0xff] }
 0x358   : > { %v7741_v43 = vpop.f32.mrb[211].mxu0  ;;  %vm6728_vm5 = vcmp.ne.s32.totalorder %v13434_v14, 1 }
 0x359   : > { %v13435_v43 = vld [vmem:[#allocation94_spill] sm:$0xff] }
 0x35a   : > { %vm6729_vm6 = vcmp.ne.s32.totalorder %v13435_v43, 1 }
 0x35b   : > { %vm6087_vm8 = vmpackc.low %vm6728_vm5, %vm6729_vm6 }
 0x35d   : > { %7587 = vmatmul.mubr.msk.bf16.gmra.mrb[196].mxu1 %vm6077_vm2, %v13428_v12  ;;  %v11931_v61 = vpop.f32.mrb[212].mxu0  ;;  %v13437_v12 = vld [vmem:[#allocation96_spill] sm:$0xff] }
 0x35e   : > { %v7744_v7 = vpop.f32.mrb[213].mxu0  ;;  %7590 = vmatprep.mubr.msk.bf16.mxu1 %vm8226_vm10, %v12926_v37 }
 0x35f   : > { %v11935_v23 = vpop.f32.mrb[214].mxu0  ;;  %v13438_v7 = vpack.c.bf16 %v13436_v39, %v13437_v12 }
 0x360   : > { %v7745_v15 = vpop.f32.mrb[215].mxu0 }
 0x365   : > { %7591 = vmatmul.mubr.msk.bf16.gmra.mrb[200].mxu1 %vm6082_vm4, %v13433_v36  ;;  %v11943_v8 = vpop.f32.mrb[216].mxu0 }
 0x366   : > { %v7748_v24 = vpop.f32.mrb[217].mxu0  ;;  %7594 = vmatprep.mubr.msk.bf16.mxu1 %vm8226_vm10, %v12926_v37 }
 0x367   : > { %v11950_v55 = vpop.f32.mrb[218].mxu0  ;;  %v13439_v24 = vld [vmem:[#allocation100_spill] sm:$0xff] }
 0x368   : > { %v7749_v33 = vpop.f32.mrb[219].mxu0 }
 0x369   : > { %v13440_v33 = vld [vmem:[#allocation102_spill] sm:$0xff] }
 0x36a   : > { %v13441_v14 = vpack.c.bf16 %v13439_v24, %v13440_v33 }
 0x36d   : > { %7595 = vmatmul.mubr.msk.bf16.gmra.mrb[204].mxu1 %vm6087_vm8, %v13438_v7  ;;  %v11966_v15 = vpop.f32.mrb[220].mxu0  ;;  %v13442_v7 = vld [vmem:[#allocation104_spill] sm:$0xff] }
 0x36e   : > { %v7752_v22 = vpop.f32.mrb[221].mxu0  ;;  %7598 = vmatprep.mubr.msk.bf16.mxu1 %vm8226_vm10, %v12926_v37 }
 0x36f   : > { %v11970_v10 = vpop.f32.mrb[222].mxu0  ;;  %v13444_v22 = vpack.c.bf16 %v13442_v7, %v13443_v18 }
 0x370   : > { %v7753_v36 = vpop.f32.mrb[223].mxu0 }
 0x371   : > { %v2990_v36 = vpop.permute.xlu0 %2989 }
 0x372   : > { %vm6735_vm0 = vcmp.ne.s32.totalorder %v2990_v36, 1  ;;  %v3005_v36 = vpop.permute.xlu1 %3004 }
 0x373   : > { %vm6102_vm2 = vmpackc.low %vm6734_vm15, %vm6735_vm0  ;;  %vm6738_vm5 = vcmp.ne.s32.totalorder %v3005_v36, 1 }
 0x375   : > { %7599 = vmatmul.mubr.msk.bf16.gmra.mrb[208].mxu1 %vm6092_vm12, %v13441_v14  ;;  %v11978_v43 = vpop.f32.mrb[224].mxu0  ;;  %v2996_v18 = vpop.permute.xlu0 %2995 }
 0x376   : > { %v7756_v34 = vpop.f32.mrb[225].mxu0  ;;  %7602 = vmatprep.mubr.msk.bf16.mxu1 %vm8226_vm10, %v12926_v37  ;;  %vm6737_vm3 = vcmp.ne.s32.totalorder %v2996_v18, 1  ;;  %v3011_v18 = vpop.permute.xlu1 %3010 }
 0x377   : > { %v11982_v39 = vpop.f32.mrb[226].mxu0  ;;  %v13447_v34 = vld [vmem:[#allocation65_spill] sm:$0xff]  ;;  %vm6107_vm4 = vmpackc.low %vm6736_vm1, %vm6737_vm3  ;;  %vm6740_vm9 = vcmp.ne.s32.totalorder %v3011_v18, 1  ;;  %v13465_v18 = vld [vmem:[#allocation119_spill] sm:$0xff] }
 0x378   : > { %v7757_v12 = vpop.f32.mrb[227].mxu0 }
 0x379   : > { %v13448_v12 = vpack.c.bf16 %v13446_v20, %v13447_v34  ;;  %v13452_v20 = vld [vmem:[#allocation101_spill] sm:$0xff] }
 0x37a   : > { %v3017_v36 = vpop.permute.xlu1 %3016 }
 0x37b   : > { %vm6742_vm7 = vcmp.ne.s32.totalorder %v3017_v36, 1 }
 0x37d   : > { %7603 = vmatmul.mubr.msk.bf16.gmra.mrb[212].mxu1 %vm6097_vm14, %v13444_v22  ;;  %v11987_v45 = vpop.f32.mrb[228].mxu0 }
 0x37e   : > { %v7760_v24 = vpop.f32.mrb[229].mxu0  ;;  %7606 = vmatprep.mubr.msk.bf16.mxu1 %vm8226_vm10, %v12926_v37 }
 0x37f   : > { %v11991_v33 = vpop.f32.mrb[230].mxu0 }
 0x380   : > { %13445 = vst [vmem:[#allocation18_spill] sm:$0xff] %v11991_v33  ;;  %v7761_v14 = vpop.f32.mrb[231].mxu0 }
 0x381   : > { %v13451_v14 = vld [vmem:[#allocation105_spill] sm:$0xff] }
 0x382   : > { %v13453_v34 = vpack.c.bf16 %v13451_v14, %v13452_v20 }
 0x385   : > { %7607 = vmatmul.mubr.msk.bf16.gmra.mrb[216].mxu1 %vm6102_vm2, %v13448_v12  ;;  %v11996_v7 = vpop.f32.mrb[232].mxu0 }
 0x386   : > { %13449 = vst [vmem:[#allocation19_spill] sm:$0xff] %v11996_v7  ;;  %v7764_v22 = vpop.f32.mrb[233].mxu0  ;;  %7610 = vmatprep.mubr.msk.bf16.mxu1 %vm8226_vm10, %v12926_v37  ;;  %v13457_v7 = vld [vmem:[#allocation109_spill] sm:$0xff] }
 0x387   : > { %v12000_v24 = vpop.f32.mrb[234].mxu0  ;;  %v3002_v22 = vpop.permute.xlu0 %3001  ;;  %v13458_v33 = vpack.c.bf16 %v13456_v27, %v13457_v7 }
 0x388   : > { %13450 = vst [vmem:[#allocation118_spill] sm:$0xff] %v12000_v24  ;;  %v7765_v30 = vpop.f32.mrb[235].mxu0  ;;  %vm6739_vm6 = vcmp.ne.s32.totalorder %v3002_v22, 1  ;;  %v13461_v22 = vld [vmem:[#allocation113_spill] sm:$0xff] }
 0x389   : > { %vm6112_vm8 = vmpackc.low %vm6738_vm5, %vm6739_vm6 }
 0x38b   : > { %v3008_v20 = vpop.permute.xlu0 %3007 }
 0x38c   : > { %vm6741_vm11 = vcmp.ne.s32.totalorder %v3008_v20, 1  ;;  %v13466_v20 = vld [vmem:[#allocation115_spill] sm:$0xff] }
 0x38d   : > { %7611 = vmatmul.mubr.msk.bf16.gmra.mrb[220].mxu1 %vm6107_vm4, %v13453_v34  ;;  %v12009_v12 = vpop.f32.mrb[236].mxu0  ;;  %vm6117_vm12 = vmpackc.low %vm6740_vm9, %vm6741_vm11 }
 0x38e   : > { %13454 = vst [vmem:[#allocation20_spill] sm:$0xff] %v12009_v12  ;;  %v7768_v24 = vpop.f32.mrb[237].mxu0  ;;  %7614 = vmatprep.mubr.msk.bf16.mxu1 %vm8226_vm10, %v12926_v37 }
 0x38f   : > { %v12013_v30 = vpop.f32.mrb[238].mxu0 }
 0x390   : > { %13455 = vst [vmem:[#allocation21_spill] sm:$0xff] %v12013_v30  ;;  %v7769_v52 = vpop.f32.mrb[239].mxu0 }
 0x391   : > { %v13462_v52 = vld [vmem:[#allocation112_spill] sm:$0xff] }
 0x392   : > { %v13463_v30 = vpack.c.bf16 %v13461_v22, %v13462_v52 }
 0x395   : > { %7615 = vmatmul.mubr.msk.bf16.gmra.mrb[224].mxu1 %vm6112_vm8, %v13458_v33  ;;  %v12018_v14 = vpop.f32.mrb[240].mxu0  ;;  %v3014_v33 = vpop.permute.xlu0 %3013 }
 0x396   : > { %13459 = vst [vmem:[#allocation10_spill] sm:$0xff] %v12018_v14  ;;  %v7772_v34 = vpop.f32.mrb[241].mxu0  ;;  %7618 = vmatprep.mubr.msk.bf16.mxu1 %vm8226_vm10, %v12926_v37  ;;  %vm6743_vm13 = vcmp.ne.s32.totalorder %v3014_v33, 1  ;;  %v13470_v33 = vld [vmem:[#allocation70_spill] sm:$0xff] }
 0x397   : > { %v12022_v24 = vpop.f32.mrb[242].mxu0  ;;  %vm6122_vm14 = vmpackc.low %vm6742_vm7, %vm6743_vm13 }
 0x398   : > { %13460 = vst [vmem:[#allocation11_spill] sm:$0xff] %v12022_v24  ;;  %v7773_v12 = vpop.f32.mrb[243].mxu0  ;;  %v13467_v24 = vpack.c.bf16 %v13465_v18, %v13466_v20  ;;  %v13471_v18 = vld [vmem:[#allocation48_spill] sm:$0xff] }
 0x399   : > { %v3023_v12 = vpop.permute.xlu1 %3022  ;;  %v13472_v20 = vpack.c.bf16 %v13470_v33, %v13471_v18 }
 0x39a   : > { %vm6744_vm15 = vcmp.ne.s32.totalorder %v3023_v12, 1 }
 0x39d   : > { %7619 = vmatmul.mubr.msk.bf16.gmra.mrb[228].mxu1 %vm6117_vm12, %v13463_v30  ;;  %v12027_v7 = vpop.f32.mrb[244].mxu0  ;;  %v3020_v30 = vpop.permute.xlu0 %3019 }
 0x39e   : > { %v7776_v27 = vpop.f32.mrb[245].mxu0  ;;  %7622 = vmatprep.mubr.msk.bf16.mxu1 %vm8226_vm10, %v12926_v37  ;;  %vm6745_vm0 = vcmp.ne.s32.totalorder %v3020_v30, 1 }
 0x39f   : > { %v12031_v34 = vpop.f32.mrb[246].mxu0  ;;  %vm6127_vm2 = vmpackc.low %vm6744_vm15, %vm6745_vm0 }
 0x3a0   : > { %13464 = vst [vmem:[#allocation22_spill] sm:$0xff] %v12031_v34  ;;  %v7777_v14 = vpop.f32.mrb[247].mxu0 }
 0x3a1   : > { %v8147_v14 = vld [vmem:[%s12797_s10 + $0x10] sm:$0xff]  }
 0x3a2   : > { %7815 = vmatpush3.bf16.msra.mxu1 %v8147_v14  ;;  %v13474_v14 = vld [vmem:[#allocation77_spill] sm:$0xff] }
 0x3a3   : > { %7816 = vmatprep.subr.bf16.mxu1 %v12926_v37 }
 0x3a5   : > { %7623 = vmatmul.mubr.msk.bf16.gmra.mrb[232].mxu1 %vm6122_vm14, %v13467_v24  ;;  %v12036_v22 = vpop.f32.mrb[248].mxu0  ;;  %v3029_v24 = vpop.permute.xlu1 %3028 }
 0x3a6   : > { %13468 = vst [vmem:[#allocation23_spill] sm:$0xff] %v12036_v22  ;;  %v7780_v52 = vpop.f32.mrb[249].mxu0  ;;  %7626 = vmatprep.mubr.msk.bf16.mxu1 %vm8226_vm10, %v12926_v37  ;;  %v3026_v22 = vpop.permute.xlu0 %3025  ;;  %vm6746_vm1 = vcmp.ne.s32.totalorder %v3029_v24, 1  ;;  %v13477_v24 = vld [vmem:[#allocation106_spill] sm:$0xff] }
 0x3a7   : > { %v12040_v27 = vpop.f32.mrb[250].mxu0  ;;  %vm6747_vm3 = vcmp.ne.s32.totalorder %v3026_v22, 1 }
 0x3a8   : > { %13469 = vst [vmem:[#allocation88_spill] sm:$0xff] %v12040_v27  ;;  %v7781_v36 = vpop.f32.mrb[251].mxu0  ;;  %vm6132_vm4 = vmpackc.low %vm6746_vm1, %vm6747_vm3 }
 0x3a9   : > { %v3035_v30 = vpop.permute.xlu1 %3034  ;;  %v13475_v36 = vpack.c.bf16 %v11629_v5, %v13474_v14 }
 0x3aa   : > { %v3032_v18 = vpop.permute.xlu0 %3031  ;;  %vm6748_vm5 = vcmp.ne.s32.totalorder %v3035_v30, 1  ;;  %v13479_v30 = vpack.c.bf16 %v11665_v19, %v11659_v28  ;;  %v13480_v19 = vpack.c.bf16 %v11681_v54, %v11675_v6 }
 0x3ab   : > { %vm6749_vm6 = vcmp.ne.s32.totalorder %v3032_v18, 1 }
 0x3ac   : > { %vm6137_vm8 = vmpackc.low %vm6748_vm5, %vm6749_vm6 }
 0x3ad   : > { %7627 = vmatmul.mubr.msk.bf16.gmra.mrb[236].mxu1 %vm6127_vm2, %v13472_v20  ;;  %v12049_v52 = vpop.f32.mrb[252].mxu0  ;;  %v3041_v22 = vpop.permute.xlu1 %3040 }
 0x3ae   : > { %13473 = vst [vmem:[#allocation49_spill] sm:$0xff] %v12049_v52  ;;  %v7784_v27 = vpop.f32.mrb[253].mxu0  ;;  %7630 = vmatprep.mubr.msk.bf16.mxu1 %vm8226_vm10, %v12926_v37  ;;  %v3038_v14 = vpop.permute.xlu0 %3037  ;;  %vm6750_vm9 = vcmp.ne.s32.totalorder %v3041_v22, 1 }
 0x3af   : > { %v12053_v34 = vpop.f32.mrb[254].mxu0  ;;  %vm6751_vm11 = vcmp.ne.s32.totalorder %v3038_v14, 1 }
 0x3b0   : > { %v7785_v12 = vpop.f32.mrb[255].mxu0  ;;  %vm6142_vm12 = vmpackc.low %vm6750_vm9, %vm6751_vm11 }
 0x3b1   : > { %v13478_v12 = vpack.c.bf16 %v11649_v47, %v13477_v24 }
 0x3b2   : > { %v3044_v18 = vpop.permute.xlu0 %3043 }
 0x3b3   : > { %vm6753_vm13 = vcmp.ne.s32.totalorder %v3044_v18, 1 }
 0x3b5   : > { %7631 = vmatmul.mubr.msk.bf16.gmra.mrb[240].mxu1 %vm6132_vm4, %v13475_v36  ;;  %v12058_v33 = vpop.f32.mrb[0].mxu0 }
 0x3b6   : > { %13476 = vst [vmem:[#allocation50_spill] sm:$0xff] %v12058_v33  ;;  %v7788_v20 = vpop.f32.mrb[1].mxu0  ;;  %7634 = vmatprep.mubr.msk.bf16.mxu1 %vm8226_vm10, %v12926_v37 }
 0x3b7   : > { %v12062_v27 = vpop.f32.mrb[2].mxu0 }
 0x3b8   : > { %v7789_v52 = vpop.f32.mrb[3].mxu0 }
 0x3b9   : > { %v3047_v52 = vpop.permute.xlu1 %3046 }
 0x3ba   : > { %vm6752_vm7 = vcmp.ne.s32.totalorder %v3047_v52, 1 }
 0x3bb   : > { %vm6147_vm14 = vmpackc.low %vm6752_vm7, %vm6753_vm13 }
 0x3bd   : > { %7635 = vmatmul.mubr.msk.bf16.gmra.mrb[244].mxu1 %vm6137_vm8, %v13478_v12  ;;  %v12067_v5 = vpop.f32.mrb[4].mxu0  ;;  %v3053_v28 = vpop.permute.xlu1 %3052 }
 0x3be   : > { %v7792_v36 = vpop.f32.mrb[5].mxu0  ;;  %7638 = vmatprep.mubr.msk.bf16.mxu1 %vm8226_vm10, %v12926_v37  ;;  %vm6754_vm15 = vcmp.ne.s32.totalorder %v3053_v28, 1 }
 0x3bf   : > { %v12071_v20 = vpop.f32.mrb[6].mxu0  ;;  %v3050_v36 = vpop.permute.xlu0 %3049 }
 0x3c0   : > { %v7793_v33 = vpop.f32.mrb[7].mxu0  ;;  %vm6755_vm0 = vcmp.ne.s32.totalorder %v3050_v36, 1  ;;  %v13484_v36 = vpack.c.bf16 %v11711_v0, %v11706_v9 }
 0x3c1   : > { %v8148_v33 = vld [vmem:[%s12797_s10 + $0x18] sm:$0xff]   ;;  %vm6152_vm2 = vmpackc.low %vm6754_vm15, %vm6755_vm0  ;;  %v3059_v18 = vpop.permute.xlu1 %3058 }
 0x3c2   : > { %7817 = vmatpush3.bf16.msra.mxu1 %v8148_v33  ;;  %v13481_v33 = vpack.c.bf16 %v11695_v31, %v11690_v59  ;;  %vm6756_vm1 = vcmp.ne.s32.totalorder %v3059_v18, 1  ;;  %v12116_v18 = vld [vmem:[%s12796_s9] ss:$0 sm:$0xff] }
 0x3c3   : > { %7818 = vmatprep.subr.bf16.mxu1 %v12926_v37  ;;  %v3056_v54 = vpop.permute.xlu0 %3055 }
 0x3c4   : > { %vm6757_vm3 = vcmp.ne.s32.totalorder %v3056_v54, 1 }
 0x3c5   : > { %7639 = vmatmul.mubr.msk.bf16.gmra.mrb[248].mxu1 %vm6142_vm12, %v13479_v30  ;;  %v12076_v47 = vpop.f32.mrb[8].mxu0  ;;  %vm6157_vm4 = vmpackc.low %vm6756_vm1, %vm6757_vm3  ;;  %v3065_v28 = vpop.permute.xlu1 %3064 }
 0x3c6   : > { %v7796_v24 = vpop.f32.mrb[9].mxu0  ;;  %7642 = vmatprep.mubr.msk.bf16.mxu1 %vm8226_vm10, %v12926_v37  ;;  %vm6758_vm5 = vcmp.ne.s32.totalorder %v3065_v28, 1 }
 0x3c7   : > { %v12080_v12 = vpop.f32.mrb[10].mxu0  ;;  %v3062_v31 = vpop.permute.xlu0 %3061 }
 0x3c8   : > { %v7797_v22 = vpop.f32.mrb[11].mxu0  ;;  %vm6759_vm6 = vcmp.ne.s32.totalorder %v3062_v31, 1 }
 0x3c9   : > { %vm6162_vm8 = vmpackc.low %vm6758_vm5, %vm6759_vm6 }
 0x3cd   : > { %7643 = vmatmul.mubr.msk.bf16.gmra.mrb[252].mxu1 %vm6147_vm14, %v13480_v19  ;;  %v12089_v14 = vpop.f32.mrb[12].mxu0 }
 0x3ce   : > { %v7800_v30 = vpop.f32.mrb[13].mxu0  ;;  %7646 = vmatprep.mubr.msk.bf16.mxu1 %vm8226_vm10, %v12926_v37 }
 0x3cf   : > { %v12093_v24 = vpop.f32.mrb[14].mxu0 }
 0x3d0   : > { %v7801_v52 = vpop.f32.mrb[15].mxu0 }
 0x3d5   : > { %7647 = vmatmul.mubr.msk.bf16.gmra.mrb[0].mxu1 %vm6152_vm2, %v13481_v33  ;;  %v12098_v6 = vpop.f32.mrb[16].mxu0 }
 0x3d6   : > { %13482 = vst [vmem:[#allocation24_spill] sm:$0xff] %v12098_v6  ;;  %v7804_v22 = vpop.f32.mrb[17].mxu0  ;;  %7650 = vmatprep.mubr.msk.bf16.mxu1 %vm8226_vm10, %v12926_v37 }
 0x3d7   : > { %v12102_v19 = vpop.f32.mrb[18].mxu0 }
 0x3d8   : > { %13483 = vst [vmem:[#allocation25_spill] sm:$0xff] %v12102_v19  ;;  %v7805_v30 = vpop.f32.mrb[19].mxu0 }
 0x3d9   : > { %v8149_v30 = vld [vmem:[%s12797_s10 + $0x20] sm:$0xff]  }
 0x3da   : > { %7819 = vmatpush3.bf16.msra.mxu1 %v8149_v30 }
 0x3db   : > { %7820 = vmatprep.subr.bf16.mxu1 %v12926_v37 }
 0x3dd   : > { %7651 = vmatmul.mubr.msk.bf16.gmra.mrb[4].mxu1 %vm6157_vm4, %v13484_v36  ;;  %v12107_v59 = vpop.f32.mrb[20].mxu0 }
 0x3de   : > { %13485 = vst [vmem:[#allocation62_spill] sm:$0xff] %v12107_v59  ;;  %v7808_v52 = vpop.f32.mrb[21].mxu0  ;;  %7654 = vmatprep.mubr.msk.bf16.mxu1 %vm8226_vm10, %v12926_v37 }
 0x3df   : > { %v12111_v33 = vpop.f32.mrb[22].mxu0 }
 0x3e0   : > { %13486 = vst [vmem:[#allocation121_spill] sm:$0xff] %v12111_v33  ;;  %v3384_v22 = vpop.f32.mrb[156].mxu1  ;;  %v7809_v54 = vpop.f32.mrb[23].mxu0  ;;  %v13487_v33 = vld [vmem:[#allocation120_spill] sm:$0xff] }
 0x3e1   : > { %v3714_v9 = vadd.f32 %v11720_v62, %v3384_v22  ;;  %v7548_v0 = vpop.f32.mrb[157].mxu1  ;;  %v13488_v62 = vld [vmem:[#allocation78_spill] sm:$0xff]  ;;  %v3071_v22 = vpop.permute.xlu1 %3070 }
 0x3e2   : > { %v3387_v36 = vpop.f32.mrb[158].mxu1  ;;  %v13489_v31 = vpack.c.bf16 %v11731_v38, %v13488_v62  ;;  %v3068_v54 = vpop.permute.xlu0 %3067  ;;  %vm6760_vm9 = vcmp.ne.s32.totalorder %v3071_v22, 1  ;;  %v13490_v62 = vld [vmem:[#allocation79_spill] sm:$0xff] }
 0x3e3   : > { %v12123_v52 = vadd.f32 %v12116_v18, %v3714_v9  ;;  %v3717_v59 = vadd.f32 %v13487_v33, %v3387_v36  ;;  %v7549_v19 = vpop.f32.mrb[159].mxu1  ;;  %vm6761_vm11 = vcmp.ne.s32.totalorder %v3068_v54, 1  ;;  %v13491_v54 = vld [vmem:[#allocation111_spill] sm:$0xff] }
 0x3e4   : > { %vm6167_vm12 = vmpackc.low %vm6760_vm9, %vm6761_vm11 }
 0x3e5   : > { %v3968_v28 = vadd.f32 %v12116_v18, %v3717_v59  ;;  %7655 = vmatmul.mubr.msk.bf16.gmra.mrb[8].mxu1 %vm6162_vm8, %v13489_v31  ;;  %v12915_v9 = vmax.f32 %v12123_v52, 0.0 }
 0x3e6   : > { %7658 = vmatprep.mubr.msk.bf16.mxu1 %vm8226_vm10, %v12926_v37 }
 0x3e7   : > { %v4030_v0 = vmax.f32 %v3968_v28, 0.0 }
 0x3e8   : > { %v3392_v33 = vpop.f32.mrb[160].mxu1 }
 0x3e9   : > { %v4525_v19 = vpack.c.bf16 %v4030_v0, %v12915_v9  ;;  %v3722_v59 = vadd.f32 %v11740_v29, %v3392_v33  ;;  %v7552_v30 = vpop.f32.mrb[161].mxu1  ;;  %v13492_v9 = vpack.c.bf16 %v11751_v11, %v13491_v54  ;;  %v3077_v29 = vpop.permute.xlu1 %3076  ;;  %v13493_v11 = vld [vmem:[#allocation117_spill] sm:$0xff] }
 0x3ea   : > { %v3395_v36 = vpop.f32.mrb[162].mxu1  ;;  %v3074_v33 = vpop.permute.xlu0 %3073  ;;  %vm6762_vm7 = vcmp.ne.s32.totalorder %v3077_v29, 1 }
 0x3eb   : > { %v3969_v38 = vadd.f32 %v12116_v18, %v3722_v59  ;;  %v3725_v31 = vadd.f32 %v13490_v62, %v3395_v36  ;;  %v7553_v6 = vpop.f32.mrb[163].mxu1  ;;  %7967 = vmatmul.mubr.bf16.vlgmr.msra.gmra.mrb[24].mxu0 %v4525_v19  ;;  %vm6763_vm13 = vcmp.ne.s32.totalorder %v3074_v33, 1 }
 0x3ec   : > { %7970 = vmatprep.mubr.msk.bf16.mxu0 %vm8226_vm10, %v12926_v37  ;;  %vm6172_vm14 = vmpackc.low %vm6762_vm7, %vm6763_vm13 }
 0x3ed   : > { %v4031_v28 = vmax.f32 %v3969_v38, 0.0  ;;  %v3970_v22 = vadd.f32 %v12116_v18, %v3725_v31  ;;  %7659 = vmatmul.mubr.msk.bf16.gmra.mrb[12].mxu1 %vm6167_vm12, %v13492_v9 }
 0x3ee   : > { %7662 = vmatprep.mubr.msk.bf16.mxu1 %vm8226_vm10, %v12926_v37  ;;  %v3080_v29 = vpop.permute.xlu0 %3079 }
 0x3ef   : > { %v12147_v59 = vpack.c.bf16 %v4031_v28, %v4030_v0  ;;  %v4032_v6 = vmax.f32 %v3970_v22, 0.0  ;;  %vm6765_vm0 = vcmp.ne.s32.totalorder %v3080_v29, 1  ;;  %v8150_v29 = vld [vmem:[%s12797_s10 + $0x28] sm:$0xff]  }
 0x3f0   : > { %v3400_v19 = vpop.f32.mrb[164].mxu1  ;;  %7821 = vmatpush3.bf16.msra.mxu1 %v8150_v29 }
 0x3f1   : > { %v4526_v30 = vpack.c.bf16 %v4032_v6, %v4031_v28  ;;  %v3730_v36 = vadd.f32 %v11760_v50, %v3400_v19  ;;  %v7556_v38 = vpop.f32.mrb[165].mxu1  ;;  %v13494_v28 = vpack.c.bf16 %v11771_v57, %v11766_v3  ;;  %v3083_v50 = vpop.permute.xlu1 %3082  ;;  %7822 = vmatprep.subr.bf16.mxu1 %v12926_v37 }
 0x3f2   : > { %v3403_v62 = vpop.f32.mrb[166].mxu1  ;;  %vm6764_vm15 = vcmp.ne.s32.totalorder %v3083_v50, 1 }
 0x3f3   : > { %v3971_v31 = vadd.f32 %v12116_v18, %v3730_v36  ;;  %v3733_v9 = vadd.f32 %v13493_v11, %v3403_v62  ;;  %v7557_v54 = vpop.f32.mrb[167].mxu1  ;;  %7971 = vmatmul.mubr.bf16.gmra.mrb[28].mxu0 %v4526_v30  ;;  %vm6177_vm2 = vmpackc.low %vm6764_vm15, %vm6765_vm0 }
 0x3f4   : > { %7974 = vmatprep.mubr.msk.bf16.mxu0 %vm8226_vm10, %v12926_v37  ;;  %v13495_v54 = vpack.c.bf16 %v11792_v63, %v11786_v48 }
 0x3f5   : > { %v4033_v0 = vmax.f32 %v3971_v31, 0.0  ;;  %v3972_v22 = vadd.f32 %v12116_v18, %v3733_v9  ;;  %7663 = vmatmul.mubr.msk.bf16.gmra.mrb[16].mxu1 %vm6172_vm14, %v13494_v28 }
 0x3f6   : > { %7666 = vmatprep.mubr.msk.bf16.mxu1 %vm8226_vm10, %v12926_v37 }
 0x3f7   : > { %v12160_v33 = vpack.c.bf16 %v4033_v0, %v4032_v6  ;;  %v4034_v19 = vmax.f32 %v3972_v22, 0.0 }
 0x3f8   : > { %v3408_v30 = vpop.f32.mrb[168].mxu1 }
 0x3f9   : > { %v4527_v36 = vpack.c.bf16 %v4034_v19, %v4033_v0  ;;  %v3738_v38 = vadd.f32 %v11780_v4, %v3408_v30  ;;  %v7560_v62 = vpop.f32.mrb[169].mxu1 }
 0x3fa   : > { %v3411_v31 = vpop.f32.mrb[170].mxu1 }
 0x3fb   : > { %v3973_v11 = vadd.f32 %v12116_v18, %v3738_v38  ;;  %v3741_v3 = vadd.f32 %v11782_v46, %v3411_v31  ;;  %v7561_v57 = vpop.f32.mrb[171].mxu1  ;;  %7975 = vmatmul.mubr.bf16.gmra.mrb[32].mxu0 %v4527_v36 }
 0x3fc   : > { %7978 = vmatprep.mubr.msk.bf16.mxu0 %vm8226_vm10, %v12926_v37 }
 0x3fd   : > { %v4035_v6 = vmax.f32 %v3973_v11, 0.0  ;;  %v3974_v9 = vadd.f32 %v12116_v18, %v3741_v3  ;;  %7667 = vmatmul.mubr.msk.bf16.gmra.mrb[20].mxu1 %vm6177_vm2, %v13495_v54 }
 0x3fe   : > { %7826 = vmatprep.mubr.msk.bf16.mxu1 %vm8226_vm10, %v12926_v37 }
 0x3ff   : > { %v12173_v4 = vpack.c.bf16 %v4035_v6, %v4034_v19  ;;  %v4036_v0 = vmax.f32 %v3974_v9, 0.0 }
 0x400   : > { %v3416_v46 = vpop.f32.mrb[172].mxu1 }
 0x401   : > { %v4528_v22 = vpack.c.bf16 %v4036_v0, %v4035_v6  ;;  %v3746_v28 = vadd.f32 %v11802_v2, %v3416_v46  ;;  %v7564_v50 = vpop.f32.mrb[173].mxu1 }
 0x402   : > { %v3419_v30 = vpop.f32.mrb[174].mxu1 }
 0x403   : > { %v3975_v36 = vadd.f32 %v12116_v18, %v3746_v28  ;;  %v3749_v48 = vadd.f32 %v11806_v17, %v3419_v30  ;;  %v7565_v63 = vpop.f32.mrb[175].mxu1  ;;  %7979 = vmatmul.mubr.bf16.gmra.mrb[36].mxu0 %v4528_v22 }
 0x404   : > { %7982 = vmatprep.mubr.msk.bf16.mxu0 %vm8226_vm10, %v12926_v37 }
 0x405   : > { %v4037_v19 = vmax.f32 %v3975_v36, 0.0  ;;  %v3976_v2 = vadd.f32 %v12116_v18, %v3749_v48 }
 0x407   : > { %v12185_v38 = vpack.c.bf16 %v4037_v19, %v4036_v0  ;;  %v4038_v62 = vmax.f32 %v3976_v2, 0.0 }
 0x408   : > { %v3424_v31 = vpop.f32.mrb[176].mxu1 }
 0x409   : > { %v4529_v11 = vpack.c.bf16 %v4038_v62, %v4037_v19  ;;  %v3754_v3 = vadd.f32 %v11813_v56, %v3424_v31  ;;  %v7568_v57 = vpop.f32.mrb[177].mxu1 }
 0x40a   : > { %v3427_v17 = vpop.f32.mrb[178].mxu1 }
 0x40b   : > { %v3977_v6 = vadd.f32 %v12116_v18, %v3754_v3  ;;  %v3757_v9 = vadd.f32 %v11817_v53, %v3427_v17  ;;  %v7569_v54 = vpop.f32.mrb[179].mxu1  ;;  %7983 = vmatmul.mubr.bf16.gmra.mrb[40].mxu0 %v4529_v11 }
 0x40c   : > { %7986 = vmatprep.mubr.msk.bf16.mxu0 %vm8226_vm10, %v12926_v37 }
 0x40d   : > { %v4039_v46 = vmax.f32 %v3977_v6, 0.0  ;;  %v3978_v0 = vadd.f32 %v12116_v18, %v3757_v9 }
 0x40f   : > { %v12193_v22 = vpack.c.bf16 %v4039_v46, %v4038_v62  ;;  %v4040_v28 = vmax.f32 %v3978_v0, 0.0 }
 0x410   : > { %v3432_v50 = vpop.f32.mrb[180].mxu1 }
 0x411   : > { %v4530_v29 = vpack.c.bf16 %v4040_v28, %v4039_v46  ;;  %v3762_v56 = vadd.f32 %v11824_v42, %v3432_v50  ;;  %v7572_v30 = vpop.f32.mrb[181].mxu1 }
 0x412   : > { %v3435_v36 = vpop.f32.mrb[182].mxu1 }
 0x413   : > { %v3979_v48 = vadd.f32 %v12116_v18, %v3762_v56  ;;  %v3765_v53 = vadd.f32 %v11828_v16, %v3435_v36  ;;  %v7573_v63 = vpop.f32.mrb[183].mxu1  ;;  %7987 = vmatmul.mubr.bf16.gmra.mrb[44].mxu0 %v4530_v29 }
 0x414   : > { %7990 = vmatprep.mubr.msk.bf16.mxu0 %vm8226_vm10, %v12926_v37 }
 0x415   : > { %v4041_v19 = vmax.f32 %v3979_v48, 0.0  ;;  %v3980_v2 = vadd.f32 %v12116_v18, %v3765_v53 }
 0x417   : > { %v12201_v62 = vpack.c.bf16 %v4041_v19, %v4040_v28  ;;  %v4042_v31 = vmax.f32 %v3980_v2, 0.0 }
 0x418   : > { %v3440_v11 = vpop.f32.mrb[184].mxu1 }
 0x419   : > { %v4531_v3 = vpack.c.bf16 %v4042_v31, %v4041_v19  ;;  %v3770_v42 = vadd.f32 %v11835_v44, %v3440_v11  ;;  %v7576_v57 = vpop.f32.mrb[185].mxu1 }
 0x41a   : > { %v3443_v17 = vpop.f32.mrb[186].mxu1 }
 0x41b   : > { %v3981_v6 = vadd.f32 %v12116_v18, %v3770_v42  ;;  %v3773_v16 = vadd.f32 %v11839_v32, %v3443_v17  ;;  %v7577_v9 = vpop.f32.mrb[187].mxu1  ;;  %7991 = vmatmul.mubr.bf16.gmra.mrb[48].mxu0 %v4531_v3  ;;  %v8151_v32 = vld [vmem:[%s12797_s10 + $0x30] sm:$0xff]  }
 0x41c   : > { %7994 = vmatprep.mubr.msk.bf16.mxu0 %vm8226_vm10, %v12926_v37  ;;  %7823 = vmatpush3.bf16.msra.mxu1 %v8151_v32 }
 0x41d   : > { %v4043_v54 = vmax.f32 %v3981_v6, 0.0  ;;  %v3982_v46 = vadd.f32 %v12116_v18, %v3773_v16  ;;  %7824 = vmatprep.subr.bf16.mxu1 %v12926_v37 }
 0x41f   : > { %v12209_v0 = vpack.c.bf16 %v4043_v54, %v4042_v31  ;;  %v4044_v28 = vmax.f32 %v3982_v46, 0.0 }
 0x420   : > { %v3448_v50 = vpop.f32.mrb[188].mxu1 }
 0x421   : > { %v4532_v29 = vpack.c.bf16 %v4044_v28, %v4043_v54  ;;  %v3778_v44 = vadd.f32 %v11846_v1, %v3448_v50  ;;  %v7580_v56 = vpop.f32.mrb[189].mxu1 }
 0x422   : > { %v3451_v30 = vpop.f32.mrb[190].mxu1 }
 0x423   : > { %v3983_v36 = vadd.f32 %v12116_v18, %v3778_v44  ;;  %v3781_v48 = vadd.f32 %v11850_v35, %v3451_v30  ;;  %v7581_v53 = vpop.f32.mrb[191].mxu1  ;;  %7995 = vmatmul.mubr.bf16.gmra.mrb[52].mxu0 %v4532_v29 }
 0x424   : > { %7998 = vmatprep.mubr.msk.bf16.mxu0 %vm8226_vm10, %v12926_v37 }
 0x425   : > { %v4045_v63 = vmax.f32 %v3983_v36, 0.0  ;;  %v3984_v1 = vadd.f32 %v12116_v18, %v3781_v48 }
 0x427   : > { %v12221_v19 = vpack.c.bf16 %v4045_v63, %v4044_v28  ;;  %v4046_v2 = vmax.f32 %v3984_v1, 0.0 }
 0x428   : > { %v3456_v31 = vpop.f32.mrb[192].mxu1 }
 0x429   : > { %v4533_v11 = vpack.c.bf16 %v4046_v2, %v4045_v63  ;;  %v3786_v3 = vadd.f32 %v11857_v13, %v3456_v31  ;;  %v7584_v42 = vpop.f32.mrb[193].mxu1 }
 0x42a   : > { %v3459_v35 = vpop.f32.mrb[194].mxu1 }
 0x42b   : > { %v3985_v57 = vadd.f32 %v12116_v18, %v3786_v3  ;;  %v3789_v17 = vadd.f32 %v11861_v60, %v3459_v35  ;;  %v7585_v6 = vpop.f32.mrb[195].mxu1  ;;  %7999 = vmatmul.mubr.bf16.gmra.mrb[56].mxu0 %v4533_v11 }
 0x42c   : > { %8002 = vmatprep.mubr.msk.bf16.mxu0 %vm8226_vm10, %v12926_v37 }
 0x42d   : > { %v4047_v16 = vmax.f32 %v3985_v57, 0.0  ;;  %v3986_v9 = vadd.f32 %v12116_v18, %v3789_v17 }
 0x42f   : > { %v12229_v54 = vpack.c.bf16 %v4047_v16, %v4046_v2  ;;  %v4048_v46 = vmax.f32 %v3986_v9, 0.0 }
 0x430   : > { %v3464_v28 = vpop.f32.mrb[196].mxu1 }
 0x431   : > { %v4534_v50 = vpack.c.bf16 %v4048_v46, %v4047_v16  ;;  %v3794_v13 = vadd.f32 %v11868_v49, %v3464_v28  ;;  %v7588_v29 = vpop.f32.mrb[197].mxu1 }
 0x432   : > { %v3467_v44 = vpop.f32.mrb[198].mxu1 }
 0x433   : > { %v3987_v56 = vadd.f32 %v12116_v18, %v3794_v13  ;;  %v3797_v60 = vadd.f32 %v11872_v21, %v3467_v44  ;;  %v7589_v32 = vpop.f32.mrb[199].mxu1  ;;  %8003 = vmatmul.mubr.bf16.gmra.mrb[60].mxu0 %v4534_v50 }
 0x434   : > { %8006 = vmatprep.mubr.msk.bf16.mxu0 %vm8226_vm10, %v12926_v37 }
 0x435   : > { %v4049_v30 = vmax.f32 %v3987_v56, 0.0  ;;  %v3988_v36 = vadd.f32 %v12116_v18, %v3797_v60 }
 0x437   : > { %v12237_v48 = vpack.c.bf16 %v4049_v30, %v4048_v46  ;;  %v4050_v53 = vmax.f32 %v3988_v36, 0.0 }
 0x438   : > { %v3472_v63 = vpop.f32.mrb[200].mxu1 }
 0x439   : > { %v4535_v1 = vpack.c.bf16 %v4050_v53, %v4049_v30  ;;  %v3802_v49 = vadd.f32 %v11879_v41, %v3472_v63  ;;  %v7592_v2 = vpop.f32.mrb[201].mxu1 }
 0x43a   : > { %v3475_v31 = vpop.f32.mrb[202].mxu1 }
 0x43b   : > { %v3989_v11 = vadd.f32 %v12116_v18, %v3802_v49  ;;  %v3805_v21 = vadd.f32 %v11883_v51, %v3475_v31  ;;  %v7593_v3 = vpop.f32.mrb[203].mxu1  ;;  %8007 = vmatmul.mubr.bf16.gmra.mrb[64].mxu0 %v4535_v1  ;;  %v8152_v51 = vld [vmem:[%s12797_s10 + $0x38] sm:$0xff]  }
 0x43c   : > { %8010 = vmatprep.mubr.msk.bf16.mxu0 %vm8226_vm10, %v12926_v37  ;;  %7825 = vmatpush3.bf16.msra.mxu1 %v8152_v51 }
 0x43d   : > { %v4051_v42 = vmax.f32 %v3989_v11, 0.0  ;;  %v3990_v35 = vadd.f32 %v12116_v18, %v3805_v21 }
 0x43f   : > { %v12245_v57 = vpack.c.bf16 %v4051_v42, %v4050_v53  ;;  %v4052_v17 = vmax.f32 %v3990_v35, 0.0 }
 0x440   : > { %v3480_v6 = vpop.f32.mrb[204].mxu1 }
 0x441   : > { %v4536_v16 = vpack.c.bf16 %v4052_v17, %v4051_v42  ;;  %v3810_v41 = vadd.f32 %v11894_v26, %v3480_v6  ;;  %v7596_v9 = vpop.f32.mrb[205].mxu1 }
 0x442   : > { %v3483_v46 = vpop.f32.mrb[206].mxu1 }
 0x443   : > { %v3991_v28 = vadd.f32 %v12116_v18, %v3810_v41  ;;  %v3813_v50 = vadd.f32 %v11898_v58, %v3483_v46  ;;  %v7597_v13 = vpop.f32.mrb[207].mxu1  ;;  %8011 = vmatmul.mubr.bf16.gmra.mrb[68].mxu0 %v4536_v16 }
 0x444   : > { %8014 = vmatprep.mubr.msk.bf16.mxu0 %vm8226_vm10, %v12926_v37 }
 0x445   : > { %v4053_v29 = vmax.f32 %v3991_v28, 0.0  ;;  %v3992_v44 = vadd.f32 %v12116_v18, %v3813_v50 }
 0x447   : > { %v12256_v26 = vpack.c.bf16 %v4053_v29, %v4052_v17  ;;  %v4054_v56 = vmax.f32 %v3992_v44, 0.0 }
 0x448   : > { %v3488_v60 = vpop.f32.mrb[208].mxu1 }
 0x449   : > { %v4537_v32 = vpack.c.bf16 %v4054_v56, %v4053_v29  ;;  %v3818_v30 = vadd.f32 %v11912_v40, %v3488_v60  ;;  %v7600_v36 = vpop.f32.mrb[209].mxu1 }
 0x44a   : > { %v3491_v53 = vpop.f32.mrb[210].mxu1 }
 0x44b   : > { %v3993_v58 = vadd.f32 %v12116_v18, %v3818_v30  ;;  %v3821_v63 = vadd.f32 %v11916_v25, %v3491_v53  ;;  %v7601_v1 = vpop.f32.mrb[211].mxu1  ;;  %8015 = vmatmul.mubr.bf16.gmra.mrb[72].mxu0 %v4537_v32 }
 0x44c   : > { %8018 = vmatprep.mubr.msk.bf16.mxu0 %vm8226_vm10, %v12926_v37 }
 0x44d   : > { %v4055_v49 = vmax.f32 %v3993_v58, 0.0  ;;  %v3994_v2 = vadd.f32 %v12116_v18, %v3821_v63 }
 0x44f   : > { %v12264_v31 = vpack.c.bf16 %v4055_v49, %v4054_v56  ;;  %v4056_v11 = vmax.f32 %v3994_v2, 0.0 }
 0x450   : > { %v3496_v21 = vpop.f32.mrb[212].mxu1 }
 0x451   : > { %v4538_v3 = vpack.c.bf16 %v4056_v11, %v4055_v49  ;;  %v3826_v40 = vadd.f32 %v11931_v61, %v3496_v21  ;;  %v7604_v42 = vpop.f32.mrb[213].mxu1 }
 0x452   : > { %v3499_v35 = vpop.f32.mrb[214].mxu1 }
 0x453   : > { %v3995_v17 = vadd.f32 %v12116_v18, %v3826_v40  ;;  %v3829_v25 = vadd.f32 %v11935_v23, %v3499_v35  ;;  %v7605_v6 = vpop.f32.mrb[215].mxu1  ;;  %8019 = vmatmul.mubr.bf16.gmra.mrb[76].mxu0 %v4538_v3 }
 0x454   : > { %8022 = vmatprep.mubr.msk.bf16.mxu0 %vm8226_vm10, %v12926_v37 }
 0x455   : > { %v4057_v16 = vmax.f32 %v3995_v17, 0.0  ;;  %v3996_v41 = vadd.f32 %v12116_v18, %v3829_v25 }
 0x457   : > { %v12272_v9 = vpack.c.bf16 %v4057_v16, %v4056_v11  ;;  %v4058_v51 = vmax.f32 %v3996_v41, 0.0 }
 0x458   : > { %v3504_v46 = vpop.f32.mrb[216].mxu1 }
 0x459   : > { %v4539_v28 = vpack.c.bf16 %v4058_v51, %v4057_v16  ;;  %v3834_v61 = vadd.f32 %v11943_v8, %v3504_v46  ;;  %v7608_v50 = vpop.f32.mrb[217].mxu1 }
 0x45a   : > { %v3507_v13 = vpop.f32.mrb[218].mxu1 }
 0x45b   : > { %v3997_v29 = vadd.f32 %v12116_v18, %v3834_v61  ;;  %v3837_v23 = vadd.f32 %v11950_v55, %v3507_v13  ;;  %v7609_v44 = vpop.f32.mrb[219].mxu1  ;;  %8023 = vmatmul.mubr.bf16.gmra.mrb[80].mxu0 %v4539_v28 }
 0x45c   : > { %8026 = vmatprep.mubr.msk.bf16.mxu0 %vm8226_vm10, %v12926_v37 }
 0x45d   : > { %v4059_v56 = vmax.f32 %v3997_v29, 0.0  ;;  %v3998_v60 = vadd.f32 %v12116_v18, %v3837_v23 }
 0x45f   : > { %v12280_v32 = vpack.c.bf16 %v4059_v56, %v4058_v51  ;;  %v4060_v30 = vmax.f32 %v3998_v60, 0.0 }
 0x460   : > { %v3512_v36 = vpop.f32.mrb[220].mxu1 }
 0x461   : > { %v4540_v53 = vpack.c.bf16 %v4060_v30, %v4059_v56  ;;  %v3842_v8 = vadd.f32 %v11966_v15, %v3512_v36  ;;  %v7612_v58 = vpop.f32.mrb[221].mxu1 }
 0x462   : > { %v3515_v63 = vpop.f32.mrb[222].mxu1 }
 0x463   : > { %v3999_v1 = vadd.f32 %v12116_v18, %v3842_v8  ;;  %v3845_v55 = vadd.f32 %v11970_v10, %v3515_v63  ;;  %v7613_v49 = vpop.f32.mrb[223].mxu1  ;;  %8027 = vmatmul.mubr.bf16.gmra.mrb[84].mxu0 %v4540_v53 }
 0x464   : > { %8030 = vmatprep.mubr.msk.bf16.mxu0 %vm8226_vm10, %v12926_v37  ;;  %v13498_v49 = vld [vmem:[#allocation118_spill] sm:$0xff] }
 0x465   : > { %v4061_v2 = vmax.f32 %v3999_v1, 0.0  ;;  %v4000_v11 = vadd.f32 %v12116_v18, %v3845_v55 }
 0x467   : > { %v12288_v21 = vpack.c.bf16 %v4061_v2, %v4060_v30  ;;  %v4062_v3 = vmax.f32 %v4000_v11, 0.0 }
 0x468   : > { %v3520_v40 = vpop.f32.mrb[224].mxu1 }
 0x469   : > { %v4541_v42 = vpack.c.bf16 %v4062_v3, %v4061_v2  ;;  %v3850_v15 = vadd.f32 %v11978_v43, %v3520_v40  ;;  %v7616_v35 = vpop.f32.mrb[225].mxu1 }
 0x46a   : > { %v3523_v17 = vpop.f32.mrb[226].mxu1 }
 0x46b   : > { %v4001_v25 = vadd.f32 %v12116_v18, %v3850_v15  ;;  %v3853_v10 = vadd.f32 %v11982_v39, %v3523_v17  ;;  %v7617_v6 = vpop.f32.mrb[227].mxu1  ;;  %8031 = vmatmul.mubr.bf16.gmra.mrb[88].mxu0 %v4541_v42  ;;  %v13496_v39 = vld [vmem:[#allocation18_spill] sm:$0xff] }
 0x46c   : > { %8034 = vmatprep.mubr.msk.bf16.mxu0 %vm8226_vm10, %v12926_v37 }
 0x46d   : > { %v4063_v16 = vmax.f32 %v4001_v25, 0.0  ;;  %v4002_v41 = vadd.f32 %v12116_v18, %v3853_v10  ;;  %v13499_v25 = vld [vmem:[#allocation20_spill] sm:$0xff] }
 0x46f   : > { %v12296_v51 = vpack.c.bf16 %v4063_v16, %v4062_v3  ;;  %v4064_v46 = vmax.f32 %v4002_v41, 0.0 }
 0x470   : > { %v3528_v28 = vpop.f32.mrb[228].mxu1 }
 0x471   : > { %v4542_v61 = vpack.c.bf16 %v4064_v46, %v4063_v16  ;;  %v3858_v43 = vadd.f32 %v11987_v45, %v3528_v28  ;;  %v7620_v50 = vpop.f32.mrb[229].mxu1  ;;  %v13497_v45 = vld [vmem:[#allocation19_spill] sm:$0xff] }
 0x472   : > { %v3531_v13 = vpop.f32.mrb[230].mxu1 }
 0x473   : > { %v4003_v29 = vadd.f32 %v12116_v18, %v3858_v43  ;;  %v3861_v23 = vadd.f32 %v13496_v39, %v3531_v13  ;;  %v7621_v44 = vpop.f32.mrb[231].mxu1  ;;  %8035 = vmatmul.mubr.bf16.gmra.mrb[92].mxu0 %v4542_v61 }
 0x474   : > { %8038 = vmatprep.mubr.msk.bf16.mxu0 %vm8226_vm10, %v12926_v37  ;;  %v13501_v44 = vld [vmem:[#allocation10_spill] sm:$0xff] }
 0x475   : > { %v4065_v56 = vmax.f32 %v4003_v29, 0.0  ;;  %v4004_v60 = vadd.f32 %v12116_v18, %v3861_v23 }
 0x477   : > { %v12304_v30 = vpack.c.bf16 %v4065_v56, %v4064_v46  ;;  %v4066_v36 = vmax.f32 %v4004_v60, 0.0  ;;  %v13500_v46 = vld [vmem:[#allocation21_spill] sm:$0xff] }
 0x478   : > { %v3536_v53 = vpop.f32.mrb[232].mxu1 }
 0x479   : > { %v4543_v8 = vpack.c.bf16 %v4066_v36, %v4065_v56  ;;  %v3866_v58 = vadd.f32 %v13497_v45, %v3536_v53  ;;  %v7624_v63 = vpop.f32.mrb[233].mxu1 }
 0x47a   : > { %v3539_v1 = vpop.f32.mrb[234].mxu1 }
 0x47b   : > { %v4005_v55 = vadd.f32 %v12116_v18, %v3866_v58  ;;  %v3869_v2 = vadd.f32 %v13498_v49, %v3539_v1  ;;  %v7625_v11 = vpop.f32.mrb[235].mxu1  ;;  %8039 = vmatmul.mubr.bf16.gmra.mrb[96].mxu0 %v4543_v8  ;;  %v13502_v8 = vld [vmem:[#allocation11_spill] sm:$0xff] }
 0x47c   : > { %8042 = vmatprep.mubr.msk.bf16.mxu0 %vm8226_vm10, %v12926_v37 }
 0x47d   : > { %v4067_v3 = vmax.f32 %v4005_v55, 0.0  ;;  %v4006_v40 = vadd.f32 %v12116_v18, %v3869_v2 }
 0x47f   : > { %v12312_v42 = vpack.c.bf16 %v4067_v3, %v4066_v36  ;;  %v4068_v15 = vmax.f32 %v4006_v40, 0.0 }
 0x480   : > { %v3544_v35 = vpop.f32.mrb[236].mxu1 }
 0x481   : > { %v4544_v17 = vpack.c.bf16 %v4068_v15, %v4067_v3  ;;  %v3874_v10 = vadd.f32 %v13499_v25, %v3544_v35  ;;  %v7628_v6 = vpop.f32.mrb[237].mxu1 }
 0x482   : > { %v3547_v16 = vpop.f32.mrb[238].mxu1 }
 0x483   : > { %v4007_v41 = vadd.f32 %v12116_v18, %v3874_v10  ;;  %v3877_v28 = vadd.f32 %v13500_v46, %v3547_v16  ;;  %v7629_v61 = vpop.f32.mrb[239].mxu1  ;;  %8043 = vmatmul.mubr.bf16.gmra.mrb[100].mxu0 %v4544_v17  ;;  %v13503_v17 = vld [vmem:[#allocation22_spill] sm:$0xff] }
 0x484   : > { %8046 = vmatprep.mubr.msk.bf16.mxu0 %vm8226_vm10, %v12926_v37 }
 0x485   : > { %v4069_v43 = vmax.f32 %v4007_v41, 0.0  ;;  %v4008_v50 = vadd.f32 %v12116_v18, %v3877_v28 }
 0x487   : > { %v12320_v13 = vpack.c.bf16 %v4069_v43, %v4068_v15  ;;  %v4070_v29 = vmax.f32 %v4008_v50, 0.0 }
 0x488   : > { %v3552_v39 = vpop.f32.mrb[240].mxu1 }
 0x489   : > { %v4545_v23 = vpack.c.bf16 %v4070_v29, %v4069_v43  ;;  %v3882_v56 = vadd.f32 %v13501_v44, %v3552_v39  ;;  %v7632_v60 = vpop.f32.mrb[241].mxu1 }
 0x48a   : > { %v3555_v36 = vpop.f32.mrb[242].mxu1 }
 0x48b   : > { %v4009_v53 = vadd.f32 %v12116_v18, %v3882_v56  ;;  %v3885_v45 = vadd.f32 %v13502_v8, %v3555_v36  ;;  %v7633_v58 = vpop.f32.mrb[243].mxu1  ;;  %8047 = vmatmul.mubr.bf16.gmra.mrb[104].mxu0 %v4545_v23  ;;  %v13505_v23 = vld [vmem:[#allocation88_spill] sm:$0xff] }
 0x48c   : > { %8050 = vmatprep.mubr.msk.bf16.mxu0 %vm8226_vm10, %v12926_v37 }
 0x48d   : > { %v4071_v63 = vmax.f32 %v4009_v53, 0.0  ;;  %v4010_v1 = vadd.f32 %v12116_v18, %v3885_v45 }
 0x48f   : > { %v12328_v55 = vpack.c.bf16 %v4071_v63, %v4070_v29  ;;  %v4072_v49 = vmax.f32 %v4010_v1, 0.0 }
 0x490   : > { %v3560_v2 = vpop.f32.mrb[244].mxu1 }
 0x491   : > { %v4546_v11 = vpack.c.bf16 %v4072_v49, %v4071_v63  ;;  %v3890_v3 = vadd.f32 %v12027_v7, %v3560_v2  ;;  %v7636_v40 = vpop.f32.mrb[245].mxu1  ;;  %v13504_v7 = vld [vmem:[#allocation23_spill] sm:$0xff]  ;;  %v13506_v63 = vld [vmem:[#allocation49_spill] sm:$0xff] }
 0x492   : > { %v3563_v15 = vpop.f32.mrb[246].mxu1 }
 0x493   : > { %v4011_v35 = vadd.f32 %v12116_v18, %v3890_v3  ;;  %v3893_v25 = vadd.f32 %v13503_v17, %v3563_v15  ;;  %v7637_v10 = vpop.f32.mrb[247].mxu1  ;;  %8051 = vmatmul.mubr.bf16.gmra.mrb[108].mxu0 %v4546_v11 }
 0x494   : > { %8054 = vmatprep.mubr.msk.bf16.mxu0 %vm8226_vm10, %v12926_v37 }
 0x495   : > { %v4073_v6 = vmax.f32 %v4011_v35, 0.0  ;;  %v4012_v16 = vadd.f32 %v12116_v18, %v3893_v25 }
 0x497   : > { %v12336_v41 = vpack.c.bf16 %v4073_v6, %v4072_v49  ;;  %v4074_v46 = vmax.f32 %v4012_v16, 0.0  ;;  %v13507_v16 = vld [vmem:[#allocation50_spill] sm:$0xff] }
 0x498   : > { %v3568_v28 = vpop.f32.mrb[248].mxu1 }
 0x499   : > { %v4547_v61 = vpack.c.bf16 %v4074_v46, %v4073_v6  ;;  %v3898_v43 = vadd.f32 %v13504_v7, %v3568_v28  ;;  %v7640_v50 = vpop.f32.mrb[249].mxu1 }
 0x49a   : > { %v3571_v29 = vpop.f32.mrb[250].mxu1 }
 0x49b   : > { %v4013_v39 = vadd.f32 %v12116_v18, %v3898_v43  ;;  %v3901_v44 = vadd.f32 %v13505_v23, %v3571_v29  ;;  %v7641_v56 = vpop.f32.mrb[251].mxu1  ;;  %8055 = vmatmul.mubr.bf16.gmra.mrb[112].mxu0 %v4547_v61 }
 0x49c   : > { %8058 = vmatprep.mubr.msk.bf16.mxu0 %vm8226_vm10, %v12926_v37 }
 0x49d   : > { %v4075_v60 = vmax.f32 %v4013_v39, 0.0  ;;  %v4014_v36 = vadd.f32 %v12116_v18, %v3901_v44 }
 0x49f   : > { %v12344_v53 = vpack.c.bf16 %v4075_v60, %v4074_v46  ;;  %v4076_v8 = vmax.f32 %v4014_v36, 0.0 }
 0x4a0   : > { %v3576_v45 = vpop.f32.mrb[252].mxu1 }
 0x4a1   : > { %v4548_v58 = vpack.c.bf16 %v4076_v8, %v4075_v60  ;;  %v3906_v1 = vadd.f32 %v13506_v63, %v3576_v45  ;;  %v7644_v49 = vpop.f32.mrb[253].mxu1 }
 0x4a2   : > { %v3579_v2 = vpop.f32.mrb[254].mxu1 }
 0x4a3   : > { %v4015_v11 = vadd.f32 %v12116_v18, %v3906_v1  ;;  %v3909_v3 = vadd.f32 %v12053_v34, %v3579_v2  ;;  %v7645_v40 = vpop.f32.mrb[255].mxu1  ;;  %8059 = vmatmul.mubr.bf16.gmra.mrb[116].mxu0 %v4548_v58 }
 0x4a4   : > { %8062 = vmatprep.mubr.msk.bf16.mxu0 %vm8226_vm10, %v12926_v37 }
 0x4a5   : > { %v4077_v15 = vmax.f32 %v4015_v11, 0.0  ;;  %v4016_v35 = vadd.f32 %v12116_v18, %v3909_v3 }
 0x4a7   : > { %v12352_v17 = vpack.c.bf16 %v4077_v15, %v4076_v8  ;;  %v4078_v25 = vmax.f32 %v4016_v35, 0.0 }
 0x4a8   : > { %v3584_v10 = vpop.f32.mrb[0].mxu1 }
 0x4a9   : > { %v4549_v6 = vpack.c.bf16 %v4078_v25, %v4077_v15  ;;  %v3914_v46 = vadd.f32 %v13507_v16, %v3584_v10  ;;  %v7648_v28 = vpop.f32.mrb[1].mxu1 }
 0x4aa   : > { %v3587_v61 = vpop.f32.mrb[2].mxu1 }
 0x4ab   : > { %v4017_v7 = vadd.f32 %v12116_v18, %v3914_v46  ;;  %v3917_v34 = vadd.f32 %v12062_v27, %v3587_v61  ;;  %v7649_v43 = vpop.f32.mrb[3].mxu1  ;;  %8063 = vmatmul.mubr.bf16.gmra.mrb[120].mxu0 %v4549_v6 }
 0x4ac   : > { %8066 = vmatprep.mubr.msk.bf16.mxu0 %vm8226_vm10, %v12926_v37 }
 0x4ad   : > { %v4079_v50 = vmax.f32 %v4017_v7, 0.0  ;;  %v4018_v29 = vadd.f32 %v12116_v18, %v3917_v34 }
 0x4af   : > { %v12360_v39 = vpack.c.bf16 %v4079_v50, %v4078_v25  ;;  %v4080_v23 = vmax.f32 %v4018_v29, 0.0 }
 0x4b0   : > { %v3592_v44 = vpop.f32.mrb[4].mxu1 }
 0x4b1   : > { %v4550_v56 = vpack.c.bf16 %v4080_v23, %v4079_v50  ;;  %v3922_v60 = vadd.f32 %v12067_v5, %v3592_v44  ;;  %v7652_v36 = vpop.f32.mrb[5].mxu1 }
 0x4b2   : > { %v3595_v8 = vpop.f32.mrb[6].mxu1 }
 0x4b3   : > { %v4019_v45 = vadd.f32 %v12116_v18, %v3922_v60  ;;  %v3925_v27 = vadd.f32 %v12071_v20, %v3595_v8  ;;  %v7653_v58 = vpop.f32.mrb[7].mxu1  ;;  %8067 = vmatmul.mubr.bf16.gmra.mrb[124].mxu0 %v4550_v56 }
 0x4b4   : > { %8070 = vmatprep.mubr.msk.bf16.mxu0 %vm8226_vm10, %v12926_v37 }
 0x4b5   : > { %v4081_v63 = vmax.f32 %v4019_v45, 0.0  ;;  %v4020_v1 = vadd.f32 %v12116_v18, %v3925_v27 }
 0x4b7   : > { %v12368_v49 = vpack.c.bf16 %v4081_v63, %v4080_v23  ;;  %v4082_v2 = vmax.f32 %v4020_v1, 0.0 }
 0x4b8   : > { %v3600_v11 = vpop.f32.mrb[8].mxu1 }
 0x4b9   : > { %v4551_v3 = vpack.c.bf16 %v4082_v2, %v4081_v63  ;;  %v3930_v5 = vadd.f32 %v12076_v47, %v3600_v11  ;;  %v7656_v40 = vpop.f32.mrb[9].mxu1 }
 0x4ba   : > { %v3603_v15 = vpop.f32.mrb[10].mxu1 }
 0x4bb   : > { %v4021_v35 = vadd.f32 %v12116_v18, %v3930_v5  ;;  %v3933_v20 = vadd.f32 %v12080_v12, %v3603_v15  ;;  %v7657_v25 = vpop.f32.mrb[11].mxu1  ;;  %8071 = vmatmul.mubr.bf16.gmra.mrb[128].mxu0 %v4551_v3  ;;  %v13509_v15 = vld [vmem:[#allocation25_spill] sm:$0xff] }
 0x4bc   : > { %8074 = vmatprep.mubr.msk.bf16.mxu0 %vm8226_vm10, %v12926_v37 }
 0x4bd   : > { %v4083_v10 = vmax.f32 %v4021_v35, 0.0  ;;  %v4022_v6 = vadd.f32 %v12116_v18, %v3933_v20 }
 0x4be   : > { %v12376_v16 = vpop.f32.mrb[24].mxu0 }
 0x4bf   : > { %v12378_v46 = vpack.c.bf16 %v4083_v10, %v4082_v2  ;;  %v4084_v28 = vmax.f32 %v4022_v6, 0.0  ;;  %v7968_v47 = vpop.f32.mrb[25].mxu0  ;;  %v13508_v2 = vld [vmem:[#allocation24_spill] sm:$0xff] }
 0x4c0   : > { %v3608_v61 = vpop.f32.mrb[12].mxu1  ;;  %v12380_v7 = vpop.f32.mrb[26].mxu0 }
 0x4c1   : > { %v4552_v34 = vpack.c.bf16 %v4084_v28, %v4083_v10  ;;  %v3938_v12 = vadd.f32 %v12089_v14, %v3608_v61  ;;  %v7660_v43 = vpop.f32.mrb[13].mxu1  ;;  %v7969_v50 = vpop.f32.mrb[27].mxu0 }
 0x4c2   : > { %v3611_v29 = vpop.f32.mrb[14].mxu1  ;;  %v13510_v50 = vld [vmem:[#allocation62_spill] sm:$0xff] }
 0x4c3   : > { %v4023_v23 = vadd.f32 %v12116_v18, %v3938_v12  ;;  %v3941_v44 = vadd.f32 %v12093_v24, %v3611_v29  ;;  %v7661_v56 = vpop.f32.mrb[15].mxu1  ;;  %8075 = vmatmul.mubr.bf16.gmra.mrb[132].mxu0 %v4552_v34 }
 0x4c4   : > { %8078 = vmatprep.mubr.msk.bf16.mxu0 %vm8226_vm10, %v12926_v37 }
 0x4c5   : > { %v4085_v60 = vmax.f32 %v4023_v23, 0.0  ;;  %v4024_v36 = vadd.f32 %v12116_v18, %v3941_v44 }
 0x4c6   : > { %v12388_v8 = vpop.f32.mrb[28].mxu0 }
 0x4c7   : > { %v12390_v45 = vpack.c.bf16 %v4085_v60, %v4084_v28  ;;  %v4086_v14 = vmax.f32 %v4024_v36, 0.0  ;;  %v7972_v27 = vpop.f32.mrb[29].mxu0  ;;  %v13511_v36 = vld [vmem:[#allocation121_spill] sm:$0xff] }
 0x4c8   : > { %v3616_v58 = vpop.f32.mrb[16].mxu1  ;;  %v12392_v63 = vpop.f32.mrb[30].mxu0 }
 0x4c9   : > { %v4553_v1 = vpack.c.bf16 %v4086_v14, %v4085_v60  ;;  %v3946_v24 = vadd.f32 %v13508_v2, %v3616_v58  ;;  %v7664_v11 = vpop.f32.mrb[17].mxu1  ;;  %v7973_v3 = vpop.f32.mrb[31].mxu0 }
 0x4ca   : > { %v3619_v5 = vpop.f32.mrb[18].mxu1 }
 0x4cb   : > { %v4025_v40 = vadd.f32 %v12116_v18, %v3946_v24  ;;  %v3949_v35 = vadd.f32 %v13509_v15, %v3619_v5  ;;  %v7665_v20 = vpop.f32.mrb[19].mxu1  ;;  %8079 = vmatmul.mubr.bf16.gmra.mrb[136].mxu0 %v4553_v1  ;;  %v4220_v1 = vpop.permute.xlu1 %4219 }
 0x4cc   : > { %8082 = vmatprep.mubr.msk.bf16.mxu0 %vm8226_vm10, %v12926_v37  ;;  %vm6766_vm1 = vcmp.ne.s32.totalorder %v4220_v1, 1  ;;  %v13512_v20 = vmax.f32 %v12123_v52, 0.0 }
 0x4cd   : > { %v4087_v25 = vmax.f32 %v4025_v40, 0.0  ;;  %v4026_v10 = vadd.f32 %v12116_v18, %v3949_v35 }
 0x4ce   : > { %v12400_v6 = vpop.f32.mrb[32].mxu0 }
 0x4cf   : > { %v12402_v28 = vpack.c.bf16 %v4087_v25, %v4086_v14  ;;  %v4088_v47 = vmax.f32 %v4026_v10, 0.0  ;;  %v7976_v61 = vpop.f32.mrb[33].mxu0  ;;  %v4217_v14 = vpop.permute.xlu0 %4216 }
 0x4d0   : > { %v3624_v34 = vpop.f32.mrb[20].mxu1  ;;  %v12404_v12 = vpop.f32.mrb[34].mxu0  ;;  %vm6767_vm3 = vcmp.ne.s32.totalorder %v4217_v14, 1 }
 0x4d1   : > { %v4554_v43 = vpack.c.bf16 %v4088_v47, %v4087_v25  ;;  %v3954_v29 = vadd.f32 %v13510_v50, %v3624_v34  ;;  %v7668_v23 = vpop.f32.mrb[21].mxu1  ;;  %v7977_v44 = vpop.f32.mrb[35].mxu0  ;;  %vm6199_vm4 = vmpackc.low %vm6766_vm1, %vm6767_vm3 }
 0x4d2   : > { %v3627_v56 = vpop.f32.mrb[22].mxu1  ;;  %v4226_v61 = vpop.permute.xlu1 %4225 }
 0x4d3   : > { %v4027_v60 = vadd.f32 %v12116_v18, %v3954_v29  ;;  %v3957_v27 = vadd.f32 %v13511_v36, %v3627_v56  ;;  %v7669_v58 = vpop.f32.mrb[23].mxu1  ;;  %8083 = vmatmul.mubr.bf16.gmra.mrb[140].mxu0 %v4554_v43  ;;  %vm6768_vm5 = vcmp.ne.s32.totalorder %v4226_v61, 1 }
 0x4d4   : > { %8086 = vmatprep.mubr.msk.bf16.mxu0 %vm8226_vm10, %v12926_v37 }
 0x4d5   : > { %v4089_v2 = vmax.f32 %v4027_v60, 0.0  ;;  %v4028_v24 = vadd.f32 %v12116_v18, %v3957_v27  ;;  %v4223_v18 = vpop.permute.xlu0 %4222 }
 0x4d6   : > { %v12412_v11 = vpop.f32.mrb[36].mxu0  ;;  %vm6769_vm6 = vcmp.ne.s32.totalorder %v4223_v18, 1  ;;  %v4232_v52 = vpop.permute.xlu1 %4231 }
 0x4d7   : > { %v12414_v3 = vpack.c.bf16 %v4089_v2, %v4088_v47  ;;  %v4090_v5 = vmax.f32 %v4028_v24, 0.0  ;;  %v7980_v40 = vpop.f32.mrb[37].mxu0  ;;  %vm6204_vm8 = vmpackc.low %vm6768_vm5, %vm6769_vm6  ;;  %vm6770_vm9 = vcmp.ne.s32.totalorder %v4232_v52, 1 }
 0x4d8   : > { %v12416_v15 = vpop.f32.mrb[38].mxu0 }
 0x4d9   : > { %v4555_v35 = vpack.c.bf16 %v4090_v5, %v4089_v2  ;;  %v6200_v25 = vpack.c.bf16 %v13512_v20, %v4090_v5  ;;  %v7981_v10 = vpop.f32.mrb[39].mxu0  ;;  %v4229_v29 = vpop.permute.xlu0 %4228 }
 0x4da   : > { %vm6771_vm11 = vcmp.ne.s32.totalorder %v4229_v29, 1  ;;  %v4238_v36 = vpop.permute.xlu1 %4237 }
 0x4db   : > { %7827 = vmatmul.mubr.msk.bf16.vlgmr.msra.gmra.mrb[24].mxu1 %vm6199_vm4, %v6200_v25  ;;  %8087 = vmatmul.mubr.bf16.gmra.mrb[144].mxu0 %v4555_v35  ;;  %vm6209_vm12 = vmpackc.low %vm6770_vm9, %vm6771_vm11  ;;  %vm6772_vm7 = vcmp.ne.s32.totalorder %v4238_v36, 1 }
 0x4dc   : > { %7830 = vmatprep.mubr.msk.bf16.mxu1 %vm8226_vm10, %v12926_v37 }
 0x4dd   : > { %v4235_v27 = vpop.permute.xlu0 %4234 }
 0x4de   : > { %v12422_v34 = vpop.f32.mrb[40].mxu0  ;;  %vm6773_vm13 = vcmp.ne.s32.totalorder %v4235_v27, 1  ;;  %v4244_v2 = vpop.permute.xlu1 %4243 }
 0x4df   : > { %v7984_v47 = vpop.f32.mrb[41].mxu0  ;;  %vm6214_vm14 = vmpackc.low %vm6772_vm7, %vm6773_vm13  ;;  %vm6774_vm15 = vcmp.ne.s32.totalorder %v4244_v2, 1 }
 0x4e0   : > { %v12424_v43 = vpop.f32.mrb[42].mxu0 }
 0x4e1   : > { %v7985_v50 = vpop.f32.mrb[43].mxu0  ;;  %v4241_v24 = vpop.permute.xlu0 %4240 }
 0x4e2   : > { %vm6775_vm0 = vcmp.ne.s32.totalorder %v4241_v24, 1  ;;  %v4250_v20 = vpop.permute.xlu1 %4249 }
 0x4e3   : > { %7831 = vmatmul.mubr.msk.bf16.gmra.mrb[28].mxu1 %vm6204_vm8, %v12147_v59  ;;  %vm6219_vm2 = vmpackc.low %vm6774_vm15, %vm6775_vm0  ;;  %vm6776_vm1 = vcmp.ne.s32.totalorder %v4250_v20, 1 }
 0x4e4   : > { %7834 = vmatprep.mubr.msk.bf16.mxu1 %vm8226_vm10, %v12926_v37 }
 0x4e5   : > { %v4247_v25 = vpop.permute.xlu0 %4246 }
 0x4e6   : > { %v12429_v23 = vpop.f32.mrb[44].mxu0  ;;  %vm6777_vm3 = vcmp.ne.s32.totalorder %v4247_v25, 1  ;;  %v4256_v47 = vpop.permute.xlu1 %4255 }
 0x4e7   : > { %v7988_v44 = vpop.f32.mrb[45].mxu0  ;;  %vm6224_vm4 = vmpackc.low %vm6776_vm1, %vm6777_vm3  ;;  %vm6778_vm5 = vcmp.ne.s32.totalorder %v4256_v47, 1 }
 0x4e8   : > { %v12431_v56 = vpop.f32.mrb[46].mxu0 }
 0x4e9   : > { %v7989_v60 = vpop.f32.mrb[47].mxu0  ;;  %v4253_v50 = vpop.permute.xlu0 %4252 }
 0x4ea   : > { %vm6779_vm6 = vcmp.ne.s32.totalorder %v4253_v50, 1  ;;  %v4262_v60 = vpop.permute.xlu1 %4261 }
 0x4eb   : > { %7835 = vmatmul.mubr.msk.bf16.gmra.mrb[32].mxu1 %vm6209_vm12, %v12160_v33  ;;  %vm6229_vm8 = vmpackc.low %vm6778_vm5, %vm6779_vm6  ;;  %vm6780_vm9 = vcmp.ne.s32.totalorder %v4262_v60, 1 }
 0x4ec   : > { %7838 = vmatprep.mubr.msk.bf16.mxu1 %vm8226_vm10, %v12926_v37 }
 0x4ed   : > { %v4259_v36 = vpop.permute.xlu0 %4258 }
 0x4ee   : > { %v12436_v59 = vpop.f32.mrb[48].mxu0  ;;  %vm6781_vm11 = vcmp.ne.s32.totalorder %v4259_v36, 1  ;;  %v4268_v2 = vpop.permute.xlu1 %4267 }
 0x4ef   : > { %v7992_v58 = vpop.f32.mrb[49].mxu0  ;;  %vm6234_vm12 = vmpackc.low %vm6780_vm9, %vm6781_vm11  ;;  %vm6782_vm7 = vcmp.ne.s32.totalorder %v4268_v2, 1 }
 0x4f0   : > { %v12438_v1 = vpop.f32.mrb[50].mxu0 }
 0x4f1   : > { %v7993_v14 = vpop.f32.mrb[51].mxu0  ;;  %v4265_v24 = vpop.permute.xlu0 %4264 }
 0x4f2   : > { %vm6783_vm13 = vcmp.ne.s32.totalorder %v4265_v24, 1  ;;  %v4274_v25 = vpop.permute.xlu1 %4273 }
 0x4f3   : > { %7839 = vmatmul.mubr.msk.bf16.gmra.mrb[36].mxu1 %vm6214_vm14, %v12173_v4  ;;  %vm6239_vm14 = vmpackc.low %vm6782_vm7, %vm6783_vm13  ;;  %vm6784_vm15 = vcmp.ne.s32.totalorder %v4274_v25, 1 }
 0x4f4   : > { %7842 = vmatprep.mubr.msk.bf16.mxu1 %vm8226_vm10, %v12926_v37 }
 0x4f6   : > { %v12443_v33 = vpop.f32.mrb[52].mxu0 }
 0x4f7   : > { %v7996_v5 = vpop.f32.mrb[53].mxu0 }
 0x4f8   : > { %v12445_v40 = vpop.f32.mrb[54].mxu0 }
 0x4f9   : > { %v7997_v35 = vpop.f32.mrb[55].mxu0 }
 0x4fb   : > { %7843 = vmatmul.mubr.msk.bf16.gmra.mrb[40].mxu1 %vm6219_vm2, %v12185_v38 }
 0x4fc   : > { %7846 = vmatprep.mubr.msk.bf16.mxu1 %vm8226_vm10, %v12926_v37 }
 0x4fe   : > { %v12450_v4 = vpop.f32.mrb[56].mxu0 }
 0x4ff   : > { %v8000_v10 = vpop.f32.mrb[57].mxu0 }
 0x500   : > { %v12452_v61 = vpop.f32.mrb[58].mxu0  ;;  %v4271_v10 = vpop.permute.xlu0 %4270 }
 0x501   : > { %v8001_v18 = vpop.f32.mrb[59].mxu0  ;;  %vm6785_vm0 = vcmp.ne.s32.totalorder %v4271_v10, 1 }
 0x502   : > { %vm6244_vm2 = vmpackc.low %vm6784_vm15, %vm6785_vm0 }
 0x503   : > { %7847 = vmatmul.mubr.msk.bf16.gmra.mrb[44].mxu1 %vm6224_vm4, %v12193_v22 }
 0x504   : > { %7850 = vmatprep.mubr.msk.bf16.mxu1 %vm8226_vm10, %v12926_v37 }
 0x506   : > { %v12457_v38 = vpop.f32.mrb[60].mxu0 }
 0x507   : > { %v8004_v52 = vpop.f32.mrb[61].mxu0 }
 0x508   : > { %v12459_v29 = vpop.f32.mrb[62].mxu0  ;;  %v4280_v52 = vpop.permute.xlu1 %4279 }
 0x509   : > { %v8005_v44 = vpop.f32.mrb[63].mxu0  ;;  %vm6786_vm1 = vcmp.ne.s32.totalorder %v4280_v52, 1 }
 0x50a   : > { %v4277_v44 = vpop.permute.xlu0 %4276 }
 0x50b   : > { %7851 = vmatmul.mubr.msk.bf16.gmra.mrb[48].mxu1 %vm6229_vm8, %v12201_v62  ;;  %vm6787_vm3 = vcmp.ne.s32.totalorder %v4277_v44, 1 }
 0x50c   : > { %7854 = vmatprep.mubr.msk.bf16.mxu1 %vm8226_vm10, %v12926_v37  ;;  %vm6249_vm4 = vmpackc.low %vm6786_vm1, %vm6787_vm3 }
 0x50e   : > { %v12464_v22 = vpop.f32.mrb[64].mxu0  ;;  %v4283_v2 = vpop.permute.xlu0 %4282 }
 0x50f   : > { %v8008_v27 = vpop.f32.mrb[65].mxu0  ;;  %vm6789_vm6 = vcmp.ne.s32.totalorder %v4283_v2, 1 }
 0x510   : > { %v12466_v58 = vpop.f32.mrb[66].mxu0 }
 0x511   : > { %v8009_v14 = vpop.f32.mrb[67].mxu0 }
 0x512   : > { %v4286_v14 = vpop.permute.xlu1 %4285  ;;  %v4289_v10 = vpop.permute.xlu0 %4288 }
 0x513   : > { %7855 = vmatmul.mubr.msk.bf16.gmra.mrb[52].mxu1 %vm6234_vm12, %v12209_v0  ;;  %vm6788_vm5 = vcmp.ne.s32.totalorder %v4286_v14, 1  ;;  %vm6791_vm11 = vcmp.ne.s32.totalorder %v4289_v10, 1 }
 0x514   : > { %7858 = vmatprep.mubr.msk.bf16.mxu1 %vm8226_vm10, %v12926_v37  ;;  %vm6254_vm8 = vmpackc.low %vm6788_vm5, %vm6789_vm6 }
 0x516   : > { %v12471_v62 = vpop.f32.mrb[68].mxu0  ;;  %v4292_v25 = vpop.permute.xlu1 %4291 }
 0x517   : > { %v8012_v5 = vpop.f32.mrb[69].mxu0  ;;  %vm6790_vm9 = vcmp.ne.s32.totalorder %v4292_v25, 1 }
 0x518   : > { %v12473_v35 = vpop.f32.mrb[70].mxu0  ;;  %vm6259_vm12 = vmpackc.low %vm6790_vm9, %vm6791_vm11 }
 0x519   : > { %v8013_v20 = vpop.f32.mrb[71].mxu0 }
 0x51a   : > { %v4298_v44 = vpop.permute.xlu1 %4297 }
 0x51b   : > { %7859 = vmatmul.mubr.msk.bf16.gmra.mrb[56].mxu1 %vm6239_vm14, %v12221_v19  ;;  %vm6792_vm7 = vcmp.ne.s32.totalorder %v4298_v44, 1 }
 0x51c   : > { %7862 = vmatprep.mubr.msk.bf16.mxu1 %vm8226_vm10, %v12926_v37 }
 0x51e   : > { %v12478_v0 = vpop.f32.mrb[72].mxu0 }
 0x51f   : > { %v8016_v18 = vpop.f32.mrb[73].mxu0 }
 0x520   : > { %v12480_v47 = vpop.f32.mrb[74].mxu0 }
 0x521   : > { %v8017_v50 = vpop.f32.mrb[75].mxu0 }
 0x523   : > { %7863 = vmatmul.mubr.msk.bf16.gmra.mrb[60].mxu1 %vm6244_vm2, %v12229_v54 }
 0x524   : > { %7866 = vmatprep.mubr.msk.bf16.mxu1 %vm8226_vm10, %v12926_v37 }
 0x526   : > { %v12485_v19 = vpop.f32.mrb[76].mxu0 }
 0x527   : > { %v8020_v60 = vpop.f32.mrb[77].mxu0 }
 0x528   : > { %v12487_v36 = vpop.f32.mrb[78].mxu0  ;;  %v4295_v60 = vpop.permute.xlu0 %4294 }
 0x529   : > { %v8021_v27 = vpop.f32.mrb[79].mxu0  ;;  %vm6793_vm13 = vcmp.ne.s32.totalorder %v4295_v60, 1 }
 0x52a   : > { %vm6264_vm14 = vmpackc.low %vm6792_vm7, %vm6793_vm13 }
 0x52b   : > { %7867 = vmatmul.mubr.msk.bf16.gmra.mrb[64].mxu1 %vm6249_vm4, %v12237_v48 }
 0x52c   : > { %7870 = vmatprep.mubr.msk.bf16.mxu1 %vm8226_vm10, %v12926_v37 }
 0x52e   : > { %v12492_v54 = vpop.f32.mrb[80].mxu0 }
 0x52f   : > { %v8024_v24 = vpop.f32.mrb[81].mxu0 }
 0x530   : > { %v12494_v5 = vpop.f32.mrb[82].mxu0  ;;  %v4304_v24 = vpop.permute.xlu1 %4303 }
 0x531   : > { %v8025_v20 = vpop.f32.mrb[83].mxu0  ;;  %vm6794_vm15 = vcmp.ne.s32.totalorder %v4304_v24, 1 }
 0x532   : > { %v4301_v20 = vpop.permute.xlu0 %4300 }
 0x533   : > { %7871 = vmatmul.mubr.msk.bf16.gmra.mrb[68].mxu1 %vm6254_vm8, %v12245_v57  ;;  %vm6795_vm0 = vcmp.ne.s32.totalorder %v4301_v20, 1 }
 0x534   : > { %7874 = vmatprep.mubr.msk.bf16.mxu1 %vm8226_vm10, %v12926_v37  ;;  %vm6269_vm2 = vmpackc.low %vm6794_vm15, %vm6795_vm0 }
 0x536   : > { %v12499_v48 = vpop.f32.mrb[84].mxu0  ;;  %v4307_v44 = vpop.permute.xlu0 %4306 }
 0x537   : > { %v8028_v18 = vpop.f32.mrb[85].mxu0  ;;  %vm6797_vm3 = vcmp.ne.s32.totalorder %v4307_v44, 1 }
 0x538   : > { %v12501_v50 = vpop.f32.mrb[86].mxu0 }
 0x539   : > { %v8029_v52 = vpop.f32.mrb[87].mxu0 }
 0x53a   : > { %v4310_v52 = vpop.permute.xlu1 %4309  ;;  %v4313_v20 = vpop.permute.xlu0 %4312 }
 0x53b   : > { %7875 = vmatmul.mubr.msk.bf16.gmra.mrb[72].mxu1 %vm6259_vm12, %v12256_v26  ;;  %vm6796_vm1 = vcmp.ne.s32.totalorder %v4310_v52, 1  ;;  %vm6799_vm6 = vcmp.ne.s32.totalorder %v4313_v20, 1 }
 0x53c   : > { %7878 = vmatprep.mubr.msk.bf16.mxu1 %vm8226_vm10, %v12926_v37  ;;  %vm6274_vm4 = vmpackc.low %vm6796_vm1, %vm6797_vm3 }
 0x53e   : > { %v12506_v57 = vpop.f32.mrb[88].mxu0  ;;  %v4316_v24 = vpop.permute.xlu1 %4315 }
 0x53f   : > { %v8032_v27 = vpop.f32.mrb[89].mxu0  ;;  %vm6798_vm5 = vcmp.ne.s32.totalorder %v4316_v24, 1 }
 0x540   : > { %v12508_v14 = vpop.f32.mrb[90].mxu0  ;;  %vm6279_vm8 = vmpackc.low %vm6798_vm5, %vm6799_vm6 }
 0x541   : > { %v8033_v2 = vpop.f32.mrb[91].mxu0 }
 0x542   : > { %v4322_v44 = vpop.permute.xlu1 %4321 }
 0x543   : > { %7879 = vmatmul.mubr.msk.bf16.gmra.mrb[76].mxu1 %vm6264_vm14, %v12264_v31  ;;  %vm6800_vm9 = vcmp.ne.s32.totalorder %v4322_v44, 1 }
 0x544   : > { %7882 = vmatprep.mubr.msk.bf16.mxu1 %vm8226_vm10, %v12926_v37 }
 0x546   : > { %v12513_v26 = vpop.f32.mrb[92].mxu0  ;;  %v4328_v20 = vpop.permute.xlu1 %4327 }
 0x547   : > { %v8036_v25 = vpop.f32.mrb[93].mxu0  ;;  %vm6802_vm7 = vcmp.ne.s32.totalorder %v4328_v20, 1 }
 0x548   : > { %v12515_v10 = vpop.f32.mrb[94].mxu0 }
 0x549   : > { %v8037_v18 = vpop.f32.mrb[95].mxu0 }
 0x54b   : > { %7883 = vmatmul.mubr.msk.bf16.gmra.mrb[80].mxu1 %vm6269_vm2, %v12272_v9 }
 0x54c   : > { %7886 = vmatprep.mubr.msk.bf16.mxu1 %vm8226_vm10, %v12926_v37 }
 0x54e   : > { %v12520_v31 = vpop.f32.mrb[96].mxu0 }
 0x54f   : > { %v8040_v60 = vpop.f32.mrb[97].mxu0 }
 0x550   : > { %v12522_v27 = vpop.f32.mrb[98].mxu0  ;;  %v4319_v60 = vpop.permute.xlu0 %4318 }
 0x551   : > { %v8041_v2 = vpop.f32.mrb[99].mxu0  ;;  %vm6801_vm11 = vcmp.ne.s32.totalorder %v4319_v60, 1  ;;  %v4334_v60 = vpop.permute.xlu1 %4333 }
 0x552   : > { %vm6284_vm12 = vmpackc.low %vm6800_vm9, %vm6801_vm11  ;;  %vm6804_vm15 = vcmp.ne.s32.totalorder %v4334_v60, 1 }
 0x553   : > { %7887 = vmatmul.mubr.msk.bf16.gmra.mrb[84].mxu1 %vm6274_vm4, %v12280_v32 }
 0x554   : > { %7890 = vmatprep.mubr.msk.bf16.mxu1 %vm8226_vm10, %v12926_v37 }
 0x556   : > { %v12527_v9 = vpop.f32.mrb[100].mxu0 }
 0x557   : > { %13513 = vst [vmem:[#allocation122_spill] sm:$0xff] %v12527_v9  ;;  %v8044_v25 = vpop.f32.mrb[101].mxu0 }
 0x558   : > { %v12529_v18 = vpop.f32.mrb[102].mxu0  ;;  %v4325_v25 = vpop.permute.xlu0 %4324 }
 0x559   : > { %v8045_v52 = vpop.f32.mrb[103].mxu0  ;;  %vm6803_vm13 = vcmp.ne.s32.totalorder %v4325_v25, 1  ;;  %v4340_v25 = vpop.permute.xlu1 %4339 }
 0x55a   : > { %vm6289_vm14 = vmpackc.low %vm6802_vm7, %vm6803_vm13  ;;  %vm6806_vm1 = vcmp.ne.s32.totalorder %v4340_v25, 1 }
 0x55b   : > { %7891 = vmatmul.mubr.msk.bf16.gmra.mrb[88].mxu1 %vm6279_vm8, %v12288_v21 }
 0x55c   : > { %7894 = vmatprep.mubr.msk.bf16.mxu1 %vm8226_vm10, %v12926_v37 }
 0x55e   : > { %v12534_v32 = vpop.f32.mrb[104].mxu0 }
 0x55f   : > { %13514 = vst [vmem:[#allocation26_spill] sm:$0xff] %v12534_v32  ;;  %v8048_v2 = vpop.f32.mrb[105].mxu0 }
 0x560   : > { %v12536_v9 = vpop.f32.mrb[106].mxu0  ;;  %v4331_v2 = vpop.permute.xlu0 %4330 }
 0x561   : > { %v8049_v24 = vpop.f32.mrb[107].mxu0  ;;  %vm6805_vm0 = vcmp.ne.s32.totalorder %v4331_v2, 1  ;;  %v4346_v2 = vpop.permute.xlu1 %4345 }
 0x562   : > { %vm6294_vm2 = vmpackc.low %vm6804_vm15, %vm6805_vm0  ;;  %vm6808_vm5 = vcmp.ne.s32.totalorder %v4346_v2, 1 }
 0x563   : > { %7895 = vmatmul.mubr.msk.bf16.gmra.mrb[92].mxu1 %vm6284_vm12, %v12296_v51 }
 0x564   : > { %7898 = vmatprep.mubr.msk.bf16.mxu1 %vm8226_vm10, %v12926_v37 }
 0x566   : > { %v12541_v21 = vpop.f32.mrb[108].mxu0 }
 0x567   : > { %13515 = vst [vmem:[#allocation27_spill] sm:$0xff] %v12541_v21  ;;  %v8052_v52 = vpop.f32.mrb[109].mxu0 }
 0x568   : > { %v12543_v32 = vpop.f32.mrb[110].mxu0  ;;  %v4337_v52 = vpop.permute.xlu0 %4336 }
 0x569   : > { %v8053_v44 = vpop.f32.mrb[111].mxu0  ;;  %vm6807_vm3 = vcmp.ne.s32.totalorder %v4337_v52, 1  ;;  %v4352_v52 = vpop.permute.xlu1 %4351 }
 0x56a   : > { %vm6299_vm4 = vmpackc.low %vm6806_vm1, %vm6807_vm3  ;;  %vm6810_vm9 = vcmp.ne.s32.totalorder %v4352_v52, 1 }
 0x56b   : > { %7899 = vmatmul.mubr.msk.bf16.gmra.mrb[96].mxu1 %vm6289_vm14, %v12304_v30 }
 0x56c   : > { %7902 = vmatprep.mubr.msk.bf16.mxu1 %vm8226_vm10, %v12926_v37 }
 0x56e   : > { %v12548_v51 = vpop.f32.mrb[112].mxu0 }
 0x56f   : > { %13516 = vst [vmem:[#allocation71_spill] sm:$0xff] %v12548_v51  ;;  %v8056_v24 = vpop.f32.mrb[113].mxu0 }
 0x570   : > { %v12550_v21 = vpop.f32.mrb[114].mxu0  ;;  %v4343_v24 = vpop.permute.xlu0 %4342 }
 0x571   : > { %v8057_v20 = vpop.f32.mrb[115].mxu0  ;;  %vm6809_vm6 = vcmp.ne.s32.totalorder %v4343_v24, 1  ;;  %v4358_v24 = vpop.permute.xlu1 %4357 }
 0x572   : > { %vm6304_vm8 = vmpackc.low %vm6808_vm5, %vm6809_vm6  ;;  %vm6812_vm7 = vcmp.ne.s32.totalorder %v4358_v24, 1 }
 0x573   : > { %7903 = vmatmul.mubr.msk.bf16.gmra.mrb[100].mxu1 %vm6294_vm2, %v12312_v42 }
 0x574   : > { %7906 = vmatprep.mubr.msk.bf16.mxu1 %vm8226_vm10, %v12926_v37 }
 0x576   : > { %v12555_v30 = vpop.f32.mrb[116].mxu0 }
 0x577   : > { %13517 = vst [vmem:[#allocation28_spill] sm:$0xff] %v12555_v30  ;;  %v8060_v44 = vpop.f32.mrb[117].mxu0 }
 0x578   : > { %v12557_v51 = vpop.f32.mrb[118].mxu0  ;;  %v4349_v44 = vpop.permute.xlu0 %4348 }
 0x579   : > { %v8061_v60 = vpop.f32.mrb[119].mxu0  ;;  %vm6811_vm11 = vcmp.ne.s32.totalorder %v4349_v44, 1  ;;  %v4364_v44 = vpop.permute.xlu1 %4363 }
 0x57a   : > { %vm6309_vm12 = vmpackc.low %vm6810_vm9, %vm6811_vm11  ;;  %vm6814_vm15 = vcmp.ne.s32.totalorder %v4364_v44, 1 }
 0x57b   : > { %7907 = vmatmul.mubr.msk.bf16.gmra.mrb[104].mxu1 %vm6299_vm4, %v12320_v13 }
 0x57c   : > { %7910 = vmatprep.mubr.msk.bf16.mxu1 %vm8226_vm10, %v12926_v37 }
 0x57e   : > { %v12562_v42 = vpop.f32.mrb[120].mxu0 }
 0x57f   : > { %13518 = vst [vmem:[#allocation29_spill] sm:$0xff] %v12562_v42  ;;  %v8064_v20 = vpop.f32.mrb[121].mxu0 }
 0x580   : > { %v12564_v30 = vpop.f32.mrb[122].mxu0  ;;  %v4355_v20 = vpop.permute.xlu0 %4354 }
 0x581   : > { %v8065_v25 = vpop.f32.mrb[123].mxu0  ;;  %vm6813_vm13 = vcmp.ne.s32.totalorder %v4355_v20, 1  ;;  %v4370_v20 = vpop.permute.xlu1 %4369 }
 0x582   : > { %vm6314_vm14 = vmpackc.low %vm6812_vm7, %vm6813_vm13  ;;  %vm6816_vm1 = vcmp.ne.s32.totalorder %v4370_v20, 1 }
 0x583   : > { %7911 = vmatmul.mubr.msk.bf16.gmra.mrb[108].mxu1 %vm6304_vm8, %v12328_v55 }
 0x584   : > { %7914 = vmatprep.mubr.msk.bf16.mxu1 %vm8226_vm10, %v12926_v37 }
 0x586   : > { %v12569_v13 = vpop.f32.mrb[124].mxu0 }
 0x587   : > { %13519 = vst [vmem:[#allocation30_spill] sm:$0xff] %v12569_v13  ;;  %v8068_v60 = vpop.f32.mrb[125].mxu0 }
 0x588   : > { %v12571_v42 = vpop.f32.mrb[126].mxu0  ;;  %v4361_v60 = vpop.permute.xlu0 %4360 }
 0x589   : > { %13520 = vst [vmem:[#allocation31_spill] sm:$0xff] %v12571_v42  ;;  %v8069_v2 = vpop.f32.mrb[127].mxu0  ;;  %vm6815_vm0 = vcmp.ne.s32.totalorder %v4361_v60, 1  ;;  %v4376_v60 = vpop.permute.xlu1 %4375 }
 0x58a   : > { %vm6319_vm2 = vmpackc.low %vm6814_vm15, %vm6815_vm0  ;;  %vm6818_vm5 = vcmp.ne.s32.totalorder %v4376_v60, 1 }
 0x58b   : > { %7915 = vmatmul.mubr.msk.bf16.gmra.mrb[112].mxu1 %vm6309_vm12, %v12336_v41 }
 0x58c   : > { %7918 = vmatprep.mubr.msk.bf16.mxu1 %vm8226_vm10, %v12926_v37 }
 0x58e   : > { %v12576_v55 = vpop.f32.mrb[128].mxu0 }
 0x58f   : > { %13521 = vst [vmem:[#allocation32_spill] sm:$0xff] %v12576_v55  ;;  %v8072_v25 = vpop.f32.mrb[129].mxu0 }
 0x590   : > { %v12578_v13 = vpop.f32.mrb[130].mxu0  ;;  %v4367_v25 = vpop.permute.xlu0 %4366 }
 0x591   : > { %13522 = vst [vmem:[#allocation33_spill] sm:$0xff] %v12578_v13  ;;  %v8073_v52 = vpop.f32.mrb[131].mxu0  ;;  %vm6817_vm3 = vcmp.ne.s32.totalorder %v4367_v25, 1  ;;  %v4382_v25 = vpop.permute.xlu1 %4381 }
 0x592   : > { %vm6324_vm4 = vmpackc.low %vm6816_vm1, %vm6817_vm3  ;;  %vm6820_vm9 = vcmp.ne.s32.totalorder %v4382_v25, 1 }
 0x593   : > { %7919 = vmatmul.mubr.msk.bf16.gmra.mrb[116].mxu1 %vm6314_vm14, %v12344_v53 }
 0x594   : > { %7922 = vmatprep.mubr.msk.bf16.mxu1 %vm8226_vm10, %v12926_v37 }
 0x595   : > { %v4388_v25 = vpop.permute.xlu1 %4387 }
 0x596   : > { %v12583_v41 = vpop.f32.mrb[132].mxu0  ;;  %vm6822_vm7 = vcmp.ne.s32.totalorder %v4388_v25, 1 }
 0x597   : > { %13523 = vst [vmem:[#allocation34_spill] sm:$0xff] %v12583_v41  ;;  %v8076_v2 = vpop.f32.mrb[133].mxu0 }
 0x598   : > { %v12585_v55 = vpop.f32.mrb[134].mxu0  ;;  %v4373_v2 = vpop.permute.xlu0 %4372 }
 0x599   : > { %13524 = vst [vmem:[#allocation35_spill] sm:$0xff] %v12585_v55  ;;  %v8077_v24 = vpop.f32.mrb[135].mxu0  ;;  %vm6819_vm6 = vcmp.ne.s32.totalorder %v4373_v2, 1 }
 0x59a   : > { %vm6329_vm8 = vmpackc.low %vm6818_vm5, %vm6819_vm6 }
 0x59b   : > { %7923 = vmatmul.mubr.msk.bf16.gmra.mrb[120].mxu1 %vm6319_vm2, %v12352_v17 }
 0x59c   : > { %7926 = vmatprep.mubr.msk.bf16.mxu1 %vm8226_vm10, %v12926_v37 }
 0x59e   : > { %v12590_v53 = vpop.f32.mrb[136].mxu0 }
 0x59f   : > { %13525 = vst [vmem:[#allocation36_spill] sm:$0xff] %v12590_v53  ;;  %v8080_v52 = vpop.f32.mrb[137].mxu0 }
 0x5a0   : > { %v12592_v41 = vpop.f32.mrb[138].mxu0  ;;  %v4379_v52 = vpop.permute.xlu0 %4378 }
 0x5a1   : > { %13526 = vst [vmem:[#allocation37_spill] sm:$0xff] %v12592_v41  ;;  %v8081_v44 = vpop.f32.mrb[139].mxu0  ;;  %vm6821_vm11 = vcmp.ne.s32.totalorder %v4379_v52, 1 }
 0x5a2   : > { %v12607_v44 = vld [vmem:[%s12799_s12] ss:$0 sm:$0xff]  ;;  %vm6334_vm12 = vmpackc.low %vm6820_vm9, %vm6821_vm11 }
 0x5a3   : > { %7927 = vmatmul.mubr.msk.bf16.gmra.mrb[124].mxu1 %vm6324_vm4, %v12360_v39 }
 0x5a4   : > { %7930 = vmatprep.mubr.msk.bf16.mxu1 %vm8226_vm10, %v12926_v37  ;;  %v4385_v52 = vpop.permute.xlu0 %4384 }
 0x5a5   : > { %vm6823_vm13 = vcmp.ne.s32.totalorder %v4385_v52, 1 }
 0x5a6   : > { %v12597_v17 = vpop.f32.mrb[140].mxu0  ;;  %vm6339_vm14 = vmpackc.low %vm6822_vm7, %vm6823_vm13 }
 0x5a7   : > { %13527 = vst [vmem:[#allocation38_spill] sm:$0xff] %v12597_v17  ;;  %v8084_v24 = vpop.f32.mrb[141].mxu0 }
 0x5a8   : > { %v12599_v53 = vpop.f32.mrb[142].mxu0 }
 0x5a9   : > { %13528 = vst [vmem:[#allocation39_spill] sm:$0xff] %v12599_v53  ;;  %v8085_v20 = vpop.f32.mrb[143].mxu0 }
 0x5ab   : > { %7931 = vmatmul.mubr.msk.bf16.gmra.mrb[128].mxu1 %vm6329_vm8, %v12368_v49 }
 0x5ac   : > { %7934 = vmatprep.mubr.msk.bf16.mxu1 %vm8226_vm10, %v12926_v37 }
 0x5ae   : > { %v4701_v39 = vpop.f32.mrb[24].mxu1  ;;  %v12609_v60 = vpop.f32.mrb[144].mxu0 }
 0x5af   : > { %v5031_v2 = vadd.f32 %v12376_v16, %v4701_v39  ;;  %v7828_v24 = vpop.f32.mrb[25].mxu1  ;;  %v8088_v49 = vpop.f32.mrb[145].mxu0 }
 0x5b0   : > { %v4704_v20 = vpop.f32.mrb[26].mxu1  ;;  %v12612_v53 = vpop.f32.mrb[146].mxu0 }
 0x5b1   : > { %v5284_v17 = vadd.f32 %v12607_v44, %v5031_v2  ;;  %v5034_v41 = vadd.f32 %v12380_v7, %v4704_v20  ;;  %v7829_v55 = vpop.f32.mrb[27].mxu1  ;;  %v8089_v13 = vpop.f32.mrb[147].mxu0 }
 0x5b2   : > { %v4394_v49 = vpop.permute.xlu1 %4393  ;;  %v4391_v20 = vpop.permute.xlu0 %4390 }
 0x5b3   : > { %v5285_v42 = vadd.f32 %v12607_v44, %v5034_v41  ;;  %7935 = vmatmul.mubr.msk.bf16.gmra.mrb[132].mxu1 %vm6334_vm12, %v12378_v46  ;;  %v5346_v16 = vmax.f32 %v5284_v17, 0.0  ;;  %vm6824_vm15 = vcmp.ne.s32.totalorder %v4394_v49, 1  ;;  %vm6825_vm0 = vcmp.ne.s32.totalorder %v4391_v20, 1 }
 0x5b4   : > { %7938 = vmatprep.mubr.msk.bf16.mxu1 %vm8226_vm10, %v12926_v37  ;;  %vm6344_vm2 = vmpackc.low %vm6824_vm15, %vm6825_vm0 }
 0x5b5   : > { %v5347_v39 = vmax.f32 %v5285_v42, 0.0 }
 0x5b6   : > { %v4709_v7 = vpop.f32.mrb[28].mxu1 }
 0x5b7   : > { %v6490_v13 = vpack.c.bf16 %v5347_v39, %v5346_v16  ;;  %v5039_v55 = vadd.f32 %v12388_v8, %v4709_v7  ;;  %v7832_v46 = vpop.f32.mrb[29].mxu1 }
 0x5b8   : > { %v4712_v41 = vpop.f32.mrb[30].mxu1 }
 0x5b9   : > { %6491 = vst [vmem:[%s12624_s18] sm:$0xff] %v6490_v13   ;;  %v5286_v2 = vadd.f32 %v12607_v44, %v5039_v55  ;;  %v5042_v17 = vadd.f32 %v12392_v63, %v4712_v41  ;;  %v7833_v42 = vpop.f32.mrb[31].mxu1  ;;  %v4400_v41 = vpop.permute.xlu1 %4399 }
 0x5ba   : > { %vm6826_vm1 = vcmp.ne.s32.totalorder %v4400_v41, 1 }
 0x5bb   : > { %v5287_v24 = vadd.f32 %v12607_v44, %v5042_v17  ;;  %7939 = vmatmul.mubr.msk.bf16.gmra.mrb[136].mxu1 %vm6339_vm14, %v12390_v45  ;;  %v5348_v8 = vmax.f32 %v5286_v2, 0.0  ;;  %v4397_v2 = vpop.permute.xlu0 %4396 }
 0x5bc   : > { %7942 = vmatprep.mubr.msk.bf16.mxu1 %vm8226_vm10, %v12926_v37  ;;  %vm6827_vm3 = vcmp.ne.s32.totalorder %v4397_v2, 1 }
 0x5bd   : > { %v5349_v25 = vmax.f32 %v5287_v24, 0.0  ;;  %vm6349_vm4 = vmpackc.low %vm6826_vm1, %vm6827_vm3 }
 0x5be   : > { %v4717_v52 = vpop.f32.mrb[32].mxu1 }
 0x5bf   : > { %v6495_v16 = vpack.c.bf16 %v5349_v25, %v5348_v8  ;;  %v5047_v63 = vadd.f32 %v12400_v6, %v4717_v52  ;;  %v7836_v39 = vpop.f32.mrb[33].mxu1 }
 0x5c0   : > { %v4720_v7 = vpop.f32.mrb[34].mxu1 }
 0x5c1   : > { %6828 = vst [vmem:[%s12624_s18 + $0x8] sm:$0xff] %v6495_v16   ;;  %v5288_v13 = vadd.f32 %v12607_v44, %v5047_v63  ;;  %v5050_v45 = vadd.f32 %v12404_v12, %v4720_v7  ;;  %v7837_v55 = vpop.f32.mrb[35].mxu1 }
 0x5c3   : > { %v5289_v46 = vadd.f32 %v12607_v44, %v5050_v45  ;;  %7943 = vmatmul.mubr.msk.bf16.gmra.mrb[140].mxu1 %vm6344_vm2, %v12402_v28  ;;  %v5350_v6 = vmax.f32 %v5288_v13, 0.0 }
 0x5c4   : > { %7946 = vmatprep.mubr.msk.bf16.mxu1 %vm8226_vm10, %v12926_v37 }
 0x5c5   : > { %v5351_v17 = vmax.f32 %v5289_v46, 0.0 }
 0x5c6   : > { %v4725_v42 = vpop.f32.mrb[36].mxu1 }
 0x5c7   : > { %v6500_v24 = vpack.c.bf16 %v5351_v17, %v5350_v6  ;;  %v5055_v12 = vadd.f32 %v12412_v11, %v4725_v42  ;;  %v7840_v49 = vpop.f32.mrb[37].mxu1 }
 0x5c8   : > { %v4728_v20 = vpop.f32.mrb[38].mxu1 }
 0x5c9   : > { %6829 = vst [vmem:[%s12624_s18 + $0x10] sm:$0xff] %v6500_v24   ;;  %v5290_v8 = vadd.f32 %v12607_v44, %v5055_v12  ;;  %v5058_v28 = vadd.f32 %v12416_v15, %v4728_v20  ;;  %v7841_v25 = vpop.f32.mrb[39].mxu1 }
 0x5cb   : > { %v5291_v37 = vadd.f32 %v12607_v44, %v5058_v28  ;;  %7947 = vmatmul.mubr.msk.bf16.gmra.mrb[144].mxu1 %vm6349_vm4, %v12414_v3  ;;  %v5352_v52 = vmax.f32 %v5290_v8, 0.0 }
 0x5cd   : > { %v5353_v16 = vmax.f32 %v5291_v37, 0.0 }
 0x5ce   : > { %v4733_v63 = vpop.f32.mrb[40].mxu1 }
 0x5cf   : > { %v6505_v39 = vpack.c.bf16 %v5353_v16, %v5352_v52  ;;  %v5063_v11 = vadd.f32 %v12422_v34, %v4733_v63  ;;  %v7844_v7 = vpop.f32.mrb[41].mxu1 }
 0x5d0   : > { %v4736_v13 = vpop.f32.mrb[42].mxu1 }
 0x5d1   : > { %6830 = vst [vmem:[%s12624_s18 + $0x18] sm:$0xff] %v6505_v39   ;;  %v5292_v45 = vadd.f32 %v12607_v44, %v5063_v11  ;;  %v5066_v15 = vadd.f32 %v12424_v43, %v4736_v13  ;;  %v7845_v55 = vpop.f32.mrb[43].mxu1 }
 0x5d3   : > { %v5293_v46 = vadd.f32 %v12607_v44, %v5066_v15  ;;  %v5354_v41 = vmax.f32 %v5292_v45, 0.0 }
 0x5d5   : > { %v5355_v2 = vmax.f32 %v5293_v46, 0.0 }
 0x5d6   : > { %v4741_v3 = vpop.f32.mrb[44].mxu1 }
 0x5d7   : > { %v6510_v6 = vpack.c.bf16 %v5355_v2, %v5354_v41  ;;  %v5071_v17 = vadd.f32 %v12429_v23, %v4741_v3  ;;  %v7848_v42 = vpop.f32.mrb[45].mxu1 }
 0x5d8   : > { %v4744_v24 = vpop.f32.mrb[46].mxu1 }
 0x5d9   : > { %6831 = vst [vmem:[%s12624_s18 + $0x20] sm:$0xff] %v6510_v6   ;;  %v5294_v34 = vadd.f32 %v12607_v44, %v5071_v17  ;;  %v5074_v12 = vadd.f32 %v12431_v56, %v4744_v24  ;;  %v7849_v49 = vpop.f32.mrb[47].mxu1 }
 0x5db   : > { %v5295_v43 = vadd.f32 %v12607_v44, %v5074_v12  ;;  %v5356_v20 = vmax.f32 %v5294_v34, 0.0 }
 0x5dd   : > { %v5357_v8 = vmax.f32 %v5295_v43, 0.0 }
 0x5de   : > { %v4749_v28 = vpop.f32.mrb[48].mxu1 }
 0x5df   : > { %v6515_v25 = vpack.c.bf16 %v5357_v8, %v5356_v20  ;;  %v5079_v37 = vadd.f32 %v12436_v59, %v4749_v28  ;;  %v7852_v52 = vpop.f32.mrb[49].mxu1 }
 0x5e0   : > { %v4752_v16 = vpop.f32.mrb[50].mxu1 }
 0x5e1   : > { %6832 = vst [vmem:[%s12624_s18 + $0x28] sm:$0xff] %v6515_v25   ;;  %v5296_v23 = vadd.f32 %v12607_v44, %v5079_v37  ;;  %v5082_v63 = vadd.f32 %v12438_v1, %v4752_v16  ;;  %v7853_v39 = vpop.f32.mrb[51].mxu1 }
 0x5e3   : > { %v5297_v56 = vadd.f32 %v12607_v44, %v5082_v63  ;;  %v5358_v11 = vmax.f32 %v5296_v23, 0.0 }
 0x5e5   : > { %v5359_v7 = vmax.f32 %v5297_v56, 0.0 }
 0x5e6   : > { %v4757_v13 = vpop.f32.mrb[52].mxu1 }
 0x5e7   : > { %v6520_v45 = vpack.c.bf16 %v5359_v7, %v5358_v11  ;;  %v5087_v15 = vadd.f32 %v12443_v33, %v4757_v13  ;;  %v7856_v55 = vpop.f32.mrb[53].mxu1 }
 0x5e8   : > { %v4760_v46 = vpop.f32.mrb[54].mxu1 }
 0x5e9   : > { %6833 = vst [vmem:[%s12624_s18 + $0x30] sm:$0xff] %v6520_v45   ;;  %v5298_v59 = vadd.f32 %v12607_v44, %v5087_v15  ;;  %v5090_v41 = vadd.f32 %v12445_v40, %v4760_v46  ;;  %v7857_v2 = vpop.f32.mrb[55].mxu1 }
 0x5eb   : > { %v5299_v1 = vadd.f32 %v12607_v44, %v5090_v41  ;;  %v5360_v3 = vmax.f32 %v5298_v59, 0.0 }
 0x5ed   : > { %v5361_v6 = vmax.f32 %v5299_v1, 0.0 }
 0x5ee   : > { %v4765_v17 = vpop.f32.mrb[56].mxu1 }
 0x5ef   : > { %v6525_v42 = vpack.c.bf16 %v5361_v6, %v5360_v3  ;;  %v5095_v24 = vadd.f32 %v12450_v4, %v4765_v17  ;;  %v7860_v34 = vpop.f32.mrb[57].mxu1 }
 0x5f0   : > { %v4768_v12 = vpop.f32.mrb[58].mxu1 }
 0x5f1   : > { %6834 = vst [vmem:[%s12624_s18 + $0x38] sm:$0xff] %v6525_v42   ;;  %v5300_v33 = vadd.f32 %v12607_v44, %v5095_v24  ;;  %v5098_v49 = vadd.f32 %v12452_v61, %v4768_v12  ;;  %v7861_v43 = vpop.f32.mrb[59].mxu1 }
 0x5f3   : > { %v5301_v40 = vadd.f32 %v12607_v44, %v5098_v49  ;;  %v5362_v20 = vmax.f32 %v5300_v33, 0.0 }
 0x5f5   : > { %v5363_v8 = vmax.f32 %v5301_v40, 0.0 }
 0x5f6   : > { %v4773_v28 = vpop.f32.mrb[60].mxu1 }
 0x5f7   : > { %v6530_v25 = vpack.c.bf16 %v5363_v8, %v5362_v20  ;;  %v5103_v37 = vadd.f32 %v12457_v38, %v4773_v28  ;;  %v7864_v52 = vpop.f32.mrb[61].mxu1 }
 0x5f8   : > { %v4776_v16 = vpop.f32.mrb[62].mxu1 }
 0x5f9   : > { %6835 = vst [vmem:[%s12624_s18 + $0x40] sm:$0xff] %v6530_v25   ;;  %v5302_v4 = vadd.f32 %v12607_v44, %v5103_v37  ;;  %v5106_v23 = vadd.f32 %v12459_v29, %v4776_v16  ;;  %v7865_v63 = vpop.f32.mrb[63].mxu1 }
 0x5fb   : > { %v5303_v61 = vadd.f32 %v12607_v44, %v5106_v23  ;;  %v5364_v39 = vmax.f32 %v5302_v4, 0.0 }
 0x5fd   : > { %v5365_v56 = vmax.f32 %v5303_v61, 0.0 }
 0x5fe   : > { %v4781_v11 = vpop.f32.mrb[64].mxu1 }
 0x5ff   : > { %v6535_v7 = vpack.c.bf16 %v5365_v56, %v5364_v39  ;;  %v5111_v13 = vadd.f32 %v12464_v22, %v4781_v11  ;;  %v7868_v45 = vpop.f32.mrb[65].mxu1 }
 0x600   : > { %v4784_v15 = vpop.f32.mrb[66].mxu1 }
 0x601   : > { %6836 = vst [vmem:[%s12624_s18 + $0x48] sm:$0xff] %v6535_v7   ;;  %v5304_v38 = vadd.f32 %v12607_v44, %v5111_v13  ;;  %v5114_v55 = vadd.f32 %v12466_v58, %v4784_v15  ;;  %v7869_v46 = vpop.f32.mrb[67].mxu1 }
 0x603   : > { %v5305_v29 = vadd.f32 %v12607_v44, %v5114_v55  ;;  %v5366_v59 = vmax.f32 %v5304_v38, 0.0 }
 0x605   : > { %v5367_v41 = vmax.f32 %v5305_v29, 0.0 }
 0x606   : > { %v4789_v2 = vpop.f32.mrb[68].mxu1 }
 0x607   : > { %v6540_v1 = vpack.c.bf16 %v5367_v41, %v5366_v59  ;;  %v5119_v3 = vadd.f32 %v12471_v62, %v4789_v2  ;;  %v7872_v6 = vpop.f32.mrb[69].mxu1 }
 0x608   : > { %v4792_v17 = vpop.f32.mrb[70].mxu1 }
 0x609   : > { %6837 = vst [vmem:[%s12624_s18 + $0x50] sm:$0xff] %v6540_v1   ;;  %v5306_v22 = vadd.f32 %v12607_v44, %v5119_v3  ;;  %v5122_v42 = vadd.f32 %v12473_v35, %v4792_v17  ;;  %v7873_v24 = vpop.f32.mrb[71].mxu1 }
 0x60b   : > { %v5307_v58 = vadd.f32 %v12607_v44, %v5122_v42  ;;  %v5368_v34 = vmax.f32 %v5306_v22, 0.0 }
 0x60d   : > { %v5369_v12 = vmax.f32 %v5307_v58, 0.0 }
 0x60e   : > { %v4797_v33 = vpop.f32.mrb[72].mxu1 }
 0x60f   : > { %v6545_v49 = vpack.c.bf16 %v5369_v12, %v5368_v34  ;;  %v5127_v43 = vadd.f32 %v12478_v0, %v4797_v33  ;;  %v7876_v40 = vpop.f32.mrb[73].mxu1 }
 0x610   : > { %v4800_v20 = vpop.f32.mrb[74].mxu1 }
 0x611   : > { %6838 = vst [vmem:[%s12624_s18 + $0x58] sm:$0xff] %v6545_v49   ;;  %v5308_v62 = vadd.f32 %v12607_v44, %v5127_v43  ;;  %v5130_v8 = vadd.f32 %v12480_v47, %v4800_v20  ;;  %v7877_v28 = vpop.f32.mrb[75].mxu1 }
 0x613   : > { %v5309_v35 = vadd.f32 %v12607_v44, %v5130_v8  ;;  %v5370_v25 = vmax.f32 %v5308_v62, 0.0 }
 0x615   : > { %v5371_v37 = vmax.f32 %v5309_v35, 0.0 }
 0x616   : > { %v4805_v52 = vpop.f32.mrb[76].mxu1 }
 0x617   : > { %v6550_v16 = vpack.c.bf16 %v5371_v37, %v5370_v25  ;;  %v5135_v4 = vadd.f32 %v12485_v19, %v4805_v52  ;;  %v7880_v23 = vpop.f32.mrb[77].mxu1 }
 0x618   : > { %v4808_v63 = vpop.f32.mrb[78].mxu1 }
 0x619   : > { %6839 = vst [vmem:[%s12624_s18 + $0x60] sm:$0xff] %v6550_v16   ;;  %v5310_v0 = vadd.f32 %v12607_v44, %v5135_v4  ;;  %v5138_v61 = vadd.f32 %v12487_v36, %v4808_v63  ;;  %v7881_v39 = vpop.f32.mrb[79].mxu1 }
 0x61b   : > { %v5311_v47 = vadd.f32 %v12607_v44, %v5138_v61  ;;  %v5372_v56 = vmax.f32 %v5310_v0, 0.0 }
 0x61d   : > { %v5373_v11 = vmax.f32 %v5311_v47, 0.0 }
 0x61e   : > { %v4813_v7 = vpop.f32.mrb[80].mxu1 }
 0x61f   : > { %v6555_v13 = vpack.c.bf16 %v5373_v11, %v5372_v56  ;;  %v5143_v45 = vadd.f32 %v12492_v54, %v4813_v7  ;;  %v7884_v15 = vpop.f32.mrb[81].mxu1 }
 0x620   : > { %v4816_v38 = vpop.f32.mrb[82].mxu1 }
 0x621   : > { %6840 = vst [vmem:[%s12624_s18 + $0x68] sm:$0xff] %v6555_v13   ;;  %v5312_v19 = vadd.f32 %v12607_v44, %v5143_v45  ;;  %v5146_v55 = vadd.f32 %v12494_v5, %v4816_v38  ;;  %v7885_v46 = vpop.f32.mrb[83].mxu1  ;;  %v13529_v38 = vld [vmem:[#allocation122_spill] sm:$0xff] }
 0x623   : > { %v5313_v36 = vadd.f32 %v12607_v44, %v5146_v55  ;;  %v5374_v29 = vmax.f32 %v5312_v19, 0.0 }
 0x625   : > { %v5375_v59 = vmax.f32 %v5313_v36, 0.0 }
 0x626   : > { %v4821_v41 = vpop.f32.mrb[84].mxu1 }
 0x627   : > { %v6560_v2 = vpack.c.bf16 %v5375_v59, %v5374_v29  ;;  %v5151_v1 = vadd.f32 %v12499_v48, %v4821_v41  ;;  %v7888_v3 = vpop.f32.mrb[85].mxu1 }
 0x628   : > { %v4824_v6 = vpop.f32.mrb[86].mxu1  ;;  %v13530_v3 = vld [vmem:[#allocation26_spill] sm:$0xff] }
 0x629   : > { %6841 = vst [vmem:[%s12624_s18 + $0x70] sm:$0xff] %v6560_v2   ;;  %v5314_v54 = vadd.f32 %v12607_v44, %v5151_v1  ;;  %v5154_v17 = vadd.f32 %v12501_v50, %v4824_v6  ;;  %v7889_v22 = vpop.f32.mrb[87].mxu1 }
 0x62b   : > { %v5315_v5 = vadd.f32 %v12607_v44, %v5154_v17  ;;  %v5376_v42 = vmax.f32 %v5314_v54, 0.0 }
 0x62d   : > { %v5377_v24 = vmax.f32 %v5315_v5, 0.0 }
 0x62e   : > { %v4829_v58 = vpop.f32.mrb[88].mxu1 }
 0x62f   : > { %v6565_v34 = vpack.c.bf16 %v5377_v24, %v5376_v42  ;;  %v5159_v12 = vadd.f32 %v12506_v57, %v4829_v58  ;;  %v7892_v33 = vpop.f32.mrb[89].mxu1 }
 0x630   : > { %v4832_v49 = vpop.f32.mrb[90].mxu1  ;;  %v13531_v33 = vld [vmem:[#allocation27_spill] sm:$0xff] }
 0x631   : > { %6842 = vst [vmem:[%s12624_s18 + $0x78] sm:$0xff] %v6565_v34   ;;  %v5316_v48 = vadd.f32 %v12607_v44, %v5159_v12  ;;  %v5162_v43 = vadd.f32 %v12508_v14, %v4832_v49  ;;  %v7893_v40 = vpop.f32.mrb[91].mxu1 }
 0x633   : > { %v5317_v50 = vadd.f32 %v12607_v44, %v5162_v43  ;;  %v5378_v20 = vmax.f32 %v5316_v48, 0.0 }
 0x635   : > { %v5379_v62 = vmax.f32 %v5317_v50, 0.0 }
 0x636   : > { %v4837_v8 = vpop.f32.mrb[92].mxu1 }
 0x637   : > { %v6570_v28 = vpack.c.bf16 %v5379_v62, %v5378_v20  ;;  %v5167_v35 = vadd.f32 %v12513_v26, %v4837_v8  ;;  %v7896_v25 = vpop.f32.mrb[93].mxu1 }
 0x638   : > { %v4840_v37 = vpop.f32.mrb[94].mxu1  ;;  %v13532_v25 = vld [vmem:[#allocation71_spill] sm:$0xff] }
 0x639   : > { %6843 = vst [vmem:[%s12624_s18 + $0x80] sm:$0xff] %v6570_v28   ;;  %v5318_v57 = vadd.f32 %v12607_v44, %v5167_v35  ;;  %v5170_v52 = vadd.f32 %v12515_v10, %v4840_v37  ;;  %v7897_v16 = vpop.f32.mrb[95].mxu1 }
 0x63b   : > { %v5319_v14 = vadd.f32 %v12607_v44, %v5170_v52  ;;  %v5380_v4 = vmax.f32 %v5318_v57, 0.0 }
 0x63d   : > { %v5381_v23 = vmax.f32 %v5319_v14, 0.0 }
 0x63e   : > { %v4845_v63 = vpop.f32.mrb[96].mxu1 }
 0x63f   : > { %v6575_v0 = vpack.c.bf16 %v5381_v23, %v5380_v4  ;;  %v5175_v61 = vadd.f32 %v12520_v31, %v4845_v63  ;;  %v7900_v39 = vpop.f32.mrb[97].mxu1 }
 0x640   : > { %v4848_v47 = vpop.f32.mrb[98].mxu1  ;;  %v13533_v39 = vld [vmem:[#allocation28_spill] sm:$0xff] }
 0x641   : > { %6844 = vst [vmem:[%s12624_s18 + $0x88] sm:$0xff] %v6575_v0   ;;  %v5320_v26 = vadd.f32 %v12607_v44, %v5175_v61  ;;  %v5178_v56 = vadd.f32 %v12522_v27, %v4848_v47  ;;  %v7901_v11 = vpop.f32.mrb[99].mxu1 }
 0x643   : > { %v5321_v10 = vadd.f32 %v12607_v44, %v5178_v56  ;;  %v5382_v7 = vmax.f32 %v5320_v26, 0.0 }
 0x645   : > { %v5383_v13 = vmax.f32 %v5321_v10, 0.0 }
 0x646   : > { %v4853_v45 = vpop.f32.mrb[100].mxu1 }
 0x647   : > { %v6580_v15 = vpack.c.bf16 %v5383_v13, %v5382_v7  ;;  %v5183_v19 = vadd.f32 %v13529_v38, %v4853_v45  ;;  %v7904_v55 = vpop.f32.mrb[101].mxu1 }
 0x648   : > { %v4856_v46 = vpop.f32.mrb[102].mxu1 }
 0x649   : > { %6845 = vst [vmem:[%s12624_s18 + $0x90] sm:$0xff] %v6580_v15   ;;  %v5322_v31 = vadd.f32 %v12607_v44, %v5183_v19  ;;  %v5186_v36 = vadd.f32 %v12529_v18, %v4856_v46  ;;  %v7905_v29 = vpop.f32.mrb[103].mxu1  ;;  %v13534_v19 = vld [vmem:[#allocation29_spill] sm:$0xff] }
 0x64b   : > { %v5323_v27 = vadd.f32 %v12607_v44, %v5186_v36  ;;  %v5384_v59 = vmax.f32 %v5322_v31, 0.0 }
 0x64d   : > { %v5385_v41 = vmax.f32 %v5323_v27, 0.0 }
 0x64e   : > { %v4861_v2 = vpop.f32.mrb[104].mxu1 }
 0x64f   : > { %v6585_v1 = vpack.c.bf16 %v5385_v41, %v5384_v59  ;;  %v5191_v6 = vadd.f32 %v13530_v3, %v4861_v2  ;;  %v7908_v54 = vpop.f32.mrb[105].mxu1  ;;  %v13535_v3 = vld [vmem:[#allocation30_spill] sm:$0xff] }
 0x650   : > { %v4864_v17 = vpop.f32.mrb[106].mxu1 }
 0x651   : > { %6846 = vst [vmem:[%s12624_s18 + $0x98] sm:$0xff] %v6585_v1   ;;  %v5324_v22 = vadd.f32 %v12607_v44, %v5191_v6  ;;  %v5194_v5 = vadd.f32 %v12536_v9, %v4864_v17  ;;  %v7909_v42 = vpop.f32.mrb[107].mxu1 }
 0x653   : > { %v5325_v18 = vadd.f32 %v12607_v44, %v5194_v5  ;;  %v5386_v24 = vmax.f32 %v5324_v22, 0.0  ;;  %v13536_v5 = vld [vmem:[#allocation31_spill] sm:$0xff] }
 0x655   : > { %v5387_v58 = vmax.f32 %v5325_v18, 0.0 }
 0x656   : > { %v4869_v34 = vpop.f32.mrb[108].mxu1 }
 0x657   : > { %v6590_v12 = vpack.c.bf16 %v5387_v58, %v5386_v24  ;;  %v5199_v49 = vadd.f32 %v13531_v33, %v4869_v34  ;;  %v7912_v48 = vpop.f32.mrb[109].mxu1  ;;  %v13537_v33 = vld [vmem:[#allocation32_spill] sm:$0xff] }
 0x658   : > { %v4872_v43 = vpop.f32.mrb[110].mxu1 }
 0x659   : > { %6847 = vst [vmem:[%s12624_s18 + $0xa0] sm:$0xff] %v6590_v12   ;;  %v5326_v40 = vadd.f32 %v12607_v44, %v5199_v49  ;;  %v5202_v50 = vadd.f32 %v12543_v32, %v4872_v43  ;;  %v7913_v20 = vpop.f32.mrb[111].mxu1 }
 0x65b   : > { %v5327_v9 = vadd.f32 %v12607_v44, %v5202_v50  ;;  %v5388_v62 = vmax.f32 %v5326_v40, 0.0  ;;  %v13538_v50 = vld [vmem:[#allocation33_spill] sm:$0xff] }
 0x65d   : > { %v5389_v8 = vmax.f32 %v5327_v9, 0.0 }
 0x65e   : > { %v4877_v28 = vpop.f32.mrb[112].mxu1 }
 0x65f   : > { %v6595_v35 = vpack.c.bf16 %v5389_v8, %v5388_v62  ;;  %v5207_v37 = vadd.f32 %v13532_v25, %v4877_v28  ;;  %v7916_v57 = vpop.f32.mrb[113].mxu1 }
 0x660   : > { %v4880_v52 = vpop.f32.mrb[114].mxu1 }
 0x661   : > { %6848 = vst [vmem:[%s12624_s18 + $0xa8] sm:$0xff] %v6595_v35   ;;  %v5328_v16 = vadd.f32 %v12607_v44, %v5207_v37  ;;  %v5210_v14 = vadd.f32 %v12550_v21, %v4880_v52  ;;  %v7917_v4 = vpop.f32.mrb[115].mxu1  ;;  %v13539_v37 = vld [vmem:[#allocation34_spill] sm:$0xff] }
 0x662   : > { %v13540_v4 = vld [vmem:[#allocation35_spill] sm:$0xff] }
 0x663   : > { %v5329_v32 = vadd.f32 %v12607_v44, %v5210_v14  ;;  %v5390_v23 = vmax.f32 %v5328_v16, 0.0 }
 0x665   : > { %v5391_v63 = vmax.f32 %v5329_v32, 0.0 }
 0x666   : > { %v4885_v0 = vpop.f32.mrb[116].mxu1 }
 0x667   : > { %v6600_v61 = vpack.c.bf16 %v5391_v63, %v5390_v23  ;;  %v5215_v47 = vadd.f32 %v13533_v39, %v4885_v0  ;;  %v7920_v26 = vpop.f32.mrb[117].mxu1 }
 0x668   : > { %v4888_v56 = vpop.f32.mrb[118].mxu1  ;;  %v13541_v26 = vld [vmem:[#allocation36_spill] sm:$0xff] }
 0x669   : > { %6849 = vst [vmem:[%s12624_s18 + $0xb0] sm:$0xff] %v6600_v61   ;;  %v5330_v11 = vadd.f32 %v12607_v44, %v5215_v47  ;;  %v5218_v10 = vadd.f32 %v12557_v51, %v4888_v56  ;;  %v7921_v7 = vpop.f32.mrb[119].mxu1 }
 0x66b   : > { %v5331_v21 = vadd.f32 %v12607_v44, %v5218_v10  ;;  %v5392_v13 = vmax.f32 %v5330_v11, 0.0 }
 0x66d   : > { %v5393_v45 = vmax.f32 %v5331_v21, 0.0  ;;  %v13542_v21 = vld [vmem:[#allocation37_spill] sm:$0xff] }
 0x66e   : > { %v4893_v15 = vpop.f32.mrb[120].mxu1 }
 0x66f   : > { %v6605_v38 = vpack.c.bf16 %v5393_v45, %v5392_v13  ;;  %v5223_v55 = vadd.f32 %v13534_v19, %v4893_v15  ;;  %v7924_v46 = vpop.f32.mrb[121].mxu1 }
 0x670   : > { %v4896_v31 = vpop.f32.mrb[122].mxu1 }
 0x671   : > { %6850 = vst [vmem:[%s12624_s18 + $0xb8] sm:$0xff] %v6605_v38   ;;  %v5332_v36 = vadd.f32 %v12607_v44, %v5223_v55  ;;  %v5226_v29 = vadd.f32 %v12564_v30, %v4896_v31  ;;  %v7925_v27 = vpop.f32.mrb[123].mxu1  ;;  %v13543_v31 = vld [vmem:[#allocation38_spill] sm:$0xff] }
 0x673   : > { %v5333_v51 = vadd.f32 %v12607_v44, %v5226_v29  ;;  %v5394_v59 = vmax.f32 %v5332_v36, 0.0 }
 0x675   : > { %v5395_v41 = vmax.f32 %v5333_v51, 0.0 }
 0x676   : > { %v4901_v2 = vpop.f32.mrb[124].mxu1 }
 0x677   : > { %v6610_v1 = vpack.c.bf16 %v5395_v41, %v5394_v59  ;;  %v5231_v6 = vadd.f32 %v13535_v3, %v4901_v2  ;;  %v7928_v54 = vpop.f32.mrb[125].mxu1  ;;  %v13544_v59 = vld [vmem:[#allocation39_spill] sm:$0xff] }
 0x678   : > { %v4904_v17 = vpop.f32.mrb[126].mxu1 }
 0x679   : > { %6851 = vst [vmem:[%s12624_s18 + $0xc0] sm:$0xff] %v6610_v1   ;;  %v5334_v22 = vadd.f32 %v12607_v44, %v5231_v6  ;;  %v5234_v42 = vadd.f32 %v13536_v5, %v4904_v17  ;;  %v7929_v18 = vpop.f32.mrb[127].mxu1 }
 0x67b   : > { %v5335_v30 = vadd.f32 %v12607_v44, %v5234_v42  ;;  %v5396_v24 = vmax.f32 %v5334_v22, 0.0 }
 0x67d   : > { %v5397_v58 = vmax.f32 %v5335_v30, 0.0 }
 0x67e   : > { %v4909_v34 = vpop.f32.mrb[128].mxu1 }
 0x67f   : > { %v6615_v12 = vpack.c.bf16 %v5397_v58, %v5396_v24  ;;  %v5239_v49 = vadd.f32 %v13537_v33, %v4909_v34  ;;  %v7932_v48 = vpop.f32.mrb[129].mxu1 }
 0x680   : > { %v4912_v43 = vpop.f32.mrb[130].mxu1 }
 0x681   : > { %6852 = vst [vmem:[%s12624_s18 + $0xc8] sm:$0xff] %v6615_v12   ;;  %v5336_v40 = vadd.f32 %v12607_v44, %v5239_v49  ;;  %v5242_v20 = vadd.f32 %v13538_v50, %v4912_v43  ;;  %v7933_v9 = vpop.f32.mrb[131].mxu1 }
 0x683   : > { %v5337_v62 = vadd.f32 %v12607_v44, %v5242_v20  ;;  %v5398_v8 = vmax.f32 %v5336_v40, 0.0 }
 0x685   : > { %v5399_v28 = vmax.f32 %v5337_v62, 0.0 }
 0x686   : > { %v4917_v35 = vpop.f32.mrb[132].mxu1 }
 0x687   : > { %v6620_v25 = vpack.c.bf16 %v5399_v28, %v5398_v8  ;;  %v5247_v57 = vadd.f32 %v13539_v37, %v4917_v35  ;;  %v7936_v52 = vpop.f32.mrb[133].mxu1 }
 0x688   : > { %v4920_v16 = vpop.f32.mrb[134].mxu1 }
 0x689   : > { %6853 = vst [vmem:[%s12624_s18 + $0xd0] sm:$0xff] %v6620_v25   ;;  %v5338_v14 = vadd.f32 %v12607_v44, %v5247_v57  ;;  %v5250_v32 = vadd.f32 %v13540_v4, %v4920_v16  ;;  %v7937_v23 = vpop.f32.mrb[135].mxu1 }
 0x68b   : > { %v5339_v63 = vadd.f32 %v12607_v44, %v5250_v32  ;;  %v5400_v0 = vmax.f32 %v5338_v14, 0.0 }
 0x68d   : > { %v5401_v61 = vmax.f32 %v5339_v63, 0.0 }
 0x68e   : > { %v4925_v39 = vpop.f32.mrb[136].mxu1 }
 0x68f   : > { %v6625_v47 = vpack.c.bf16 %v5401_v61, %v5400_v0  ;;  %v5255_v56 = vadd.f32 %v13541_v26, %v4925_v39  ;;  %v7940_v11 = vpop.f32.mrb[137].mxu1 }
 0x690   : > { %v4928_v10 = vpop.f32.mrb[138].mxu1 }
 0x691   : > { %6854 = vst [vmem:[%s12624_s18 + $0xd8] sm:$0xff] %v6625_v47   ;;  %v5340_v7 = vadd.f32 %v12607_v44, %v5255_v56  ;;  %v5258_v13 = vadd.f32 %v13542_v21, %v4928_v10  ;;  %v7941_v45 = vpop.f32.mrb[139].mxu1 }
 0x693   : > { %v5341_v15 = vadd.f32 %v12607_v44, %v5258_v13  ;;  %v5402_v38 = vmax.f32 %v5340_v7, 0.0 }
 0x695   : > { %v5403_v19 = vmax.f32 %v5341_v15, 0.0 }
 0x696   : > { %v4933_v55 = vpop.f32.mrb[140].mxu1 }
 0x697   : > { %v6630_v46 = vpack.c.bf16 %v5403_v19, %v5402_v38  ;;  %v5263_v36 = vadd.f32 %v13543_v31, %v4933_v55  ;;  %v7944_v29 = vpop.f32.mrb[141].mxu1 }
 0x698   : > { %v4936_v27 = vpop.f32.mrb[142].mxu1 }
 0x699   : > { %6855 = vst [vmem:[%s12624_s18 + $0xe0] sm:$0xff] %v6630_v46   ;;  %v5342_v51 = vadd.f32 %v12607_v44, %v5263_v36  ;;  %v5266_v41 = vadd.f32 %v13544_v59, %v4936_v27  ;;  %v7945_v2 = vpop.f32.mrb[143].mxu1 }
 0x69b   : > { %v5343_v1 = vadd.f32 %v12607_v44, %v5266_v41  ;;  %v5404_v3 = vmax.f32 %v5342_v51, 0.0 }
 0x69d   : > { %v5405_v6 = vmax.f32 %v5343_v1, 0.0 }
 0x69e   : > { %v4941_v54 = vpop.f32.mrb[144].mxu1 }
 0x69f   : > { %v6635_v17 = vpack.c.bf16 %v5405_v6, %v5404_v3  ;;  %v5271_v22 = vadd.f32 %v12609_v60, %v4941_v54  ;;  %v7948_v5 = vpop.f32.mrb[145].mxu1 }
 0x6a0   : > { %v4944_v42 = vpop.f32.mrb[146].mxu1 }
 0x6a1   : > { %6856 = vst [vmem:[%s12624_s18 + $0xe8] sm:$0xff] %v6635_v17   ;;  %v5344_v18 = vadd.f32 %v12607_v44, %v5271_v22  ;;  %v5274_v30 = vadd.f32 %v12612_v53, %v4944_v42  ;;  %v7949_v24 = vpop.f32.mrb[147].mxu1 }
 0x6a3   : > { %v5345_v58 = vadd.f32 %v12607_v44, %v5274_v30  ;;  %v5406_v34 = vmax.f32 %v5344_v18, 0.0 }
 0x6a5   : > { %v5407_v12 = vmax.f32 %v5345_v58, 0.0 }
 0x6a7   : > { %v6640_v33 = vpack.c.bf16 %v5407_v12, %v5406_v34 }
 0x6a9   : > { %6857 = vst [vmem:[%s12624_s18 + $0xf0] sm:$0xff] %v6640_v33  }
 0x6aa PF: > { %s23_s25 = sadd.s32 1, %s8222_s25  }
 0x6ab   : > { %p20_p4 = scmp.ge.s32.totalorder %s23_s25, 4  }
 0x6ad   :  { %22 = sbr.rel (!%p20_p4) target bundleno = 1 (0x1), region = 102 }

</bundles_post_ra>
